<compile_context>
chip_gen: v6e
topology: v6e:2x2x1
jax: 0.10.0
libtpu: 0.0.40
codegen_flags: <defaults>
</compile_context>

<pallas_src>
import functools
import math

import jax
import jax.numpy as jnp
from jax.experimental import pallas as pl
from jax.experimental.pallas import tpu as pltpu

ENC_DIMS = [720, 540, 400, 300, 225, 150, 100, 60, 45]
DEC_HIDDEN = [45, 60, 100, 150, 225, 300, 400, 540, 720]


def _round_up(x, m):
    return ((x + m - 1) // m) * m


def _layer_dims(z_dim):
    """(fan_in, fan_out, relu) for the 18 fused layers (fc_mu|fc_logvar merged)."""
    dims = []
    for i in range(len(ENC_DIMS) - 1):                       # 8 encoder Linears
        dims.append((ENC_DIMS[i], ENC_DIMS[i + 1], i < len(ENC_DIMS) - 2))
    dims.append((ENC_DIMS[-1], 2 * z_dim, False))            # merged fc_mu|fc_logvar
    dd = [z_dim] + DEC_HIDDEN                                 # 9 decoder Linears
    for i in range(len(dd) - 1):
        dims.append((dd[i], dd[i + 1], i < len(dd) - 2))
    return dims


# ---------------------------------------------------------------------------
# Fused Pallas kernel: full VAE forward in one invocation, with manual
# double-buffered weight streaming (prefetch layer i+1 while computing layer i).
# ---------------------------------------------------------------------------
def fused_vae_kernel(*refs, layers, z_dim, merged_idx):
    n_layers = len(layers)
    x_ref, eps_ref, b_ref = refs[0], refs[1], refs[2]
    w_hbm = refs[3:3 + n_layers]                      # HBM refs (memory_space=ANY)
    recon_ref, mu_ref, logvar_ref = refs[3 + n_layers:6 + n_layers]
    wbuf, sem = refs[6 + n_layers], refs[7 + n_layers]  # VMEM double buffer + sems

    def weight_copy(i, slot):
        _, _, pin, pout, _, _ = layers[i]
        return pltpu.make_async_copy(
            w_hbm[i], wbuf.at[slot, :pin, :pout], sem.at[slot])

    # Prime the pipeline: start streaming layer 0's weights immediately.
    weight_copy(0, 0).start()

    a = x_ref[...]
    mu = logvar = None

    for i in range(n_layers):                         # fully unrolled (static)
        fi, fo, pin, pout, boff, relu = layers[i]
        slot = i & 1
        # Prefetch layer i+1 into the other buffer while layer i computes.
        if i + 1 < n_layers:
            weight_copy(i + 1, 1 - slot).start()
        weight_copy(i, slot).wait()

        # MXU matmul with bf16 operands, f32 accumulation; bias/ReLU stay f32.
        w = wbuf[slot, :fi, :fo]
        y = jnp.dot(a.astype(w.dtype), w, preferred_element_type=jnp.float32)
        y = y + b_ref[:, boff:boff + fo]
        if relu:
            y = jnp.maximum(y, 0.0)
        a = y

        if i == merged_idx:
            # Split merged fc_mu | fc_logvar, then reparameterize:
            # z = mu + eps * exp(0.5 * logvar).  (No clamp on logvar — matches
            # the PyTorch reference semantics.)
            mu = a[:, :z_dim]
            logvar = a[:, z_dim:2 * z_dim]
            a = mu + eps_ref[...] * jnp.exp(0.5 * logvar)

    recon_ref[...] = a.astype(recon_ref.dtype)
    mu_ref[...] = mu.astype(mu_ref.dtype)
    logvar_ref[...] = logvar.astype(logvar_ref.dtype)


def vae_forward(params, x, eps):
    B = x.shape[0]
    z_dim = eps.shape[1]
    weights = params["w"]        # list of 18 zero-padded bf16 (pin, pout) arrays
    b_packed = params["b"]       # (1, total_padded_out) f32, 128-aligned offsets

    dims = _layer_dims(z_dim)
    assert len(weights) == len(dims)

    meta = []
    off = 0
    for (fi, fo, relu), w in zip(dims, weights):
        pin, pout = w.shape
        meta.append((fi, fo, pin, pout, off, relu))
        off += _round_up(fo, 128)
    meta = tuple(meta)
    assert b_packed.shape == (1, off)

    max_pin = max(m[2] for m in meta)
    max_pout = max(m[3] for m in meta)

    inputs = [x, eps, b_packed] + list(weights)

    out_shape = (
        jax.ShapeDtypeStruct((B, DEC_HIDDEN[-1]), jnp.float32),  # reconstruction
        jax.ShapeDtypeStruct((B, z_dim), jnp.float32),           # mu
        jax.ShapeDtypeStruct((B, z_dim), jnp.float32),           # logvar
    )

    flops = sum(2 * B * fi * fo for (fi, fo, _) in dims)
    bytes_in = sum(int(a.size) * a.dtype.itemsize for a in inputs)
    bytes_out = sum(math.prod(o.shape) * jnp.dtype(o.dtype).itemsize
                    for o in out_shape)
    cost = pl.CostEstimate(flops=flops,
                           transcendentals=B * z_dim,
                           bytes_accessed=bytes_in + bytes_out)

    kernel = functools.partial(fused_vae_kernel, layers=meta, z_dim=z_dim,
                               merged_idx=len(ENC_DIMS) - 1)

    return pl.pallas_call(
        kernel,
        out_shape=out_shape,
        in_specs=([pl.BlockSpec(memory_space=pltpu.MemorySpace.VMEM)] * 3     # x, eps, biases
                  + [pl.BlockSpec(memory_space=pl.ANY)] * len(weights)),      # weights stay in HBM
        out_specs=tuple(pl.BlockSpec(memory_space=pltpu.MemorySpace.VMEM)
                        for _ in out_shape),
        scratch_shapes=[
            pltpu.VMEM((2, max_pin, max_pout), jnp.bfloat16),  # weight double buffer (~2.2 MB)
            pltpu.SemaphoreType.DMA((2,)),
        ],
        compiler_params=pltpu.CompilerParams(
            # Working set (~3 MB: double buffer + activations + bias pack) fits the
            # default scoped VMEM everywhere; 32 MiB keeps headroom and stays well
            # under v7x's 64 MiB physical VMEM.  Do not raise further.
            vmem_limit_bytes=32 * 1024 * 1024),
        cost_estimate=cost,
    )(*inputs)


# ---------------------------------------------------------------------------
# Pure-JAX reference mirroring the kernel's math (same bf16 weights / operand
# casts) — used as a cross-check of the Pallas plumbing (DMA, slicing, packing).
# ---------------------------------------------------------------------------
def vae_reference(params, x, eps):
    z_dim = eps.shape[1]
    dims = _layer_dims(z_dim)
    merged_idx = len(ENC_DIMS) - 1
    b_packed = params["b"]
    a = x
    mu = logvar = None
    off = 0
    for i, ((fi, fo, relu), w) in enumerate(zip(dims, params["w"])):
        y = jnp.dot(a.astype(w.dtype), w[:fi, :fo],
                    preferred_element_type=jnp.float32)
        y = y + b_packed[:, off:off + fo]
        if relu:
            y = jnp.maximum(y, 0.0)
        a = y
        if i == merged_idx:
            mu = a[:, :z_dim]
            logvar = a[:, z_dim:2 * z_dim]
            a = mu + eps * jnp.exp(0.5 * logvar)
        off += _round_up(fo, 128)
    return a, mu, logvar


# ---------------------------------------------------------------------------
# Parameter init (mirrors the spec: explicit kaiming_uniform_(a=0) on weights,
# nn.Linear default bias init).  Weights stored bf16 and zero-padded to tile-
# aligned shapes; biases packed into one f32 buffer with 128-aligned offsets.
# ---------------------------------------------------------------------------
def _init_linear(key, fan_in, fan_out):
    kw, kb = jax.random.split(key)
    bound_w = (6.0 / fan_in) ** 0.5          # kaiming_uniform_ (a=0, fan_in)
    bound_b = 1.0 / (fan_in ** 0.5)          # nn.Linear default bias init
    w = jax.random.uniform(kw, (fan_in, fan_out), jnp.float32, -bound_w, bound_w)
    b = jax.random.uniform(kb, (fan_out,), jnp.float32, -bound_b, bound_b)
    return w, b


def init_params(key, z_dim, w_dtype=jnp.bfloat16):
    dims = _layer_dims(z_dim)
    merged_idx = len(ENC_DIMS) - 1

    keys = jax.random.split(key, len(dims) + 1)   # merged layer uses two keys
    raw = []
    ki = 0
    for i, (fi, fo, _) in enumerate(dims):
        if i == merged_idx:
            # fc_mu and fc_logvar are initialized separately (as in the spec),
            # then concatenated into a single (45, 2*z_dim) layer.
            w_mu, b_mu = _init_linear(keys[ki], fi, z_dim); ki += 1
            w_lv, b_lv = _init_linear(keys[ki], fi, z_dim); ki += 1
            raw.append((jnp.concatenate([w_mu, w_lv], axis=1),
                        jnp.concatenate([b_mu, b_lv], axis=0)))
        else:
            raw.append(_init_linear(keys[ki], fi, fo)); ki += 1

    weights = []
    total = sum(_round_up(fo, 128) for (_, fo, _) in dims)
    b_packed = jnp.zeros((1, total), jnp.float32)
    off = 0
    for (fi, fo, _), (w, b) in zip(dims, raw):
        pin, pout = _round_up(fi, 16), _round_up(fo, 128)
        wp = jnp.zeros((pin, pout), jnp.float32).at[:fi, :fo].set(w)
        weights.append(wp.astype(w_dtype))
        b_packed = b_packed.at[0, off:off + fo].set(b)
        off += _round_up(fo, 128)

    return {"w": weights, "b": b_packed}


# ---------------------------------------------------------------------------
if __name__ == "__main__":
    z_dim = 20
    batch = 8

    key = jax.random.PRNGKey(0)
    k_params, k_x, k_eps = jax.random.split(key, 3)

    params = init_params(k_params, z_dim)
    x = jax.random.normal(k_x, (batch, 720), dtype=jnp.float32)
    # eps ~ N(0,1): the randn_like() draw of the reparameterization trick.
    eps = jax.random.normal(k_eps, (batch, z_dim), dtype=jnp.float32)

    recon, mu, logvar = jax.jit(vae_forward)(params, x, eps)
    jax.block_until_ready((recon, mu, logvar))

    assert recon.shape == (batch, 720)
    assert mu.shape == (batch, z_dim)
    assert logvar.shape == (batch, z_dim)
    assert bool(jnp.isfinite(recon).all())
    assert bool(jnp.isfinite(mu).all())
    assert bool(jnp.isfinite(logvar).all())

    # Cross-check against a pure-JAX reference with identical numerics.
    r2, m2, lv2 = jax.jit(vae_reference)(params, x, eps)
    assert bool(jnp.allclose(recon, r2, rtol=2e-2, atol=2e-2))
    assert bool(jnp.allclose(mu, m2, rtol=2e-2, atol=2e-2))
    assert bool(jnp.allclose(logvar, lv2, rtol=2e-2, atol=2e-2))

    print("KERNEL_OK")
</pallas_src>

<mosaic_0001>
module attributes {stable_mosaic.version = 11 : i64} {
  func.func @fused_vae_kernel(%arg0: memref<8x720xf32, #tpu.memory_space<vmem>>, %arg1: memref<8x20xf32, #tpu.memory_space<vmem>>, %arg2: memref<1x5760xf32, #tpu.memory_space<vmem>>, %arg3: memref<720x640xbf16, #tpu.memory_space<any>>, %arg4: memref<544x512xbf16, #tpu.memory_space<any>>, %arg5: memref<400x384xbf16, #tpu.memory_space<any>>, %arg6: memref<304x256xbf16, #tpu.memory_space<any>>, %arg7: memref<240x256xbf16, #tpu.memory_space<any>>, %arg8: memref<160x128xbf16, #tpu.memory_space<any>>, %arg9: memref<112x128xbf16, #tpu.memory_space<any>>, %arg10: memref<64x128xbf16, #tpu.memory_space<any>>, %arg11: memref<48x128xbf16, #tpu.memory_space<any>>, %arg12: memref<32x128xbf16, #tpu.memory_space<any>>, %arg13: memref<48x128xbf16, #tpu.memory_space<any>>, %arg14: memref<64x128xbf16, #tpu.memory_space<any>>, %arg15: memref<112x256xbf16, #tpu.memory_space<any>>, %arg16: memref<160x256xbf16, #tpu.memory_space<any>>, %arg17: memref<240x384xbf16, #tpu.memory_space<any>>, %arg18: memref<304x512xbf16, #tpu.memory_space<any>>, %arg19: memref<400x640xbf16, #tpu.memory_space<any>>, %arg20: memref<544x768xbf16, #tpu.memory_space<any>>, %arg21: memref<8x720xf32, #tpu.memory_space<vmem>>, %arg22: memref<8x20xf32, #tpu.memory_space<vmem>>, %arg23: memref<8x20xf32, #tpu.memory_space<vmem>>, %arg24: memref<2x720x768xbf16, #tpu.memory_space<vmem>>, %arg25: memref<2x!tpu.dma_semaphore, #tpu.memory_space<semaphore_mem>>) attributes {dimension_semantics = [], scalar_prefetch = 0 : i64, scratch_operands = 2 : i64, tpu.core_type = #tpu.core_type<tc>} {
    %c0_i32 = arith.constant 0 : i32
    %c0_i32_0 = arith.constant 0 : i32
    %c0_i32_1 = arith.constant 0 : i32
    %c0_i32_2 = arith.constant 0 : i32
    %0 = tpu.memref_slice %arg24[%c0_i32, %c0_i32_1, %c0_i32_2] : memref<2x720x768xbf16, #tpu.memory_space<vmem>> -> memref<1x720x640xbf16, #tpu.memory_space<vmem>>
    %1 = tpu.memref_squeeze %0 : memref<1x720x640xbf16, #tpu.memory_space<vmem>> -> memref<720x640xbf16, #tpu.memory_space<vmem>>
    %2 = tpu.memref_slice %arg25[%c0_i32_0] : memref<2x!tpu.dma_semaphore, #tpu.memory_space<semaphore_mem>> -> memref<1x!tpu.dma_semaphore, #tpu.memory_space<semaphore_mem>>
    %3 = tpu.memref_squeeze %2 : memref<1x!tpu.dma_semaphore, #tpu.memory_space<semaphore_mem>> -> memref<!tpu.dma_semaphore, #tpu.memory_space<semaphore_mem>>
    tpu.enqueue_dma source(%arg3 : memref<720x640xbf16, #tpu.memory_space<any>>) target(%1 : memref<720x640xbf16, #tpu.memory_space<vmem>>) target_semaphore(%3 : memref<!tpu.dma_semaphore, #tpu.memory_space<semaphore_mem>>)
    %c0 = arith.constant 0 : index
    %c0_3 = arith.constant 0 : index
    %4 = vector.load %arg0[%c0, %c0_3] : memref<8x720xf32, #tpu.memory_space<vmem>>, vector<8x720xf32>
    %c1_i32 = arith.constant 1 : i32
    %c1_i32_4 = arith.constant 1 : i32
    %c0_i32_5 = arith.constant 0 : i32
    %c0_i32_6 = arith.constant 0 : i32
    %5 = tpu.memref_slice %arg24[%c1_i32, %c0_i32_5, %c0_i32_6] : memref<2x720x768xbf16, #tpu.memory_space<vmem>> -> memref<1x544x512xbf16, #tpu.memory_space<vmem>>
    %6 = tpu.memref_squeeze %5 : memref<1x544x512xbf16, #tpu.memory_space<vmem>> -> memref<544x512xbf16, #tpu.memory_space<vmem>>
    %7 = tpu.memref_slice %arg25[%c1_i32_4] : memref<2x!tpu.dma_semaphore, #tpu.memory_space<semaphore_mem>> -> memref<1x!tpu.dma_semaphore, #tpu.memory_space<semaphore_mem>>
    %8 = tpu.memref_squeeze %7 : memref<1x!tpu.dma_semaphore, #tpu.memory_space<semaphore_mem>> -> memref<!tpu.dma_semaphore, #tpu.memory_space<semaphore_mem>>
    tpu.enqueue_dma source(%arg4 : memref<544x512xbf16, #tpu.memory_space<any>>) target(%6 : memref<544x512xbf16, #tpu.memory_space<vmem>>) target_semaphore(%8 : memref<!tpu.dma_semaphore, #tpu.memory_space<semaphore_mem>>)
    %c0_i32_7 = arith.constant 0 : i32
    %c0_i32_8 = arith.constant 0 : i32
    %c0_i32_9 = arith.constant 0 : i32
    %c0_i32_10 = arith.constant 0 : i32
    %9 = tpu.memref_slice %arg24[%c0_i32_7, %c0_i32_9, %c0_i32_10] : memref<2x720x768xbf16, #tpu.memory_space<vmem>> -> memref<1x720x640xbf16, #tpu.memory_space<vmem>>
    %10 = tpu.memref_squeeze %9 : memref<1x720x640xbf16, #tpu.memory_space<vmem>> -> memref<720x640xbf16, #tpu.memory_space<vmem>>
    %11 = tpu.memref_slice %arg25[%c0_i32_8] : memref<2x!tpu.dma_semaphore, #tpu.memory_space<semaphore_mem>> -> memref<1x!tpu.dma_semaphore, #tpu.memory_space<semaphore_mem>>
    %12 = tpu.memref_squeeze %11 : memref<1x!tpu.dma_semaphore, #tpu.memory_space<semaphore_mem>> -> memref<!tpu.dma_semaphore, #tpu.memory_space<semaphore_mem>>
    tpu.wait_dma2 semaphore(%12 : memref<!tpu.dma_semaphore, #tpu.memory_space<semaphore_mem>>) src(%arg3 : memref<720x640xbf16, #tpu.memory_space<any>>) dst(%10 : memref<720x640xbf16, #tpu.memory_space<vmem>>)
    %c0_11 = arith.constant 0 : index
    %c0_12 = arith.constant 0 : index
    %c0_13 = arith.constant 0 : index
    %13 = vector.load %arg24[%c0_11, %c0_12, %c0_13] : memref<2x720x768xbf16, #tpu.memory_space<vmem>>, vector<1x720x540xbf16>
    %14 = vector.shape_cast %13 : vector<1x720x540xbf16> to vector<720x540xbf16>
    %15 = arith.truncf %4 : vector<8x720xf32> to vector<8x720xbf16>
    %cst = arith.constant dense<0.000000e+00> : vector<8x540xf32>
    %16 = tpu.matmul %15, %14, %cst {dimension_numbers = #tpu.dot_dimension_numbers<[1], [0], [0], [1], [0, 0, 1, 1], [], []>} : vector<8x720xbf16>, vector<720x540xbf16>, vector<8x540xf32> -> vector<8x540xf32>
    %c0_14 = arith.constant 0 : index
    %c0_15 = arith.constant 0 : index
    %17 = vector.load %arg2[%c0_14, %c0_15] : memref<1x5760xf32, #tpu.memory_space<vmem>>, vector<1x540xf32>
    %18 = vector.broadcast %17 : vector<1x540xf32> to vector<8x540xf32>
    %19 = arith.addf %16, %18 : vector<8x540xf32>
    %cst_16 = arith.constant 0.000000e+00 : f32
    %20 = vector.broadcast %cst_16 : f32 to vector<8x540xf32>
    %21 = arith.maximumf %19, %20 : vector<8x540xf32>
    %c0_i32_17 = arith.constant 0 : i32
    %c0_i32_18 = arith.constant 0 : i32
    %c0_i32_19 = arith.constant 0 : i32
    %c0_i32_20 = arith.constant 0 : i32
    %22 = tpu.memref_slice %arg24[%c0_i32_17, %c0_i32_19, %c0_i32_20] : memref<2x720x768xbf16, #tpu.memory_space<vmem>> -> memref<1x400x384xbf16, #tpu.memory_space<vmem>>
    %23 = tpu.memref_squeeze %22 : memref<1x400x384xbf16, #tpu.memory_space<vmem>> -> memref<400x384xbf16, #tpu.memory_space<vmem>>
    %24 = tpu.memref_slice %arg25[%c0_i32_18] : memref<2x!tpu.dma_semaphore, #tpu.memory_space<semaphore_mem>> -> memref<1x!tpu.dma_semaphore, #tpu.memory_space<semaphore_mem>>
    %25 = tpu.memref_squeeze %24 : memref<1x!tpu.dma_semaphore, #tpu.memory_space<semaphore_mem>> -> memref<!tpu.dma_semaphore, #tpu.memory_space<semaphore_mem>>
    tpu.enqueue_dma source(%arg5 : memref<400x384xbf16, #tpu.memory_space<any>>) target(%23 : memref<400x384xbf16, #tpu.memory_space<vmem>>) target_semaphore(%25 : memref<!tpu.dma_semaphore, #tpu.memory_space<semaphore_mem>>)
    %c1_i32_21 = arith.constant 1 : i32
    %c1_i32_22 = arith.constant 1 : i32
    %c0_i32_23 = arith.constant 0 : i32
    %c0_i32_24 = arith.constant 0 : i32
    %26 = tpu.memref_slice %arg24[%c1_i32_21, %c0_i32_23, %c0_i32_24] : memref<2x720x768xbf16, #tpu.memory_space<vmem>> -> memref<1x544x512xbf16, #tpu.memory_space<vmem>>
    %27 = tpu.memref_squeeze %26 : memref<1x544x512xbf16, #tpu.memory_space<vmem>> -> memref<544x512xbf16, #tpu.memory_space<vmem>>
    %28 = tpu.memref_slice %arg25[%c1_i32_22] : memref<2x!tpu.dma_semaphore, #tpu.memory_space<semaphore_mem>> -> memref<1x!tpu.dma_semaphore, #tpu.memory_space<semaphore_mem>>
    %29 = tpu.memref_squeeze %28 : memref<1x!tpu.dma_semaphore, #tpu.memory_space<semaphore_mem>> -> memref<!tpu.dma_semaphore, #tpu.memory_space<semaphore_mem>>
    tpu.wait_dma2 semaphore(%29 : memref<!tpu.dma_semaphore, #tpu.memory_space<semaphore_mem>>) src(%arg4 : memref<544x512xbf16, #tpu.memory_space<any>>) dst(%27 : memref<544x512xbf16, #tpu.memory_space<vmem>>)
    %c1 = arith.constant 1 : index
    %c0_25 = arith.constant 0 : index
    %c0_26 = arith.constant 0 : index
    %30 = vector.load %arg24[%c1, %c0_25, %c0_26] : memref<2x720x768xbf16, #tpu.memory_space<vmem>>, vector<1x540x400xbf16>
    %31 = vector.shape_cast %30 : vector<1x540x400xbf16> to vector<540x400xbf16>
    %32 = arith.truncf %21 : vector<8x540xf32> to vector<8x540xbf16>
    %cst_27 = arith.constant dense<0.000000e+00> : vector<8x400xf32>
    %33 = tpu.matmul %32, %31, %cst_27 {dimension_numbers = #tpu.dot_dimension_numbers<[1], [0], [0], [1], [0, 0, 1, 1], [], []>} : vector<8x540xbf16>, vector<540x400xbf16>, vector<8x400xf32> -> vector<8x400xf32>
    %c0_28 = arith.constant 0 : index
    %c640 = arith.constant 640 : index
    %34 = vector.load %arg2[%c0_28, %c640] : memref<1x5760xf32, #tpu.memory_space<vmem>>, vector<1x400xf32>
    %35 = vector.broadcast %34 : vector<1x400xf32> to vector<8x400xf32>
    %36 = arith.addf %33, %35 : vector<8x400xf32>
    %cst_29 = arith.constant 0.000000e+00 : f32
    %37 = vector.broadcast %cst_29 : f32 to vector<8x400xf32>
    %38 = arith.maximumf %36, %37 : vector<8x400xf32>
    %c1_i32_30 = arith.constant 1 : i32
    %c1_i32_31 = arith.constant 1 : i32
    %c0_i32_32 = arith.constant 0 : i32
    %c0_i32_33 = arith.constant 0 : i32
    %39 = tpu.memref_slice %arg24[%c1_i32_30, %c0_i32_32, %c0_i32_33] : memref<2x720x768xbf16, #tpu.memory_space<vmem>> -> memref<1x304x256xbf16, #tpu.memory_space<vmem>>
    %40 = tpu.memref_squeeze %39 : memref<1x304x256xbf16, #tpu.memory_space<vmem>> -> memref<304x256xbf16, #tpu.memory_space<vmem>>
    %41 = tpu.memref_slice %arg25[%c1_i32_31] : memref<2x!tpu.dma_semaphore, #tpu.memory_space<semaphore_mem>> -> memref<1x!tpu.dma_semaphore, #tpu.memory_space<semaphore_mem>>
    %42 = tpu.memref_squeeze %41 : memref<1x!tpu.dma_semaphore, #tpu.memory_space<semaphore_mem>> -> memref<!tpu.dma_semaphore, #tpu.memory_space<semaphore_mem>>
    tpu.enqueue_dma source(%arg6 : memref<304x256xbf16, #tpu.memory_space<any>>) target(%40 : memref<304x256xbf16, #tpu.memory_space<vmem>>) target_semaphore(%42 : memref<!tpu.dma_semaphore, #tpu.memory_space<semaphore_mem>>)
    %c0_i32_34 = arith.constant 0 : i32
    %c0_i32_35 = arith.constant 0 : i32
    %c0_i32_36 = arith.constant 0 : i32
    %c0_i32_37 = arith.constant 0 : i32
    %43 = tpu.memref_slice %arg24[%c0_i32_34, %c0_i32_36, %c0_i32_37] : memref<2x720x768xbf16, #tpu.memory_space<vmem>> -> memref<1x400x384xbf16, #tpu.memory_space<vmem>>
    %44 = tpu.memref_squeeze %43 : memref<1x400x384xbf16, #tpu.memory_space<vmem>> -> memref<400x384xbf16, #tpu.memory_space<vmem>>
    %45 = tpu.memref_slice %arg25[%c0_i32_35] : memref<2x!tpu.dma_semaphore, #tpu.memory_space<semaphore_mem>> -> memref<1x!tpu.dma_semaphore, #tpu.memory_space<semaphore_mem>>
    %46 = tpu.memref_squeeze %45 : memref<1x!tpu.dma_semaphore, #tpu.memory_space<semaphore_mem>> -> memref<!tpu.dma_semaphore, #tpu.memory_space<semaphore_mem>>
    tpu.wait_dma2 semaphore(%46 : memref<!tpu.dma_semaphore, #tpu.memory_space<semaphore_mem>>) src(%arg5 : memref<400x384xbf16, #tpu.memory_space<any>>) dst(%44 : memref<400x384xbf16, #tpu.memory_space<vmem>>)
    %c0_38 = arith.constant 0 : index
    %c0_39 = arith.constant 0 : index
    %c0_40 = arith.constant 0 : index
    %47 = vector.load %arg24[%c0_38, %c0_39, %c0_40] : memref<2x720x768xbf16, #tpu.memory_space<vmem>>, vector<1x400x300xbf16>
    %48 = vector.shape_cast %47 : vector<1x400x300xbf16> to vector<400x300xbf16>
    %49 = arith.truncf %38 : vector<8x400xf32> to vector<8x400xbf16>
    %cst_41 = arith.constant dense<0.000000e+00> : vector<8x300xf32>
    %50 = tpu.matmul %49, %48, %cst_41 {dimension_numbers = #tpu.dot_dimension_numbers<[1], [0], [0], [1], [0, 0, 1, 1], [], []>} : vector<8x400xbf16>, vector<400x300xbf16>, vector<8x300xf32> -> vector<8x300xf32>
    %c0_42 = arith.constant 0 : index
    %c1152 = arith.constant 1152 : index
    %51 = vector.load %arg2[%c0_42, %c1152] : memref<1x5760xf32, #tpu.memory_space<vmem>>, vector<1x300xf32>
    %52 = vector.broadcast %51 : vector<1x300xf32> to vector<8x300xf32>
    %53 = arith.addf %50, %52 : vector<8x300xf32>
    %cst_43 = arith.constant 0.000000e+00 : f32
    %54 = vector.broadcast %cst_43 : f32 to vector<8x300xf32>
    %55 = arith.maximumf %53, %54 : vector<8x300xf32>
    %c0_i32_44 = arith.constant 0 : i32
    %c0_i32_45 = arith.constant 0 : i32
    %c0_i32_46 = arith.constant 0 : i32
    %c0_i32_47 = arith.constant 0 : i32
    %56 = tpu.memref_slice %arg24[%c0_i32_44, %c0_i32_46, %c0_i32_47] : memref<2x720x768xbf16, #tpu.memory_space<vmem>> -> memref<1x240x256xbf16, #tpu.memory_space<vmem>>
    %57 = tpu.memref_squeeze %56 : memref<1x240x256xbf16, #tpu.memory_space<vmem>> -> memref<240x256xbf16, #tpu.memory_space<vmem>>
    %58 = tpu.memref_slice %arg25[%c0_i32_45] : memref<2x!tpu.dma_semaphore, #tpu.memory_space<semaphore_mem>> -> memref<1x!tpu.dma_semaphore, #tpu.memory_space<semaphore_mem>>
    %59 = tpu.memref_squeeze %58 : memref<1x!tpu.dma_semaphore, #tpu.memory_space<semaphore_mem>> -> memref<!tpu.dma_semaphore, #tpu.memory_space<semaphore_mem>>
    tpu.enqueue_dma source(%arg7 : memref<240x256xbf16, #tpu.memory_space<any>>) target(%57 : memref<240x256xbf16, #tpu.memory_space<vmem>>) target_semaphore(%59 : memref<!tpu.dma_semaphore, #tpu.memory_space<semaphore_mem>>)
    %c1_i32_48 = arith.constant 1 : i32
    %c1_i32_49 = arith.constant 1 : i32
    %c0_i32_50 = arith.constant 0 : i32
    %c0_i32_51 = arith.constant 0 : i32
    %60 = tpu.memref_slice %arg24[%c1_i32_48, %c0_i32_50, %c0_i32_51] : memref<2x720x768xbf16, #tpu.memory_space<vmem>> -> memref<1x304x256xbf16, #tpu.memory_space<vmem>>
    %61 = tpu.memref_squeeze %60 : memref<1x304x256xbf16, #tpu.memory_space<vmem>> -> memref<304x256xbf16, #tpu.memory_space<vmem>>
    %62 = tpu.memref_slice %arg25[%c1_i32_49] : memref<2x!tpu.dma_semaphore, #tpu.memory_space<semaphore_mem>> -> memref<1x!tpu.dma_semaphore, #tpu.memory_space<semaphore_mem>>
    %63 = tpu.memref_squeeze %62 : memref<1x!tpu.dma_semaphore, #tpu.memory_space<semaphore_mem>> -> memref<!tpu.dma_semaphore, #tpu.memory_space<semaphore_mem>>
    tpu.wait_dma2 semaphore(%63 : memref<!tpu.dma_semaphore, #tpu.memory_space<semaphore_mem>>) src(%arg6 : memref<304x256xbf16, #tpu.memory_space<any>>) dst(%61 : memref<304x256xbf16, #tpu.memory_space<vmem>>)
    %c1_52 = arith.constant 1 : index
    %c0_53 = arith.constant 0 : index
    %c0_54 = arith.constant 0 : index
    %64 = vector.load %arg24[%c1_52, %c0_53, %c0_54] : memref<2x720x768xbf16, #tpu.memory_space<vmem>>, vector<1x300x225xbf16>
    %65 = vector.shape_cast %64 : vector<1x300x225xbf16> to vector<300x225xbf16>
    %66 = arith.truncf %55 : vector<8x300xf32> to vector<8x300xbf16>
    %cst_55 = arith.constant dense<0.000000e+00> : vector<8x225xf32>
    %67 = tpu.matmul %66, %65, %cst_55 {dimension_numbers = #tpu.dot_dimension_numbers<[1], [0], [0], [1], [0, 0, 1, 1], [], []>} : vector<8x300xbf16>, vector<300x225xbf16>, vector<8x225xf32> -> vector<8x225xf32>
    %c0_56 = arith.constant 0 : index
    %c1536 = arith.constant 1536 : index
    %68 = vector.load %arg2[%c0_56, %c1536] : memref<1x5760xf32, #tpu.memory_space<vmem>>, vector<1x225xf32>
    %69 = vector.broadcast %68 : vector<1x225xf32> to vector<8x225xf32>
    %70 = arith.addf %67, %69 : vector<8x225xf32>
    %cst_57 = arith.constant 0.000000e+00 : f32
    %71 = vector.broadcast %cst_57 : f32 to vector<8x225xf32>
    %72 = arith.maximumf %70, %71 : vector<8x225xf32>
    %c1_i32_58 = arith.constant 1 : i32
    %c1_i32_59 = arith.constant 1 : i32
    %c0_i32_60 = arith.constant 0 : i32
    %c0_i32_61 = arith.constant 0 : i32
    %73 = tpu.memref_slice %arg24[%c1_i32_58, %c0_i32_60, %c0_i32_61] : memref<2x720x768xbf16, #tpu.memory_space<vmem>> -> memref<1x160x128xbf16, #tpu.memory_space<vmem>>
    %74 = tpu.memref_squeeze %73 : memref<1x160x128xbf16, #tpu.memory_space<vmem>> -> memref<160x128xbf16, #tpu.memory_space<vmem>>
    %75 = tpu.memref_slice %arg25[%c1_i32_59] : memref<2x!tpu.dma_semaphore, #tpu.memory_space<semaphore_mem>> -> memref<1x!tpu.dma_semaphore, #tpu.memory_space<semaphore_mem>>
    %76 = tpu.memref_squeeze %75 : memref<1x!tpu.dma_semaphore, #tpu.memory_space<semaphore_mem>> -> memref<!tpu.dma_semaphore, #tpu.memory_space<semaphore_mem>>
    tpu.enqueue_dma source(%arg8 : memref<160x128xbf16, #tpu.memory_space<any>>) target(%74 : memref<160x128xbf16, #tpu.memory_space<vmem>>) target_semaphore(%76 : memref<!tpu.dma_semaphore, #tpu.memory_space<semaphore_mem>>)
    %c0_i32_62 = arith.constant 0 : i32
    %c0_i32_63 = arith.constant 0 : i32
    %c0_i32_64 = arith.constant 0 : i32
    %c0_i32_65 = arith.constant 0 : i32
    %77 = tpu.memref_slice %arg24[%c0_i32_62, %c0_i32_64, %c0_i32_65] : memref<2x720x768xbf16, #tpu.memory_space<vmem>> -> memref<1x240x256xbf16, #tpu.memory_space<vmem>>
    %78 = tpu.memref_squeeze %77 : memref<1x240x256xbf16, #tpu.memory_space<vmem>> -> memref<240x256xbf16, #tpu.memory_space<vmem>>
    %79 = tpu.memref_slice %arg25[%c0_i32_63] : memref<2x!tpu.dma_semaphore, #tpu.memory_space<semaphore_mem>> -> memref<1x!tpu.dma_semaphore, #tpu.memory_space<semaphore_mem>>
    %80 = tpu.memref_squeeze %79 : memref<1x!tpu.dma_semaphore, #tpu.memory_space<semaphore_mem>> -> memref<!tpu.dma_semaphore, #tpu.memory_space<semaphore_mem>>
    tpu.wait_dma2 semaphore(%80 : memref<!tpu.dma_semaphore, #tpu.memory_space<semaphore_mem>>) src(%arg7 : memref<240x256xbf16, #tpu.memory_space<any>>) dst(%78 : memref<240x256xbf16, #tpu.memory_space<vmem>>)
    %c0_66 = arith.constant 0 : index
    %c0_67 = arith.constant 0 : index
    %c0_68 = arith.constant 0 : index
    %81 = vector.load %arg24[%c0_66, %c0_67, %c0_68] : memref<2x720x768xbf16, #tpu.memory_space<vmem>>, vector<1x225x150xbf16>
    %82 = vector.shape_cast %81 : vector<1x225x150xbf16> to vector<225x150xbf16>
    %83 = arith.truncf %72 : vector<8x225xf32> to vector<8x225xbf16>
    %cst_69 = arith.constant dense<0.000000e+00> : vector<8x150xf32>
    %84 = tpu.matmul %83, %82, %cst_69 {dimension_numbers = #tpu.dot_dimension_numbers<[1], [0], [0], [1], [0, 0, 1, 1], [], []>} : vector<8x225xbf16>, vector<225x150xbf16>, vector<8x150xf32> -> vector<8x150xf32>
    %c0_70 = arith.constant 0 : index
    %c1792 = arith.constant 1792 : index
    %85 = vector.load %arg2[%c0_70, %c1792] : memref<1x5760xf32, #tpu.memory_space<vmem>>, vector<1x150xf32>
    %86 = vector.broadcast %85 : vector<1x150xf32> to vector<8x150xf32>
    %87 = arith.addf %84, %86 : vector<8x150xf32>
    %cst_71 = arith.constant 0.000000e+00 : f32
    %88 = vector.broadcast %cst_71 : f32 to vector<8x150xf32>
    %89 = arith.maximumf %87, %88 : vector<8x150xf32>
    %c0_i32_72 = arith.constant 0 : i32
    %c0_i32_73 = arith.constant 0 : i32
    %c0_i32_74 = arith.constant 0 : i32
    %c0_i32_75 = arith.constant 0 : i32
    %90 = tpu.memref_slice %arg24[%c0_i32_72, %c0_i32_74, %c0_i32_75] : memref<2x720x768xbf16, #tpu.memory_space<vmem>> -> memref<1x112x128xbf16, #tpu.memory_space<vmem>>
    %91 = tpu.memref_squeeze %90 : memref<1x112x128xbf16, #tpu.memory_space<vmem>> -> memref<112x128xbf16, #tpu.memory_space<vmem>>
    %92 = tpu.memref_slice %arg25[%c0_i32_73] : memref<2x!tpu.dma_semaphore, #tpu.memory_space<semaphore_mem>> -> memref<1x!tpu.dma_semaphore, #tpu.memory_space<semaphore_mem>>
    %93 = tpu.memref_squeeze %92 : memref<1x!tpu.dma_semaphore, #tpu.memory_space<semaphore_mem>> -> memref<!tpu.dma_semaphore, #tpu.memory_space<semaphore_mem>>
    tpu.enqueue_dma source(%arg9 : memref<112x128xbf16, #tpu.memory_space<any>>) target(%91 : memref<112x128xbf16, #tpu.memory_space<vmem>>) target_semaphore(%93 : memref<!tpu.dma_semaphore, #tpu.memory_space<semaphore_mem>>)
    %c1_i32_76 = arith.constant 1 : i32
    %c1_i32_77 = arith.constant 1 : i32
    %c0_i32_78 = arith.constant 0 : i32
    %c0_i32_79 = arith.constant 0 : i32
    %94 = tpu.memref_slice %arg24[%c1_i32_76, %c0_i32_78, %c0_i32_79] : memref<2x720x768xbf16, #tpu.memory_space<vmem>> -> memref<1x160x128xbf16, #tpu.memory_space<vmem>>
    %95 = tpu.memref_squeeze %94 : memref<1x160x128xbf16, #tpu.memory_space<vmem>> -> memref<160x128xbf16, #tpu.memory_space<vmem>>
    %96 = tpu.memref_slice %arg25[%c1_i32_77] : memref<2x!tpu.dma_semaphore, #tpu.memory_space<semaphore_mem>> -> memref<1x!tpu.dma_semaphore, #tpu.memory_space<semaphore_mem>>
    %97 = tpu.memref_squeeze %96 : memref<1x!tpu.dma_semaphore, #tpu.memory_space<semaphore_mem>> -> memref<!tpu.dma_semaphore, #tpu.memory_space<semaphore_mem>>
    tpu.wait_dma2 semaphore(%97 : memref<!tpu.dma_semaphore, #tpu.memory_space<semaphore_mem>>) src(%arg8 : memref<160x128xbf16, #tpu.memory_space<any>>) dst(%95 : memref<160x128xbf16, #tpu.memory_space<vmem>>)
    %c1_80 = arith.constant 1 : index
    %c0_81 = arith.constant 0 : index
    %c0_82 = arith.constant 0 : index
    %98 = vector.load %arg24[%c1_80, %c0_81, %c0_82] : memref<2x720x768xbf16, #tpu.memory_space<vmem>>, vector<1x150x100xbf16>
    %99 = vector.shape_cast %98 : vector<1x150x100xbf16> to vector<150x100xbf16>
    %100 = arith.truncf %89 : vector<8x150xf32> to vector<8x150xbf16>
    %cst_83 = arith.constant dense<0.000000e+00> : vector<8x100xf32>
    %101 = tpu.matmul %100, %99, %cst_83 {dimension_numbers = #tpu.dot_dimension_numbers<[1], [0], [0], [1], [0, 0, 1, 1], [], []>} : vector<8x150xbf16>, vector<150x100xbf16>, vector<8x100xf32> -> vector<8x100xf32>
    %c0_84 = arith.constant 0 : index
    %c2048 = arith.constant 2048 : index
    %102 = vector.load %arg2[%c0_84, %c2048] : memref<1x5760xf32, #tpu.memory_space<vmem>>, vector<1x100xf32>
    %103 = vector.broadcast %102 : vector<1x100xf32> to vector<8x100xf32>
    %104 = arith.addf %101, %103 : vector<8x100xf32>
    %cst_85 = arith.constant 0.000000e+00 : f32
    %105 = vector.broadcast %cst_85 : f32 to vector<8x100xf32>
    %106 = arith.maximumf %104, %105 : vector<8x100xf32>
    %c1_i32_86 = arith.constant 1 : i32
    %c1_i32_87 = arith.constant 1 : i32
    %c0_i32_88 = arith.constant 0 : i32
    %c0_i32_89 = arith.constant 0 : i32
    %107 = tpu.memref_slice %arg24[%c1_i32_86, %c0_i32_88, %c0_i32_89] : memref<2x720x768xbf16, #tpu.memory_space<vmem>> -> memref<1x64x128xbf16, #tpu.memory_space<vmem>>
    %108 = tpu.memref_squeeze %107 : memref<1x64x128xbf16, #tpu.memory_space<vmem>> -> memref<64x128xbf16, #tpu.memory_space<vmem>>
    %109 = tpu.memref_slice %arg25[%c1_i32_87] : memref<2x!tpu.dma_semaphore, #tpu.memory_space<semaphore_mem>> -> memref<1x!tpu.dma_semaphore, #tpu.memory_space<semaphore_mem>>
    %110 = tpu.memref_squeeze %109 : memref<1x!tpu.dma_semaphore, #tpu.memory_space<semaphore_mem>> -> memref<!tpu.dma_semaphore, #tpu.memory_space<semaphore_mem>>
    tpu.enqueue_dma source(%arg10 : memref<64x128xbf16, #tpu.memory_space<any>>) target(%108 : memref<64x128xbf16, #tpu.memory_space<vmem>>) target_semaphore(%110 : memref<!tpu.dma_semaphore, #tpu.memory_space<semaphore_mem>>)
    %c0_i32_90 = arith.constant 0 : i32
    %c0_i32_91 = arith.constant 0 : i32
    %c0_i32_92 = arith.constant 0 : i32
    %c0_i32_93 = arith.constant 0 : i32
    %111 = tpu.memref_slice %arg24[%c0_i32_90, %c0_i32_92, %c0_i32_93] : memref<2x720x768xbf16, #tpu.memory_space<vmem>> -> memref<1x112x128xbf16, #tpu.memory_space<vmem>>
    %112 = tpu.memref_squeeze %111 : memref<1x112x128xbf16, #tpu.memory_space<vmem>> -> memref<112x128xbf16, #tpu.memory_space<vmem>>
    %113 = tpu.memref_slice %arg25[%c0_i32_91] : memref<2x!tpu.dma_semaphore, #tpu.memory_space<semaphore_mem>> -> memref<1x!tpu.dma_semaphore, #tpu.memory_space<semaphore_mem>>
    %114 = tpu.memref_squeeze %113 : memref<1x!tpu.dma_semaphore, #tpu.memory_space<semaphore_mem>> -> memref<!tpu.dma_semaphore, #tpu.memory_space<semaphore_mem>>
    tpu.wait_dma2 semaphore(%114 : memref<!tpu.dma_semaphore, #tpu.memory_space<semaphore_mem>>) src(%arg9 : memref<112x128xbf16, #tpu.memory_space<any>>) dst(%112 : memref<112x128xbf16, #tpu.memory_space<vmem>>)
    %c0_94 = arith.constant 0 : index
    %c0_95 = arith.constant 0 : index
    %c0_96 = arith.constant 0 : index
    %115 = vector.load %arg24[%c0_94, %c0_95, %c0_96] : memref<2x720x768xbf16, #tpu.memory_space<vmem>>, vector<1x100x60xbf16>
    %116 = vector.shape_cast %115 : vector<1x100x60xbf16> to vector<100x60xbf16>
    %117 = arith.truncf %106 : vector<8x100xf32> to vector<8x100xbf16>
    %cst_97 = arith.constant dense<0.000000e+00> : vector<8x60xf32>
    %118 = tpu.matmul %117, %116, %cst_97 {dimension_numbers = #tpu.dot_dimension_numbers<[1], [0], [0], [1], [0, 0, 1, 1], [], []>} : vector<8x100xbf16>, vector<100x60xbf16>, vector<8x60xf32> -> vector<8x60xf32>
    %c0_98 = arith.constant 0 : index
    %c2176 = arith.constant 2176 : index
    %119 = vector.load %arg2[%c0_98, %c2176] : memref<1x5760xf32, #tpu.memory_space<vmem>>, vector<1x60xf32>
    %120 = vector.broadcast %119 : vector<1x60xf32> to vector<8x60xf32>
    %121 = arith.addf %118, %120 : vector<8x60xf32>
    %cst_99 = arith.constant 0.000000e+00 : f32
    %122 = vector.broadcast %cst_99 : f32 to vector<8x60xf32>
    %123 = arith.maximumf %121, %122 : vector<8x60xf32>
    %c0_i32_100 = arith.constant 0 : i32
    %c0_i32_101 = arith.constant 0 : i32
    %c0_i32_102 = arith.constant 0 : i32
    %c0_i32_103 = arith.constant 0 : i32
    %124 = tpu.memref_slice %arg24[%c0_i32_100, %c0_i32_102, %c0_i32_103] : memref<2x720x768xbf16, #tpu.memory_space<vmem>> -> memref<1x48x128xbf16, #tpu.memory_space<vmem>>
    %125 = tpu.memref_squeeze %124 : memref<1x48x128xbf16, #tpu.memory_space<vmem>> -> memref<48x128xbf16, #tpu.memory_space<vmem>>
    %126 = tpu.memref_slice %arg25[%c0_i32_101] : memref<2x!tpu.dma_semaphore, #tpu.memory_space<semaphore_mem>> -> memref<1x!tpu.dma_semaphore, #tpu.memory_space<semaphore_mem>>
    %127 = tpu.memref_squeeze %126 : memref<1x!tpu.dma_semaphore, #tpu.memory_space<semaphore_mem>> -> memref<!tpu.dma_semaphore, #tpu.memory_space<semaphore_mem>>
    tpu.enqueue_dma source(%arg11 : memref<48x128xbf16, #tpu.memory_space<any>>) target(%125 : memref<48x128xbf16, #tpu.memory_space<vmem>>) target_semaphore(%127 : memref<!tpu.dma_semaphore, #tpu.memory_space<semaphore_mem>>)
    %c1_i32_104 = arith.constant 1 : i32
    %c1_i32_105 = arith.constant 1 : i32
    %c0_i32_106 = arith.constant 0 : i32
    %c0_i32_107 = arith.constant 0 : i32
    %128 = tpu.memref_slice %arg24[%c1_i32_104, %c0_i32_106, %c0_i32_107] : memref<2x720x768xbf16, #tpu.memory_space<vmem>> -> memref<1x64x128xbf16, #tpu.memory_space<vmem>>
    %129 = tpu.memref_squeeze %128 : memref<1x64x128xbf16, #tpu.memory_space<vmem>> -> memref<64x128xbf16, #tpu.memory_space<vmem>>
    %130 = tpu.memref_slice %arg25[%c1_i32_105] : memref<2x!tpu.dma_semaphore, #tpu.memory_space<semaphore_mem>> -> memref<1x!tpu.dma_semaphore, #tpu.memory_space<semaphore_mem>>
    %131 = tpu.memref_squeeze %130 : memref<1x!tpu.dma_semaphore, #tpu.memory_space<semaphore_mem>> -> memref<!tpu.dma_semaphore, #tpu.memory_space<semaphore_mem>>
    tpu.wait_dma2 semaphore(%131 : memref<!tpu.dma_semaphore, #tpu.memory_space<semaphore_mem>>) src(%arg10 : memref<64x128xbf16, #tpu.memory_space<any>>) dst(%129 : memref<64x128xbf16, #tpu.memory_space<vmem>>)
    %c1_108 = arith.constant 1 : index
    %c0_109 = arith.constant 0 : index
    %c0_110 = arith.constant 0 : index
    %132 = vector.load %arg24[%c1_108, %c0_109, %c0_110] : memref<2x720x768xbf16, #tpu.memory_space<vmem>>, vector<1x60x45xbf16>
    %133 = vector.shape_cast %132 : vector<1x60x45xbf16> to vector<60x45xbf16>
    %134 = arith.truncf %123 : vector<8x60xf32> to vector<8x60xbf16>
    %cst_111 = arith.constant dense<0.000000e+00> : vector<8x45xf32>
    %135 = tpu.matmul %134, %133, %cst_111 {dimension_numbers = #tpu.dot_dimension_numbers<[1], [0], [0], [1], [0, 0, 1, 1], [], []>} : vector<8x60xbf16>, vector<60x45xbf16>, vector<8x45xf32> -> vector<8x45xf32>
    %c0_112 = arith.constant 0 : index
    %c2304 = arith.constant 2304 : index
    %136 = vector.load %arg2[%c0_112, %c2304] : memref<1x5760xf32, #tpu.memory_space<vmem>>, vector<1x45xf32>
    %137 = vector.broadcast %136 : vector<1x45xf32> to vector<8x45xf32>
    %138 = arith.addf %135, %137 : vector<8x45xf32>
    %c1_i32_113 = arith.constant 1 : i32
    %c1_i32_114 = arith.constant 1 : i32
    %c0_i32_115 = arith.constant 0 : i32
    %c0_i32_116 = arith.constant 0 : i32
    %139 = tpu.memref_slice %arg24[%c1_i32_113, %c0_i32_115, %c0_i32_116] : memref<2x720x768xbf16, #tpu.memory_space<vmem>> -> memref<1x32x128xbf16, #tpu.memory_space<vmem>>
    %140 = tpu.memref_squeeze %139 : memref<1x32x128xbf16, #tpu.memory_space<vmem>> -> memref<32x128xbf16, #tpu.memory_space<vmem>>
    %141 = tpu.memref_slice %arg25[%c1_i32_114] : memref<2x!tpu.dma_semaphore, #tpu.memory_space<semaphore_mem>> -> memref<1x!tpu.dma_semaphore, #tpu.memory_space<semaphore_mem>>
    %142 = tpu.memref_squeeze %141 : memref<1x!tpu.dma_semaphore, #tpu.memory_space<semaphore_mem>> -> memref<!tpu.dma_semaphore, #tpu.memory_space<semaphore_mem>>
    tpu.enqueue_dma source(%arg12 : memref<32x128xbf16, #tpu.memory_space<any>>) target(%140 : memref<32x128xbf16, #tpu.memory_space<vmem>>) target_semaphore(%142 : memref<!tpu.dma_semaphore, #tpu.memory_space<semaphore_mem>>)
    %c0_i32_117 = arith.constant 0 : i32
    %c0_i32_118 = arith.constant 0 : i32
    %c0_i32_119 = arith.constant 0 : i32
    %c0_i32_120 = arith.constant 0 : i32
    %143 = tpu.memref_slice %arg24[%c0_i32_117, %c0_i32_119, %c0_i32_120] : memref<2x720x768xbf16, #tpu.memory_space<vmem>> -> memref<1x48x128xbf16, #tpu.memory_space<vmem>>
    %144 = tpu.memref_squeeze %143 : memref<1x48x128xbf16, #tpu.memory_space<vmem>> -> memref<48x128xbf16, #tpu.memory_space<vmem>>
    %145 = tpu.memref_slice %arg25[%c0_i32_118] : memref<2x!tpu.dma_semaphore, #tpu.memory_space<semaphore_mem>> -> memref<1x!tpu.dma_semaphore, #tpu.memory_space<semaphore_mem>>
    %146 = tpu.memref_squeeze %145 : memref<1x!tpu.dma_semaphore, #tpu.memory_space<semaphore_mem>> -> memref<!tpu.dma_semaphore, #tpu.memory_space<semaphore_mem>>
    tpu.wait_dma2 semaphore(%146 : memref<!tpu.dma_semaphore, #tpu.memory_space<semaphore_mem>>) src(%arg11 : memref<48x128xbf16, #tpu.memory_space<any>>) dst(%144 : memref<48x128xbf16, #tpu.memory_space<vmem>>)
    %c0_121 = arith.constant 0 : index
    %c0_122 = arith.constant 0 : index
    %c0_123 = arith.constant 0 : index
    %147 = vector.load %arg24[%c0_121, %c0_122, %c0_123] : memref<2x720x768xbf16, #tpu.memory_space<vmem>>, vector<1x45x40xbf16>
    %148 = vector.shape_cast %147 : vector<1x45x40xbf16> to vector<45x40xbf16>
    %149 = arith.truncf %138 : vector<8x45xf32> to vector<8x45xbf16>
    %cst_124 = arith.constant dense<0.000000e+00> : vector<8x40xf32>
    %150 = tpu.matmul %149, %148, %cst_124 {dimension_numbers = #tpu.dot_dimension_numbers<[1], [0], [0], [1], [0, 0, 1, 1], [], []>} : vector<8x45xbf16>, vector<45x40xbf16>, vector<8x40xf32> -> vector<8x40xf32>
    %c0_125 = arith.constant 0 : index
    %c2432 = arith.constant 2432 : index
    %151 = vector.load %arg2[%c0_125, %c2432] : memref<1x5760xf32, #tpu.memory_space<vmem>>, vector<1x40xf32>
    %152 = vector.broadcast %151 : vector<1x40xf32> to vector<8x40xf32>
    %153 = arith.addf %150, %152 : vector<8x40xf32>
    %154 = vector.extract_strided_slice %153 {offsets = [0, 0], sizes = [8, 20], strides = [1, 1]} : vector<8x40xf32> to vector<8x20xf32>
    %155 = vector.extract_strided_slice %153 {offsets = [0, 20], sizes = [8, 20], strides = [1, 1]} : vector<8x40xf32> to vector<8x20xf32>
    %c0_126 = arith.constant 0 : index
    %c0_127 = arith.constant 0 : index
    %156 = vector.load %arg1[%c0_126, %c0_127] : memref<8x20xf32, #tpu.memory_space<vmem>>, vector<8x20xf32>
    %cst_128 = arith.constant 5.000000e-01 : f32
    %157 = vector.broadcast %cst_128 : f32 to vector<8x20xf32>
    %158 = arith.mulf %157, %155 : vector<8x20xf32>
    %159 = math.exp %158 : vector<8x20xf32>
    %160 = arith.mulf %156, %159 : vector<8x20xf32>
    %161 = arith.addf %154, %160 : vector<8x20xf32>
    %c0_i32_129 = arith.constant 0 : i32
    %c0_i32_130 = arith.constant 0 : i32
    %c0_i32_131 = arith.constant 0 : i32
    %c0_i32_132 = arith.constant 0 : i32
    %162 = tpu.memref_slice %arg24[%c0_i32_129, %c0_i32_131, %c0_i32_132] : memref<2x720x768xbf16, #tpu.memory_space<vmem>> -> memref<1x48x128xbf16, #tpu.memory_space<vmem>>
    %163 = tpu.memref_squeeze %162 : memref<1x48x128xbf16, #tpu.memory_space<vmem>> -> memref<48x128xbf16, #tpu.memory_space<vmem>>
    %164 = tpu.memref_slice %arg25[%c0_i32_130] : memref<2x!tpu.dma_semaphore, #tpu.memory_space<semaphore_mem>> -> memref<1x!tpu.dma_semaphore, #tpu.memory_space<semaphore_mem>>
    %165 = tpu.memref_squeeze %164 : memref<1x!tpu.dma_semaphore, #tpu.memory_space<semaphore_mem>> -> memref<!tpu.dma_semaphore, #tpu.memory_space<semaphore_mem>>
    tpu.enqueue_dma source(%arg13 : memref<48x128xbf16, #tpu.memory_space<any>>) target(%163 : memref<48x128xbf16, #tpu.memory_space<vmem>>) target_semaphore(%165 : memref<!tpu.dma_semaphore, #tpu.memory_space<semaphore_mem>>)
    %c1_i32_133 = arith.constant 1 : i32
    %c1_i32_134 = arith.constant 1 : i32
    %c0_i32_135 = arith.constant 0 : i32
    %c0_i32_136 = arith.constant 0 : i32
    %166 = tpu.memref_slice %arg24[%c1_i32_133, %c0_i32_135, %c0_i32_136] : memref<2x720x768xbf16, #tpu.memory_space<vmem>> -> memref<1x32x128xbf16, #tpu.memory_space<vmem>>
    %167 = tpu.memref_squeeze %166 : memref<1x32x128xbf16, #tpu.memory_space<vmem>> -> memref<32x128xbf16, #tpu.memory_space<vmem>>
    %168 = tpu.memref_slice %arg25[%c1_i32_134] : memref<2x!tpu.dma_semaphore, #tpu.memory_space<semaphore_mem>> -> memref<1x!tpu.dma_semaphore, #tpu.memory_space<semaphore_mem>>
    %169 = tpu.memref_squeeze %168 : memref<1x!tpu.dma_semaphore, #tpu.memory_space<semaphore_mem>> -> memref<!tpu.dma_semaphore, #tpu.memory_space<semaphore_mem>>
    tpu.wait_dma2 semaphore(%169 : memref<!tpu.dma_semaphore, #tpu.memory_space<semaphore_mem>>) src(%arg12 : memref<32x128xbf16, #tpu.memory_space<any>>) dst(%167 : memref<32x128xbf16, #tpu.memory_space<vmem>>)
    %c1_137 = arith.constant 1 : index
    %c0_138 = arith.constant 0 : index
    %c0_139 = arith.constant 0 : index
    %170 = vector.load %arg24[%c1_137, %c0_138, %c0_139] : memref<2x720x768xbf16, #tpu.memory_space<vmem>>, vector<1x20x45xbf16>
    %171 = vector.shape_cast %170 : vector<1x20x45xbf16> to vector<20x45xbf16>
    %172 = arith.truncf %161 : vector<8x20xf32> to vector<8x20xbf16>
    %cst_140 = arith.constant dense<0.000000e+00> : vector<8x45xf32>
    %173 = tpu.matmul %172, %171, %cst_140 {dimension_numbers = #tpu.dot_dimension_numbers<[1], [0], [0], [1], [0, 0, 1, 1], [], []>} : vector<8x20xbf16>, vector<20x45xbf16>, vector<8x45xf32> -> vector<8x45xf32>
    %c0_141 = arith.constant 0 : index
    %c2560 = arith.constant 2560 : index
    %174 = vector.load %arg2[%c0_141, %c2560] : memref<1x5760xf32, #tpu.memory_space<vmem>>, vector<1x45xf32>
    %175 = vector.broadcast %174 : vector<1x45xf32> to vector<8x45xf32>
    %176 = arith.addf %173, %175 : vector<8x45xf32>
    %cst_142 = arith.constant 0.000000e+00 : f32
    %177 = vector.broadcast %cst_142 : f32 to vector<8x45xf32>
    %178 = arith.maximumf %176, %177 : vector<8x45xf32>
    %c1_i32_143 = arith.constant 1 : i32
    %c1_i32_144 = arith.constant 1 : i32
    %c0_i32_145 = arith.constant 0 : i32
    %c0_i32_146 = arith.constant 0 : i32
    %179 = tpu.memref_slice %arg24[%c1_i32_143, %c0_i32_145, %c0_i32_146] : memref<2x720x768xbf16, #tpu.memory_space<vmem>> -> memref<1x64x128xbf16, #tpu.memory_space<vmem>>
    %180 = tpu.memref_squeeze %179 : memref<1x64x128xbf16, #tpu.memory_space<vmem>> -> memref<64x128xbf16, #tpu.memory_space<vmem>>
    %181 = tpu.memref_slice %arg25[%c1_i32_144] : memref<2x!tpu.dma_semaphore, #tpu.memory_space<semaphore_mem>> -> memref<1x!tpu.dma_semaphore, #tpu.memory_space<semaphore_mem>>
    %182 = tpu.memref_squeeze %181 : memref<1x!tpu.dma_semaphore, #tpu.memory_space<semaphore_mem>> -> memref<!tpu.dma_semaphore, #tpu.memory_space<semaphore_mem>>
    tpu.enqueue_dma source(%arg14 : memref<64x128xbf16, #tpu.memory_space<any>>) target(%180 : memref<64x128xbf16, #tpu.memory_space<vmem>>) target_semaphore(%182 : memref<!tpu.dma_semaphore, #tpu.memory_space<semaphore_mem>>)
    %c0_i32_147 = arith.constant 0 : i32
    %c0_i32_148 = arith.constant 0 : i32
    %c0_i32_149 = arith.constant 0 : i32
    %c0_i32_150 = arith.constant 0 : i32
    %183 = tpu.memref_slice %arg24[%c0_i32_147, %c0_i32_149, %c0_i32_150] : memref<2x720x768xbf16, #tpu.memory_space<vmem>> -> memref<1x48x128xbf16, #tpu.memory_space<vmem>>
    %184 = tpu.memref_squeeze %183 : memref<1x48x128xbf16, #tpu.memory_space<vmem>> -> memref<48x128xbf16, #tpu.memory_space<vmem>>
    %185 = tpu.memref_slice %arg25[%c0_i32_148] : memref<2x!tpu.dma_semaphore, #tpu.memory_space<semaphore_mem>> -> memref<1x!tpu.dma_semaphore, #tpu.memory_space<semaphore_mem>>
    %186 = tpu.memref_squeeze %185 : memref<1x!tpu.dma_semaphore, #tpu.memory_space<semaphore_mem>> -> memref<!tpu.dma_semaphore, #tpu.memory_space<semaphore_mem>>
    tpu.wait_dma2 semaphore(%186 : memref<!tpu.dma_semaphore, #tpu.memory_space<semaphore_mem>>) src(%arg13 : memref<48x128xbf16, #tpu.memory_space<any>>) dst(%184 : memref<48x128xbf16, #tpu.memory_space<vmem>>)
    %c0_151 = arith.constant 0 : index
    %c0_152 = arith.constant 0 : index
    %c0_153 = arith.constant 0 : index
    %187 = vector.load %arg24[%c0_151, %c0_152, %c0_153] : memref<2x720x768xbf16, #tpu.memory_space<vmem>>, vector<1x45x60xbf16>
    %188 = vector.shape_cast %187 : vector<1x45x60xbf16> to vector<45x60xbf16>
    %189 = arith.truncf %178 : vector<8x45xf32> to vector<8x45xbf16>
    %cst_154 = arith.constant dense<0.000000e+00> : vector<8x60xf32>
    %190 = tpu.matmul %189, %188, %cst_154 {dimension_numbers = #tpu.dot_dimension_numbers<[1], [0], [0], [1], [0, 0, 1, 1], [], []>} : vector<8x45xbf16>, vector<45x60xbf16>, vector<8x60xf32> -> vector<8x60xf32>
    %c0_155 = arith.constant 0 : index
    %c2688 = arith.constant 2688 : index
    %191 = vector.load %arg2[%c0_155, %c2688] : memref<1x5760xf32, #tpu.memory_space<vmem>>, vector<1x60xf32>
    %192 = vector.broadcast %191 : vector<1x60xf32> to vector<8x60xf32>
    %193 = arith.addf %190, %192 : vector<8x60xf32>
    %cst_156 = arith.constant 0.000000e+00 : f32
    %194 = vector.broadcast %cst_156 : f32 to vector<8x60xf32>
    %195 = arith.maximumf %193, %194 : vector<8x60xf32>
    %c0_i32_157 = arith.constant 0 : i32
    %c0_i32_158 = arith.constant 0 : i32
    %c0_i32_159 = arith.constant 0 : i32
    %c0_i32_160 = arith.constant 0 : i32
    %196 = tpu.memref_slice %arg24[%c0_i32_157, %c0_i32_159, %c0_i32_160] : memref<2x720x768xbf16, #tpu.memory_space<vmem>> -> memref<1x112x256xbf16, #tpu.memory_space<vmem>>
    %197 = tpu.memref_squeeze %196 : memref<1x112x256xbf16, #tpu.memory_space<vmem>> -> memref<112x256xbf16, #tpu.memory_space<vmem>>
    %198 = tpu.memref_slice %arg25[%c0_i32_158] : memref<2x!tpu.dma_semaphore, #tpu.memory_space<semaphore_mem>> -> memref<1x!tpu.dma_semaphore, #tpu.memory_space<semaphore_mem>>
    %199 = tpu.memref_squeeze %198 : memref<1x!tpu.dma_semaphore, #tpu.memory_space<semaphore_mem>> -> memref<!tpu.dma_semaphore, #tpu.memory_space<semaphore_mem>>
    tpu.enqueue_dma source(%arg15 : memref<112x256xbf16, #tpu.memory_space<any>>) target(%197 : memref<112x256xbf16, #tpu.memory_space<vmem>>) target_semaphore(%199 : memref<!tpu.dma_semaphore, #tpu.memory_space<semaphore_mem>>)
    %c1_i32_161 = arith.constant 1 : i32
    %c1_i32_162 = arith.constant 1 : i32
    %c0_i32_163 = arith.constant 0 : i32
    %c0_i32_164 = arith.constant 0 : i32
    %200 = tpu.memref_slice %arg24[%c1_i32_161, %c0_i32_163, %c0_i32_164] : memref<2x720x768xbf16, #tpu.memory_space<vmem>> -> memref<1x64x128xbf16, #tpu.memory_space<vmem>>
    %201 = tpu.memref_squeeze %200 : memref<1x64x128xbf16, #tpu.memory_space<vmem>> -> memref<64x128xbf16, #tpu.memory_space<vmem>>
    %202 = tpu.memref_slice %arg25[%c1_i32_162] : memref<2x!tpu.dma_semaphore, #tpu.memory_space<semaphore_mem>> -> memref<1x!tpu.dma_semaphore, #tpu.memory_space<semaphore_mem>>
    %203 = tpu.memref_squeeze %202 : memref<1x!tpu.dma_semaphore, #tpu.memory_space<semaphore_mem>> -> memref<!tpu.dma_semaphore, #tpu.memory_space<semaphore_mem>>
    tpu.wait_dma2 semaphore(%203 : memref<!tpu.dma_semaphore, #tpu.memory_space<semaphore_mem>>) src(%arg14 : memref<64x128xbf16, #tpu.memory_space<any>>) dst(%201 : memref<64x128xbf16, #tpu.memory_space<vmem>>)
    %c1_165 = arith.constant 1 : index
    %c0_166 = arith.constant 0 : index
    %c0_167 = arith.constant 0 : index
    %204 = vector.load %arg24[%c1_165, %c0_166, %c0_167] : memref<2x720x768xbf16, #tpu.memory_space<vmem>>, vector<1x60x100xbf16>
    %205 = vector.shape_cast %204 : vector<1x60x100xbf16> to vector<60x100xbf16>
    %206 = arith.truncf %195 : vector<8x60xf32> to vector<8x60xbf16>
    %cst_168 = arith.constant dense<0.000000e+00> : vector<8x100xf32>
    %207 = tpu.matmul %206, %205, %cst_168 {dimension_numbers = #tpu.dot_dimension_numbers<[1], [0], [0], [1], [0, 0, 1, 1], [], []>} : vector<8x60xbf16>, vector<60x100xbf16>, vector<8x100xf32> -> vector<8x100xf32>
    %c0_169 = arith.constant 0 : index
    %c2816 = arith.constant 2816 : index
    %208 = vector.load %arg2[%c0_169, %c2816] : memref<1x5760xf32, #tpu.memory_space<vmem>>, vector<1x100xf32>
    %209 = vector.broadcast %208 : vector<1x100xf32> to vector<8x100xf32>
    %210 = arith.addf %207, %209 : vector<8x100xf32>
    %cst_170 = arith.constant 0.000000e+00 : f32
    %211 = vector.broadcast %cst_170 : f32 to vector<8x100xf32>
    %212 = arith.maximumf %210, %211 : vector<8x100xf32>
    %c1_i32_171 = arith.constant 1 : i32
    %c1_i32_172 = arith.constant 1 : i32
    %c0_i32_173 = arith.constant 0 : i32
    %c0_i32_174 = arith.constant 0 : i32
    %213 = tpu.memref_slice %arg24[%c1_i32_171, %c0_i32_173, %c0_i32_174] : memref<2x720x768xbf16, #tpu.memory_space<vmem>> -> memref<1x160x256xbf16, #tpu.memory_space<vmem>>
    %214 = tpu.memref_squeeze %213 : memref<1x160x256xbf16, #tpu.memory_space<vmem>> -> memref<160x256xbf16, #tpu.memory_space<vmem>>
    %215 = tpu.memref_slice %arg25[%c1_i32_172] : memref<2x!tpu.dma_semaphore, #tpu.memory_space<semaphore_mem>> -> memref<1x!tpu.dma_semaphore, #tpu.memory_space<semaphore_mem>>
    %216 = tpu.memref_squeeze %215 : memref<1x!tpu.dma_semaphore, #tpu.memory_space<semaphore_mem>> -> memref<!tpu.dma_semaphore, #tpu.memory_space<semaphore_mem>>
    tpu.enqueue_dma source(%arg16 : memref<160x256xbf16, #tpu.memory_space<any>>) target(%214 : memref<160x256xbf16, #tpu.memory_space<vmem>>) target_semaphore(%216 : memref<!tpu.dma_semaphore, #tpu.memory_space<semaphore_mem>>)
    %c0_i32_175 = arith.constant 0 : i32
    %c0_i32_176 = arith.constant 0 : i32
    %c0_i32_177 = arith.constant 0 : i32
    %c0_i32_178 = arith.constant 0 : i32
    %217 = tpu.memref_slice %arg24[%c0_i32_175, %c0_i32_177, %c0_i32_178] : memref<2x720x768xbf16, #tpu.memory_space<vmem>> -> memref<1x112x256xbf16, #tpu.memory_space<vmem>>
    %218 = tpu.memref_squeeze %217 : memref<1x112x256xbf16, #tpu.memory_space<vmem>> -> memref<112x256xbf16, #tpu.memory_space<vmem>>
    %219 = tpu.memref_slice %arg25[%c0_i32_176] : memref<2x!tpu.dma_semaphore, #tpu.memory_space<semaphore_mem>> -> memref<1x!tpu.dma_semaphore, #tpu.memory_space<semaphore_mem>>
    %220 = tpu.memref_squeeze %219 : memref<1x!tpu.dma_semaphore, #tpu.memory_space<semaphore_mem>> -> memref<!tpu.dma_semaphore, #tpu.memory_space<semaphore_mem>>
    tpu.wait_dma2 semaphore(%220 : memref<!tpu.dma_semaphore, #tpu.memory_space<semaphore_mem>>) src(%arg15 : memref<112x256xbf16, #tpu.memory_space<any>>) dst(%218 : memref<112x256xbf16, #tpu.memory_space<vmem>>)
    %c0_179 = arith.constant 0 : index
    %c0_180 = arith.constant 0 : index
    %c0_181 = arith.constant 0 : index
    %221 = vector.load %arg24[%c0_179, %c0_180, %c0_181] : memref<2x720x768xbf16, #tpu.memory_space<vmem>>, vector<1x100x150xbf16>
    %222 = vector.shape_cast %221 : vector<1x100x150xbf16> to vector<100x150xbf16>
    %223 = arith.truncf %212 : vector<8x100xf32> to vector<8x100xbf16>
    %cst_182 = arith.constant dense<0.000000e+00> : vector<8x150xf32>
    %224 = tpu.matmul %223, %222, %cst_182 {dimension_numbers = #tpu.dot_dimension_numbers<[1], [0], [0], [1], [0, 0, 1, 1], [], []>} : vector<8x100xbf16>, vector<100x150xbf16>, vector<8x150xf32> -> vector<8x150xf32>
    %c0_183 = arith.constant 0 : index
    %c2944 = arith.constant 2944 : index
    %225 = vector.load %arg2[%c0_183, %c2944] : memref<1x5760xf32, #tpu.memory_space<vmem>>, vector<1x150xf32>
    %226 = vector.broadcast %225 : vector<1x150xf32> to vector<8x150xf32>
    %227 = arith.addf %224, %226 : vector<8x150xf32>
    %cst_184 = arith.constant 0.000000e+00 : f32
    %228 = vector.broadcast %cst_184 : f32 to vector<8x150xf32>
    %229 = arith.maximumf %227, %228 : vector<8x150xf32>
    %c0_i32_185 = arith.constant 0 : i32
    %c0_i32_186 = arith.constant 0 : i32
    %c0_i32_187 = arith.constant 0 : i32
    %c0_i32_188 = arith.constant 0 : i32
    %230 = tpu.memref_slice %arg24[%c0_i32_185, %c0_i32_187, %c0_i32_188] : memref<2x720x768xbf16, #tpu.memory_space<vmem>> -> memref<1x240x384xbf16, #tpu.memory_space<vmem>>
    %231 = tpu.memref_squeeze %230 : memref<1x240x384xbf16, #tpu.memory_space<vmem>> -> memref<240x384xbf16, #tpu.memory_space<vmem>>
    %232 = tpu.memref_slice %arg25[%c0_i32_186] : memref<2x!tpu.dma_semaphore, #tpu.memory_space<semaphore_mem>> -> memref<1x!tpu.dma_semaphore, #tpu.memory_space<semaphore_mem>>
    %233 = tpu.memref_squeeze %232 : memref<1x!tpu.dma_semaphore, #tpu.memory_space<semaphore_mem>> -> memref<!tpu.dma_semaphore, #tpu.memory_space<semaphore_mem>>
    tpu.enqueue_dma source(%arg17 : memref<240x384xbf16, #tpu.memory_space<any>>) target(%231 : memref<240x384xbf16, #tpu.memory_space<vmem>>) target_semaphore(%233 : memref<!tpu.dma_semaphore, #tpu.memory_space<semaphore_mem>>)
    %c1_i32_189 = arith.constant 1 : i32
    %c1_i32_190 = arith.constant 1 : i32
    %c0_i32_191 = arith.constant 0 : i32
    %c0_i32_192 = arith.constant 0 : i32
    %234 = tpu.memref_slice %arg24[%c1_i32_189, %c0_i32_191, %c0_i32_192] : memref<2x720x768xbf16, #tpu.memory_space<vmem>> -> memref<1x160x256xbf16, #tpu.memory_space<vmem>>
    %235 = tpu.memref_squeeze %234 : memref<1x160x256xbf16, #tpu.memory_space<vmem>> -> memref<160x256xbf16, #tpu.memory_space<vmem>>
    %236 = tpu.memref_slice %arg25[%c1_i32_190] : memref<2x!tpu.dma_semaphore, #tpu.memory_space<semaphore_mem>> -> memref<1x!tpu.dma_semaphore, #tpu.memory_space<semaphore_mem>>
    %237 = tpu.memref_squeeze %236 : memref<1x!tpu.dma_semaphore, #tpu.memory_space<semaphore_mem>> -> memref<!tpu.dma_semaphore, #tpu.memory_space<semaphore_mem>>
    tpu.wait_dma2 semaphore(%237 : memref<!tpu.dma_semaphore, #tpu.memory_space<semaphore_mem>>) src(%arg16 : memref<160x256xbf16, #tpu.memory_space<any>>) dst(%235 : memref<160x256xbf16, #tpu.memory_space<vmem>>)
    %c1_193 = arith.constant 1 : index
    %c0_194 = arith.constant 0 : index
    %c0_195 = arith.constant 0 : index
    %238 = vector.load %arg24[%c1_193, %c0_194, %c0_195] : memref<2x720x768xbf16, #tpu.memory_space<vmem>>, vector<1x150x225xbf16>
    %239 = vector.shape_cast %238 : vector<1x150x225xbf16> to vector<150x225xbf16>
    %240 = arith.truncf %229 : vector<8x150xf32> to vector<8x150xbf16>
    %cst_196 = arith.constant dense<0.000000e+00> : vector<8x225xf32>
    %241 = tpu.matmul %240, %239, %cst_196 {dimension_numbers = #tpu.dot_dimension_numbers<[1], [0], [0], [1], [0, 0, 1, 1], [], []>} : vector<8x150xbf16>, vector<150x225xbf16>, vector<8x225xf32> -> vector<8x225xf32>
    %c0_197 = arith.constant 0 : index
    %c3200 = arith.constant 3200 : index
    %242 = vector.load %arg2[%c0_197, %c3200] : memref<1x5760xf32, #tpu.memory_space<vmem>>, vector<1x225xf32>
    %243 = vector.broadcast %242 : vector<1x225xf32> to vector<8x225xf32>
    %244 = arith.addf %241, %243 : vector<8x225xf32>
    %cst_198 = arith.constant 0.000000e+00 : f32
    %245 = vector.broadcast %cst_198 : f32 to vector<8x225xf32>
    %246 = arith.maximumf %244, %245 : vector<8x225xf32>
    %c1_i32_199 = arith.constant 1 : i32
    %c1_i32_200 = arith.constant 1 : i32
    %c0_i32_201 = arith.constant 0 : i32
    %c0_i32_202 = arith.constant 0 : i32
    %247 = tpu.memref_slice %arg24[%c1_i32_199, %c0_i32_201, %c0_i32_202] : memref<2x720x768xbf16, #tpu.memory_space<vmem>> -> memref<1x304x512xbf16, #tpu.memory_space<vmem>>
    %248 = tpu.memref_squeeze %247 : memref<1x304x512xbf16, #tpu.memory_space<vmem>> -> memref<304x512xbf16, #tpu.memory_space<vmem>>
    %249 = tpu.memref_slice %arg25[%c1_i32_200] : memref<2x!tpu.dma_semaphore, #tpu.memory_space<semaphore_mem>> -> memref<1x!tpu.dma_semaphore, #tpu.memory_space<semaphore_mem>>
    %250 = tpu.memref_squeeze %249 : memref<1x!tpu.dma_semaphore, #tpu.memory_space<semaphore_mem>> -> memref<!tpu.dma_semaphore, #tpu.memory_space<semaphore_mem>>
    tpu.enqueue_dma source(%arg18 : memref<304x512xbf16, #tpu.memory_space<any>>) target(%248 : memref<304x512xbf16, #tpu.memory_space<vmem>>) target_semaphore(%250 : memref<!tpu.dma_semaphore, #tpu.memory_space<semaphore_mem>>)
    %c0_i32_203 = arith.constant 0 : i32
    %c0_i32_204 = arith.constant 0 : i32
    %c0_i32_205 = arith.constant 0 : i32
    %c0_i32_206 = arith.constant 0 : i32
    %251 = tpu.memref_slice %arg24[%c0_i32_203, %c0_i32_205, %c0_i32_206] : memref<2x720x768xbf16, #tpu.memory_space<vmem>> -> memref<1x240x384xbf16, #tpu.memory_space<vmem>>
    %252 = tpu.memref_squeeze %251 : memref<1x240x384xbf16, #tpu.memory_space<vmem>> -> memref<240x384xbf16, #tpu.memory_space<vmem>>
    %253 = tpu.memref_slice %arg25[%c0_i32_204] : memref<2x!tpu.dma_semaphore, #tpu.memory_space<semaphore_mem>> -> memref<1x!tpu.dma_semaphore, #tpu.memory_space<semaphore_mem>>
    %254 = tpu.memref_squeeze %253 : memref<1x!tpu.dma_semaphore, #tpu.memory_space<semaphore_mem>> -> memref<!tpu.dma_semaphore, #tpu.memory_space<semaphore_mem>>
    tpu.wait_dma2 semaphore(%254 : memref<!tpu.dma_semaphore, #tpu.memory_space<semaphore_mem>>) src(%arg17 : memref<240x384xbf16, #tpu.memory_space<any>>) dst(%252 : memref<240x384xbf16, #tpu.memory_space<vmem>>)
    %c0_207 = arith.constant 0 : index
    %c0_208 = arith.constant 0 : index
    %c0_209 = arith.constant 0 : index
    %255 = vector.load %arg24[%c0_207, %c0_208, %c0_209] : memref<2x720x768xbf16, #tpu.memory_space<vmem>>, vector<1x225x300xbf16>
    %256 = vector.shape_cast %255 : vector<1x225x300xbf16> to vector<225x300xbf16>
    %257 = arith.truncf %246 : vector<8x225xf32> to vector<8x225xbf16>
    %cst_210 = arith.constant dense<0.000000e+00> : vector<8x300xf32>
    %258 = tpu.matmul %257, %256, %cst_210 {dimension_numbers = #tpu.dot_dimension_numbers<[1], [0], [0], [1], [0, 0, 1, 1], [], []>} : vector<8x225xbf16>, vector<225x300xbf16>, vector<8x300xf32> -> vector<8x300xf32>
    %c0_211 = arith.constant 0 : index
    %c3456 = arith.constant 3456 : index
    %259 = vector.load %arg2[%c0_211, %c3456] : memref<1x5760xf32, #tpu.memory_space<vmem>>, vector<1x300xf32>
    %260 = vector.broadcast %259 : vector<1x300xf32> to vector<8x300xf32>
    %261 = arith.addf %258, %260 : vector<8x300xf32>
    %cst_212 = arith.constant 0.000000e+00 : f32
    %262 = vector.broadcast %cst_212 : f32 to vector<8x300xf32>
    %263 = arith.maximumf %261, %262 : vector<8x300xf32>
    %c0_i32_213 = arith.constant 0 : i32
    %c0_i32_214 = arith.constant 0 : i32
    %c0_i32_215 = arith.constant 0 : i32
    %c0_i32_216 = arith.constant 0 : i32
    %264 = tpu.memref_slice %arg24[%c0_i32_213, %c0_i32_215, %c0_i32_216] : memref<2x720x768xbf16, #tpu.memory_space<vmem>> -> memref<1x400x640xbf16, #tpu.memory_space<vmem>>
    %265 = tpu.memref_squeeze %264 : memref<1x400x640xbf16, #tpu.memory_space<vmem>> -> memref<400x640xbf16, #tpu.memory_space<vmem>>
    %266 = tpu.memref_slice %arg25[%c0_i32_214] : memref<2x!tpu.dma_semaphore, #tpu.memory_space<semaphore_mem>> -> memref<1x!tpu.dma_semaphore, #tpu.memory_space<semaphore_mem>>
    %267 = tpu.memref_squeeze %266 : memref<1x!tpu.dma_semaphore, #tpu.memory_space<semaphore_mem>> -> memref<!tpu.dma_semaphore, #tpu.memory_space<semaphore_mem>>
    tpu.enqueue_dma source(%arg19 : memref<400x640xbf16, #tpu.memory_space<any>>) target(%265 : memref<400x640xbf16, #tpu.memory_space<vmem>>) target_semaphore(%267 : memref<!tpu.dma_semaphore, #tpu.memory_space<semaphore_mem>>)
    %c1_i32_217 = arith.constant 1 : i32
    %c1_i32_218 = arith.constant 1 : i32
    %c0_i32_219 = arith.constant 0 : i32
    %c0_i32_220 = arith.constant 0 : i32
    %268 = tpu.memref_slice %arg24[%c1_i32_217, %c0_i32_219, %c0_i32_220] : memref<2x720x768xbf16, #tpu.memory_space<vmem>> -> memref<1x304x512xbf16, #tpu.memory_space<vmem>>
    %269 = tpu.memref_squeeze %268 : memref<1x304x512xbf16, #tpu.memory_space<vmem>> -> memref<304x512xbf16, #tpu.memory_space<vmem>>
    %270 = tpu.memref_slice %arg25[%c1_i32_218] : memref<2x!tpu.dma_semaphore, #tpu.memory_space<semaphore_mem>> -> memref<1x!tpu.dma_semaphore, #tpu.memory_space<semaphore_mem>>
    %271 = tpu.memref_squeeze %270 : memref<1x!tpu.dma_semaphore, #tpu.memory_space<semaphore_mem>> -> memref<!tpu.dma_semaphore, #tpu.memory_space<semaphore_mem>>
    tpu.wait_dma2 semaphore(%271 : memref<!tpu.dma_semaphore, #tpu.memory_space<semaphore_mem>>) src(%arg18 : memref<304x512xbf16, #tpu.memory_space<any>>) dst(%269 : memref<304x512xbf16, #tpu.memory_space<vmem>>)
    %c1_221 = arith.constant 1 : index
    %c0_222 = arith.constant 0 : index
    %c0_223 = arith.constant 0 : index
    %272 = vector.load %arg24[%c1_221, %c0_222, %c0_223] : memref<2x720x768xbf16, #tpu.memory_space<vmem>>, vector<1x300x400xbf16>
    %273 = vector.shape_cast %272 : vector<1x300x400xbf16> to vector<300x400xbf16>
    %274 = arith.truncf %263 : vector<8x300xf32> to vector<8x300xbf16>
    %cst_224 = arith.constant dense<0.000000e+00> : vector<8x400xf32>
    %275 = tpu.matmul %274, %273, %cst_224 {dimension_numbers = #tpu.dot_dimension_numbers<[1], [0], [0], [1], [0, 0, 1, 1], [], []>} : vector<8x300xbf16>, vector<300x400xbf16>, vector<8x400xf32> -> vector<8x400xf32>
    %c0_225 = arith.constant 0 : index
    %c3840 = arith.constant 3840 : index
    %276 = vector.load %arg2[%c0_225, %c3840] : memref<1x5760xf32, #tpu.memory_space<vmem>>, vector<1x400xf32>
    %277 = vector.broadcast %276 : vector<1x400xf32> to vector<8x400xf32>
    %278 = arith.addf %275, %277 : vector<8x400xf32>
    %cst_226 = arith.constant 0.000000e+00 : f32
    %279 = vector.broadcast %cst_226 : f32 to vector<8x400xf32>
    %280 = arith.maximumf %278, %279 : vector<8x400xf32>
    %c1_i32_227 = arith.constant 1 : i32
    %c1_i32_228 = arith.constant 1 : i32
    %c0_i32_229 = arith.constant 0 : i32
    %c0_i32_230 = arith.constant 0 : i32
    %281 = tpu.memref_slice %arg24[%c1_i32_227, %c0_i32_229, %c0_i32_230] : memref<2x720x768xbf16, #tpu.memory_space<vmem>> -> memref<1x544x768xbf16, #tpu.memory_space<vmem>>
    %282 = tpu.memref_squeeze %281 : memref<1x544x768xbf16, #tpu.memory_space<vmem>> -> memref<544x768xbf16, #tpu.memory_space<vmem>>
    %283 = tpu.memref_slice %arg25[%c1_i32_228] : memref<2x!tpu.dma_semaphore, #tpu.memory_space<semaphore_mem>> -> memref<1x!tpu.dma_semaphore, #tpu.memory_space<semaphore_mem>>
    %284 = tpu.memref_squeeze %283 : memref<1x!tpu.dma_semaphore, #tpu.memory_space<semaphore_mem>> -> memref<!tpu.dma_semaphore, #tpu.memory_space<semaphore_mem>>
    tpu.enqueue_dma source(%arg20 : memref<544x768xbf16, #tpu.memory_space<any>>) target(%282 : memref<544x768xbf16, #tpu.memory_space<vmem>>) target_semaphore(%284 : memref<!tpu.dma_semaphore, #tpu.memory_space<semaphore_mem>>)
    %c0_i32_231 = arith.constant 0 : i32
    %c0_i32_232 = arith.constant 0 : i32
    %c0_i32_233 = arith.constant 0 : i32
    %c0_i32_234 = arith.constant 0 : i32
    %285 = tpu.memref_slice %arg24[%c0_i32_231, %c0_i32_233, %c0_i32_234] : memref<2x720x768xbf16, #tpu.memory_space<vmem>> -> memref<1x400x640xbf16, #tpu.memory_space<vmem>>
    %286 = tpu.memref_squeeze %285 : memref<1x400x640xbf16, #tpu.memory_space<vmem>> -> memref<400x640xbf16, #tpu.memory_space<vmem>>
    %287 = tpu.memref_slice %arg25[%c0_i32_232] : memref<2x!tpu.dma_semaphore, #tpu.memory_space<semaphore_mem>> -> memref<1x!tpu.dma_semaphore, #tpu.memory_space<semaphore_mem>>
    %288 = tpu.memref_squeeze %287 : memref<1x!tpu.dma_semaphore, #tpu.memory_space<semaphore_mem>> -> memref<!tpu.dma_semaphore, #tpu.memory_space<semaphore_mem>>
    tpu.wait_dma2 semaphore(%288 : memref<!tpu.dma_semaphore, #tpu.memory_space<semaphore_mem>>) src(%arg19 : memref<400x640xbf16, #tpu.memory_space<any>>) dst(%286 : memref<400x640xbf16, #tpu.memory_space<vmem>>)
    %c0_235 = arith.constant 0 : index
    %c0_236 = arith.constant 0 : index
    %c0_237 = arith.constant 0 : index
    %289 = vector.load %arg24[%c0_235, %c0_236, %c0_237] : memref<2x720x768xbf16, #tpu.memory_space<vmem>>, vector<1x400x540xbf16>
    %290 = vector.shape_cast %289 : vector<1x400x540xbf16> to vector<400x540xbf16>
    %291 = arith.truncf %280 : vector<8x400xf32> to vector<8x400xbf16>
    %cst_238 = arith.constant dense<0.000000e+00> : vector<8x540xf32>
    %292 = tpu.matmul %291, %290, %cst_238 {dimension_numbers = #tpu.dot_dimension_numbers<[1], [0], [0], [1], [0, 0, 1, 1], [], []>} : vector<8x400xbf16>, vector<400x540xbf16>, vector<8x540xf32> -> vector<8x540xf32>
    %c0_239 = arith.constant 0 : index
    %c4352 = arith.constant 4352 : index
    %293 = vector.load %arg2[%c0_239, %c4352] : memref<1x5760xf32, #tpu.memory_space<vmem>>, vector<1x540xf32>
    %294 = vector.broadcast %293 : vector<1x540xf32> to vector<8x540xf32>
    %295 = arith.addf %292, %294 : vector<8x540xf32>
    %cst_240 = arith.constant 0.000000e+00 : f32
    %296 = vector.broadcast %cst_240 : f32 to vector<8x540xf32>
    %297 = arith.maximumf %295, %296 : vector<8x540xf32>
    %c1_i32_241 = arith.constant 1 : i32
    %c1_i32_242 = arith.constant 1 : i32
    %c0_i32_243 = arith.constant 0 : i32
    %c0_i32_244 = arith.constant 0 : i32
    %298 = tpu.memref_slice %arg24[%c1_i32_241, %c0_i32_243, %c0_i32_244] : memref<2x720x768xbf16, #tpu.memory_space<vmem>> -> memref<1x544x768xbf16, #tpu.memory_space<vmem>>
    %299 = tpu.memref_squeeze %298 : memref<1x544x768xbf16, #tpu.memory_space<vmem>> -> memref<544x768xbf16, #tpu.memory_space<vmem>>
    %300 = tpu.memref_slice %arg25[%c1_i32_242] : memref<2x!tpu.dma_semaphore, #tpu.memory_space<semaphore_mem>> -> memref<1x!tpu.dma_semaphore, #tpu.memory_space<semaphore_mem>>
    %301 = tpu.memref_squeeze %300 : memref<1x!tpu.dma_semaphore, #tpu.memory_space<semaphore_mem>> -> memref<!tpu.dma_semaphore, #tpu.memory_space<semaphore_mem>>
    tpu.wait_dma2 semaphore(%301 : memref<!tpu.dma_semaphore, #tpu.memory_space<semaphore_mem>>) src(%arg20 : memref<544x768xbf16, #tpu.memory_space<any>>) dst(%299 : memref<544x768xbf16, #tpu.memory_space<vmem>>)
    %c1_245 = arith.constant 1 : index
    %c0_246 = arith.constant 0 : index
    %c0_247 = arith.constant 0 : index
    %302 = vector.load %arg24[%c1_245, %c0_246, %c0_247] : memref<2x720x768xbf16, #tpu.memory_space<vmem>>, vector<1x540x720xbf16>
    %303 = vector.shape_cast %302 : vector<1x540x720xbf16> to vector<540x720xbf16>
    %304 = arith.truncf %297 : vector<8x540xf32> to vector<8x540xbf16>
    %cst_248 = arith.constant dense<0.000000e+00> : vector<8x720xf32>
    %305 = tpu.matmul %304, %303, %cst_248 {dimension_numbers = #tpu.dot_dimension_numbers<[1], [0], [0], [1], [0, 0, 1, 1], [], []>} : vector<8x540xbf16>, vector<540x720xbf16>, vector<8x720xf32> -> vector<8x720xf32>
    %c0_249 = arith.constant 0 : index
    %c4992 = arith.constant 4992 : index
    %306 = vector.load %arg2[%c0_249, %c4992] : memref<1x5760xf32, #tpu.memory_space<vmem>>, vector<1x720xf32>
    %307 = vector.broadcast %306 : vector<1x720xf32> to vector<8x720xf32>
    %308 = arith.addf %305, %307 : vector<8x720xf32>
    %c0_250 = arith.constant 0 : index
    %c0_251 = arith.constant 0 : index
    %309 = vector.load %arg21[%c0_250, %c0_251] : memref<8x720xf32, #tpu.memory_space<vmem>>, vector<8x720xf32>
    tpu.vector_store %arg21[%c0_250, %c0_251], %308 {strides = array<i32>} : memref<8x720xf32, #tpu.memory_space<vmem>>, vector<8x720xf32>,
    %c0_252 = arith.constant 0 : index
    %c0_253 = arith.constant 0 : index
    %310 = vector.load %arg22[%c0_252, %c0_253] : memref<8x20xf32, #tpu.memory_space<vmem>>, vector<8x20xf32>
    tpu.vector_store %arg22[%c0_252, %c0_253], %154 {strides = array<i32>} : memref<8x20xf32, #tpu.memory_space<vmem>>, vector<8x20xf32>,
    %c0_254 = arith.constant 0 : index
    %c0_255 = arith.constant 0 : index
    %311 = vector.load %arg23[%c0_254, %c0_255] : memref<8x20xf32, #tpu.memory_space<vmem>>, vector<8x20xf32>
    tpu.vector_store %arg23[%c0_254, %c0_255], %155 {strides = array<i32>} : memref<8x20xf32, #tpu.memory_space<vmem>>, vector<8x20xf32>,
    return
  }
}

</mosaic_0001>

<bundles_post_ra>
// kernel: vae_forward.1
= control target key start
LH: loop header
LB: loop body
LE: loop exit
PB: predicated region body
PF: predicated region fallthrough
CT: control target
= control target key end

     0   :  { %s13440_s0 = inlined_call_operand.hbm [shape: f32[8,720], index: 0, kind: input, shape index: {}]   ;;  %s13441_s1 = inlined_call_operand.vmem [shape: f32[8,20], index: 1, kind: input, shape index: {}]   ;;  %s13442_s2 = inlined_call_operand.hbm [shape: f32[1,5760], index: 2, kind: input, shape index: {}]   ;;  %s13443_s3 = inlined_call_operand.hbm [shape: bf16[720,640], index: 3, kind: input, shape index: {}]   ;;  %s13444_s4 = inlined_call_operand.hbm [shape: bf16[544,512], index: 4, kind: input, shape index: {}]   ;;  %s13445_s5 = inlined_call_operand.hbm [shape: bf16[400,384], index: 5, kind: input, shape index: {}]   ;;  %s13446_s6 = inlined_call_operand.hbm [shape: bf16[304,256], index: 6, kind: input, shape index: {}]   ;;  %s13447_s7 = inlined_call_operand.hbm [shape: bf16[240,256], index: 7, kind: input, shape index: {}]   ;;  %s13448_s8 = inlined_call_operand.hbm [shape: bf16[160,128], index: 8, kind: input, shape index: {}]   ;;  %s13449_s9 = inlined_call_operand.hbm [shape: bf16[112,128], index: 9, kind: input, shape index: {}]   ;;  %s13450_s10 = inlined_call_operand.hbm [shape: bf16[64,128], index: 10, kind: input, shape index: {}]   ;;  %s13451_s11 = inlined_call_operand.hbm [shape: bf16[48,128], index: 11, kind: input, shape index: {}]   ;;  %s13452_s12 = inlined_call_operand.vmem [shape: bf16[32,128], index: 12, kind: input, shape index: {}]   ;;  %s13453_s13 = inlined_call_operand.hbm [shape: bf16[48,128], index: 13, kind: input, shape index: {}]   ;;  %s13454_s14 = inlined_call_operand.hbm [shape: bf16[64,128], index: 14, kind: input, shape index: {}]   ;;  %s13455_s15 = inlined_call_operand.hbm [shape: bf16[112,256], index: 15, kind: input, shape index: {}]   ;;  %s13456_s16 = inlined_call_operand.hbm [shape: bf16[160,256], index: 16, kind: input, shape index: {}]   ;;  %s13457_s17 = inlined_call_operand.hbm [shape: bf16[240,384], index: 17, kind: input, shape index: {}]   ;;  %s13458_s18 = inlined_call_operand.hbm [shape: bf16[304,512], index: 18, kind: input, shape index: {}]   ;;  %s13459_s19 = inlined_call_operand.hbm [shape: bf16[400,640], index: 19, kind: input, shape index: {}]   ;;  %s13460_s20 = inlined_call_operand.hbm [shape: bf16[544,768], index: 20, kind: input, shape index: {}]   ;;  %s13461_s21 = inlined_call_operand.hbm [shape: f32[8,720], index: 21, kind: output, shape index: {0}]   ;;  %s13462_s22 = inlined_call_operand.hbm [shape: f32[8,20], index: 22, kind: output, shape index: {1}]   ;;  %s13463_s23 = inlined_call_operand.hbm [shape: f32[8,20], index: 23, kind: output, shape index: {2}]  }
   0x1   :  { %13472 = sst [smem:[#allocation56_spill]] %s13440_s0 }
   0x2   :  { %13473 = sst [smem:[#allocation57_spill]] %s13441_s1 }
   0x3   :  { %13474 = sst [smem:[#allocation58_spill]] %s13442_s2 }
   0x4   :  { %13475 = sst [smem:[#allocation59_spill]] %s13443_s3 }
   0x5   :  { %13476 = sst [smem:[#allocation60_spill]] %s13444_s4 }
   0x6   :  { %13477 = sst [smem:[#allocation61_spill]] %s13445_s5 }
   0x7   :  { %13478 = sst [smem:[#allocation62_spill]] %s13446_s6 }
   0x8   :  { %13479 = sst [smem:[#allocation63_spill]] %s13447_s7 }
   0x9   :  { %29 = vsyncpa [#allocation5], 0 }
   0xa   :  { %30 = vsyncpa [#allocation8], 0 }
   0xb   :  { %31 = vsyncpa [#allocation6], 0 }
   0xc   :  { %32 = vsyncpa [#allocation11], 0  ;;  %s12583_s4 = smov [#allocation4]   ;;  %s12584_s24 = smov [#allocation7]  }
   0xd   :  { %s39_s30 = sshll.u32 %s12583_s4, 4  ;;  %s51_s25 = sshll.u32 %s12584_s24, 4  ;;  %s40_s30 = int_to_ptr.vmem [resolvable:$true] %s39_s30  ;;  %s52_s25 = int_to_ptr.vmem [resolvable:$true] %s51_s25 }
   0xe   :  { %s12107_s5 = scalar_lea.vmem %s40_s30, 768  ;;  %p12112_p1 = scmp.lt.s32.totalorder %s40_s30, %s40_s30 }
   0xf   :  { %p12108_p0 = scmp.ne.s32.totalorder %s40_s30, %s12107_s5  ;;  %p12113_p2 = scmp.lt.s32.totalorder %s12107_s5, %s12107_s5 }
  0x11   :  { %p12114_p3 = por %p12113_p2, %p12112_p1 }
  0x13   :  { %p12115_p4 = pnand %p12114_p3, %p12108_p0 }
  0x15   :  { %12118 = shalt.err (!%p12115_p4)
}
  0x16   :  { %s13480_s2 = sld [smem:[#allocation56_spill]]  ;;  %s12127_s6 = scalar_lea.vmem %s52_s25, 720 }
  0x17   :  { %p12128_p5 = scmp.ne.s32.totalorder %s52_s25, %s12127_s6  ;;  %s12131_s27 = scalar_lea.vmem %s52_s25, 736 }
  0x18   :  { %p12132_p6 = scmp.lt.s32.totalorder %s52_s25, %s52_s25  ;;  %p12133_p7 = scmp.lt.s32.totalorder %s12131_s27, %s12127_s6 }
  0x1a   :  { %p12134_p8 = por %p12133_p7, %p12132_p6 }
  0x1c   :  { %42 = dma.hbm_to_vmem [thread:$0]  %s13480_s2, 768, %s40_s30, [#allocation5]  }
  0x1d   :  { %p12135_p9 = pnand %p12134_p8, %p12128_p5 }
  0x1f   :  { %12138 = shalt.err (!%p12135_p9)
}
  0x20   :  { %s13481_s29 = sld [smem:[#allocation58_spill]] }
  0x26   :  { %54 = dma.hbm_to_vmem [thread:$0]  %s13481_s29, 720, %s52_s25, [#allocation8]  }
  0x27   :  { %12539 = dma.done.wait [#allocation5], 768  }
  0x28   :  { %12540 = vsyncadd [#allocation5], 4294966528 }
  0x29   :  { %12541 = dma.done.wait [#allocation8], 720  }
  0x2a   :  { %12542 = vsyncadd [#allocation8], 4294966576  ;;  %s12585_s3 = smov [#allocation2]  }
  0x2b   :  { %s63_s0 = sshll.u32 %s12585_s3, 4  ;;  %s12732_s0 = int_to_ptr.vmem [resolvable:$true] %s63_s0 }
  0x2c   :  { %s12147_s4 = scalar_lea.vmem %s12732_s0, 28800  ;;  %s12737_s30 = scalar_lea.vmem %s12732_s0, 69120 }
  0x2d   :  { %p12148_p10 = scmp.ne.s32.totalorder %s12732_s0, %s12147_s4  ;;  %p12741_p11 = scmp.lt.s32.totalorder %s12732_s0, %s12732_s0 }
  0x2e   :  { %p12153_p12 = scmp.lt.s32.totalorder %s12737_s30, %s12147_s4 }
  0x30   :  { %p12154_p13 = por %p12153_p12, %p12741_p11 }
  0x32   :  { %p12155_p0 = pnand %p12154_p13, %p12148_p10 }
  0x34   :  { %12158 = shalt.err (!%p12155_p0)  }
  0x35   :  { %s13464_s25 = smov 320   ;;  %s12587_s5 = smov 384   ;;  %v12757_v0 = vld [vmem:[#allocation4] sm:$0xff]  ;;  %v68_v1 = vld [vmem:[#allocation4 + $0x8] sm:$0xff]  ;;  %v12759_v2 = vld [vmem:[#allocation4 + $0x10] sm:$0xff] }
  0x36   :  { %s13465_s1 = smov 20   ;;  %s13483_s6 = sld [smem:[#allocation59_spill]] }
  0x37   :  { %s12589_s27 = smov [#allocation2 + $0x870]  }
  0x38   :  { %s76_s7 = sshll.u32 %s12589_s27, 4  ;;  %s12755_s7 = int_to_ptr.vmem [resolvable:$true] %s76_s7 }
  0x39   :  { %s12167_s28 = scalar_lea.vmem %s12755_s7, 17408  ;;  %p12765_p2 = scmp.lt.s32.totalorder %s12755_s7, %s12732_s0 }
  0x3a   :  { %p12168_p1 = scmp.ne.s32.totalorder %s12755_s7, %s12167_s28  ;;  %p12173_p3 = scmp.lt.s32.totalorder %s12737_s30, %s12167_s28 }
  0x3c   :  { %66 = dma.hbm_to_vmem [thread:$0]  %s13483_s6, 28800, %s12732_s0, [#allocation3], %s13464_s25, %s12587_s5, %s13465_s1 }
  0x3d   :  { %p12174_p4 = por %p12173_p3, %p12765_p2 }
  0x3f   :  { %p12175_p5 = pnand %p12174_p4, %p12168_p1 }
  0x41   :  { %12178 = shalt.err (!%p12175_p5)  }
  0x42   :  { %s13466_s3 = smov 256   ;;  %s13467_s4 = smov 16   ;;  %v70_v3 = vld [vmem:[#allocation4 + $0x18] sm:$0xff]  ;;  %v12779_v4 = vld [vmem:[#allocation4 + $0x20] sm:$0xff]  ;;  %v12781_v5 = vld [vmem:[#allocation4 + $0x28] sm:$0xff] }
  0x43   :  { %s13485_s6 = sld [smem:[#allocation60_spill]] }
  0x49   :  { %79 = dma.hbm_to_vmem [thread:$0]  %s13485_s6, 17408, %s12755_s7, [#allocation3 + $0x1], %s13466_s3, %s12587_s5, %s13467_s4 }
  0x4a   :  { %12543 = dma.done.wait [#allocation3], 28800 }
  0x4b   :  { %12544 = vsyncadd [#allocation3], 4294938496  ;;  %v12783_v6 = vpack.c.bf16 %v68_v1, %v68_v1  ;;  %v12785_v7 = vpack.c.bf16 %v70_v3, %v70_v3  ;;  %v10641_v8 = vld [vmem:[#allocation2 + $0x154] ss:$24 sps:$4 sm:$0xff]   ;;  %v10643_v9 = vld [vmem:[#allocation2 + $0x150] ss:$24 sps:$4 sm:$0xff]  }
  0x4c   :  { %1561 = vmatprep.subr.bf16.mxu0 %v10641_v8  ;;  %v10644_v10 = vld [vmem:[#allocation2 + $0x454] ss:$24 sps:$4 sm:$0xff]   ;;  %v10646_v11 = vld [vmem:[#allocation2 + $0x450] ss:$24 sps:$4 sm:$0xff]   ;;  %v10647_v12 = vld [vmem:[#allocation2 + $0x124] ss:$24 sps:$4 sm:$0xff]  }
  0x4d   :  { %1593 = vmatprep.mubr.bf16.mxu0 %v12783_v6  ;;  %1634 = vmatprep.mubr.bf16.mxu1 %v12785_v7  ;;  %v10649_v13 = vld [vmem:[#allocation2 + $0x120] ss:$24 sps:$4 sm:$0xff]   ;;  %v10650_v14 = vld [vmem:[#allocation2 + $0x424] ss:$24 sps:$4 sm:$0xff]   ;;  %v10653_v16 = vld [vmem:[#allocation2 + $0xf4] ss:$24 sps:$4 sm:$0xff]  }
  0x4e   :  { %1562 = vmatpush1.bf16.msra.mxu0 %v10643_v9  ;;  %1602 = vmatprep.subr.bf16.mxu1 %v10644_v10  ;;  %v10652_v15 = vld [vmem:[#allocation2 + $0x420] ss:$24 sps:$4 sm:$0xff]   ;;  %v10655_v17 = vld [vmem:[#allocation2 + $0xf0] ss:$24 sps:$4 sm:$0xff]   ;;  %v10656_v18 = vld [vmem:[#allocation2 + $0x3f4] ss:$24 sps:$4 sm:$0xff]  }
  0x4f   :  { %1603 = vmatpush1.bf16.msra.mxu1 %v10646_v11  ;;  %1563 = vmatprep.subr.bf16.mxu0 %v10647_v12  ;;  %v10659_v19 = vld [vmem:[#allocation2 + $0xc4] ss:$24 sps:$4 sm:$0xff]   ;;  %v10658_v20 = vld [vmem:[#allocation2 + $0x3f0] ss:$24 sps:$4 sm:$0xff]   ;;  %v10661_v22 = vld [vmem:[#allocation2 + $0xc0] ss:$24 sps:$4 sm:$0xff]  }
  0x50   :  { %1604 = vmatprep.subr.bf16.mxu1 %v10650_v14  ;;  %v10662_v21 = vld [vmem:[#allocation2 + $0x3c4] ss:$24 sps:$4 sm:$0xff]   ;;  %v10665_v23 = vld [vmem:[#allocation2 + $0x94] ss:$24 sps:$4 sm:$0xff]   ;;  %v10664_v24 = vld [vmem:[#allocation2 + $0x3c0] ss:$24 sps:$4 sm:$0xff]  }
  0x51   :  { %v10668_v25 = vld [vmem:[#allocation2 + $0x394] ss:$24 sps:$4 sm:$0xff]   ;;  %v10667_v26 = vld [vmem:[#allocation2 + $0x90] ss:$24 sps:$4 sm:$0xff]   ;;  %v10671_v27 = vld [vmem:[#allocation2 + $0x64] ss:$24 sps:$4 sm:$0xff]  }
  0x52   :  { %1564 = vmatpush1.bf16.msra.mxu0 %v10649_v13  ;;  %v10670_v28 = vld [vmem:[#allocation2 + $0x390] ss:$24 sps:$4 sm:$0xff]   ;;  %v10674_v29 = vld [vmem:[#allocation2 + $0x364] ss:$24 sps:$4 sm:$0xff]   ;;  %v10673_v30 = vld [vmem:[#allocation2 + $0x60] ss:$24 sps:$4 sm:$0xff]  }
  0x53   :  { %1565 = vmatprep.subr.bf16.mxu0 %v10653_v16  ;;  %1605 = vmatpush1.bf16.msra.mxu1 %v10652_v15  ;;  %v10677_v31 = vld [vmem:[#allocation2 + $0x34] ss:$24 sps:$4 sm:$0xff]   ;;  %v10676_v32 = vld [vmem:[#allocation2 + $0x360] ss:$24 sps:$4 sm:$0xff]   ;;  %v10679_v34 = vld [vmem:[#allocation2 + $0x30] ss:$24 sps:$4 sm:$0xff]   ;;  %v12791_v15 = vpack.c.bf16 %v12757_v0, %v12757_v0 }
  0x54   :  { %1606 = vmatprep.subr.bf16.mxu1 %v10656_v18  ;;  %v10680_v33 = vld [vmem:[#allocation2 + $0x334] ss:$24 sps:$4 sm:$0xff]   ;;  %v10683_v35 = vld [vmem:[#allocation2 + $0x4] ss:$24 sps:$4 sm:$0xff]   ;;  %v10682_v36 = vld [vmem:[#allocation2 + $0x330] ss:$24 sps:$4 sm:$0xff]   ;;  %v12795_v18 = vpack.c.bf16 %v12781_v5, %v12781_v5 }
  0x55   :  { %v10686_v37 = vld [vmem:[#allocation2 + $0x304] ss:$24 sps:$4 sm:$0xff]   ;;  %v10685_v38 = vld [vmem:[#allocation2] ss:$24 sps:$4 sm:$0xff]   ;;  %v10689_v39 = vld [vmem:[#allocation2 + $0x2d4] ss:$24 sps:$4 sm:$0xff]  }
  0x56   :  { %1566 = vmatpush1.bf16.msra.mxu0 %v10655_v17  ;;  %v10688_v40 = vld [vmem:[#allocation2 + $0x300] ss:$24 sps:$4 sm:$0xff]   ;;  %v10692_v41 = vld [vmem:[#allocation2 + $0x5d4] ss:$24 sps:$4 sm:$0xff]   ;;  %v10691_v42 = vld [vmem:[#allocation2 + $0x2d0] ss:$24 sps:$4 sm:$0xff]  }
  0x57   :  { %1567 = vmatprep.subr.bf16.mxu0 %v10659_v19  ;;  %1607 = vmatpush1.bf16.msra.mxu1 %v10658_v20  ;;  %v10695_v43 = vld [vmem:[#allocation2 + $0x2a4] ss:$24 sps:$4 sm:$0xff]   ;;  %v10694_v44 = vld [vmem:[#allocation2 + $0x5d0] ss:$24 sps:$4 sm:$0xff]   ;;  %v10697_v46 = vld [vmem:[#allocation2 + $0x2a0] ss:$24 sps:$4 sm:$0xff]   ;;  %v12799_v19 = vpack.c.bf16 %v12759_v2, %v12759_v2 }
  0x58   :  { %1608 = vmatprep.subr.bf16.mxu1 %v10662_v21  ;;  %v10698_v45 = vld [vmem:[#allocation2 + $0x5a4] ss:$24 sps:$4 sm:$0xff]   ;;  %v10701_v47 = vld [vmem:[#allocation2 + $0x274] ss:$24 sps:$4 sm:$0xff]   ;;  %v10700_v48 = vld [vmem:[#allocation2 + $0x5a0] ss:$24 sps:$4 sm:$0xff]  }
  0x59   :  { %v10704_v49 = vld [vmem:[#allocation2 + $0x574] ss:$24 sps:$4 sm:$0xff]   ;;  %v10703_v50 = vld [vmem:[#allocation2 + $0x270] ss:$24 sps:$4 sm:$0xff]   ;;  %v10707_v51 = vld [vmem:[#allocation2 + $0x244] ss:$24 sps:$4 sm:$0xff]  }
  0x5a   :  { %1568 = vmatpush1.bf16.msra.mxu0 %v10661_v22  ;;  %v10706_v52 = vld [vmem:[#allocation2 + $0x570] ss:$24 sps:$4 sm:$0xff]   ;;  %v10710_v53 = vld [vmem:[#allocation2 + $0x544] ss:$24 sps:$4 sm:$0xff]   ;;  %v10709_v54 = vld [vmem:[#allocation2 + $0x240] ss:$24 sps:$4 sm:$0xff]  }
  0x5b   :  { %1569 = vmatprep.subr.bf16.mxu0 %v10665_v23  ;;  %1609 = vmatpush1.bf16.msra.mxu1 %v10664_v24  ;;  %v10713_v55 = vld [vmem:[#allocation2 + $0x214] ss:$24 sps:$4 sm:$0xff]   ;;  %v10712_v56 = vld [vmem:[#allocation2 + $0x540] ss:$24 sps:$4 sm:$0xff]   ;;  %v10715_v58 = vld [vmem:[#allocation2 + $0x210] ss:$24 sps:$4 sm:$0xff]  }
  0x5c   :  { %1610 = vmatprep.subr.bf16.mxu1 %v10668_v25  ;;  %v10716_v57 = vld [vmem:[#allocation2 + $0x514] ss:$24 sps:$4 sm:$0xff]   ;;  %v10719_v59 = vld [vmem:[#allocation2 + $0x1e4] ss:$24 sps:$4 sm:$0xff]   ;;  %v10718_v60 = vld [vmem:[#allocation2 + $0x510] ss:$24 sps:$4 sm:$0xff]  }
  0x5d   :  { %v10722_v61 = vld [vmem:[#allocation2 + $0x4e4] ss:$24 sps:$4 sm:$0xff]   ;;  %v10721_v62 = vld [vmem:[#allocation2 + $0x1e0] ss:$24 sps:$4 sm:$0xff]   ;;  %v10725_v63 = vld [vmem:[#allocation2 + $0x1b4] ss:$24 sps:$4 sm:$0xff]  }
  0x5e   :  { %1570 = vmatpush1.bf16.msra.mxu0 %v10667_v26  ;;  %v10724_v1 = vld [vmem:[#allocation2 + $0x4e0] ss:$24 sps:$4 sm:$0xff]   ;;  %v10728_v3 = vld [vmem:[#allocation2 + $0x4b4] ss:$24 sps:$4 sm:$0xff]   ;;  %v10727_v8 = vld [vmem:[#allocation2 + $0x1b0] ss:$24 sps:$4 sm:$0xff]  }
  0x5f   :  { %1571 = vmatprep.subr.bf16.mxu0 %v10671_v27  ;;  %1611 = vmatpush1.bf16.msra.mxu1 %v10670_v28  ;;  %v10731_v9 = vld [vmem:[#allocation2 + $0x184] ss:$24 sps:$4 sm:$0xff]   ;;  %v10730_v10 = vld [vmem:[#allocation2 + $0x4b0] ss:$24 sps:$4 sm:$0xff]   ;;  %v10733_v12 = vld [vmem:[#allocation2 + $0x180] ss:$24 sps:$4 sm:$0xff]  }
  0x60   :  { %1612 = vmatprep.subr.bf16.mxu1 %v10674_v29  ;;  %v10734_v11 = vld [vmem:[#allocation2 + $0x484] ss:$24 sps:$4 sm:$0xff]   ;;  %v10737_v13 = vld [vmem:[#allocation2 + $0x754] ss:$24 sps:$4 sm:$0xff]   ;;  %v10736_v14 = vld [vmem:[#allocation2 + $0x480] ss:$24 sps:$4 sm:$0xff]  }
  0x61   :  { %v10740_v16 = vld [vmem:[#allocation2 + $0x15c] ss:$24 sps:$4 sm:$0xff]   ;;  %v10739_v17 = vld [vmem:[#allocation2 + $0x750] ss:$24 sps:$4 sm:$0xff]   ;;  %vm1557_vm0 = vcmask 654336   ;;  %s12187_s27 = scalar_lea.vmem %s12732_s0, 9600 }
  0x62   :  { %1572 = vmatpush1.bf16.msra.mxu0 %v10673_v30  ;;  %v10743_v20 = vld [vmem:[#allocation2 + $0x724] ss:$24 sps:$4 sm:$0xff]   ;;  %v10742_v21 = vld [vmem:[#allocation2 + $0x158] ss:$24 sps:$4 sm:$0xff]   ;;  %v10749_v5 = vld [vmem:[#allocation2 + $0x6f4] ss:$24 sps:$4 sm:$0xff]   ;;  %p12188_p6 = scmp.ne.s32.totalorder %s12732_s0, %s12187_s27  ;;  %p12193_p7 = scmp.lt.s32.totalorder %s12737_s30, %s12187_s27 }
  0x63   :  { %1573 = vmatprep.subr.bf16.mxu0 %v10677_v31  ;;  %1613 = vmatpush1.bf16.msra.mxu1 %v10676_v32  ;;  %v10746_v0 = vld [vmem:[#allocation2 + $0x12c] ss:$24 sps:$4 sm:$0xff]   ;;  %v10745_v22 = vld [vmem:[#allocation2 + $0x720] ss:$24 sps:$4 sm:$0xff]   ;;  %v10752_v23 = vld [vmem:[#allocation2 + $0xfc] ss:$24 sps:$4 sm:$0xff]  }
  0x64   :  { %1614 = vmatprep.subr.bf16.mxu1 %v10680_v33  ;;  %v10748_v2 = vld [vmem:[#allocation2 + $0x128] ss:$24 sps:$4 sm:$0xff]   ;;  %v10755_v25 = vld [vmem:[#allocation2 + $0x6c4] ss:$24 sps:$4 sm:$0xff]   ;;  %v10754_v26 = vld [vmem:[#allocation2 + $0xf8] ss:$24 sps:$4 sm:$0xff]   ;;  %p12194_p8 = por %p12193_p7, %p12741_p11 }
  0x65   :  { %v10751_v24 = vld [vmem:[#allocation2 + $0x6f0] ss:$24 sps:$4 sm:$0xff]   ;;  %v10758_v27 = vld [vmem:[#allocation2 + $0xcc] ss:$24 sps:$4 sm:$0xff]   ;;  %v10757_v28 = vld [vmem:[#allocation2 + $0x6c0] ss:$24 sps:$4 sm:$0xff]  }
  0x66   :  { %1574 = vmatpush1.bf16.msra.mxu0 %v10679_v34  ;;  %v10761_v29 = vld [vmem:[#allocation2 + $0x694] ss:$24 sps:$4 sm:$0xff]   ;;  %v10760_v30 = vld [vmem:[#allocation2 + $0xc8] ss:$24 sps:$4 sm:$0xff]   ;;  %v10767_v33 = vld [vmem:[#allocation2 + $0x664] ss:$24 sps:$4 sm:$0xff]   ;;  %p12195_p9 = pnand %p12194_p8, %p12188_p6 }
  0x67   :  { %1575 = vmatprep.subr.bf16.mxu0 %v10683_v35  ;;  %1615 = vmatpush1.bf16.msra.mxu1 %v10682_v36  ;;  %v10764_v31 = vld [vmem:[#allocation2 + $0x9c] ss:$24 sps:$4 sm:$0xff]   ;;  %v10763_v32 = vld [vmem:[#allocation2 + $0x690] ss:$24 sps:$4 sm:$0xff]   ;;  %v10770_v35 = vld [vmem:[#allocation2 + $0x6c] ss:$24 sps:$4 sm:$0xff]  }
  0x68   :  { %1616 = vmatprep.subr.bf16.mxu1 %v10686_v37  ;;  %v10766_v34 = vld [vmem:[#allocation2 + $0x98] ss:$24 sps:$4 sm:$0xff]   ;;  %v10773_v37 = vld [vmem:[#allocation2 + $0x634] ss:$24 sps:$4 sm:$0xff]  }
  0x69   :  { %v10769_v36 = vld [vmem:[#allocation2 + $0x660] ss:$24 sps:$4 sm:$0xff]  }
  0x6a   :  { %1576 = vmatpush1.bf16.msra.mxu0 %v10685_v38  ;;  %v10772_v38 = vld [vmem:[#allocation2 + $0x68] ss:$24 sps:$4 sm:$0xff]  }
  0x6b   :  { %1577 = vmatprep.subr.bf16.mxu0 %v10689_v39  ;;  %1617 = vmatpush1.bf16.msra.mxu1 %v10688_v40  ;;  %v10776_v39 = vld [vmem:[#allocation2 + $0x3c] ss:$24 sps:$4 sm:$0xff]   ;;  %v10775_v40 = vld [vmem:[#allocation2 + $0x630] ss:$24 sps:$4 sm:$0xff]  }
  0x6c   :  { %1618 = vmatprep.subr.bf16.mxu1 %v10692_v41  ;;  %v10779_v41 = vld [vmem:[#allocation2 + $0x604] ss:$24 sps:$4 sm:$0xff]  }
  0x6e   :  { %1578 = vmatpush2.bf16.msra.mxu0 %v10691_v42  ;;  %v10778_v42 = vld [vmem:[#allocation2 + $0x38] ss:$24 sps:$4 sm:$0xff]  }
  0x6f   :  { %1579 = vmatprep.subr.bf16.mxu0 %v10695_v43  ;;  %1619 = vmatpush2.bf16.msra.mxu1 %v10694_v44  ;;  %v10782_v43 = vld [vmem:[#allocation2 + $0xc] ss:$24 sps:$4 sm:$0xff]   ;;  %v10781_v44 = vld [vmem:[#allocation2 + $0x600] ss:$24 sps:$4 sm:$0xff]  }
  0x70   :  { %1620 = vmatprep.subr.bf16.mxu1 %v10698_v45  ;;  %v10785_v45 = vld [vmem:[#allocation2 + $0x844] ss:$24 sps:$4 sm:$0xff]  }
  0x72   :  { %1580 = vmatpush2.bf16.msra.mxu0 %v10697_v46  ;;  %v10784_v46 = vld [vmem:[#allocation2 + $0x8] ss:$24 sps:$4 sm:$0xff]  }
  0x73   :  { %1581 = vmatprep.subr.bf16.mxu0 %v10701_v47  ;;  %1621 = vmatpush2.bf16.msra.mxu1 %v10700_v48  ;;  %v10788_v47 = vld [vmem:[#allocation2 + $0x2dc] ss:$24 sps:$4 sm:$0xff]   ;;  %v10787_v48 = vld [vmem:[#allocation2 + $0x840] ss:$24 sps:$4 sm:$0xff]  }
  0x74   :  { %1622 = vmatprep.subr.bf16.mxu1 %v10704_v49  ;;  %v10791_v49 = vld [vmem:[#allocation2 + $0x814] ss:$24 sps:$4 sm:$0xff]  }
  0x76   :  { %1582 = vmatpush2.bf16.msra.mxu0 %v10703_v50  ;;  %v10790_v50 = vld [vmem:[#allocation2 + $0x2d8] ss:$24 sps:$4 sm:$0xff]  }
  0x77   :  { %1583 = vmatprep.subr.bf16.mxu0 %v10707_v51  ;;  %1623 = vmatpush2.bf16.msra.mxu1 %v10706_v52  ;;  %v10794_v51 = vld [vmem:[#allocation2 + $0x2ac] ss:$24 sps:$4 sm:$0xff]   ;;  %v10793_v52 = vld [vmem:[#allocation2 + $0x810] ss:$24 sps:$4 sm:$0xff]  }
  0x78   :  { %1624 = vmatprep.subr.bf16.mxu1 %v10710_v53  ;;  %v10797_v53 = vld [vmem:[#allocation2 + $0x7e4] ss:$24 sps:$4 sm:$0xff]  }
  0x7a   :  { %1584 = vmatpush2.bf16.msra.mxu0 %v10709_v54  ;;  %v10796_v54 = vld [vmem:[#allocation2 + $0x2a8] ss:$24 sps:$4 sm:$0xff]  }
  0x7b   :  { %1585 = vmatprep.subr.bf16.mxu0 %v10713_v55  ;;  %1625 = vmatpush2.bf16.msra.mxu1 %v10712_v56  ;;  %v10800_v55 = vld [vmem:[#allocation2 + $0x27c] ss:$24 sps:$4 sm:$0xff]   ;;  %v10799_v56 = vld [vmem:[#allocation2 + $0x7e0] ss:$24 sps:$4 sm:$0xff]  }
  0x7c   :  { %1626 = vmatprep.subr.bf16.mxu1 %v10716_v57  ;;  %v10803_v57 = vld [vmem:[#allocation2 + $0x7b4] ss:$24 sps:$4 sm:$0xff]  }
  0x7e   :  { %1586 = vmatpush2.bf16.msra.mxu0 %v10715_v58  ;;  %v10802_v58 = vld [vmem:[#allocation2 + $0x278] ss:$24 sps:$4 sm:$0xff]  }
  0x7f   :  { %1587 = vmatprep.subr.bf16.mxu0 %v10719_v59  ;;  %1627 = vmatpush2.bf16.msra.mxu1 %v10718_v60  ;;  %v10806_v59 = vld [vmem:[#allocation2 + $0x24c] ss:$24 sps:$4 sm:$0xff]   ;;  %v10805_v60 = vld [vmem:[#allocation2 + $0x7b0] ss:$24 sps:$4 sm:$0xff]  }
  0x80   :  { %1628 = vmatprep.subr.bf16.mxu1 %v10722_v61  ;;  %v10809_v61 = vld [vmem:[#allocation2 + $0x784] ss:$24 sps:$4 sm:$0xff]  }
  0x82   :  { %1588 = vmatpush2.bf16.msra.mxu0 %v10721_v62  ;;  %v10808_v62 = vld [vmem:[#allocation2 + $0x248] ss:$24 sps:$4 sm:$0xff]  }
  0x83   :  { %1589 = vmatprep.subr.bf16.mxu0 %v10725_v63  ;;  %1629 = vmatpush2.bf16.msra.mxu1 %v10724_v1  ;;  %v10812_v63 = vld [vmem:[#allocation2 + $0x21c] ss:$24 sps:$4 sm:$0xff]   ;;  %v10811_v1 = vld [vmem:[#allocation2 + $0x780] ss:$24 sps:$4 sm:$0xff]  }
  0x84   :  { %1630 = vmatprep.subr.bf16.mxu1 %v10728_v3  ;;  %v10815_v3 = vld [vmem:[#allocation2 + $0x45c] ss:$24 sps:$4 sm:$0xff]  }
  0x86   :  { %1590 = vmatpush2.bf16.msra.mxu0 %v10727_v8  ;;  %v10814_v8 = vld [vmem:[#allocation2 + $0x218] ss:$24 sps:$4 sm:$0xff]  }
  0x87   :  { %1591 = vmatprep.subr.bf16.mxu0 %v10731_v9  ;;  %1631 = vmatpush2.bf16.msra.mxu1 %v10730_v10  ;;  %v12808_v9 = vpack.c.bf16 %v12779_v4, %v12779_v4  ;;  %v10818_v10 = vld [vmem:[#allocation2 + $0x1ec] ss:$24 sps:$4 sm:$0xff]   ;;  %v10826_v4 = vld [vmem:[#allocation2 + $0x1b8] ss:$24 sps:$4 sm:$0xff]  }
  0x88   :  { %1632 = vmatprep.subr.bf16.mxu1 %v10734_v11  ;;  %v10817_v11 = vld [vmem:[#allocation2 + $0x458] ss:$24 sps:$4 sm:$0xff]  }
  0x8a   :  { %1592 = vmatpush2.bf16.msra.mxu0 %v10733_v12  ;;  %v10821_v12 = vld [vmem:[#allocation2 + $0x42c] ss:$24 sps:$4 sm:$0xff]  }
  0x8b   :  { %1643 = vmatprep.subr.bf16.mxu0 %v10737_v13  ;;  %1633 = vmatpush2.bf16.msra.mxu1 %v10736_v14  ;;  %v10820_v13 = vld [vmem:[#allocation2 + $0x1e8] ss:$24 sps:$4 sm:$0xff]   ;;  %v10824_v14 = vld [vmem:[#allocation2 + $0x1bc] ss:$24 sps:$4 sm:$0xff]  }
  0x8c   :  { %1684 = vmatprep.subr.bf16.mxu1 %v10740_v16  ;;  %v10823_v16 = vld [vmem:[#allocation2 + $0x428] ss:$24 sps:$4 sm:$0xff]  }
  0x8d   :  { %1594 = vmatmul.mubr.bf16.vlgmr.msra.gmra.mxu0 %v12791_v15 }
  0x8e   :  { %1644 = vmatpush1.bf16.msra.mxu0 %v10739_v17  ;;  %9588 = vmatprep.mubr.msk.bf16.mxu0 %vm1557_vm0, %v12795_v18  ;;  %v10827_v17 = vld [vmem:[#allocation2 + $0x3fc] ss:$24 sps:$4 sm:$0xff]  }
  0x8f   :  { %1635 = vmatmul.mubr.bf16.vlgmr.msra.gmra.mxu1 %v12799_v19  ;;  %1645 = vmatprep.subr.bf16.mxu0 %v10743_v20  ;;  %v10830_v20 = vld [vmem:[#allocation2 + $0x18c] ss:$24 sps:$4 sm:$0xff]  }
  0x90   :  { %1685 = vmatpush1.bf16.msra.mxu1 %v10742_v21  ;;  %1716 = vmatprep.mubr.bf16.mxu1 %v12783_v6  ;;  %v10829_v21 = vld [vmem:[#allocation2 + $0x3f8] ss:$24 sps:$4 sm:$0xff]  }
  0x91   :  { %1686 = vmatprep.subr.bf16.mxu1 %v10746_v0  ;;  %v10833_v0 = vld [vmem:[#allocation2 + $0x3cc] ss:$24 sps:$4 sm:$0xff]  }
  0x92   :  { %1646 = vmatpush1.bf16.msra.mxu0 %v10745_v22  ;;  %v10832_v22 = vld [vmem:[#allocation2 + $0x188] ss:$24 sps:$4 sm:$0xff]  }
  0x93   :  { %1647 = vmatprep.subr.bf16.mxu0 %v10749_v5  ;;  %v10836_v5 = vld [vmem:[#allocation2 + $0x75c] ss:$24 sps:$4 sm:$0xff]  }
  0x94   :  { %1687 = vmatpush1.bf16.msra.mxu1 %v10748_v2  ;;  %v10835_v2 = vld [vmem:[#allocation2 + $0x3c8] ss:$24 sps:$4 sm:$0xff]  }
  0x95   :  { %1688 = vmatprep.subr.bf16.mxu1 %v10752_v23  ;;  %v10839_v23 = vld [vmem:[#allocation2 + $0x39c] ss:$24 sps:$4 sm:$0xff]  }
  0x96   :  { %1648 = vmatpush1.bf16.msra.mxu0 %v10751_v24  ;;  %v10838_v24 = vld [vmem:[#allocation2 + $0x758] ss:$24 sps:$4 sm:$0xff]  }
  0x97   :  { %1649 = vmatprep.subr.bf16.mxu0 %v10755_v25  ;;  %v10842_v25 = vld [vmem:[#allocation2 + $0x72c] ss:$24 sps:$4 sm:$0xff]  }
  0x98   :  { %1689 = vmatpush1.bf16.msra.mxu1 %v10754_v26  ;;  %v10841_v26 = vld [vmem:[#allocation2 + $0x398] ss:$24 sps:$4 sm:$0xff]  }
  0x99   :  { %1690 = vmatprep.subr.bf16.mxu1 %v10758_v27  ;;  %v10845_v27 = vld [vmem:[#allocation2 + $0x36c] ss:$24 sps:$4 sm:$0xff]  }
  0x9a   :  { %1650 = vmatpush1.bf16.msra.mxu0 %v10757_v28  ;;  %v10844_v28 = vld [vmem:[#allocation2 + $0x728] ss:$24 sps:$4 sm:$0xff]  }
  0x9b   :  { %1651 = vmatprep.subr.bf16.mxu0 %v10761_v29  ;;  %v10848_v29 = vld [vmem:[#allocation2 + $0x6fc] ss:$24 sps:$4 sm:$0xff]  }
  0x9c   :  { %1691 = vmatpush1.bf16.msra.mxu1 %v10760_v30  ;;  %v10847_v30 = vld [vmem:[#allocation2 + $0x368] ss:$24 sps:$4 sm:$0xff]  }
  0x9d   :  { %1692 = vmatprep.subr.bf16.mxu1 %v10764_v31  ;;  %v10851_v31 = vld [vmem:[#allocation2 + $0x33c] ss:$24 sps:$4 sm:$0xff]  }
  0x9e   :  { %1652 = vmatpush1.bf16.msra.mxu0 %v10763_v32  ;;  %v10850_v32 = vld [vmem:[#allocation2 + $0x6f8] ss:$24 sps:$4 sm:$0xff]  }
  0x9f   :  { %1653 = vmatprep.subr.bf16.mxu0 %v10767_v33  ;;  %v10854_v33 = vld [vmem:[#allocation2 + $0x6cc] ss:$24 sps:$4 sm:$0xff]  }
  0xa0   :  { %1693 = vmatpush1.bf16.msra.mxu1 %v10766_v34  ;;  %v10853_v34 = vld [vmem:[#allocation2 + $0x338] ss:$24 sps:$4 sm:$0xff]  }
  0xa1   :  { %1694 = vmatprep.subr.bf16.mxu1 %v10770_v35  ;;  %v10857_v35 = vld [vmem:[#allocation2 + $0x30c] ss:$24 sps:$4 sm:$0xff]  }
  0xa2   :  { %1654 = vmatpush1.bf16.msra.mxu0 %v10769_v36  ;;  %v10856_v36 = vld [vmem:[#allocation2 + $0x6c8] ss:$24 sps:$4 sm:$0xff]  }
  0xa3   :  { %1655 = vmatprep.subr.bf16.mxu0 %v10773_v37  ;;  %v10860_v37 = vld [vmem:[#allocation2 + $0x69c] ss:$24 sps:$4 sm:$0xff]  }
  0xa4   :  { %1695 = vmatpush1.bf16.msra.mxu1 %v10772_v38  ;;  %v10859_v38 = vld [vmem:[#allocation2 + $0x308] ss:$24 sps:$4 sm:$0xff]  }
  0xa5   :  { %1696 = vmatprep.subr.bf16.mxu1 %v10776_v39  ;;  %v10863_v39 = vld [vmem:[#allocation2 + $0x5dc] ss:$24 sps:$4 sm:$0xff]  }
  0xa6   :  { %1656 = vmatpush1.bf16.msra.mxu0 %v10775_v40  ;;  %v10862_v40 = vld [vmem:[#allocation2 + $0x698] ss:$24 sps:$4 sm:$0xff]  }
  0xa7   :  { %1657 = vmatprep.subr.bf16.mxu0 %v10779_v41  ;;  %v10866_v41 = vld [vmem:[#allocation2 + $0x66c] ss:$24 sps:$4 sm:$0xff]  }
  0xa8   :  { %1697 = vmatpush1.bf16.msra.mxu1 %v10778_v42  ;;  %v10865_v42 = vld [vmem:[#allocation2 + $0x5d8] ss:$24 sps:$4 sm:$0xff]  }
  0xa9   :  { %1698 = vmatprep.subr.bf16.mxu1 %v10782_v43  ;;  %v10869_v43 = vld [vmem:[#allocation2 + $0x5ac] ss:$24 sps:$4 sm:$0xff]  }
  0xaa   :  { %1658 = vmatpush1.bf16.msra.mxu0 %v10781_v44  ;;  %v10868_v44 = vld [vmem:[#allocation2 + $0x668] ss:$24 sps:$4 sm:$0xff]  }
  0xab   :  { %1665 = vmatprep.subr.bf16.mxu0 %v10785_v45  ;;  %v10872_v45 = vld [vmem:[#allocation2 + $0x63c] ss:$24 sps:$4 sm:$0xff]  }
  0xac   :  { %1699 = vmatpush1.bf16.msra.mxu1 %v10784_v46  ;;  %v10871_v46 = vld [vmem:[#allocation2 + $0x5a8] ss:$24 sps:$4 sm:$0xff]  }
  0xad   :  { %1700 = vmatprep.subr.bf16.mxu1 %v10788_v47  ;;  %v10875_v47 = vld [vmem:[#allocation2 + $0x57c] ss:$24 sps:$4 sm:$0xff]  }
  0xae   :  { %1666 = vmatpush2.bf16.msra.mxu0 %v10787_v48  ;;  %v10874_v48 = vld [vmem:[#allocation2 + $0x638] ss:$24 sps:$4 sm:$0xff]  }
  0xaf   :  { %1667 = vmatprep.subr.bf16.mxu0 %v10791_v49  ;;  %v10878_v49 = vld [vmem:[#allocation2 + $0x60c] ss:$24 sps:$4 sm:$0xff]  }
  0xb0   :  { %1701 = vmatpush2.bf16.msra.mxu1 %v10790_v50  ;;  %v10877_v50 = vld [vmem:[#allocation2 + $0x578] ss:$24 sps:$4 sm:$0xff]  }
  0xb1   :  { %1702 = vmatprep.subr.bf16.mxu1 %v10794_v51  ;;  %v10881_v51 = vld [vmem:[#allocation2 + $0x54c] ss:$24 sps:$4 sm:$0xff]  }
  0xb2   :  { %1668 = vmatpush2.bf16.msra.mxu0 %v10793_v52  ;;  %v10880_v52 = vld [vmem:[#allocation2 + $0x608] ss:$24 sps:$4 sm:$0xff]  }
  0xb3   :  { %1669 = vmatprep.subr.bf16.mxu0 %v10797_v53  ;;  %v10884_v53 = vld [vmem:[#allocation2 + $0x84c] ss:$24 sps:$4 sm:$0xff]  }
  0xb4   :  { %1703 = vmatpush2.bf16.msra.mxu1 %v10796_v54  ;;  %v10883_v54 = vld [vmem:[#allocation2 + $0x548] ss:$24 sps:$4 sm:$0xff]  }
  0xb5   :  { %1704 = vmatprep.subr.bf16.mxu1 %v10800_v55  ;;  %v10887_v55 = vld [vmem:[#allocation2 + $0x51c] ss:$24 sps:$4 sm:$0xff]  }
  0xb6   :  { %1670 = vmatpush2.bf16.msra.mxu0 %v10799_v56  ;;  %v10886_v56 = vld [vmem:[#allocation2 + $0x848] ss:$24 sps:$4 sm:$0xff]  }
  0xb7   :  { %1671 = vmatprep.subr.bf16.mxu0 %v10803_v57  ;;  %v10890_v57 = vld [vmem:[#allocation2 + $0x81c] ss:$24 sps:$4 sm:$0xff]  }
  0xb8   :  { %1705 = vmatpush2.bf16.msra.mxu1 %v10802_v58  ;;  %v10889_v58 = vld [vmem:[#allocation2 + $0x518] ss:$24 sps:$4 sm:$0xff]  }
  0xb9   :  { %1706 = vmatprep.subr.bf16.mxu1 %v10806_v59  ;;  %v10893_v59 = vld [vmem:[#allocation2 + $0x4ec] ss:$24 sps:$4 sm:$0xff]  }
  0xba   :  { %1672 = vmatpush2.bf16.msra.mxu0 %v10805_v60  ;;  %v10892_v60 = vld [vmem:[#allocation2 + $0x818] ss:$24 sps:$4 sm:$0xff]  }
  0xbb   :  { %1673 = vmatprep.subr.bf16.mxu0 %v10809_v61  ;;  %v10896_v61 = vld [vmem:[#allocation2 + $0x7ec] ss:$24 sps:$4 sm:$0xff]  }
  0xbc   :  { %1707 = vmatpush2.bf16.msra.mxu1 %v10808_v62  ;;  %v10895_v62 = vld [vmem:[#allocation2 + $0x4e8] ss:$24 sps:$4 sm:$0xff]  }
  0xbd   :  { %1708 = vmatprep.subr.bf16.mxu1 %v10812_v63  ;;  %v10899_v63 = vld [vmem:[#allocation2 + $0x4bc] ss:$24 sps:$4 sm:$0xff]  }
  0xbe   :  { %1674 = vmatpush2.bf16.msra.mxu0 %v10811_v1  ;;  %v10898_v1 = vld [vmem:[#allocation2 + $0x7e8] ss:$24 sps:$4 sm:$0xff]  }
  0xbf   :  { %1725 = vmatprep.subr.bf16.mxu0 %v10815_v3  ;;  %v10902_v3 = vld [vmem:[#allocation2 + $0x7bc] ss:$24 sps:$4 sm:$0xff]  }
  0xc0   :  { %1709 = vmatpush2.bf16.msra.mxu1 %v10814_v8  ;;  %v10901_v8 = vld [vmem:[#allocation2 + $0x4b8] ss:$24 sps:$4 sm:$0xff]  }
  0xc1   :  { %1676 = vmatmul.mubr.bf16.vlgmr.msra.gmra.mxu0 %v12808_v9  ;;  %1710 = vmatprep.subr.bf16.mxu1 %v10818_v10  ;;  %v10905_v10 = vld [vmem:[#allocation2 + $0x48c] ss:$24 sps:$4 sm:$0xff]  }
  0xc2   :  { %1726 = vmatpush1.bf16.msra.mxu0 %v10817_v11  ;;  %1757 = vmatprep.mubr.bf16.mxu0 %v12785_v7  ;;  %v10904_v11 = vld [vmem:[#allocation2 + $0x7b8] ss:$24 sps:$4 sm:$0xff]  }
  0xc3   :  { %1727 = vmatprep.subr.bf16.mxu0 %v10821_v12  ;;  %v10908_v12 = vld [vmem:[#allocation2 + $0x78c] ss:$24 sps:$4 sm:$0xff]  }
  0xc4   :  { %1711 = vmatpush2.bf16.msra.mxu1 %v10820_v13  ;;  %v10907_v13 = vld [vmem:[#allocation2 + $0x488] ss:$24 sps:$4 sm:$0xff]  }
  0xc5   :  { %1712 = vmatprep.subr.bf16.mxu1 %v10824_v14  ;;  %v10911_v14 = vld [vmem:[#allocation2 + $0x2e0] ss:$24 sps:$4 sm:$0xff]  }
  0xc6   :  { %1728 = vmatpush1.bf16.msra.mxu0 %v10823_v16  ;;  %v10910_v16 = vld [vmem:[#allocation2 + $0x788] ss:$24 sps:$4 sm:$0xff]  }
  0xc7   :  { %1729 = vmatprep.subr.bf16.mxu0 %v10827_v17  ;;  %v10913_v17 = vld [vmem:[#allocation2 + $0x5e0] ss:$24 sps:$4 sm:$0xff]  }
  0xc8   :  { %1713 = vmatpush2.bf16.msra.mxu1 %v10826_v4  ;;  %v10912_v4 = vld [vmem:[#allocation2 + $0x160] ss:$24 sps:$4 sm:$0xff]  }
  0xc9   :  { %1714 = vmatprep.subr.bf16.mxu1 %v10830_v20  ;;  %v10915_v20 = vld [vmem:[#allocation2 + $0x2b0] ss:$24 sps:$4 sm:$0xff]  }
  0xca   :  { %1730 = vmatpush1.bf16.msra.mxu0 %v10829_v21  ;;  %v10914_v21 = vld [vmem:[#allocation2 + $0x460] ss:$24 sps:$4 sm:$0xff]  }
  0xcb   :  { %1731 = vmatprep.subr.bf16.mxu0 %v10833_v0  ;;  %v10917_v0 = vld [vmem:[#allocation2 + $0x5b0] ss:$24 sps:$4 sm:$0xff]  }
  0xcc   :  { %1715 = vmatpush2.bf16.msra.mxu1 %v10832_v22  ;;  %v10916_v22 = vld [vmem:[#allocation2 + $0x130] ss:$24 sps:$4 sm:$0xff]  }
  0xcd   :  { %1766 = vmatprep.subr.bf16.mxu1 %v10836_v5  ;;  %v10919_v5 = vld [vmem:[#allocation2 + $0x280] ss:$24 sps:$4 sm:$0xff]  }
  0xce   :  { %1732 = vmatpush1.bf16.msra.mxu0 %v10835_v2  ;;  %v10918_v2 = vld [vmem:[#allocation2 + $0x430] ss:$24 sps:$4 sm:$0xff]  }
  0xcf   :  { %1717 = vmatmul.mubr.bf16.vlgmr.msra.gmra.mxu1 %v12791_v15  ;;  %1733 = vmatprep.subr.bf16.mxu0 %v10839_v23  ;;  %v10921_v23 = vld [vmem:[#allocation2 + $0x580] ss:$24 sps:$4 sm:$0xff]  }
  0xd0   :  { %1767 = vmatpush1.bf16.msra.mxu1 %v10838_v24  ;;  %9589 = vmatprep.mubr.msk.bf16.mxu1 %vm1557_vm0, %v12795_v18  ;;  %v10920_v24 = vld [vmem:[#allocation2 + $0x100] ss:$24 sps:$4 sm:$0xff]  }
  0xd1   :  { %1768 = vmatprep.subr.bf16.mxu1 %v10842_v25  ;;  %v10923_v25 = vld [vmem:[#allocation2 + $0x250] ss:$24 sps:$4 sm:$0xff]  }
  0xd2   :  { %1734 = vmatpush1.bf16.msra.mxu0 %v10841_v26  ;;  %v10922_v26 = vld [vmem:[#allocation2 + $0x400] ss:$24 sps:$4 sm:$0xff]  }
  0xd3   :  { %1735 = vmatprep.subr.bf16.mxu0 %v10845_v27  ;;  %v10925_v27 = vld [vmem:[#allocation2 + $0x550] ss:$24 sps:$4 sm:$0xff]  }
  0xd4   :  { %1769 = vmatpush1.bf16.msra.mxu1 %v10844_v28  ;;  %v10927_v28 = vld [vmem:[#allocation2 + $0x220] ss:$24 sps:$4 sm:$0xff]  }
  0xd5   :  { %1770 = vmatprep.subr.bf16.mxu1 %v10848_v29  ;;  %v10926_v29 = vld [vmem:[#allocation2 + $0x3d0] ss:$24 sps:$4 sm:$0xff]  }
  0xd6   :  { %1736 = vmatpush1.bf16.msra.mxu0 %v10847_v30  ;;  %v10929_v30 = vld [vmem:[#allocation2 + $0x520] ss:$24 sps:$4 sm:$0xff]  }
  0xd7   :  { %1737 = vmatprep.subr.bf16.mxu0 %v10851_v31  ;;  %v10931_v31 = vld [vmem:[#allocation2 + $0x1f0] ss:$24 sps:$4 sm:$0xff]  }
  0xd8   :  { %1771 = vmatpush1.bf16.msra.mxu1 %v10850_v32  ;;  %v10930_v32 = vld [vmem:[#allocation2 + $0x3a0] ss:$24 sps:$4 sm:$0xff]  }
  0xd9   :  { %1772 = vmatprep.subr.bf16.mxu1 %v10854_v33  ;;  %v10933_v33 = vld [vmem:[#allocation2 + $0x4f0] ss:$24 sps:$4 sm:$0xff]  }
  0xda   :  { %1738 = vmatpush1.bf16.msra.mxu0 %v10853_v34  ;;  %v10932_v34 = vld [vmem:[#allocation2 + $0x70] ss:$24 sps:$4 sm:$0xff]  }
  0xdb   :  { %1739 = vmatprep.subr.bf16.mxu0 %v10857_v35  ;;  %v10935_v35 = vld [vmem:[#allocation2 + $0x1c0] ss:$24 sps:$4 sm:$0xff]  }
  0xdc   :  { %1773 = vmatpush1.bf16.msra.mxu1 %v10856_v36  ;;  %v10934_v36 = vld [vmem:[#allocation2 + $0x370] ss:$24 sps:$4 sm:$0xff]  }
  0xdd   :  { %1774 = vmatprep.subr.bf16.mxu1 %v10860_v37  ;;  %v10937_v37 = vld [vmem:[#allocation2 + $0x4c0] ss:$24 sps:$4 sm:$0xff]  }
  0xde   :  { %1740 = vmatpush1.bf16.msra.mxu0 %v10859_v38  ;;  %v10936_v38 = vld [vmem:[#allocation2 + $0x40] ss:$24 sps:$4 sm:$0xff]  }
  0xdf   :  { %1741 = vmatprep.subr.bf16.mxu0 %v10863_v39  ;;  %v10939_v39 = vld [vmem:[#allocation2 + $0x190] ss:$24 sps:$4 sm:$0xff]  }
  0xe0   :  { %1775 = vmatpush1.bf16.msra.mxu1 %v10862_v40  ;;  %v10938_v40 = vld [vmem:[#allocation2 + $0x340] ss:$24 sps:$4 sm:$0xff]  }
  0xe1   :  { %1776 = vmatprep.subr.bf16.mxu1 %v10866_v41  ;;  %v10941_v41 = vld [vmem:[#allocation2 + $0x490] ss:$24 sps:$4 sm:$0xff]  }
  0xe2   :  { %1742 = vmatpush2.bf16.msra.mxu0 %v10865_v42  ;;  %v10940_v42 = vld [vmem:[#allocation2 + $0x10] ss:$24 sps:$4 sm:$0xff]  }
  0xe3   :  { %1743 = vmatprep.subr.bf16.mxu0 %v10869_v43  ;;  %v10942_v43 = vld [vmem:[#allocation2 + $0x310] ss:$24 sps:$4 sm:$0xff]  }
  0xe4   :  { %1777 = vmatpush1.bf16.msra.mxu1 %v10868_v44  ;;  %v10943_v44 = vld [vmem:[#allocation2 + $0x760] ss:$24 sps:$4 sm:$0xff]  }
  0xe5   :  { %1778 = vmatprep.subr.bf16.mxu1 %v10872_v45  ;;  %v12592_v45 = vmov 0  }
  0xe6   :  { %1744 = vmatpush2.bf16.msra.mxu0 %v10871_v46  ;;  %v10944_v46 = vld [vmem:[#allocation2 + $0x730] ss:$24 sps:$4 sm:$0xff]  }
  0xe7   :  { %1745 = vmatprep.subr.bf16.mxu0 %v10875_v47  ;;  %v10945_v47 = vld [vmem:[#allocation2 + $0x700] ss:$24 sps:$4 sm:$0xff]  }
  0xe8   :  { %1779 = vmatpush1.bf16.msra.mxu1 %v10874_v48  ;;  %v10946_v48 = vld [vmem:[#allocation2 + $0x6d0] ss:$24 sps:$4 sm:$0xff]  }
  0xe9   :  { %1780 = vmatprep.subr.bf16.mxu1 %v10878_v49  ;;  %v10947_v49 = vld [vmem:[#allocation2 + $0x6a0] ss:$24 sps:$4 sm:$0xff]  }
  0xea   :  { %1746 = vmatpush2.bf16.msra.mxu0 %v10877_v50  ;;  %v10951_v50 = vld [vmem:[#allocation2 + $0x850] ss:$24 sps:$4 sm:$0xff]  }
  0xeb   :  { %1747 = vmatprep.subr.bf16.mxu0 %v10881_v51  ;;  %v362_v51 = vlaneseq }
  0xec   :  { %1781 = vmatpush1.bf16.msra.mxu1 %v10880_v52  ;;  %v10952_v52 = vld [vmem:[#allocation2 + $0x820] ss:$24 sps:$4 sm:$0xff]  }
  0xed   :  { %1788 = vmatprep.subr.bf16.mxu1 %v10884_v53  ;;  %v12832_v53 = vshrl.u32 %v362_v51, 7 }
  0xee   :  { %1748 = vmatpush2.bf16.msra.mxu0 %v10883_v54  ;;  %v10953_v54 = vld [vmem:[#allocation2 + $0x7f0] ss:$24 sps:$4 sm:$0xff]  }
  0xef   :  { %1749 = vmatprep.subr.bf16.mxu0 %v10887_v55  ;;  %v12836_v55 = vsub.s32 0, %v12832_v53 }
  0xf0   :  { %1789 = vmatpush2.bf16.msra.mxu1 %v10886_v56  ;;  %v12839_v56 = vld [vmem:[#allocation7] sm:$0x1f] }
  0xf1   :  { %1790 = vmatprep.subr.bf16.mxu1 %v10890_v57  ;;  %v12842_v57 = vsub.s32 1, %v12832_v53 }
  0xf2   :  { %1750 = vmatpush2.bf16.msra.mxu0 %v10889_v58  ;;  %v365_v58 = vrot.slane %v12839_v56, %v12836_v55 }
  0xf3   :  { %1751 = vmatprep.subr.bf16.mxu0 %v10893_v59  ;;  %v10954_v59 = vld [vmem:[#allocation2 + $0x7c0] ss:$24 sps:$4 sm:$0xff]  }
  0xf4   :  { %1791 = vmatpush2.bf16.msra.mxu1 %v10892_v60  ;;  %v369_v60 = vrot.slane %v12839_v56, %v12842_v57 }
  0xf5   :  { %1792 = vmatprep.subr.bf16.mxu1 %v10896_v61 }
  0xf6   :  { %1752 = vmatpush2.bf16.msra.mxu0 %v10895_v62 }
  0xf7   :  { %1753 = vmatprep.subr.bf16.mxu0 %v10899_v63  ;;  %v10955_v63 = vld [vmem:[#allocation2 + $0x790] ss:$24 sps:$4 sm:$0xff]  }
  0xf8   :  { %1793 = vmatpush2.bf16.msra.mxu1 %v10898_v1 }
  0xf9   :  { %1794 = vmatprep.subr.bf16.mxu1 %v10902_v3 }
  0xfa   :  { %1754 = vmatpush2.bf16.msra.mxu0 %v10901_v8 }
  0xfb   :  { %1755 = vmatprep.subr.bf16.mxu0 %v10905_v10 }
  0xfc   :  { %1795 = vmatpush2.bf16.msra.mxu1 %v10904_v11 }
  0xfd   :  { %1796 = vmatprep.subr.bf16.mxu1 %v10908_v12 }
  0xfe   :  { %1756 = vmatpush2.bf16.msra.mxu0 %v10907_v13 }
  0xff   :  { %10431 = vmatprep.subr.bf16.mxu0 %v10911_v14 }
 0x100   :  { %1797 = vmatpush2.bf16.msra.mxu1 %v10910_v16 }
 0x101   :  { %1758 = vmatmul.mubr.bf16.vlgmr.msra.gmra.mxu0 %v12799_v19  ;;  %10453 = vmatprep.subr.bf16.mxu1 %v10913_v17 }
 0x102   :  { %10432 = vmatpush3.bf16.msra.mxu0 %v10912_v4  ;;  %1839 = vmatprep.mubr.bf16.mxu0 %v12783_v6  ;;  %v10924_v6 = vld [vmem:[#allocation2 + $0xd0] ss:$24 sps:$4 sm:$0xff]  }
 0x103   :  { %1799 = vmatmul.mubr.bf16.vlgmr.msra.gmra.mxu1 %v12808_v9  ;;  %10433 = vmatprep.subr.bf16.mxu0 %v10915_v20 }
 0x104   :  { %10454 = vmatpush3.bf16.msra.mxu1 %v10914_v21  ;;  %1879 = vmatprep.mubr.bf16.mxu1 %v12785_v7  ;;  %v10928_v7 = vld [vmem:[#allocation2 + $0xa0] ss:$24 sps:$4 sm:$0xff]  }
 0x105   :  { %10455 = vmatprep.subr.bf16.mxu1 %v10917_v0 }
 0x106   :  { %10434 = vmatpush3.bf16.msra.mxu0 %v10916_v22 }
 0x107   :  { %10435 = vmatprep.subr.bf16.mxu0 %v10919_v5 }
 0x108   :  { %10456 = vmatpush3.bf16.msra.mxu1 %v10918_v2 }
 0x109   :  { %10457 = vmatprep.subr.bf16.mxu1 %v10921_v23 }
 0x10a   :  { %10436 = vmatpush3.bf16.msra.mxu0 %v10920_v24 }
 0x10b   :  { %10437 = vmatprep.subr.bf16.mxu0 %v10923_v25 }
 0x10c   :  { %10458 = vmatpush3.bf16.msra.mxu1 %v10922_v26 }
 0x10d   :  { %10459 = vmatprep.subr.bf16.mxu1 %v10925_v27 }
 0x10e   :  { %10438 = vmatpush3.bf16.msra.mxu0 %v10924_v6 }
 0x10f   :  { %10439 = vmatprep.subr.bf16.mxu0 %v10927_v28 }
 0x110   :  { %10460 = vmatpush3.bf16.msra.mxu1 %v10926_v29 }
 0x111   :  { %10461 = vmatprep.subr.bf16.mxu1 %v10929_v30 }
 0x112   :  { %10440 = vmatpush3.bf16.msra.mxu0 %v10928_v7 }
 0x113   :  { %10441 = vmatprep.subr.bf16.mxu0 %v10931_v31 }
 0x114   :  { %10462 = vmatpush3.bf16.msra.mxu1 %v10930_v32 }
 0x115   :  { %10463 = vmatprep.subr.bf16.mxu1 %v10933_v33 }
 0x116   :  { %10442 = vmatpush3.bf16.msra.mxu0 %v10932_v34 }
 0x117   :  { %10443 = vmatprep.subr.bf16.mxu0 %v10935_v35 }
 0x118   :  { %10464 = vmatpush3.bf16.msra.mxu1 %v10934_v36 }
 0x119   :  { %10465 = vmatprep.subr.bf16.mxu1 %v10937_v37 }
 0x11a   :  { %10444 = vmatpush3.bf16.msra.mxu0 %v10936_v38 }
 0x11b   :  { %10445 = vmatprep.subr.bf16.mxu0 %v10939_v39 }
 0x11c   :  { %10466 = vmatpush3.bf16.msra.mxu1 %v10938_v40 }
 0x11d   :  { %10467 = vmatprep.subr.bf16.mxu1 %v10941_v41 }
 0x11e   :  { %10446 = vmatpush3.bf16.msra.mxu0 %v10940_v42 }
 0x11f   :  { %1887 = vmatprep.subr.bf16.mxu0 %v12592_v45 }
 0x120   :  { %10468 = vmatpush3.bf16.msra.mxu1 %v10942_v43 }
 0x121   :  { %1840 = vmatmul.mubr.bf16.vlgmr.msra.gmra.mxu0 %v12791_v15  ;;  %v10948_v15 = vld [vmem:[#allocation2 + $0x670] ss:$24 sps:$4 sm:$0xff]  }
 0x122   :  { %1888 = vmatpush1.bf16.msra.mxu0 %v10943_v44  ;;  %9590 = vmatprep.mubr.msk.bf16.mxu0 %vm1557_vm0, %v12795_v18  ;;  %v10949_v18 = vld [vmem:[#allocation2 + $0x640] ss:$24 sps:$4 sm:$0xff]  }
 0x123   :  { %1880 = vmatmul.mubr.bf16.vlgmr.msra.gmra.mxu1 %v12799_v19  ;;  %1889 = vmatprep.subr.bf16.mxu0 %v12592_v45  ;;  %v10950_v19 = vld [vmem:[#allocation2 + $0x610] ss:$24 sps:$4 sm:$0xff]  }
 0x126   :  { %1890 = vmatpush1.bf16.msra.mxu0 %v10944_v46 }
 0x127   :  { %1891 = vmatprep.subr.bf16.mxu0 %v12592_v45 }
 0x12a   :  { %1892 = vmatpush1.bf16.msra.mxu0 %v10945_v47 }
 0x12b   :  { %1893 = vmatprep.subr.bf16.mxu0 %v12592_v45 }
 0x12e   :  { %1894 = vmatpush1.bf16.msra.mxu0 %v10946_v48 }
 0x12f   :  { %1895 = vmatprep.subr.bf16.mxu0 %v12592_v45 }
 0x132   :  { %1896 = vmatpush1.bf16.msra.mxu0 %v10947_v49 }
 0x133   :  { %1897 = vmatprep.subr.bf16.mxu0 %v12592_v45 }
 0x136   :  { %1898 = vmatpush1.bf16.msra.mxu0 %v10948_v15 }
 0x137   :  { %1899 = vmatprep.subr.bf16.mxu0 %v12592_v45 }
 0x13a   :  { %1900 = vmatpush1.bf16.msra.mxu0 %v10949_v18 }
 0x13b   :  { %1901 = vmatprep.subr.bf16.mxu0 %v12592_v45 }
 0x13e   :  { %1902 = vmatpush1.bf16.msra.mxu0 %v10950_v19 }
 0x13f   :  { %1909 = vmatprep.subr.bf16.mxu0 %v12592_v45 }
 0x142   :  { %1910 = vmatpush2.bf16.msra.mxu0 %v10951_v50 }
 0x143   :  { %1911 = vmatprep.subr.bf16.mxu0 %v12592_v45 }
 0x146   :  { %1912 = vmatpush2.bf16.msra.mxu0 %v10952_v52 }
 0x147   :  { %1913 = vmatprep.subr.bf16.mxu0 %v12592_v45 }
 0x14a   :  { %1914 = vmatpush2.bf16.msra.mxu0 %v10953_v54 }
 0x14b   :  { %1915 = vmatprep.subr.bf16.mxu0 %v12592_v45 }
 0x14d   :  { %v1595_v61 = vpop.f32.mrf.mxu0 }
 0x14e   :  { %v1596_v62 = vadd.f32 %v1595_v61, %v365_v58  ;;  %1916 = vmatpush2.bf16.msra.mxu0 %v10954_v59 }
 0x14f   :  { %v1597_v1 = vpop.f32.mrf.mxu0  ;;  %v1636_v3 = vpop.f32.mrf.mxu1  ;;  %1917 = vmatprep.subr.bf16.mxu0 %v12592_v45 }
 0x150   :  { %v1598_v8 = vadd.f32 %v1597_v1, %v369_v60  ;;  %v1637_v10 = vadd.f32 %v1636_v3, %v1596_v62 }
 0x151   :  { %v1599_v11 = vpop.f32.mrf.mxu0  ;;  %v1638_v12 = vpop.f32.mrf.mxu1 }
 0x152   :  { %v1639_v13 = vadd.f32 %v1638_v12, %v1598_v8  ;;  %1918 = vmatpush2.bf16.msra.mxu0 %v10955_v63 }
 0x153   :  { %v1600_v14 = vpop.f32.mrf.mxu0  ;;  %v1640_v16 = vpop.f32.mrf.mxu1 }
 0x155   :  { %1920 = vmatmul.mubr.bf16.vlgmr.msra.gmra.mxu0 %v12808_v9  ;;  %v1641_v17 = vpop.f32.mrf.mxu1 }
 0x181   :  { %v1677_v4 = vpop.f32.mrf.mxu0 }
 0x182   :  { %v12851_v20 = vadd.f32 %v1677_v4, %v1637_v10 }
 0x183   :  { %v1679_v21 = vpop.f32.mrf.mxu0 }
 0x184   :  { %v1927_v0 = vmax.f32 %v12851_v20, 0.0  ;;  %v1680_v22 = vadd.f32 %v1679_v21, %v1639_v13 }
 0x185   :  { %v1681_v5 = vpop.f32.mrf.mxu0 }
 0x186   :  { %v1928_v2 = vmax.f32 %v1680_v22, 0.0 }
 0x187   :  { %v1682_v23 = vpop.f32.mrf.mxu0 }
 0x18f   :  { %v1718_v24 = vpop.f32.mrf.mxu1 }
 0x191   :  { %v1720_v25 = vpop.f32.mrf.mxu1 }
 0x193   :  { %v1722_v26 = vpop.f32.mrf.mxu1 }
 0x195   :  { %v1723_v27 = vpop.f32.mrf.mxu1 }
 0x196   :  { %12198 = shalt.err (!%p12195_p9)  }
 0x197   :  { %s13468_s28 = smov 192   ;;  %s13469_s26 = smov 12   ;;  %v12867_v9 = vsub.s32 2, %v12832_v53  ;;  %v12872_v28 = vsub.s32 3, %v12832_v53  ;;  %v12880_v51 = vsub.s32 4, %v12832_v53 }
 0x198   :  { %s13486_s25 = sld [smem:[#allocation61_spill]] }
 0x199   :  { %v373_v6 = vrot.slane %v12839_v56, %v12867_v9  ;;  %v377_v30 = vrot.slane %v12839_v56, %v12872_v28  ;;  %v381_v52 = vrot.slane %v12839_v56, %v12880_v51 }
 0x19b   :  { %v1719_v29 = vadd.f32 %v1718_v24, %v373_v6  ;;  %v1721_v31 = vadd.f32 %v1720_v25, %v377_v30 }
 0x19e   :  { %1936 = dma.hbm_to_vmem [thread:$0]  %s13486_s25, 9600, %s12732_s0, [#allocation3], %s13468_s28, %s12587_s5, %s13469_s26 }
 0x1c1   :  { %v1759_v7 = vpop.f32.mrf.mxu0 }
 0x1c2   :  { %v1760_v32 = vadd.f32 %v1759_v7, %v1719_v29 }
 0x1c3   :  { %v1761_v33 = vpop.f32.mrf.mxu0  ;;  %v1800_v34 = vpop.f32.mrf.mxu1 }
 0x1c4   :  { %v1762_v35 = vadd.f32 %v1761_v33, %v1721_v31  ;;  %v12876_v36 = vadd.f32 %v1800_v34, %v1760_v32 }
 0x1c5   :  { %v1763_v37 = vpop.f32.mrf.mxu0  ;;  %v1802_v38 = vpop.f32.mrf.mxu1 }
 0x1c6   :  { %v1929_v39 = vmax.f32 %v12876_v36, 0.0  ;;  %v1803_v40 = vadd.f32 %v1802_v38, %v1762_v35 }
 0x1c7   :  { %v1764_v41 = vpop.f32.mrf.mxu0  ;;  %v1804_v42 = vpop.f32.mrf.mxu1 }
 0x1c8   :  { %v1930_v43 = vmax.f32 %v1803_v40, 0.0 }
 0x1c9   :  { %v1805_v44 = vpop.f32.mrf.mxu1 }
 0x1e1   :  { %v10447_v46 = vpop.f32.mrf.mxu0 }
 0x1e3   :  { %v10448_v47 = vpop.f32.mrf.mxu0  ;;  %v10469_v48 = vpop.f32.mrf.mxu1 }
 0x1e4   :  { %v10449_v54 = vadd.f32 %v10448_v47, %v10447_v46 }
 0x1e5   :  { %v10450_v49 = vpop.f32.mrf.mxu0  ;;  %v10470_v15 = vpop.f32.mrf.mxu1 }
 0x1e6   :  { %v1842_v58 = vadd.f32 %v10449_v54, %v381_v52  ;;  %v10471_v59 = vadd.f32 %v10470_v15, %v10469_v48 }
 0x1e7   :  { %v10451_v18 = vpop.f32.mrf.mxu0  ;;  %v10472_v19 = vpop.f32.mrf.mxu1 }
 0x1e8   :  { %v1882_v60 = vadd.f32 %v10471_v59, %v1842_v58 }
 0x1e9   :  { %v10473_v50 = vpop.f32.mrf.mxu1 }
 0x215   :  { %v1921_v61 = vpop.f32.mrf.mxu0 }
 0x216   :  { %v12884_v62 = vadd.f32 %v1921_v61, %v1882_v60 }
 0x217   :  { %v1923_v63 = vpop.f32.mrf.mxu0 }
 0x218   :  { %v1931_v1 = vmax.f32 %v12884_v62, 0.0 }
 0x219   :  { %v1924_v3 = vpop.f32.mrf.mxu0 }
 0x21b   :  { %v1925_v8 = vpop.f32.mrf.mxu0 }
 0x21c   :  { %12545 = dma.done.wait [#allocation3 + $0x1], 17408 }
 0x21d   :  { %12546 = vsyncadd [#allocation3 + $0x1], 4294949888  ;;  %v12887_v10 = vpack.c.bf16 %v1928_v2, %v1928_v2  ;;  %v12889_v11 = vpack.c.bf16 %v1930_v43, %v1930_v43  ;;  %v10956_v56 = vld [vmem:[#allocation2 + $0x9c4] ss:$24 sps:$4 sm:$0xff]   ;;  %v10958_v12 = vld [vmem:[#allocation2 + $0x9c0] ss:$24 sps:$4 sm:$0xff]  }
 0x21e   :  { %2797 = vmatprep.subr.bf16.mxu1 %v10956_v56  ;;  %v10959_v13 = vld [vmem:[#allocation2 + $0xcc4] ss:$24 sps:$4 sm:$0xff]   ;;  %v10961_v14 = vld [vmem:[#allocation2 + $0xcc0] ss:$24 sps:$4 sm:$0xff]   ;;  %v10962_v16 = vld [vmem:[#allocation2 + $0x994] ss:$24 sps:$4 sm:$0xff]  }
 0x21f   :  { %2829 = vmatprep.mubr.bf16.mxu1 %v12887_v10  ;;  %2870 = vmatprep.mubr.bf16.mxu0 %v12889_v11  ;;  %v10964_v17 = vld [vmem:[#allocation2 + $0x990] ss:$24 sps:$4 sm:$0xff]   ;;  %v10965_v4 = vld [vmem:[#allocation2 + $0xc94] ss:$24 sps:$4 sm:$0xff]   ;;  %v10968_v22 = vld [vmem:[#allocation2 + $0x964] ss:$24 sps:$4 sm:$0xff]  }
 0x220   :  { %2798 = vmatpush1.bf16.msra.mxu1 %v10958_v12  ;;  %2838 = vmatprep.subr.bf16.mxu0 %v10959_v13  ;;  %v10967_v21 = vld [vmem:[#allocation2 + $0xc90] ss:$24 sps:$4 sm:$0xff]   ;;  %v10970_v5 = vld [vmem:[#allocation2 + $0x960] ss:$24 sps:$4 sm:$0xff]   ;;  %v10971_v2 = vld [vmem:[#allocation2 + $0xc64] ss:$24 sps:$4 sm:$0xff]  }
 0x221   :  { %2839 = vmatpush1.bf16.msra.mxu0 %v10961_v14  ;;  %2799 = vmatprep.subr.bf16.mxu1 %v10962_v16  ;;  %v10974_v23 = vld [vmem:[#allocation2 + $0x934] ss:$24 sps:$4 sm:$0xff]   ;;  %v10973_v24 = vld [vmem:[#allocation2 + $0xc60] ss:$24 sps:$4 sm:$0xff]   ;;  %v10976_v26 = vld [vmem:[#allocation2 + $0x930] ss:$24 sps:$4 sm:$0xff]  }
 0x222   :  { %2840 = vmatprep.subr.bf16.mxu0 %v10965_v4  ;;  %v10977_v25 = vld [vmem:[#allocation2 + $0xc34] ss:$24 sps:$4 sm:$0xff]   ;;  %v10980_v27 = vld [vmem:[#allocation2 + $0x904] ss:$24 sps:$4 sm:$0xff]   ;;  %v10979_v6 = vld [vmem:[#allocation2 + $0xc30] ss:$24 sps:$4 sm:$0xff]  }
 0x223   :  { %v10983_v29 = vld [vmem:[#allocation2 + $0xc04] ss:$24 sps:$4 sm:$0xff]   ;;  %v10982_v30 = vld [vmem:[#allocation2 + $0x900] ss:$24 sps:$4 sm:$0xff]   ;;  %v10986_v7 = vld [vmem:[#allocation2 + $0x8d4] ss:$24 sps:$4 sm:$0xff]  }
 0x224   :  { %2800 = vmatpush1.bf16.msra.mxu1 %v10964_v17  ;;  %v10985_v31 = vld [vmem:[#allocation2 + $0xc00] ss:$24 sps:$4 sm:$0xff]   ;;  %v10989_v32 = vld [vmem:[#allocation2 + $0xbd4] ss:$24 sps:$4 sm:$0xff]   ;;  %v10988_v33 = vld [vmem:[#allocation2 + $0x8d0] ss:$24 sps:$4 sm:$0xff]  }
 0x225   :  { %2801 = vmatprep.subr.bf16.mxu1 %v10968_v22  ;;  %2841 = vmatpush1.bf16.msra.mxu0 %v10967_v21  ;;  %v10992_v34 = vld [vmem:[#allocation2 + $0x8a4] ss:$24 sps:$4 sm:$0xff]   ;;  %v10991_v35 = vld [vmem:[#allocation2 + $0xbd0] ss:$24 sps:$4 sm:$0xff]   ;;  %v10994_v38 = vld [vmem:[#allocation2 + $0x8a0] ss:$24 sps:$4 sm:$0xff]  }
 0x226   :  { %2842 = vmatprep.subr.bf16.mxu0 %v10971_v2  ;;  %v10995_v37 = vld [vmem:[#allocation2 + $0xba4] ss:$24 sps:$4 sm:$0xff]   ;;  %v10998_v40 = vld [vmem:[#allocation2 + $0x874] ss:$24 sps:$4 sm:$0xff]   ;;  %v10997_v41 = vld [vmem:[#allocation2 + $0xba0] ss:$24 sps:$4 sm:$0xff]  }
 0x227   :  { %v11001_v42 = vld [vmem:[#allocation2 + $0xb74] ss:$24 sps:$4 sm:$0xff]   ;;  %v11000_v43 = vld [vmem:[#allocation2 + $0x870] ss:$24 sps:$4 sm:$0xff]   ;;  %v11004_v44 = vld [vmem:[#allocation2 + $0xb44] ss:$24 sps:$4 sm:$0xff]  }
 0x228   :  { %2802 = vmatpush1.bf16.msra.mxu1 %v10970_v5  ;;  %v11003_v46 = vld [vmem:[#allocation2 + $0xb70] ss:$24 sps:$4 sm:$0xff]   ;;  %v11007_v47 = vld [vmem:[#allocation2 + $0xe44] ss:$24 sps:$4 sm:$0xff]   ;;  %v11006_v48 = vld [vmem:[#allocation2 + $0xb40] ss:$24 sps:$4 sm:$0xff]  }
 0x229   :  { %2803 = vmatprep.subr.bf16.mxu1 %v10974_v23  ;;  %2843 = vmatpush1.bf16.msra.mxu0 %v10973_v24  ;;  %v11010_v49 = vld [vmem:[#allocation2 + $0xb14] ss:$24 sps:$4 sm:$0xff]   ;;  %v11009_v15 = vld [vmem:[#allocation2 + $0xe40] ss:$24 sps:$4 sm:$0xff]   ;;  %v11012_v19 = vld [vmem:[#allocation2 + $0xb10] ss:$24 sps:$4 sm:$0xff]  }
 0x22a   :  { %2844 = vmatprep.subr.bf16.mxu0 %v10977_v25  ;;  %v11013_v18 = vld [vmem:[#allocation2 + $0xe14] ss:$24 sps:$4 sm:$0xff]   ;;  %v11016_v50 = vld [vmem:[#allocation2 + $0xae4] ss:$24 sps:$4 sm:$0xff]   ;;  %v11015_v52 = vld [vmem:[#allocation2 + $0xe10] ss:$24 sps:$4 sm:$0xff]  }
 0x22b   :  { %v11019_v54 = vld [vmem:[#allocation2 + $0xde4] ss:$24 sps:$4 sm:$0xff]   ;;  %v11018_v58 = vld [vmem:[#allocation2 + $0xae0] ss:$24 sps:$4 sm:$0xff]   ;;  %v11022_v59 = vld [vmem:[#allocation2 + $0xab4] ss:$24 sps:$4 sm:$0xff]  }
 0x22c   :  { %2804 = vmatpush1.bf16.msra.mxu1 %v10976_v26  ;;  %v11021_v60 = vld [vmem:[#allocation2 + $0xde0] ss:$24 sps:$4 sm:$0xff]   ;;  %v11025_v61 = vld [vmem:[#allocation2 + $0xdb4] ss:$24 sps:$4 sm:$0xff]   ;;  %v11024_v63 = vld [vmem:[#allocation2 + $0xab0] ss:$24 sps:$4 sm:$0xff]  }
 0x22d   :  { %2805 = vmatprep.subr.bf16.mxu1 %v10980_v27  ;;  %2845 = vmatpush1.bf16.msra.mxu0 %v10979_v6  ;;  %v11028_v3 = vld [vmem:[#allocation2 + $0xa84] ss:$24 sps:$4 sm:$0xff]   ;;  %v11027_v8 = vld [vmem:[#allocation2 + $0xdb0] ss:$24 sps:$4 sm:$0xff]   ;;  %v11030_v12 = vld [vmem:[#allocation2 + $0xa80] ss:$24 sps:$4 sm:$0xff]  }
 0x22e   :  { %2846 = vmatprep.subr.bf16.mxu0 %v10983_v29  ;;  %v11031_v56 = vld [vmem:[#allocation2 + $0xd84] ss:$24 sps:$4 sm:$0xff]   ;;  %v11034_v13 = vld [vmem:[#allocation2 + $0xa54] ss:$24 sps:$4 sm:$0xff]   ;;  %v11033_v14 = vld [vmem:[#allocation2 + $0xd80] ss:$24 sps:$4 sm:$0xff]   ;;  %v12896_v29 = vpack.c.bf16 %v1927_v0, %v1927_v0 }
 0x22f   :  { %v11037_v16 = vld [vmem:[#allocation2 + $0xd54] ss:$24 sps:$4 sm:$0xff]   ;;  %v11036_v17 = vld [vmem:[#allocation2 + $0xa50] ss:$24 sps:$4 sm:$0xff]   ;;  %v11040_v4 = vld [vmem:[#allocation2 + $0xa24] ss:$24 sps:$4 sm:$0xff]  }
 0x230   :  { %2806 = vmatpush1.bf16.msra.mxu1 %v10982_v30  ;;  %v11039_v21 = vld [vmem:[#allocation2 + $0xd50] ss:$24 sps:$4 sm:$0xff]   ;;  %v11043_v22 = vld [vmem:[#allocation2 + $0xd24] ss:$24 sps:$4 sm:$0xff]   ;;  %v11042_v5 = vld [vmem:[#allocation2 + $0xa20] ss:$24 sps:$4 sm:$0xff]  }
 0x231   :  { %2807 = vmatprep.subr.bf16.mxu1 %v10986_v7  ;;  %2847 = vmatpush1.bf16.msra.mxu0 %v10985_v31  ;;  %v11046_v2 = vld [vmem:[#allocation2 + $0x9f4] ss:$24 sps:$4 sm:$0xff]   ;;  %v11045_v23 = vld [vmem:[#allocation2 + $0xd20] ss:$24 sps:$4 sm:$0xff]   ;;  %v11048_v25 = vld [vmem:[#allocation2 + $0x9f0] ss:$24 sps:$4 sm:$0xff]   ;;  %v12903_v31 = vpack.c.bf16 %v1929_v39, %v1929_v39  ;;  %v12912_v39 = vpack.c.bf16 %v1931_v1, %v1931_v1 }
 0x232   :  { %2848 = vmatprep.subr.bf16.mxu0 %v10989_v32  ;;  %v11049_v24 = vld [vmem:[#allocation2 + $0xcf4] ss:$24 sps:$4 sm:$0xff]   ;;  %v11052_v26 = vld [vmem:[#allocation2 + $0xea4] ss:$24 sps:$4 sm:$0x3f]   ;;  %vm2784_vm1 = vcmask 1045504  }
 0x233   :  { %v11054_v27 = vld [vmem:[#allocation2 + $0xea0] ss:$24 sps:$4 sm:$0x3f]   ;;  %v11051_v6 = vld [vmem:[#allocation2 + $0xcf0] ss:$24 sps:$4 sm:$0xff]   ;;  %vm2780_vm2 = vcmask 228352  }
 0x234   :  { %2808 = vmatpush1.bf16.msra.mxu1 %v10988_v33  ;;  %v11061_v30 = vld [vmem:[#allocation2 + $0xccc] ss:$24 sps:$4 sm:$0xff]   ;;  %v2786_v7 = vsel %vm2784_vm1, %v11054_v27, 0  ;;  %v11063_v33 = vld [vmem:[#allocation2 + $0xcc8] ss:$24 sps:$4 sm:$0xff]   ;;  %s12207_s25 = scalar_lea.vmem %s12755_s7, 4864 }
 0x235   :  { %2809 = vmatprep.subr.bf16.mxu1 %v10992_v34  ;;  %2849 = vmatpush1.bf16.msra.mxu0 %v10991_v35  ;;  %v11055_v32 = vld [vmem:[#allocation2 + $0xe74] ss:$24 sps:$4 sm:$0xff]   ;;  %v11057_v0 = vld [vmem:[#allocation2 + $0xe70] ss:$24 sps:$4 sm:$0xff]   ;;  %p12208_p10 = scmp.ne.s32.totalorder %s12755_s7, %s12207_s25  ;;  %p12213_p12 = scmp.lt.s32.totalorder %s12737_s30, %s12207_s25 }
 0x236   :  { %2850 = vmatprep.subr.bf16.mxu0 %v10995_v37  ;;  %v11067_v20 = vld [vmem:[#allocation2 + $0xc9c] ss:$24 sps:$4 sm:$0xff]   ;;  %v11058_v34 = vld [vmem:[#allocation2 + $0x9cc] ss:$24 sps:$4 sm:$0xff]   ;;  %v11069_v36 = vld [vmem:[#allocation2 + $0xc98] ss:$24 sps:$4 sm:$0xff]  }
 0x237   :  { %v11073_v35 = vld [vmem:[#allocation2 + $0xc6c] ss:$24 sps:$4 sm:$0xff]   ;;  %v11060_v37 = vld [vmem:[#allocation2 + $0x9c8] ss:$24 sps:$4 sm:$0xff]   ;;  %v11081_v1 = vld [vmem:[#allocation2 + $0xc38] ss:$24 sps:$4 sm:$0xff]   ;;  %p12214_p13 = por %p12213_p12, %p12765_p2 }
 0x238   :  { %2810 = vmatpush1.bf16.msra.mxu1 %v10994_v38  ;;  %v11064_v38 = vld [vmem:[#allocation2 + $0x99c] ss:$24 sps:$4 sm:$0xff]   ;;  %v11070_v62 = vld [vmem:[#allocation2 + $0x96c] ss:$24 sps:$4 sm:$0xff]  }
 0x239   :  { %2811 = vmatprep.subr.bf16.mxu1 %v10998_v40  ;;  %2851 = vmatpush1.bf16.msra.mxu0 %v10997_v41  ;;  %v11075_v40 = vld [vmem:[#allocation2 + $0xc68] ss:$24 sps:$4 sm:$0xff]   ;;  %v11079_v41 = vld [vmem:[#allocation2 + $0xc3c] ss:$24 sps:$4 sm:$0xff]   ;;  %p12215_p0 = pnand %p12214_p13, %p12208_p10 }
 0x23a   :  { %2852 = vmatprep.subr.bf16.mxu0 %v11001_v42  ;;  %v11085_v42 = vld [vmem:[#allocation2 + $0xc0c] ss:$24 sps:$4 sm:$0xff]   ;;  %v11139_v27 = vld [vmem:[#allocation2 + $0xd5c] ss:$24 sps:$4 sm:$0xff]  }
 0x23c   :  { %2812 = vmatpush1.bf16.msra.mxu1 %v11000_v43  ;;  %v11072_v43 = vld [vmem:[#allocation2 + $0x968] ss:$24 sps:$4 sm:$0xff]  }
 0x23d   :  { %2813 = vmatprep.subr.bf16.mxu1 %v11004_v44  ;;  %2853 = vmatpush1.bf16.msra.mxu0 %v11003_v46  ;;  %v11076_v44 = vld [vmem:[#allocation2 + $0x93c] ss:$24 sps:$4 sm:$0xff]   ;;  %v11087_v46 = vld [vmem:[#allocation2 + $0xc08] ss:$24 sps:$4 sm:$0xff]  }
 0x23e   :  { %2854 = vmatprep.subr.bf16.mxu0 %v11007_v47  ;;  %v11091_v47 = vld [vmem:[#allocation2 + $0xbdc] ss:$24 sps:$4 sm:$0xff]  }
 0x240   :  { %2814 = vmatpush2.bf16.msra.mxu1 %v11006_v48  ;;  %v11078_v48 = vld [vmem:[#allocation2 + $0x938] ss:$24 sps:$4 sm:$0xff]  }
 0x241   :  { %2815 = vmatprep.subr.bf16.mxu1 %v11010_v49  ;;  %2855 = vmatpush2.bf16.msra.mxu0 %v11009_v15  ;;  %v11082_v49 = vld [vmem:[#allocation2 + $0x90c] ss:$24 sps:$4 sm:$0xff]  }
 0x242   :  { %2856 = vmatprep.subr.bf16.mxu0 %v11013_v18  ;;  %v11097_v15 = vld [vmem:[#allocation2 + $0xbac] ss:$24 sps:$4 sm:$0xff]   ;;  %v11084_v18 = vld [vmem:[#allocation2 + $0x908] ss:$24 sps:$4 sm:$0xff]  }
 0x244   :  { %2816 = vmatpush2.bf16.msra.mxu1 %v11012_v19  ;;  %v11088_v19 = vld [vmem:[#allocation2 + $0x8dc] ss:$24 sps:$4 sm:$0xff]  }
 0x245   :  { %2817 = vmatprep.subr.bf16.mxu1 %v11016_v50  ;;  %2857 = vmatpush2.bf16.msra.mxu0 %v11015_v52  ;;  %v11099_v50 = vld [vmem:[#allocation2 + $0xba8] ss:$24 sps:$4 sm:$0xff]   ;;  %v11103_v52 = vld [vmem:[#allocation2 + $0xb7c] ss:$24 sps:$4 sm:$0xff]  }
 0x246   :  { %2858 = vmatprep.subr.bf16.mxu0 %v11019_v54  ;;  %v11090_v54 = vld [vmem:[#allocation2 + $0x8d8] ss:$24 sps:$4 sm:$0xff]  }
 0x248   :  { %2818 = vmatpush2.bf16.msra.mxu1 %v11018_v58  ;;  %v11094_v58 = vld [vmem:[#allocation2 + $0x8ac] ss:$24 sps:$4 sm:$0xff]  }
 0x249   :  { %2819 = vmatprep.subr.bf16.mxu1 %v11022_v59  ;;  %2859 = vmatpush2.bf16.msra.mxu0 %v11021_v60  ;;  %v11105_v59 = vld [vmem:[#allocation2 + $0xb78] ss:$24 sps:$4 sm:$0xff]   ;;  %v11109_v60 = vld [vmem:[#allocation2 + $0xe4c] ss:$24 sps:$4 sm:$0xff]  }
 0x24a   :  { %2860 = vmatprep.subr.bf16.mxu0 %v11025_v61  ;;  %v11096_v61 = vld [vmem:[#allocation2 + $0x8a8] ss:$24 sps:$4 sm:$0xff]  }
 0x24c   :  { %2820 = vmatpush2.bf16.msra.mxu1 %v11024_v63  ;;  %v11100_v63 = vld [vmem:[#allocation2 + $0x87c] ss:$24 sps:$4 sm:$0xff]  }
 0x24d   :  { %2821 = vmatprep.subr.bf16.mxu1 %v11028_v3  ;;  %2861 = vmatpush2.bf16.msra.mxu0 %v11027_v8  ;;  %v11111_v3 = vld [vmem:[#allocation2 + $0xe48] ss:$24 sps:$4 sm:$0xff]   ;;  %v11115_v8 = vld [vmem:[#allocation2 + $0xe1c] ss:$24 sps:$4 sm:$0xff]  }
 0x24e   :  { %2862 = vmatprep.subr.bf16.mxu0 %v11031_v56  ;;  %v11102_v56 = vld [vmem:[#allocation2 + $0x878] ss:$24 sps:$4 sm:$0xff]  }
 0x250   :  { %2822 = vmatpush2.bf16.msra.mxu1 %v11030_v12  ;;  %v11106_v12 = vld [vmem:[#allocation2 + $0xb4c] ss:$24 sps:$4 sm:$0xff]  }
 0x251   :  { %2823 = vmatprep.subr.bf16.mxu1 %v11034_v13  ;;  %2863 = vmatpush2.bf16.msra.mxu0 %v11033_v14  ;;  %v11117_v13 = vld [vmem:[#allocation2 + $0xe18] ss:$24 sps:$4 sm:$0xff]   ;;  %v11121_v14 = vld [vmem:[#allocation2 + $0xdec] ss:$24 sps:$4 sm:$0xff]  }
 0x252   :  { %2864 = vmatprep.subr.bf16.mxu0 %v11037_v16  ;;  %v11108_v16 = vld [vmem:[#allocation2 + $0xb48] ss:$24 sps:$4 sm:$0xff]  }
 0x254   :  { %2824 = vmatpush2.bf16.msra.mxu1 %v11036_v17  ;;  %v11112_v17 = vld [vmem:[#allocation2 + $0xb1c] ss:$24 sps:$4 sm:$0xff]  }
 0x255   :  { %2825 = vmatprep.subr.bf16.mxu1 %v11040_v4  ;;  %2865 = vmatpush2.bf16.msra.mxu0 %v11039_v21  ;;  %v11123_v4 = vld [vmem:[#allocation2 + $0xde8] ss:$24 sps:$4 sm:$0xff]   ;;  %v11127_v21 = vld [vmem:[#allocation2 + $0xdbc] ss:$24 sps:$4 sm:$0xff]  }
 0x256   :  { %2866 = vmatprep.subr.bf16.mxu0 %v11043_v22  ;;  %v11114_v22 = vld [vmem:[#allocation2 + $0xb18] ss:$24 sps:$4 sm:$0xff]  }
 0x258   :  { %2826 = vmatpush2.bf16.msra.mxu1 %v11042_v5  ;;  %v11118_v5 = vld [vmem:[#allocation2 + $0xaec] ss:$24 sps:$4 sm:$0xff]  }
 0x259   :  { %2827 = vmatprep.subr.bf16.mxu1 %v11046_v2  ;;  %2867 = vmatpush2.bf16.msra.mxu0 %v11045_v23  ;;  %v11129_v2 = vld [vmem:[#allocation2 + $0xdb8] ss:$24 sps:$4 sm:$0xff]   ;;  %v11133_v23 = vld [vmem:[#allocation2 + $0xd8c] ss:$24 sps:$4 sm:$0xff]  }
 0x25a   :  { %2868 = vmatprep.subr.bf16.mxu0 %v11049_v24  ;;  %v11120_v24 = vld [vmem:[#allocation2 + $0xae8] ss:$24 sps:$4 sm:$0xff]  }
 0x25c   :  { %2828 = vmatpush2.bf16.msra.mxu1 %v11048_v25  ;;  %v11124_v25 = vld [vmem:[#allocation2 + $0xabc] ss:$24 sps:$4 sm:$0xff]  }
 0x25d   :  { %9727 = vmatprep.subr.msk.bf16.mxu1 %vm2784_vm1, %v11052_v26  ;;  %2869 = vmatpush2.bf16.msra.mxu0 %v11051_v6  ;;  %v11135_v26 = vld [vmem:[#allocation2 + $0xd88] ss:$24 sps:$4 sm:$0xff]   ;;  %v11126_v6 = vld [vmem:[#allocation2 + $0xab8] ss:$24 sps:$4 sm:$0xff]  }
 0x25e   :  { %2961 = vmatprep.subr.bf16.mxu0 %v11061_v30  ;;  %v11130_v30 = vld [vmem:[#allocation2 + $0xa8c] ss:$24 sps:$4 sm:$0xff]  }
 0x25f   :  { %2830 = vmatmul.mubr.bf16.vlgmr.msra.gmra.mxu1 %v12896_v29 }
 0x260   :  { %2892 = vmatpush1.bf16.msra.mxu1 %v2786_v7  ;;  %2911 = vmatprep.mubr.bf16.mxu1 %v12592_v45  ;;  %v11141_v7 = vld [vmem:[#allocation2 + $0xd58] ss:$24 sps:$4 sm:$0xff]  }
 0x261   :  { %2871 = vmatmul.mubr.bf16.vlgmr.msra.gmra.mxu0 %v12903_v31  ;;  %2893 = vmatprep.subr.bf16.mxu1 %v11055_v32  ;;  %v11145_v32 = vld [vmem:[#allocation2 + $0xd2c] ss:$24 sps:$4 sm:$0xff]  }
 0x262   :  { %2962 = vmatpush1.bf16.msra.mxu0 %v11063_v33  ;;  %2993 = vmatprep.mubr.bf16.mxu0 %v12889_v11  ;;  %v11066_v11 = vld [vmem:[#allocation2 + $0x998] ss:$24 sps:$4 sm:$0xff]   ;;  %v11132_v33 = vld [vmem:[#allocation2 + $0xa88] ss:$24 sps:$4 sm:$0xff]  }
 0x263   :  { %2963 = vmatprep.subr.bf16.mxu0 %v11067_v20  ;;  %v11136_v20 = vld [vmem:[#allocation2 + $0xa5c] ss:$24 sps:$4 sm:$0xff]  }
 0x264   :  { %2894 = vmatpush1.bf16.msra.mxu1 %v11057_v0  ;;  %v11147_v0 = vld [vmem:[#allocation2 + $0xd28] ss:$24 sps:$4 sm:$0xff]  }
 0x265   :  { %2920 = vmatprep.subr.bf16.mxu1 %v11058_v34  ;;  %v11151_v34 = vld [vmem:[#allocation2 + $0xcfc] ss:$24 sps:$4 sm:$0xff]  }
 0x266   :  { %2964 = vmatpush1.bf16.msra.mxu0 %v11069_v36  ;;  %v11138_v36 = vld [vmem:[#allocation2 + $0xa58] ss:$24 sps:$4 sm:$0xff]  }
 0x267   :  { %9728 = vmatmul.mubr.msk.bf16.vlgmr.msra.gmra.mxu1 %vm2780_vm2, %v12912_v39  ;;  %2965 = vmatprep.subr.bf16.mxu0 %v11073_v35  ;;  %v11142_v35 = vld [vmem:[#allocation2 + $0xa2c] ss:$24 sps:$4 sm:$0xff]  }
 0x268   :  { %2921 = vmatpush1.bf16.msra.mxu1 %v11060_v37  ;;  %2952 = vmatprep.mubr.bf16.mxu1 %v12887_v10  ;;  %v11093_v10 = vld [vmem:[#allocation2 + $0xbd8] ss:$24 sps:$4 sm:$0xff]  }
 0x269   :  { %2922 = vmatprep.subr.bf16.mxu1 %v11064_v38  ;;  %v11153_v37 = vld [vmem:[#allocation2 + $0xcf8] ss:$24 sps:$4 sm:$0xff]   ;;  %v11144_v38 = vld [vmem:[#allocation2 + $0xa28] ss:$24 sps:$4 sm:$0xff]  }
 0x26a   :  { %2966 = vmatpush1.bf16.msra.mxu0 %v11075_v40  ;;  %v11148_v40 = vld [vmem:[#allocation2 + $0x9fc] ss:$24 sps:$4 sm:$0xff]  }
 0x26b   :  { %2967 = vmatprep.subr.bf16.mxu0 %v11079_v41  ;;  %v11150_v41 = vld [vmem:[#allocation2 + $0x9f8] ss:$24 sps:$4 sm:$0xff]  }
 0x26c   :  { %2923 = vmatpush1.bf16.msra.mxu1 %v11066_v11  ;;  %v11154_v11 = vld [vmem:[#allocation2 + $0xeac] ss:$24 sps:$4 sm:$0x3f]  }
 0x26d   :  { %2924 = vmatprep.subr.bf16.mxu1 %v11070_v62  ;;  %v11156_v62 = vld [vmem:[#allocation2 + $0xea8] ss:$24 sps:$4 sm:$0x3f]  }
 0x26e   :  { %2968 = vmatpush1.bf16.msra.mxu0 %v11081_v1  ;;  %v2792_v1 = vsel %vm2784_vm1, %v11156_v62, 0 }
 0x26f   :  { %2969 = vmatprep.subr.bf16.mxu0 %v11085_v42  ;;  %v11157_v42 = vld [vmem:[#allocation2 + $0xe7c] ss:$24 sps:$4 sm:$0xff]  }
 0x270   :  { %2925 = vmatpush1.bf16.msra.mxu1 %v11072_v43  ;;  %v11159_v43 = vld [vmem:[#allocation2 + $0xe78] ss:$24 sps:$4 sm:$0xff]  }
 0x271   :  { %2926 = vmatprep.subr.bf16.mxu1 %v11076_v44 }
 0x272   :  { %2970 = vmatpush1.bf16.msra.mxu0 %v11087_v46 }
 0x273   :  { %2971 = vmatprep.subr.bf16.mxu0 %v11091_v47 }
 0x274   :  { %2927 = vmatpush1.bf16.msra.mxu1 %v11078_v48 }
 0x275   :  { %2928 = vmatprep.subr.bf16.mxu1 %v11082_v49 }
 0x276   :  { %2972 = vmatpush1.bf16.msra.mxu0 %v11093_v10 }
 0x277   :  { %2973 = vmatprep.subr.bf16.mxu0 %v11097_v15 }
 0x278   :  { %2929 = vmatpush1.bf16.msra.mxu1 %v11084_v18 }
 0x279   :  { %2930 = vmatprep.subr.bf16.mxu1 %v11088_v19 }
 0x27a   :  { %2974 = vmatpush1.bf16.msra.mxu0 %v11099_v50 }
 0x27b   :  { %2975 = vmatprep.subr.bf16.mxu0 %v11103_v52 }
 0x27c   :  { %2931 = vmatpush1.bf16.msra.mxu1 %v11090_v54 }
 0x27d   :  { %2932 = vmatprep.subr.bf16.mxu1 %v11094_v58 }
 0x27e   :  { %2976 = vmatpush1.bf16.msra.mxu0 %v11105_v59 }
 0x27f   :  { %2977 = vmatprep.subr.bf16.mxu0 %v11109_v60 }
 0x280   :  { %2933 = vmatpush1.bf16.msra.mxu1 %v11096_v61 }
 0x281   :  { %2934 = vmatprep.subr.bf16.mxu1 %v11100_v63 }
 0x282   :  { %2978 = vmatpush2.bf16.msra.mxu0 %v11111_v3 }
 0x283   :  { %2979 = vmatprep.subr.bf16.mxu0 %v11115_v8 }
 0x284   :  { %2935 = vmatpush1.bf16.msra.mxu1 %v11102_v56 }
 0x285   :  { %2936 = vmatprep.subr.bf16.mxu1 %v11106_v12 }
 0x286   :  { %2980 = vmatpush2.bf16.msra.mxu0 %v11117_v13 }
 0x287   :  { %2981 = vmatprep.subr.bf16.mxu0 %v11121_v14 }
 0x288   :  { %2937 = vmatpush2.bf16.msra.mxu1 %v11108_v16 }
 0x289   :  { %2938 = vmatprep.subr.bf16.mxu1 %v11112_v17 }
 0x28a   :  { %2982 = vmatpush2.bf16.msra.mxu0 %v11123_v4 }
 0x28b   :  { %2983 = vmatprep.subr.bf16.mxu0 %v11127_v21 }
 0x28c   :  { %2939 = vmatpush2.bf16.msra.mxu1 %v11114_v22 }
 0x28d   :  { %2940 = vmatprep.subr.bf16.mxu1 %v11118_v5 }
 0x28e   :  { %2984 = vmatpush2.bf16.msra.mxu0 %v11129_v2 }
 0x28f   :  { %2985 = vmatprep.subr.bf16.mxu0 %v11133_v23 }
 0x290   :  { %2941 = vmatpush2.bf16.msra.mxu1 %v11120_v24 }
 0x291   :  { %2942 = vmatprep.subr.bf16.mxu1 %v11124_v25 }
 0x292   :  { %2986 = vmatpush2.bf16.msra.mxu0 %v11135_v26 }
 0x293   :  { %2987 = vmatprep.subr.bf16.mxu0 %v11139_v27 }
 0x294   :  { %2943 = vmatpush2.bf16.msra.mxu1 %v11126_v6 }
 0x295   :  { %2944 = vmatprep.subr.bf16.mxu1 %v11130_v30 }
 0x296   :  { %2988 = vmatpush2.bf16.msra.mxu0 %v11141_v7 }
 0x297   :  { %2989 = vmatprep.subr.bf16.mxu0 %v11145_v32 }
 0x298   :  { %2945 = vmatpush2.bf16.msra.mxu1 %v11132_v33 }
 0x299   :  { %2946 = vmatprep.subr.bf16.mxu1 %v11136_v20 }
 0x29a   :  { %2990 = vmatpush2.bf16.msra.mxu0 %v11147_v0 }
 0x29b   :  { %2991 = vmatprep.subr.bf16.mxu0 %v11151_v34 }
 0x29c   :  { %2947 = vmatpush2.bf16.msra.mxu1 %v11138_v36 }
 0x29d   :  { %2948 = vmatprep.subr.bf16.mxu1 %v11142_v35 }
 0x29e   :  { %2992 = vmatpush2.bf16.msra.mxu0 %v11153_v37 }
 0x2a0   :  { %2949 = vmatpush2.bf16.msra.mxu1 %v11144_v38 }
 0x2a1   :  { %2950 = vmatprep.subr.bf16.mxu1 %v11148_v40  ;;  %2994 = vmatmul.mubr.bf16.vlgmr.msra.gmra.mxu0 %v12903_v31 }
 0x2a4   :  { %2951 = vmatpush2.bf16.msra.mxu1 %v11150_v41 }
 0x2a5   :  { %9729 = vmatprep.subr.msk.bf16.mxu1 %vm2784_vm1, %v11154_v11 }
 0x2a7   :  { %2953 = vmatmul.mubr.bf16.vlgmr.msra.gmra.mxu1 %v12896_v29 }
 0x2a8   :  { %3015 = vmatpush1.bf16.msra.mxu1 %v2792_v1  ;;  %3034 = vmatprep.mubr.bf16.mxu1 %v12592_v45 }
 0x2a9   :  { %3016 = vmatprep.subr.bf16.mxu1 %v11157_v42 }
 0x2ac   :  { %3017 = vmatpush1.bf16.msra.mxu1 %v11159_v43 }
 0x2af   :  { %9730 = vmatmul.mubr.msk.bf16.vlgmr.msra.gmra.mxu1 %vm2780_vm2, %v12912_v39 }
 0x2b0   :  { %12218 = shalt.err (!%p12215_p0)  }
 0x2b1   :  { %s13470_s27 = smov 128   ;;  %s12596_s2 = smov 8   ;;  %v2082_v29 = vld [vmem:[#allocation7 + $0x5] sm:$0xf] }
 0x2b2   :  { %s13487_s3 = sld [smem:[#allocation62_spill]]  ;;  %v2087_v31 = vrot.slane %v2082_v29, %v12836_v55  ;;  %v2091_v39 = vrot.slane %v2082_v29, %v12842_v57  ;;  %v2095_v16 = vrot.slane %v2082_v29, %v12867_v9  ;;  %v2099_v21 = vrot.slane %v2082_v29, %v12872_v28 }
 0x2b8   :  { %3051 = dma.hbm_to_vmem [thread:$0]  %s13487_s3, 4864, %s12755_s7, [#allocation3 + $0x1], %s13470_s27, %s12587_s5, %s12596_s2 }
 0x31f   :  { %v2831_v44 = vpop.f32.mrf.mxu1 }
 0x320   :  { %v2832_v46 = vadd.f32 %v2831_v44, %v2087_v31 }
 0x321   :  { %v2833_v47 = vpop.f32.mrf.mxu1  ;;  %v2872_v48 = vpop.f32.mrf.mxu0 }
 0x322   :  { %v2834_v49 = vadd.f32 %v2833_v47, %v2091_v39  ;;  %v2873_v10 = vadd.f32 %v2872_v48, %v2832_v46 }
 0x323   :  { %v2835_v15 = vpop.f32.mrf.mxu1  ;;  %v2874_v18 = vpop.f32.mrf.mxu0 }
 0x324   :  { %v2875_v19 = vadd.f32 %v2874_v18, %v2834_v49 }
 0x325   :  { %v2836_v50 = vpop.f32.mrf.mxu1  ;;  %v2876_v52 = vpop.f32.mrf.mxu0 }
 0x327   :  { %v2913_v54 = vpop.f32.mrf.mxu1  ;;  %v2877_v58 = vpop.f32.mrf.mxu0 }
 0x328   :  { %v12938_v59 = vadd.f32 %v2913_v54, %v2873_v10 }
 0x329   :  { %v2915_v60 = vpop.f32.mrf.mxu1 }
 0x32a   :  { %v3043_v61 = vmax.f32 %v12938_v59, 0.0  ;;  %v2916_v63 = vadd.f32 %v2915_v60, %v2875_v19 }
 0x32b   :  { %v2917_v3 = vpop.f32.mrf.mxu1 }
 0x32c   :  { %v3044_v8 = vmax.f32 %v2916_v63, 0.0 }
 0x32d   :  { %v2918_v56 = vpop.f32.mrf.mxu1 }
 0x361   :  { %v2995_v12 = vpop.f32.mrf.mxu0 }
 0x363   :  { %v2997_v13 = vpop.f32.mrf.mxu0 }
 0x365   :  { %v2999_v14 = vpop.f32.mrf.mxu0 }
 0x367   :  { %v2954_v17 = vpop.f32.mrf.mxu1  ;;  %v3000_v4 = vpop.f32.mrf.mxu0 }
 0x368   :  { %v2955_v5 = vadd.f32 %v2954_v17, %v2095_v16 }
 0x369   :  { %v2956_v22 = vpop.f32.mrf.mxu1 }
 0x36a   :  { %v2957_v23 = vadd.f32 %v2956_v22, %v2099_v21  ;;  %v2996_v25 = vadd.f32 %v2995_v12, %v2955_v5 }
 0x36b   :  { %v2958_v2 = vpop.f32.mrf.mxu1 }
 0x36c   :  { %v2998_v27 = vadd.f32 %v2997_v13, %v2957_v23 }
 0x36d   :  { %v2959_v24 = vpop.f32.mrf.mxu1 }
 0x36f   :  { %v3036_v26 = vpop.f32.mrf.mxu1 }
 0x370   :  { %v12943_v6 = vadd.f32 %v3036_v26, %v2996_v25 }
 0x371   :  { %v3038_v30 = vpop.f32.mrf.mxu1 }
 0x372   :  { %v3045_v7 = vmax.f32 %v12943_v6, 0.0  ;;  %v3039_v32 = vadd.f32 %v3038_v30, %v2998_v27 }
 0x373   :  { %v3040_v33 = vpop.f32.mrf.mxu1 }
 0x374   :  { %v3046_v20 = vmax.f32 %v3039_v32, 0.0 }
 0x375   :  { %v3041_v0 = vpop.f32.mrf.mxu1 }
 0x376   :  { %12547 = dma.done.wait [#allocation3], 9600 }
 0x377   :  { %12548 = vsyncadd [#allocation3], 4294957696  ;;  %v12946_v34 = vpack.c.bf16 %v3046_v20, %v3046_v20  ;;  %vm3577_vm3 = vcmask 130048   ;;  %v12948_v36 = vpack.c.bf16 %v3044_v8, %v3044_v8  ;;  %v11160_v35 = vld [vmem:[#allocation2 + $0x154] ss:$24 sps:$4 sm:$0xff]   ;;  %v12956_v24 = vpack.c.bf16 %v3045_v7, %v3045_v7  ;;  %s12227_s1 = scalar_lea.vmem %s12732_s0, 3840 }
 0x378   :  { %v11162_v37 = vld [vmem:[#allocation2 + $0x150] ss:$24 sps:$4 sm:$0xff]   ;;  %3581 = vmatprep.subr.bf16.mxu1 %v11160_v35  ;;  %v11163_v38 = vld [vmem:[#allocation2 + $0x124] ss:$24 sps:$4 sm:$0xff]   ;;  %v11165_v40 = vld [vmem:[#allocation2 + $0x120] ss:$24 sps:$4 sm:$0xff]   ;;  %p12228_p1 = scmp.ne.s32.totalorder %s12732_s0, %s12227_s1  ;;  %p12233_p3 = scmp.lt.s32.totalorder %s12737_s30, %s12227_s1 }
 0x379   :  { %9806 = vmatprep.mubr.msk.bf16.mxu0 %vm3577_vm3, %v12946_v34  ;;  %3613 = vmatprep.mubr.bf16.mxu1 %v12948_v36  ;;  %v11166_v41 = vld [vmem:[#allocation2 + $0xf4] ss:$24 sps:$4 sm:$0xff]   ;;  %v11168_v11 = vld [vmem:[#allocation2 + $0xf0] ss:$24 sps:$4 sm:$0xff]   ;;  %v11169_v62 = vld [vmem:[#allocation2 + $0xc4] ss:$24 sps:$4 sm:$0xff]  }
 0x37a   :  { %3582 = vmatpush1.bf16.msra.mxu1 %v11162_v37  ;;  %v11178_v1 = vld [vmem:[#allocation2 + $0x454] ss:$24 sps:$4 sm:$0xff]   ;;  %v11180_v42 = vld [vmem:[#allocation2 + $0x450] ss:$24 sps:$4 sm:$0xff]   ;;  %v11171_v43 = vld [vmem:[#allocation2 + $0xc0] ss:$24 sps:$4 sm:$0xff]   ;;  %p12234_p4 = por %p12233_p3, %p12741_p11 }
 0x37b   :  { %3583 = vmatprep.subr.bf16.mxu1 %v11163_v38  ;;  %3622 = vmatprep.subr.bf16.mxu0 %v11178_v1  ;;  %v11184_v29 = vld [vmem:[#allocation2 + $0x424] ss:$24 sps:$4 sm:$0xff]   ;;  %v11186_v31 = vld [vmem:[#allocation2 + $0x420] ss:$24 sps:$4 sm:$0xff]   ;;  %v11172_v39 = vld [vmem:[#allocation2 + $0x94] ss:$24 sps:$4 sm:$0xff]  }
 0x37c   :  { %3623 = vmatpush1.bf16.msra.mxu0 %v11180_v42  ;;  %v11174_v44 = vld [vmem:[#allocation2 + $0x90] ss:$24 sps:$4 sm:$0xff]   ;;  %v11190_v46 = vld [vmem:[#allocation2 + $0x3f4] ss:$24 sps:$4 sm:$0xff]   ;;  %v11175_v47 = vld [vmem:[#allocation2 + $0x64] ss:$24 sps:$4 sm:$0xff]   ;;  %p12235_p5 = pnand %p12234_p4, %p12228_p1 }
 0x37d   :  { %3624 = vmatprep.subr.bf16.mxu0 %v11184_v29  ;;  %v11192_v48 = vld [vmem:[#allocation2 + $0x3f0] ss:$24 sps:$4 sm:$0xff]   ;;  %v11196_v49 = vld [vmem:[#allocation2 + $0x3c4] ss:$24 sps:$4 sm:$0xff]   ;;  %v11177_v10 = vld [vmem:[#allocation2 + $0x60] ss:$24 sps:$4 sm:$0xff]  }
 0x37e   :  { %3584 = vmatpush1.bf16.msra.mxu1 %v11165_v40  ;;  %v11181_v15 = vld [vmem:[#allocation2 + $0x34] ss:$24 sps:$4 sm:$0xff]   ;;  %v11198_v18 = vld [vmem:[#allocation2 + $0x3c0] ss:$24 sps:$4 sm:$0xff]   ;;  %v11183_v50 = vld [vmem:[#allocation2 + $0x30] ss:$24 sps:$4 sm:$0xff]  }
 0x37f   :  { %3585 = vmatprep.subr.bf16.mxu1 %v11166_v41  ;;  %v11202_v19 = vld [vmem:[#allocation2 + $0x394] ss:$24 sps:$4 sm:$0xff]   ;;  %v11187_v52 = vld [vmem:[#allocation2 + $0x4] ss:$24 sps:$4 sm:$0xff]   ;;  %v11204_v54 = vld [vmem:[#allocation2 + $0x390] ss:$24 sps:$4 sm:$0xff]  }
 0x380   :  { %3625 = vmatpush1.bf16.msra.mxu0 %v11186_v31  ;;  %v11208_v58 = vld [vmem:[#allocation2 + $0x364] ss:$24 sps:$4 sm:$0xff]   ;;  %v11189_v60 = vld [vmem:[#allocation2] ss:$24 sps:$4 sm:$0xff]   ;;  %v11193_v63 = vld [vmem:[#allocation2 + $0x2d4] ss:$24 sps:$4 sm:$0xff]  }
 0x381   :  { %3626 = vmatprep.subr.bf16.mxu0 %v11190_v46  ;;  %v11210_v3 = vld [vmem:[#allocation2 + $0x360] ss:$24 sps:$4 sm:$0xff]   ;;  %v11214_v8 = vld [vmem:[#allocation2 + $0x334] ss:$24 sps:$4 sm:$0xff]   ;;  %v11195_v56 = vld [vmem:[#allocation2 + $0x2d0] ss:$24 sps:$4 sm:$0xff]  }
 0x382   :  { %3586 = vmatpush1.bf16.msra.mxu1 %v11168_v11  ;;  %v11199_v12 = vld [vmem:[#allocation2 + $0x2a4] ss:$24 sps:$4 sm:$0xff]   ;;  %v11216_v13 = vld [vmem:[#allocation2 + $0x330] ss:$24 sps:$4 sm:$0xff]   ;;  %v11201_v16 = vld [vmem:[#allocation2 + $0x2a0] ss:$24 sps:$4 sm:$0xff]  }
 0x383   :  { %3587 = vmatprep.subr.bf16.mxu1 %v11169_v62  ;;  %v11220_v14 = vld [vmem:[#allocation2 + $0x304] ss:$24 sps:$4 sm:$0xff]   ;;  %v11205_v17 = vld [vmem:[#allocation2 + $0x274] ss:$24 sps:$4 sm:$0xff]   ;;  %v11222_v4 = vld [vmem:[#allocation2 + $0x300] ss:$24 sps:$4 sm:$0xff]  }
 0x384   :  { %3627 = vmatpush1.bf16.msra.mxu0 %v11192_v48  ;;  %v11226_v21 = vld [vmem:[#allocation2 + $0x484] ss:$24 sps:$4 sm:$0xff]   ;;  %v11207_v22 = vld [vmem:[#allocation2 + $0x270] ss:$24 sps:$4 sm:$0xff]   ;;  %v11228_v5 = vld [vmem:[#allocation2 + $0x480] ss:$24 sps:$4 sm:$0xff]  }
 0x385   :  { %3628 = vmatprep.subr.bf16.mxu0 %v11196_v49  ;;  %v11211_v2 = vld [vmem:[#allocation2 + $0x244] ss:$24 sps:$4 sm:$0xff]   ;;  %v11213_v23 = vld [vmem:[#allocation2 + $0x240] ss:$24 sps:$4 sm:$0xff]   ;;  %v11217_v26 = vld [vmem:[#allocation2 + $0x214] ss:$24 sps:$4 sm:$0xff]  }
 0x386   :  { %3588 = vmatpush1.bf16.msra.mxu1 %v11171_v43  ;;  %v11232_v25 = vld [vmem:[#allocation2 + $0x458] ss:$24 sps:$4 sm:$0xff]   ;;  %v11236_v30 = vld [vmem:[#allocation2 + $0x428] ss:$24 sps:$4 sm:$0xff]   ;;  %v11223_v32 = vld [vmem:[#allocation2 + $0x1e4] ss:$24 sps:$4 sm:$0xff]  }
 0x387   :  { %3589 = vmatprep.subr.bf16.mxu1 %v11172_v39  ;;  %v11219_v27 = vld [vmem:[#allocation2 + $0x210] ss:$24 sps:$4 sm:$0xff]   ;;  %v11225_v6 = vld [vmem:[#allocation2 + $0x1e0] ss:$24 sps:$4 sm:$0xff]   ;;  %v11229_v33 = vld [vmem:[#allocation2 + $0x1b4] ss:$24 sps:$4 sm:$0xff]  }
 0x388   :  { %3629 = vmatpush1.bf16.msra.mxu0 %v11198_v18  ;;  %v11239_v7 = vld [vmem:[#allocation2 + $0x3f8] ss:$24 sps:$4 sm:$0xff]   ;;  %v11233_v0 = vld [vmem:[#allocation2 + $0x184] ss:$24 sps:$4 sm:$0xff]   ;;  %v11242_v35 = vld [vmem:[#allocation2 + $0x3c8] ss:$24 sps:$4 sm:$0xff]  }
 0x389   :  { %3630 = vmatprep.subr.bf16.mxu0 %v11202_v19  ;;  %v11231_v20 = vld [vmem:[#allocation2 + $0x1b0] ss:$24 sps:$4 sm:$0xff]   ;;  %v11235_v19 = vld [vmem:[#allocation2 + $0x180] ss:$24 sps:$4 sm:$0xff]  }
 0x38a   :  { %3590 = vmatpush1.bf16.msra.mxu1 %v11174_v44  ;;  %v11237_v37 = vld [vmem:[#allocation2 + $0x2d8] ss:$24 sps:$4 sm:$0xff]   ;;  %v11240_v40 = vld [vmem:[#allocation2 + $0x2a8] ss:$24 sps:$4 sm:$0xff]  }
 0x38b   :  { %3591 = vmatprep.subr.bf16.mxu1 %v11175_v47  ;;  %v11238_v38 = vld [vmem:[#allocation2 + $0x158] ss:$24 sps:$4 sm:$0xff]   ;;  %v11241_v41 = vld [vmem:[#allocation2 + $0x128] ss:$24 sps:$4 sm:$0xff]  }
 0x38c   :  { %3631 = vmatpush1.bf16.msra.mxu0 %v11204_v54  ;;  %v11244_v11 = vld [vmem:[#allocation2 + $0xf8] ss:$24 sps:$4 sm:$0xff]   ;;  %v11246_v1 = vld [vmem:[#allocation2 + $0x248] ss:$24 sps:$4 sm:$0xff]  }
 0x38d   :  { %3632 = vmatprep.subr.bf16.mxu0 %v11208_v58  ;;  %v11245_v62 = vld [vmem:[#allocation2 + $0x398] ss:$24 sps:$4 sm:$0xff]   ;;  %v11247_v42 = vld [vmem:[#allocation2 + $0xc8] ss:$24 sps:$4 sm:$0xff]  }
 0x38e   :  { %3592 = vmatpush1.bf16.msra.mxu1 %v11177_v10  ;;  %v11248_v43 = vld [vmem:[#allocation2 + $0x368] ss:$24 sps:$4 sm:$0xff]   ;;  %v11249_v29 = vld [vmem:[#allocation2 + $0x218] ss:$24 sps:$4 sm:$0xff]  }
 0x38f   :  { %3593 = vmatprep.subr.bf16.mxu1 %v11181_v15  ;;  %v11250_v31 = vld [vmem:[#allocation2 + $0x98] ss:$24 sps:$4 sm:$0xff]   ;;  %v11252_v44 = vld [vmem:[#allocation2 + $0x1e8] ss:$24 sps:$4 sm:$0xff]  }
 0x390   :  { %3633 = vmatpush1.bf16.msra.mxu0 %v11210_v3  ;;  %v11251_v39 = vld [vmem:[#allocation2 + $0x338] ss:$24 sps:$4 sm:$0xff]   ;;  %v11253_v46 = vld [vmem:[#allocation2 + $0x68] ss:$24 sps:$4 sm:$0xff]  }
 0x391   :  { %3634 = vmatprep.subr.bf16.mxu0 %v11214_v8  ;;  %v11254_v47 = vld [vmem:[#allocation2 + $0x308] ss:$24 sps:$4 sm:$0xff]   ;;  %v11255_v48 = vld [vmem:[#allocation2 + $0x1b8] ss:$24 sps:$4 sm:$0xff]  }
 0x392   :  { %3594 = vmatpush1.bf16.msra.mxu1 %v11183_v50  ;;  %v11256_v49 = vld [vmem:[#allocation2 + $0x38] ss:$24 sps:$4 sm:$0xff]   ;;  %v11257_v10 = vld [vmem:[#allocation2 + $0x488] ss:$24 sps:$4 sm:$0xff]  }
 0x393   :  { %3595 = vmatprep.subr.bf16.mxu1 %v11187_v52  ;;  %v11258_v15 = vld [vmem:[#allocation2 + $0x188] ss:$24 sps:$4 sm:$0xff]  }
 0x394   :  { %3635 = vmatpush1.bf16.msra.mxu0 %v11216_v13  ;;  %v11259_v18 = vld [vmem:[#allocation2 + $0x8] ss:$24 sps:$4 sm:$0xff]  }
 0x395   :  { %3636 = vmatprep.subr.bf16.mxu0 %v11220_v14 }
 0x396   :  { %3596 = vmatpush1.bf16.msra.mxu1 %v11189_v60 }
 0x397   :  { %3597 = vmatprep.subr.bf16.mxu1 %v11193_v63 }
 0x398   :  { %3637 = vmatpush1.bf16.msra.mxu0 %v11222_v4 }
 0x399   :  { %3652 = vmatprep.subr.bf16.mxu0 %v11226_v21 }
 0x39a   :  { %3598 = vmatpush2.bf16.msra.mxu1 %v11195_v56 }
 0x39b   :  { %3599 = vmatprep.subr.bf16.mxu1 %v11199_v12 }
 0x39c   :  { %3653 = vmatpush2.bf16.msra.mxu0 %v11228_v5 }
 0x39d   :  { %3703 = vmatprep.subr.bf16.mxu0 %v12592_v45 }
 0x39e   :  { %3600 = vmatpush2.bf16.msra.mxu1 %v11201_v16 }
 0x39f   :  { %3601 = vmatprep.subr.bf16.mxu1 %v11205_v17  ;;  %3655 = vmatmul.mubr.bf16.vlgmr.msra.gmra.mxu0 %v12956_v24 }
 0x3a0   :  { %3704 = vmatpush1.bf16.msra.mxu0 %v11232_v25  ;;  %9807 = vmatprep.mubr.msk.bf16.mxu0 %vm3577_vm3, %v12946_v34  ;;  %v11243_v34 = vld [vmem:[#allocation2 + $0x278] ss:$24 sps:$4 sm:$0xff]  }
 0x3a1   :  { %3705 = vmatprep.subr.bf16.mxu0 %v12592_v45 }
 0x3a2   :  { %3602 = vmatpush2.bf16.msra.mxu1 %v11207_v22 }
 0x3a3   :  { %3603 = vmatprep.subr.bf16.mxu1 %v11211_v2 }
 0x3a4   :  { %3706 = vmatpush1.bf16.msra.mxu0 %v11236_v30 }
 0x3a5   :  { %3707 = vmatprep.subr.bf16.mxu0 %v12592_v45 }
 0x3a6   :  { %3604 = vmatpush2.bf16.msra.mxu1 %v11213_v23 }
 0x3a7   :  { %3605 = vmatprep.subr.bf16.mxu1 %v11217_v26 }
 0x3a8   :  { %3708 = vmatpush1.bf16.msra.mxu0 %v11239_v7 }
 0x3a9   :  { %3709 = vmatprep.subr.bf16.mxu0 %v12592_v45 }
 0x3aa   :  { %3606 = vmatpush2.bf16.msra.mxu1 %v11219_v27 }
 0x3ab   :  { %3607 = vmatprep.subr.bf16.mxu1 %v11223_v32 }
 0x3ac   :  { %3710 = vmatpush1.bf16.msra.mxu0 %v11242_v35 }
 0x3ae   :  { %3608 = vmatpush2.bf16.msra.mxu1 %v11225_v6 }
 0x3af   :  { %3609 = vmatprep.subr.bf16.mxu1 %v11229_v33 }
 0x3b2   :  { %3610 = vmatpush2.bf16.msra.mxu1 %v11231_v20 }
 0x3b3   :  { %12238 = shalt.err (!%p12235_p5)  }
 0x3b4   :  { %s13488_s6 = sld [smem:[#allocation63_spill]]  ;;  %3611 = vmatprep.subr.bf16.mxu1 %v11233_v0  ;;  %3711 = vmatprep.subr.bf16.mxu0 %v12592_v45  ;;  %v3156_v50 = vpack.c.bf16 %v3043_v61, %v3043_v61  ;;  %v3160_v54 = vld [vmem:[#allocation7 + $0x9] sm:$0x7] }
 0x3b5   :  { %3712 = vmatpush1.bf16.msra.mxu0 %v11245_v62  ;;  %v3165_v58 = vrot.slane %v3160_v54, %v12836_v55  ;;  %v3169_v60 = vrot.slane %v3160_v54, %v12842_v57 }
 0x3b6   :  { %3612 = vmatpush2.bf16.msra.mxu1 %v11235_v19  ;;  %3713 = vmatprep.subr.bf16.mxu0 %v12592_v45 }
 0x3b7   :  { %10475 = vmatprep.subr.bf16.mxu1 %v11237_v37 }
 0x3b9   :  { %3614 = vmatmul.mubr.bf16.vlgmr.msra.gmra.mxu1 %v3156_v50  ;;  %3714 = vmatpush1.bf16.msra.mxu0 %v11248_v43 }
 0x3ba   :  { %3750 = dma.hbm_to_vmem [thread:$0]  %s13488_s6, 3840, %s12732_s0, [#allocation3], %s13470_s27, %s12587_s5, %s12596_s2  ;;  %10476 = vmatpush3.bf16.msra.mxu1 %v11238_v38  ;;  %3715 = vmatprep.subr.bf16.mxu0 %v12592_v45 }
 0x3bb   :  { %10477 = vmatprep.subr.bf16.mxu1 %v11240_v40  ;;  %3695 = vmatprep.mubr.bf16.mxu1 %v12948_v36 }
 0x3bd   :  { %3716 = vmatpush1.bf16.msra.mxu0 %v11251_v39 }
 0x3be   :  { %10478 = vmatpush3.bf16.msra.mxu1 %v11241_v41  ;;  %3717 = vmatprep.subr.bf16.mxu0 %v12592_v45 }
 0x3bf   :  { %10479 = vmatprep.subr.bf16.mxu1 %v11243_v34 }
 0x3c1   :  { %3718 = vmatpush1.bf16.msra.mxu0 %v11254_v47 }
 0x3c2   :  { %10480 = vmatpush3.bf16.msra.mxu1 %v11244_v11  ;;  %3733 = vmatprep.subr.bf16.mxu0 %v12592_v45 }
 0x3c3   :  { %10481 = vmatprep.subr.bf16.mxu1 %v11246_v1 }
 0x3c5   :  { %3734 = vmatpush2.bf16.msra.mxu0 %v11257_v10 }
 0x3c6   :  { %10482 = vmatpush3.bf16.msra.mxu1 %v11247_v42 }
 0x3c7   :  { %10483 = vmatprep.subr.bf16.mxu1 %v11249_v29 }
 0x3c8   :  { %3736 = vmatmul.mubr.bf16.vlgmr.msra.gmra.mxu0 %v12956_v24  ;;  %v3173_v24 = vrot.slane %v3160_v54, %v12867_v9 }
 0x3ca   :  { %10484 = vmatpush3.bf16.msra.mxu1 %v11250_v31 }
 0x3cb   :  { %10485 = vmatprep.subr.bf16.mxu1 %v11252_v44 }
 0x3ce   :  { %10486 = vmatpush3.bf16.msra.mxu1 %v11253_v46 }
 0x3cf   :  { %10487 = vmatprep.subr.bf16.mxu1 %v11255_v48 }
 0x3d2   :  { %10488 = vmatpush3.bf16.msra.mxu1 %v11256_v49 }
 0x3d3   :  { %10489 = vmatprep.subr.bf16.mxu1 %v11258_v15 }
 0x3d6   :  { %10490 = vmatpush3.bf16.msra.mxu1 %v11259_v18 }
 0x3d9   :  { %3696 = vmatmul.mubr.bf16.vlgmr.msra.gmra.mxu1 %v3156_v50 }
 0x45f   :  { %v3656_v59 = vpop.f32.mrf.mxu0 }
 0x461   :  { %v3658_v61 = vpop.f32.mrf.mxu0 }
 0x463   :  { %v3660_v36 = vpop.f32.mrf.mxu0 }
 0x465   :  { %v3661_v52 = vpop.f32.mrf.mxu0 }
 0x479   :  { %v3615_v63 = vpop.f32.mrf.mxu1 }
 0x47a   :  { %v3616_v3 = vadd.f32 %v3615_v63, %v3165_v58 }
 0x47b   :  { %v3617_v8 = vpop.f32.mrf.mxu1 }
 0x47c   :  { %v12989_v56 = vadd.f32 %v3656_v59, %v3616_v3  ;;  %v3618_v12 = vadd.f32 %v3617_v8, %v3169_v60 }
 0x47d   :  { %v3619_v13 = vpop.f32.mrf.mxu1 }
 0x47e   :  { %v3743_v14 = vmax.f32 %v12989_v56, 0.0  ;;  %v3659_v16 = vadd.f32 %v3658_v61, %v3618_v12 }
 0x47f   :  { %v3620_v17 = vpop.f32.mrf.mxu1 }
 0x480   :  { %v3744_v4 = vmax.f32 %v3659_v16, 0.0 }
 0x488   :  { %v3737_v21 = vpop.f32.mrf.mxu0 }
 0x48a   :  { %v3739_v22 = vpop.f32.mrf.mxu0 }
 0x48c   :  { %v3740_v5 = vpop.f32.mrf.mxu0 }
 0x48e   :  { %v3741_v2 = vpop.f32.mrf.mxu0 }
 0x499   :  { %v10491_v23 = vpop.f32.mrf.mxu1 }
 0x49b   :  { %v10492_v25 = vpop.f32.mrf.mxu1 }
 0x49c   :  { %v10493_v26 = vadd.f32 %v10492_v25, %v10491_v23 }
 0x49d   :  { %v10494_v27 = vpop.f32.mrf.mxu1 }
 0x49e   :  { %v3698_v30 = vadd.f32 %v10493_v26, %v3173_v24 }
 0x49f   :  { %v10495_v32 = vpop.f32.mrf.mxu1 }
 0x4a0   :  { %v3738_v6 = vadd.f32 %v3737_v21, %v3698_v30 }
 0x4a2   :  { %v3745_v7 = vmax.f32 %v3738_v6, 0.0 }
 0x4a3   :  { %12549 = dma.done.wait [#allocation3 + $0x1], 4864 }
 0x4a4   :  { %12550 = vsyncadd [#allocation3 + $0x1], 4294962432  ;;  %4079 = vmatprep.mubr.bf16.mxu0 %v12592_v45  ;;  %v3794_v33 = vpack.c.bf16 %v3744_v4, %v3744_v4  ;;  %v11260_v20 = vld [vmem:[#allocation2 + $0x9c4] ss:$24 sps:$4 sm:$0xff]   ;;  %v11262_v0 = vld [vmem:[#allocation2 + $0x9c0] ss:$24 sps:$4 sm:$0xff]   ;;  %v3795_v19 = vpack.c.bf16 %v3745_v7, %v3745_v7  ;;  %v3793_v4 = vpack.c.bf16 %v3743_v14, %v3743_v14 }
 0x4a5   :  { %4006 = vmatprep.subr.bf16.mxu1 %v11260_v20  ;;  %v11263_v35 = vld [vmem:[#allocation2 + $0x994] ss:$24 sps:$4 sm:$0xff]   ;;  %v11265_v37 = vld [vmem:[#allocation2 + $0x990] ss:$24 sps:$4 sm:$0xff]   ;;  %v11266_v38 = vld [vmem:[#allocation2 + $0x964] ss:$24 sps:$4 sm:$0xff]  }
 0x4a6   :  { %4038 = vmatprep.mubr.bf16.mxu1 %v3794_v33  ;;  %4007 = vmatpush1.bf16.msra.mxu1 %v11262_v0  ;;  %v11268_v40 = vld [vmem:[#allocation2 + $0x960] ss:$24 sps:$4 sm:$0xff]   ;;  %v11269_v41 = vld [vmem:[#allocation2 + $0x934] ss:$24 sps:$4 sm:$0xff]   ;;  %v11271_v34 = vld [vmem:[#allocation2 + $0x930] ss:$24 sps:$4 sm:$0xff]  }
 0x4a7   :  { %4008 = vmatprep.subr.bf16.mxu1 %v11263_v35  ;;  %v11272_v11 = vld [vmem:[#allocation2 + $0x904] ss:$24 sps:$4 sm:$0xff]   ;;  %v11274_v62 = vld [vmem:[#allocation2 + $0x900] ss:$24 sps:$4 sm:$0xff]   ;;  %v11275_v1 = vld [vmem:[#allocation2 + $0x8d4] ss:$24 sps:$4 sm:$0xff]  }
 0x4a8   :  { %v11296_v42 = vld [vmem:[#allocation2 + $0xbd4] ss:$24 sps:$4 sm:$0x3f]   ;;  %v11277_v43 = vld [vmem:[#allocation2 + $0x8d0] ss:$24 sps:$4 sm:$0xff]   ;;  %vm3996_vm4 = vcmask 359424  }
 0x4a9   :  { %9846 = vmatprep.subr.msk.bf16.mxu0 %vm2784_vm1, %v11296_v42  ;;  %v11300_v29 = vld [vmem:[#allocation2 + $0xbd0] ss:$24 sps:$4 sm:$0x3f]   ;;  %v11302_v31 = vld [vmem:[#allocation2 + $0xba4] ss:$24 sps:$4 sm:$0xff]   ;;  %s12247_s1 = scalar_lea.vmem %s12755_s7, 1280 }
 0x4aa   :  { %4009 = vmatpush1.bf16.msra.mxu1 %v11265_v37  ;;  %v11278_v39 = vld [vmem:[#allocation2 + $0x8a4] ss:$24 sps:$4 sm:$0xff]   ;;  %v4001_v44 = vsel %vm2784_vm1, %v11300_v29, 0  ;;  %v11306_v46 = vld [vmem:[#allocation2 + $0xba0] ss:$24 sps:$4 sm:$0xff]   ;;  %p12248_p6 = scmp.ne.s32.totalorder %s12755_s7, %s12247_s1  ;;  %p12253_p7 = scmp.lt.s32.totalorder %s12737_s30, %s12247_s1 }
 0x4ab   :  { %4010 = vmatprep.subr.bf16.mxu1 %v11266_v38  ;;  %4058 = vmatpush1.bf16.msra.mxu0 %v4001_v44  ;;  %v11308_v47 = vld [vmem:[#allocation2 + $0xb74] ss:$24 sps:$4 sm:$0xff]   ;;  %v11280_v48 = vld [vmem:[#allocation2 + $0x8a0] ss:$24 sps:$4 sm:$0xff]   ;;  %v11312_v10 = vld [vmem:[#allocation2 + $0xb70] ss:$24 sps:$4 sm:$0xff]  }
 0x4ac   :  { %4059 = vmatprep.subr.bf16.mxu0 %v11302_v31  ;;  %v11281_v49 = vld [vmem:[#allocation2 + $0x874] ss:$24 sps:$4 sm:$0xff]   ;;  %v11283_v15 = vld [vmem:[#allocation2 + $0x870] ss:$24 sps:$4 sm:$0xff]   ;;  %v11284_v18 = vld [vmem:[#allocation2 + $0xb44] ss:$24 sps:$4 sm:$0xff]   ;;  %p12254_p8 = por %p12253_p7, %p12765_p2 }
 0x4ad   :  { %v11286_v50 = vld [vmem:[#allocation2 + $0xb40] ss:$24 sps:$4 sm:$0xff]   ;;  %v11287_v59 = vld [vmem:[#allocation2 + $0xb14] ss:$24 sps:$4 sm:$0xff]   ;;  %v11289_v61 = vld [vmem:[#allocation2 + $0xb10] ss:$24 sps:$4 sm:$0xff]  }
 0x4ae   :  { %4011 = vmatpush1.bf16.msra.mxu1 %v11268_v40  ;;  %v11290_v36 = vld [vmem:[#allocation2 + $0xae4] ss:$24 sps:$4 sm:$0xff]   ;;  %v11292_v52 = vld [vmem:[#allocation2 + $0xae0] ss:$24 sps:$4 sm:$0xff]   ;;  %v11293_v54 = vld [vmem:[#allocation2 + $0xab4] ss:$24 sps:$4 sm:$0xff]   ;;  %p12255_p9 = pnand %p12254_p8, %p12248_p6 }
 0x4af   :  { %4012 = vmatprep.subr.bf16.mxu1 %v11269_v41  ;;  %4060 = vmatpush1.bf16.msra.mxu0 %v11306_v46  ;;  %v11295_v58 = vld [vmem:[#allocation2 + $0xab0] ss:$24 sps:$4 sm:$0xff]   ;;  %v11298_v60 = vld [vmem:[#allocation2 + $0xa84] ss:$24 sps:$4 sm:$0xff]   ;;  %v11301_v63 = vld [vmem:[#allocation2 + $0xa80] ss:$24 sps:$4 sm:$0xff]  }
 0x4b0   :  { %4061 = vmatprep.subr.bf16.mxu0 %v11308_v47  ;;  %v11304_v3 = vld [vmem:[#allocation2 + $0xa54] ss:$24 sps:$4 sm:$0xff]   ;;  %v11307_v8 = vld [vmem:[#allocation2 + $0xa50] ss:$24 sps:$4 sm:$0xff]   ;;  %v11310_v12 = vld [vmem:[#allocation2 + $0xa24] ss:$24 sps:$4 sm:$0xff]  }
 0x4b1   :  { %v11313_v13 = vld [vmem:[#allocation2 + $0xa20] ss:$24 sps:$4 sm:$0xff]   ;;  %v11314_v16 = vld [vmem:[#allocation2 + $0x9f4] ss:$24 sps:$4 sm:$0xff]   ;;  %v11316_v17 = vld [vmem:[#allocation2 + $0x9f0] ss:$24 sps:$4 sm:$0xff]  }
 0x4b2   :  { %4013 = vmatpush1.bf16.msra.mxu1 %v11271_v34 }
 0x4b3   :  { %4014 = vmatprep.subr.bf16.mxu1 %v11272_v11  ;;  %4062 = vmatpush1.bf16.msra.mxu0 %v11312_v10 }
 0x4b6   :  { %4015 = vmatpush1.bf16.msra.mxu1 %v11274_v62  ;;  %9847 = vmatmul.mubr.msk.bf16.vlgmr.msra.gmra.mxu0 %vm3996_vm4, %v3795_v19 }
 0x4b7   :  { %4016 = vmatprep.subr.bf16.mxu1 %v11275_v1 }
 0x4ba   :  { %4017 = vmatpush1.bf16.msra.mxu1 %v11277_v43 }
 0x4bb   :  { %4018 = vmatprep.subr.bf16.mxu1 %v11278_v39 }
 0x4be   :  { %4019 = vmatpush1.bf16.msra.mxu1 %v11280_v48 }
 0x4bf   :  { %4020 = vmatprep.subr.bf16.mxu1 %v11281_v49 }
 0x4c2   :  { %4021 = vmatpush1.bf16.msra.mxu1 %v11283_v15 }
 0x4c3   :  { %4022 = vmatprep.subr.bf16.mxu1 %v11284_v18 }
 0x4c6   :  { %4023 = vmatpush2.bf16.msra.mxu1 %v11286_v50 }
 0x4c7   :  { %4024 = vmatprep.subr.bf16.mxu1 %v11287_v59 }
 0x4ca   :  { %4025 = vmatpush2.bf16.msra.mxu1 %v11289_v61 }
 0x4cb   :  { %4026 = vmatprep.subr.bf16.mxu1 %v11290_v36 }
 0x4ce   :  { %4027 = vmatpush2.bf16.msra.mxu1 %v11292_v52 }
 0x4cf   :  { %4028 = vmatprep.subr.bf16.mxu1 %v11293_v54 }
 0x4d2   :  { %4029 = vmatpush2.bf16.msra.mxu1 %v11295_v58 }
 0x4d3   :  { %4030 = vmatprep.subr.bf16.mxu1 %v11298_v60 }
 0x4d6   :  { %4031 = vmatpush2.bf16.msra.mxu1 %v11301_v63 }
 0x4d7   :  { %4032 = vmatprep.subr.bf16.mxu1 %v11304_v3 }
 0x4da   :  { %4033 = vmatpush2.bf16.msra.mxu1 %v11307_v8 }
 0x4db   :  { %4034 = vmatprep.subr.bf16.mxu1 %v11310_v12 }
 0x4de   :  { %4035 = vmatpush2.bf16.msra.mxu1 %v11313_v13 }
 0x4df   :  { %4036 = vmatprep.subr.bf16.mxu1 %v11314_v16 }
 0x4e2   :  { %4037 = vmatpush2.bf16.msra.mxu1 %v11316_v17 }
 0x4e5   :  { %4039 = vmatmul.mubr.bf16.vlgmr.msra.gmra.mxu1 %v3793_v4 }
 0x4e6   :  { %12258 = shalt.err (!%p12255_p9)  }
 0x4e7   :  { %s12597_s3 = smov 64   ;;  %s12598_s25 = smov 4   ;;  %v3796_v5 = vld [vmem:[#allocation7 + $0xc] sm:$0x3] }
 0x4e8   :  { %4094 = dma.hbm_to_vmem [thread:$0]  %s13448_s8, 1280, %s12755_s7, [#allocation3 + $0x1], %s12597_s3, %s12587_s5, %s12598_s25  ;;  %v3801_v2 = vrot.slane %v3796_v5, %v12836_v55  ;;  %v3805_v23 = vrot.slane %v3796_v5, %v12842_v57 }
 0x576   :  { %v4081_v56 = vpop.f32.mrf.mxu0 }
 0x578   :  { %v4083_v14 = vpop.f32.mrf.mxu0 }
 0x57a   :  { %v4085_v21 = vpop.f32.mrf.mxu0 }
 0x57c   :  { %v4086_v22 = vpop.f32.mrf.mxu0 }
 0x5a5   :  { %v4040_v24 = vpop.f32.mrf.mxu1 }
 0x5a6   :  { %v4041_v25 = vadd.f32 %v4040_v24, %v3801_v2 }
 0x5a7   :  { %v4042_v26 = vpop.f32.mrf.mxu1 }
 0x5a8   :  { %v13014_v27 = vadd.f32 %v4081_v56, %v4041_v25  ;;  %v4043_v30 = vadd.f32 %v4042_v26, %v3805_v23 }
 0x5a9   :  { %v4044_v32 = vpop.f32.mrf.mxu1 }
 0x5aa   :  { %v4088_v6 = vmax.f32 %v13014_v27, 0.0  ;;  %v4084_v7 = vadd.f32 %v4083_v14, %v4043_v30 }
 0x5ab   :  { %v4045_v33 = vpop.f32.mrf.mxu1 }
 0x5ac   :  { %v4089_v20 = vmax.f32 %v4084_v7, 0.0 }
 0x5ad   :  { %12551 = dma.done.wait [#allocation3], 3840 }
 0x5ae   :  { %12552 = vsyncadd [#allocation3], 4294963456  ;;  %v4129_v0 = vpack.c.bf16 %v4089_v20, %v4089_v20  ;;  %vm4287_vm5 = vcmask 793600   ;;  %v11317_v35 = vld [vmem:[#allocation2 + $0x154] ss:$24 sps:$4 sm:$0xff]   ;;  %s12267_s8 = scalar_lea.vmem %s12732_s0, 896 }
 0x5af   :  { %v11319_v37 = vld [vmem:[#allocation2 + $0x150] ss:$24 sps:$4 sm:$0xff]   ;;  %4300 = vmatprep.subr.bf16.mxu0 %v11317_v35  ;;  %v11320_v38 = vld [vmem:[#allocation2 + $0x124] ss:$24 sps:$4 sm:$0xff]   ;;  %v11322_v40 = vld [vmem:[#allocation2 + $0x120] ss:$24 sps:$4 sm:$0xff]   ;;  %p12268_p10 = scmp.ne.s32.totalorder %s12732_s0, %s12267_s8  ;;  %p12273_p12 = scmp.lt.s32.totalorder %s12737_s30, %s12267_s8 }
 0x5b0   :  { %9878 = vmatprep.mubr.msk.bf16.mxu0 %vm4287_vm5, %v4129_v0  ;;  %4301 = vmatpush1.bf16.msra.mxu0 %v11319_v37  ;;  %v11323_v41 = vld [vmem:[#allocation2 + $0xf4] ss:$24 sps:$4 sm:$0xff]   ;;  %v11325_v34 = vld [vmem:[#allocation2 + $0xf0] ss:$24 sps:$4 sm:$0xff]   ;;  %v11326_v11 = vld [vmem:[#allocation2 + $0xc4] ss:$24 sps:$4 sm:$0xff]  }
 0x5b1   :  { %4302 = vmatprep.subr.bf16.mxu0 %v11320_v38  ;;  %v11328_v62 = vld [vmem:[#allocation2 + $0xc0] ss:$24 sps:$4 sm:$0xff]   ;;  %v11329_v1 = vld [vmem:[#allocation2 + $0x94] ss:$24 sps:$4 sm:$0xff]   ;;  %v11331_v42 = vld [vmem:[#allocation2 + $0x90] ss:$24 sps:$4 sm:$0xff]   ;;  %p12274_p13 = por %p12273_p12, %p12741_p11 }
 0x5b2   :  { %v11332_v43 = vld [vmem:[#allocation2 + $0x64] ss:$24 sps:$4 sm:$0xff]   ;;  %v11335_v29 = vld [vmem:[#allocation2 + $0x34] ss:$24 sps:$4 sm:$0xff]   ;;  %v11334_v15 = vld [vmem:[#allocation2 + $0x60] ss:$24 sps:$4 sm:$0xff]  }
 0x5b3   :  { %v11338_v31 = vld [vmem:[#allocation2 + $0x4] ss:$24 sps:$4 sm:$0xff]   ;;  %v11343_v44 = vld [vmem:[#allocation2 + $0x274] ss:$24 sps:$4 sm:$0xff]   ;;  %p12275_p0 = pnand %p12274_p13, %p12268_p10 }
 0x5b4   :  { %4303 = vmatpush1.bf16.msra.mxu0 %v11322_v40  ;;  %v4127_v39 = vld [vmem:[#allocation2 + $0x2a0] sm:$0x11]  ;;  %v11349_v47 = vld [vmem:[#allocation2 + $0x214] ss:$24 sps:$4 sm:$0xff]  }
 0x5b5   :  { %4304 = vmatprep.subr.bf16.mxu0 %v11323_v41  ;;  %v11346_v46 = vld [vmem:[#allocation2 + $0x244] ss:$24 sps:$4 sm:$0xff]   ;;  %v11355_v49 = vld [vmem:[#allocation2 + $0x1b4] ss:$24 sps:$4 sm:$0xff]  }
 0x5b6   :  { %v11352_v48 = vld [vmem:[#allocation2 + $0x1e4] ss:$24 sps:$4 sm:$0xff]  }
 0x5b7   :  { %v11358_v10 = vld [vmem:[#allocation2 + $0x184] ss:$24 sps:$4 sm:$0xff]  }
 0x5b8   :  { %4305 = vmatpush1.bf16.msra.mxu0 %v11325_v34 }
 0x5b9   :  { %4306 = vmatprep.subr.bf16.mxu0 %v11326_v11 }
 0x5bc   :  { %4307 = vmatpush1.bf16.msra.mxu0 %v11328_v62 }
 0x5bd   :  { %4308 = vmatprep.subr.bf16.mxu0 %v11329_v1 }
 0x5c0   :  { %4309 = vmatpush1.bf16.msra.mxu0 %v11331_v42 }
 0x5c1   :  { %12278 = shalt.err (!%p12275_p0)  }
 0x5c2   :  { %4347 = dma.hbm_to_vmem [thread:$0]  %s13449_s9, 896, %s12732_s0, [#allocation3], %s12597_s3, %s12587_s5, %s12598_s25  ;;  %4310 = vmatprep.subr.bf16.mxu0 %v11332_v43  ;;  %vm4291_vm6 = vcmask 1040384   ;;  %v9877_v19 = vcombine.high %v4127_v39, %v4127_v39  ;;  %v9876_v61 = vcombine.low %v4127_v39, %v4127_v39  ;;  %v4128_v12 = vpack.c.bf16 %v4088_v6, %v4088_v6  ;;  %v4130_v13 = vld [vmem:[#allocation7 + $0xe] sm:$0x3] }
 0x5c3   :  { %v11337_v18 = vld [vmem:[#allocation2 + $0x30] ss:$24 sps:$4 sm:$0xff]   ;;  %v13031_v50 = vsel %vm4291_vm6, 65535, %v12592_v45  ;;  %v11340_v59 = vld [vmem:[#allocation2] ss:$24 sps:$4 sm:$0xff]   ;;  %v4135_v16 = vrot.slane %v4130_v13, %v12836_v55  ;;  %v4139_v17 = vrot.slane %v4130_v13, %v12842_v57 }
 0x5c4   :  { %4311 = vmatpush1.bf16.msra.mxu0 %v11334_v15  ;;  %v4298_v36 = vand.u32 %v9877_v19, %v13031_v50  ;;  %v4295_v52 = vand.u32 %v9876_v61, %v13031_v50  ;;  %v11345_v54 = vld [vmem:[#allocation2 + $0x270] ss:$24 sps:$4 sm:$0xff]   ;;  %v11348_v58 = vld [vmem:[#allocation2 + $0x240] ss:$24 sps:$4 sm:$0xff]  }
 0x5c5   :  { %4312 = vmatprep.subr.bf16.mxu0 %v11335_v29  ;;  %v11351_v60 = vld [vmem:[#allocation2 + $0x210] ss:$24 sps:$4 sm:$0xff]   ;;  %v11354_v63 = vld [vmem:[#allocation2 + $0x1e0] ss:$24 sps:$4 sm:$0xff]  }
 0x5c6   :  { %v11357_v3 = vld [vmem:[#allocation2 + $0x1b0] ss:$24 sps:$4 sm:$0xff]   ;;  %v11360_v8 = vld [vmem:[#allocation2 + $0x180] ss:$24 sps:$4 sm:$0xff]  }
 0x5c8   :  { %4313 = vmatpush1.bf16.msra.mxu0 %v11337_v18 }
 0x5c9   :  { %4314 = vmatprep.subr.bf16.mxu0 %v11338_v31 }
 0x5cc   :  { %4315 = vmatpush1.bf16.msra.mxu0 %v11340_v59 }
 0x5cd   :  { %4318 = vmatprep.subr.bf16.mxu0 %v4298_v36 }
 0x5d0   :  { %4319 = vmatpush2.bf16.msra.mxu0 %v4295_v52 }
 0x5d1   :  { %4320 = vmatprep.subr.bf16.mxu0 %v11343_v44 }
 0x5d4   :  { %4321 = vmatpush2.bf16.msra.mxu0 %v11345_v54 }
 0x5d5   :  { %4322 = vmatprep.subr.bf16.mxu0 %v11346_v46 }
 0x5d8   :  { %4323 = vmatpush2.bf16.msra.mxu0 %v11348_v58 }
 0x5d9   :  { %4324 = vmatprep.subr.bf16.mxu0 %v11349_v47 }
 0x5dc   :  { %4325 = vmatpush2.bf16.msra.mxu0 %v11351_v60 }
 0x5dd   :  { %4326 = vmatprep.subr.bf16.mxu0 %v11352_v48 }
 0x5e0   :  { %4327 = vmatpush2.bf16.msra.mxu0 %v11354_v63 }
 0x5e1   :  { %4328 = vmatprep.subr.bf16.mxu0 %v11355_v49 }
 0x5e4   :  { %4329 = vmatpush2.bf16.msra.mxu0 %v11357_v3 }
 0x5e5   :  { %4330 = vmatprep.subr.bf16.mxu0 %v11358_v10 }
 0x5e8   :  { %4331 = vmatpush2.bf16.msra.mxu0 %v11360_v8 }
 0x5eb   :  { %4333 = vmatmul.mubr.bf16.vlgmr.msra.gmra.mxu0 %v4128_v12 }
 0x6ab   :  { %v4334_v4 = vpop.f32.mrf.mxu0 }
 0x6ac   :  { %v4335_v56 = vadd.f32 %v4334_v4, %v4135_v16 }
 0x6ad   :  { %v4336_v14 = vpop.f32.mrf.mxu0 }
 0x6ae   :  { %v4341_v21 = vmax.f32 %v4335_v56, 0.0  ;;  %v4337_v22 = vadd.f32 %v4336_v14, %v4139_v17 }
 0x6af   :  { %v4338_v5 = vpop.f32.mrf.mxu0 }
 0x6b0   :  { %v4342_v2 = vmax.f32 %v4337_v22, 0.0 }
 0x6b1   :  { %v4339_v23 = vpop.f32.mrf.mxu0 }
 0x6b2   :  { %12553 = dma.done.wait [#allocation3 + $0x1], 1280 }
 0x6b3   :  { %12554 = vsyncadd [#allocation3 + $0x1], 4294966016  ;;  %4445 = vmatprep.subr.bf16.mxu1 %v12592_v45  ;;  %v4372_v24 = vpack.c.bf16 %v4342_v2, %v4342_v2  ;;  %vm4437_vm7 = vcmask 179200   ;;  %v11361_v25 = vld [vmem:[#allocation2 + $0x9c0] ss:$24 sps:$4 sm:$0xff]   ;;  %s12287_s9 = scalar_lea.vmem %s12755_s7, 512 }
 0x6b4   :  { %4446 = vmatpush1.bf16.msra.mxu1 %v11361_v25  ;;  %v11362_v26 = vld [vmem:[#allocation2 + $0x990] ss:$24 sps:$4 sm:$0xff]   ;;  %v11363_v27 = vld [vmem:[#allocation2 + $0x960] ss:$24 sps:$4 sm:$0xff]   ;;  %p12288_p1 = scmp.ne.s32.totalorder %s12755_s7, %s12287_s9  ;;  %p12293_p3 = scmp.lt.s32.totalorder %s12737_s30, %s12287_s9 }
 0x6b5   :  { %9890 = vmatprep.mubr.msk.bf16.mxu1 %vm4437_vm7, %v4372_v24  ;;  %4447 = vmatprep.subr.bf16.mxu1 %v12592_v45  ;;  %v11364_v30 = vld [vmem:[#allocation2 + $0x930] ss:$24 sps:$4 sm:$0xff]   ;;  %v11365_v32 = vld [vmem:[#allocation2 + $0x900] ss:$24 sps:$4 sm:$0xff]  }
 0x6b6   :  { %v11366_v6 = vld [vmem:[#allocation2 + $0x8d0] ss:$24 sps:$4 sm:$0xff]   ;;  %v11367_v7 = vld [vmem:[#allocation2 + $0x8a0] ss:$24 sps:$4 sm:$0xff]   ;;  %p12294_p4 = por %p12293_p3, %p12765_p2 }
 0x6b7   :  { %v11368_v33 = vld [vmem:[#allocation2 + $0x870] ss:$24 sps:$4 sm:$0xff]   ;;  %v11369_v20 = vld [vmem:[#allocation2 + $0xa20] ss:$0 sps:$4 sm:$0x77]  }
 0x6b8   :  { %4448 = vmatpush1.bf16.msra.mxu1 %v11362_v26  ;;  %v11370_v0 = vld [vmem:[#allocation2 + $0x9f0] ss:$24 sps:$4 sm:$0xff]   ;;  %p13049_p5 = pnand %p12294_p4, %p12288_p1 }
 0x6b9   :  { %4449 = vmatprep.subr.bf16.mxu1 %v12592_v45 }
 0x6bc   :  { %4450 = vmatpush1.bf16.msra.mxu1 %v11363_v27 }
 0x6bd   :  { %12298 = shalt.err (!%p13049_p5)  }
 0x6be   :  { %4490 = dma.hbm_to_vmem [thread:$0]  %s13450_s10, 512, %s12755_s7, [#allocation3 + $0x1], %s12597_s3, %s12587_s5, %s12598_s25  ;;  %4451 = vmatprep.subr.bf16.mxu1 %v12592_v45  ;;  %vm4441_vm8 = vcmask 1042432   ;;  %v4371_v37 = vpack.c.bf16 %v4341_v21, %v4341_v21  ;;  %v9879_v38 = vld [vmem:[#allocation7 + $0x10] ss:$0 sm:$0xff] }
 0x6bf   :  { %v4443_v35 = vsel %vm4441_vm8, %v11369_v20, 0 }
 0x6c0   :  { %4452 = vmatpush1.bf16.msra.mxu1 %v11364_v30 }
 0x6c1   :  { %4453 = vmatprep.subr.bf16.mxu1 %v12592_v45 }
 0x6c4   :  { %4454 = vmatpush1.bf16.msra.mxu1 %v11365_v32 }
 0x6c5   :  { %4455 = vmatprep.subr.bf16.mxu1 %v12592_v45 }
 0x6c8   :  { %4456 = vmatpush1.bf16.msra.mxu1 %v11366_v6 }
 0x6c9   :  { %4457 = vmatprep.subr.bf16.mxu1 %v12592_v45 }
 0x6cc   :  { %4458 = vmatpush1.bf16.msra.mxu1 %v11367_v7 }
 0x6cd   :  { %4459 = vmatprep.subr.bf16.mxu1 %v12592_v45 }
 0x6d0   :  { %4460 = vmatpush1.bf16.msra.mxu1 %v11368_v33 }
 0x6d1   :  { %4473 = vmatprep.subr.bf16.mxu1 %v12592_v45 }
 0x6d4   :  { %4474 = vmatpush2.bf16.msra.mxu1 %v4443_v35 }
 0x6d5   :  { %4475 = vmatprep.subr.bf16.mxu1 %v12592_v45 }
 0x6d8   :  { %4476 = vmatpush2.bf16.msra.mxu1 %v11370_v0 }
 0x6db   :  { %4478 = vmatmul.mubr.bf16.vlgmr.msra.gmra.mxu1 %v4371_v37 }
 0x79b   :  { %v4479_v40 = vpop.f32.mrf.mxu1 }
 0x79c   :  { %v4480_v41 = vadd.f32 %v9879_v38, %v4479_v40 }
 0x79d   :  { %v4481_v34 = vpop.f32.mrf.mxu1 }
 0x79e   :  { %v4485_v11 = vmax.f32 %v4480_v41, 0.0 }
 0x79f   :  { %v4482_v62 = vpop.f32.mrf.mxu1 }
 0x7a1   :  { %v4483_v1 = vpop.f32.mrf.mxu1 }
 0x7a2   :  { %12555 = dma.done.wait [#allocation3], 896 }
 0x7a3   :  { %12556 = vsyncadd [#allocation3], 4294966400  ;;  %v12599_v42 = vmov 0.0   ;;  %vm12600_vm9 = vmmov 0   ;;  %vm4559_vm10 = vcmask 1041408   ;;  %s12307_s10 = scalar_lea.vmem %s12732_s0, 384 }
 0x7a4   :  { %10548 = vmatprep.subr.bf16.mxu0 %v12599_v42  ;;  %10562 = vmatprep.mubr.msk.bf16.mxu0 %vm12600_vm9, %v12599_v42  ;;  %v11371_v43 = vld [vmem:[#allocation2 + $0x120] ss:$0 sps:$4 sm:$0x33]   ;;  %v11372_v31 = vld [vmem:[#allocation2 + $0xf0] ss:$24 sps:$4 sm:$0xff]   ;;  %p12308_p6 = scmp.ne.s32.totalorder %s12732_s0, %s12307_s10  ;;  %p12313_p7 = scmp.lt.s32.totalorder %s12737_s30, %s12307_s10 }
 0x7a5   :  { %v4561_v29 = vsel %vm4559_vm10, %v11371_v43, 0  ;;  %v11373_v39 = vld [vmem:[#allocation2 + $0xc0] ss:$24 sps:$4 sm:$0xff]   ;;  %v11374_v44 = vld [vmem:[#allocation2 + $0x90] ss:$24 sps:$4 sm:$0xff]  }
 0x7a6   :  { %10549 = vmatpush3.bf16.msra.mxu0 %v4561_v29  ;;  %v11375_v46 = vld [vmem:[#allocation2 + $0x60] ss:$24 sps:$4 sm:$0xff]   ;;  %v11376_v47 = vld [vmem:[#allocation2 + $0x30] ss:$24 sps:$4 sm:$0xff]   ;;  %p12314_p8 = por %p12313_p7, %p12741_p11 }
 0x7a7   :  { %10550 = vmatprep.subr.bf16.mxu0 %v12599_v42  ;;  %v11377_v48 = vld [vmem:[#allocation2] ss:$24 sps:$4 sm:$0xff]  }
 0x7a8   :  { %p13081_p9 = pnand %p12314_p8, %p12308_p6 }
 0x7aa   :  { %10551 = vmatpush3.bf16.msra.mxu0 %v11372_v31 }
 0x7ab   :  { %10552 = vmatprep.subr.bf16.mxu0 %v12599_v42 }
 0x7ac   :  { %12318 = shalt.err (!%p13081_p9)  }
 0x7ad   :  { %4608 = dma.hbm_to_vmem [thread:$0]  %s13451_s11, 384, %s12732_s0, [#allocation3], %s12597_s3, %s12587_s5, %s12598_s25  ;;  %v4508_v49 = vpack.c.bf16 %v4485_v11, %v4485_v11  ;;  %vm4555_vm11 = vcmask 818176   ;;  %v9891_v10 = vld [vmem:[#allocation7 + $0x11] ss:$0 sm:$0xff] }
 0x7ae   :  { %10553 = vmatpush3.bf16.msra.mxu0 %v11373_v39 }
 0x7af   :  { %10554 = vmatprep.subr.bf16.mxu0 %v12599_v42 }
 0x7b2   :  { %10555 = vmatpush3.bf16.msra.mxu0 %v11374_v44 }
 0x7b3   :  { %10556 = vmatprep.subr.bf16.mxu0 %v12599_v42 }
 0x7b6   :  { %10557 = vmatpush3.bf16.msra.mxu0 %v11375_v46 }
 0x7b7   :  { %10558 = vmatprep.subr.bf16.mxu0 %v12599_v42 }
 0x7ba   :  { %10559 = vmatpush3.bf16.msra.mxu0 %v11376_v47 }
 0x7bb   :  { %10560 = vmatprep.subr.bf16.mxu0 %v12599_v42 }
 0x7be   :  { %10561 = vmatpush3.bf16.msra.mxu0 %v11377_v48 }
 0x7c1   :  { %10563 = vmatmul.mubr.msk.bf16.vlgmr.msra.gmra.mxu0 %vm4555_vm11, %v4508_v49 }
 0x881   :  { %v4597_v15 = vpop.f32.mrf.mxu0 }
 0x882   :  { %v4598_v18 = vadd.f32 %v9891_v10, %v4597_v15 }
 0x883   :  { %v10564_v19 = vpop.f32.mrf.mxu0 }
 0x884   :  { %v4603_v59 = vmax.f32 %v4598_v18, 0.0 }
 0x885   :  { %v4600_v61 = vpop.f32.mrf.mxu0 }
 0x887   :  { %v10565_v36 = vpop.f32.mrf.mxu0 }
 0x888   :  { %12557 = dma.done.wait [#allocation3 + $0x1], 512 }
 0x889   :  { %12558 = vsyncadd [#allocation3 + $0x1], 4294966784  ;;  %10566 = vmatprep.subr.bf16.mxu1 %v12599_v42  ;;  %10574 = vmatprep.mubr.msk.bf16.mxu1 %vm12600_vm9, %v12599_v42  ;;  %v11378_v52 = vld [vmem:[#allocation2 + $0x900] ss:$24 sps:$4 sm:$0x3f]   ;;  %v4621_v16 = vpack.c.bf16 %v4603_v59, %v4603_v59  ;;  %vm4652_vm12 = vcmask 490496  }
 0x88a   :  { %v11379_v54 = vld [vmem:[#allocation2 + $0x8d0] ss:$24 sps:$4 sm:$0xff]   ;;  %v4657_v58 = vsel %vm2784_vm1, %v11378_v52, 0  ;;  %v11380_v60 = vld [vmem:[#allocation2 + $0x8a0] ss:$24 sps:$4 sm:$0xff]  }
 0x88b   :  { %v4721_v63 = vld [vmem:[%s13452_s12 + $0x8] sm:$0xf]  ;;  %10567 = vmatpush3.bf16.msra.mxu1 %v4657_v58  ;;  %v4723_v3 = vld [vmem:[%s13452_s12 + $0xc] sm:$0xf]  ;;  %v4717_v12 = vld [vmem:[%s13452_s12] sm:$0xf] }
 0x88c   :  { %4722 = vst [vmem:[#allocation2 + $0x8a0] sm:$0xf] %v4721_v63  ;;  %10568 = vmatprep.subr.bf16.mxu1 %v12599_v42  ;;  %4724 = vst [vmem:[#allocation2 + $0x8b8] sm:$0xf] %v4723_v3  ;;  %v11381_v8 = vld [vmem:[#allocation2 + $0x870] ss:$24 sps:$4 sm:$0xff]  }
 0x88d   :  { %v4719_v13 = vld [vmem:[%s13452_s12 + $0x4] sm:$0xf]  ;;  %4718 = vst [vmem:[#allocation2 + $0x870] sm:$0xf] %v4717_v12  ;;  %v9900_v17 = vld [vmem:[#allocation7 + $0x12] ss:$0 sm:$0xff] }
 0x88e   :  { %4720 = vst [vmem:[#allocation2 + $0x888] sm:$0xf] %v4719_v13 }
 0x88f   :  { %10569 = vmatpush3.bf16.msra.mxu1 %v11379_v54 }
 0x890   :  { %10570 = vmatprep.subr.bf16.mxu1 %v12599_v42 }
 0x893   :  { %10571 = vmatpush3.bf16.msra.mxu1 %v11380_v60 }
 0x894   :  { %10572 = vmatprep.subr.bf16.mxu1 %v12599_v42 }
 0x897   :  { %10573 = vmatpush3.bf16.msra.mxu1 %v11381_v8 }
 0x89a   :  { %10575 = vmatmul.mubr.msk.bf16.vlgmr.msra.gmra.mxu1 %vm4652_vm12, %v4621_v16 }
 0x95a   :  { %v4693_v4 = vpop.f32.mrf.mxu1 }
 0x95b   :  { %v4694_v56 = vadd.f32 %v9900_v17, %v4693_v4 }
 0x95c   :  { %v10576_v14 = vpop.f32.mrf.mxu1 }
 0x95e   :  { %v4696_v21 = vpop.f32.mrf.mxu1 }
 0x960   :  { %v10577_v22 = vpop.f32.mrf.mxu1 }
 0x961   :  { %4764 = vsyncadd [#allocation3 + $0x1], 256 }
 0x962   :  { %12559 = dma.done.wait [#allocation3], 384 }
 0x963   :  { %12560 = vsyncadd [#allocation3], 4294966912  ;;  %10578 = vmatprep.subr.bf16.mxu0 %v12599_v42  ;;  %10584 = vmatprep.mubr.msk.bf16.mxu0 %vm12600_vm9, %v12599_v42  ;;  %vm4804_vm13 = vcmask 1046528   ;;  %v12601_v5 = vmov 65535   ;;  %v11383_v26 = vld [vmem:[#allocation2 + $0x30] ss:$24 sps:$4 sm:$0xff]  }
 0x964   :  { %v4805_v2 = vsel %vm2784_vm1, 4294967295, %v12601_v5  ;;  %v11382_v24 = vld [vmem:[#allocation2 + $0x60] ss:$24 sps:$4 sm:$0x7f]  }
 0x965   :  { %v13123_v23 = vsel %vm4804_vm13, %v4805_v2, 0  ;;  %v11384_v27 = vld [vmem:[#allocation2] ss:$24 sps:$4 sm:$0xff]  }
 0x966   :  { %v4808_v25 = vand.u32 %v11382_v24, %v13123_v23 }
 0x967   :  { %12338 = shalt.err (!%p13081_p9)  }
 0x968   :  { %4864 = dma.hbm_to_vmem [thread:$0]  %s13453_s13, 384, %s12732_s0, [#allocation3], %s12597_s3, %s12587_s5, %s12598_s25  ;;  %10579 = vmatpush3.bf16.msra.mxu0 %v4808_v25  ;;  %v4775_v30 = vpack.c.bf16 %v4694_v56, %v4694_v56  ;;  %vm4800_vm14 = vcmask 367616   ;;  %v9906_v32 = vld [vmem:[#allocation7 + $0x13] ss:$0 sm:$0xff] }
 0x969   :  { %10580 = vmatprep.subr.bf16.mxu0 %v12599_v42  ;;  %s12602_s13 = smov 108   ;;  %s13491_s1 = sld [smem:[#allocation57_spill]] }
 0x96c   :  { %10581 = vmatpush3.bf16.msra.mxu0 %v11383_v26 }
 0x96d   :  { %10582 = vmatprep.subr.bf16.mxu0 %v12599_v42 }
 0x96f   :  { %v4850_v40 = vld [vmem:[%s13491_s1] sm:$0xff] }
 0x970   :  { %10583 = vmatpush3.bf16.msra.mxu0 %v11384_v27 }
 0x973   :  { %10585 = vmatmul.mubr.msk.bf16.vlgmr.msra.gmra.mxu0 %vm4800_vm14, %v4775_v30 }
 0xa33   :  { %v4844_v6 = vpop.f32.mrf.mxu0 }
 0xa34   :  { %v13138_v7 = vadd.f32 %v9906_v32, %v4844_v6 }
 0xa35   :  { %v10586_v33 = vpop.f32.mrf.mxu0 }
 0xa36   :  { %v4851_v20 = vmul.f32 0.5, %v13138_v7 }
 0xa37   :  { %v4847_v0 = vpop.f32.mrf.mxu0 }
 0xa38   :  { %v4852_v35 = vmul.f32 1.442695, %v4851_v20 }
 0xa39   :  { %v10587_v37 = vpop.f32.mrf.mxu0 }
 0xa3a   :  { %11385 = vpow2.f32 %v4852_v35 }
 0xa47   :  { %v11386_v38 = vpop.eup %11385 }
 0xa48   :  { %4855 = vrot.lane.b32.xlu0 %v11386_v38, %s12602_s13 }
 0xaba   :  { %v4856_v41 = vpop.permute.xlu0 %4855 }
 0xabb   :  { %v4858_v34 = vmul.f32 %v4856_v41, %v4850_v40 }
 0xabd   :  { %v4859_v11 = vadd.f32 %v4858_v34, %v13138_v7 }
 0xabe   :  { %12561 = dma.done.wait [#allocation3 + $0x1], 256 }
 0xabf   :  { %12562 = vsyncadd [#allocation3 + $0x1], 4294967040  ;;  %10588 = vmatprep.subr.bf16.mxu1 %v12599_v42  ;;  %10592 = vmatprep.mubr.msk.bf16.mxu1 %vm12600_vm9, %v12599_v42  ;;  %v11387_v62 = vld [vmem:[#allocation2 + $0x8a0] ss:$0 sps:$4 sm:$0x33]  }
 0xac0   :  { %v11388_v1 = vld [vmem:[#allocation2 + $0x870] ss:$24 sps:$4 sm:$0xff]   ;;  %v4894_v43 = vsel %vm4559_vm10, %v11387_v62, 0 }
 0xac1   :  { %12358 = shalt.err (!%p13049_p5)  }
 0xac2   :  { %4941 = dma.hbm_to_vmem [thread:$0]  %s13454_s14, 512, %s12755_s7, [#allocation3 + $0x1], %s12597_s3, %s12587_s5, %s12598_s25  ;;  %10589 = vmatpush3.bf16.msra.mxu1 %v4894_v43  ;;  %v4872_v29 = vpack.c.bf16 %v4859_v11, %v4859_v11  ;;  %vm4889_vm15 = vcmask 162816   ;;  %v9911_v31 = vld [vmem:[#allocation7 + $0x14] ss:$0 sm:$0xff] }
 0xac3   :  { %10590 = vmatprep.subr.bf16.mxu1 %v12599_v42 }
 0xac6   :  { %10591 = vmatpush3.bf16.msra.mxu1 %v11388_v1 }
 0xac9   :  { %10593 = vmatmul.mubr.msk.bf16.vlgmr.msra.gmra.mxu1 %vm4889_vm15, %v4872_v29 }
 0xb89   :  { %v4930_v39 = vpop.f32.mrf.mxu1 }
 0xb8a   :  { %v4931_v44 = vadd.f32 %v9911_v31, %v4930_v39 }
 0xb8b   :  { %v10594_v46 = vpop.f32.mrf.mxu1 }
 0xb8c   :  { %v4936_v47 = vmax.f32 %v4931_v44, 0.0 }
 0xb8d   :  { %v4933_v48 = vpop.f32.mrf.mxu1 }
 0xb8f   :  { %v10595_v49 = vpop.f32.mrf.mxu1 }
 0xb90   :  { %12563 = dma.done.wait [#allocation3], 384 }
 0xb91   :  { %12564 = vsyncadd [#allocation3], 4294966912  ;;  %10596 = vmatprep.subr.bf16.mxu0 %v12599_v42  ;;  %10602 = vmatprep.mubr.msk.bf16.mxu0 %vm12600_vm9, %v12599_v42  ;;  %v11389_v10 = vld [vmem:[#allocation2 + $0x60] ss:$24 sps:$4 sm:$0x7f]   ;;  %s12367_s14 = scalar_lea.vmem %s12732_s0, 1792 }
 0xb92   :  { %v4979_v15 = vand.u32 %v11389_v10, %v13123_v23  ;;  %v11390_v18 = vld [vmem:[#allocation2 + $0x30] ss:$24 sps:$4 sm:$0xff]   ;;  %v11391_v19 = vld [vmem:[#allocation2] ss:$24 sps:$4 sm:$0xff]   ;;  %p12368_p10 = scmp.ne.s32.totalorder %s12732_s0, %s12367_s14  ;;  %p12373_p12 = scmp.lt.s32.totalorder %s12737_s30, %s12367_s14 }
 0xb94   :  { %p12374_p13 = por %p12373_p12, %p12741_p11 }
 0xb96   :  { %p12375_p0 = pnand %p12374_p13, %p12368_p10 }
 0xb98   :  { %12378 = shalt.err (!%p12375_p0)  }
 0xb99   :  { %s13492_s3 = smov 128   ;;  %10597 = vmatpush3.bf16.msra.mxu0 %v4979_v15  ;;  %v4950_v59 = vpack.c.bf16 %v4936_v47, %v4936_v47  ;;  %v9915_v61 = vld [vmem:[#allocation7 + $0x15] ss:$0 sm:$0xff] }
 0xb9a   :  { %5026 = dma.hbm_to_vmem [thread:$0]  %s13455_s15, 1792, %s12732_s0, [#allocation3], %s13492_s3, %s12587_s5, %s12596_s2  ;;  %10598 = vmatprep.subr.bf16.mxu0 %v12599_v42 }
 0xb9d   :  { %10599 = vmatpush3.bf16.msra.mxu0 %v11390_v18 }
 0xb9e   :  { %10600 = vmatprep.subr.bf16.mxu0 %v12599_v42 }
 0xba1   :  { %10601 = vmatpush3.bf16.msra.mxu0 %v11391_v19 }
 0xba4   :  { %10603 = vmatmul.mubr.msk.bf16.vlgmr.msra.gmra.mxu0 %vm4800_vm14, %v4950_v59 }
 0xc64   :  { %v5015_v36 = vpop.f32.mrf.mxu0 }
 0xc65   :  { %v5016_v52 = vadd.f32 %v9915_v61, %v5015_v36 }
 0xc66   :  { %v10604_v54 = vpop.f32.mrf.mxu0 }
 0xc67   :  { %v5021_v58 = vmax.f32 %v5016_v52, 0.0 }
 0xc68   :  { %v5018_v60 = vpop.f32.mrf.mxu0 }
 0xc6a   :  { %v10605_v63 = vpop.f32.mrf.mxu0 }
 0xc6b   :  { %12565 = dma.done.wait [#allocation3 + $0x1], 512 }
 0xc6c   :  { %12566 = vsyncadd [#allocation3 + $0x1], 4294966784  ;;  %10606 = vmatprep.subr.bf16.mxu1 %v12599_v42  ;;  %10614 = vmatprep.mubr.msk.bf16.mxu1 %vm12600_vm9, %v12599_v42  ;;  %v11392_v3 = vld [vmem:[#allocation2 + $0x900] ss:$24 sps:$4 sm:$0x3f]   ;;  %s12387_s15 = scalar_lea.vmem %s12755_s7, 2560 }
 0xc6d   :  { %v5072_v8 = vsel %vm2784_vm1, %v11392_v3, 0  ;;  %v11393_v12 = vld [vmem:[#allocation2 + $0x8d0] ss:$24 sps:$4 sm:$0xff]   ;;  %v11394_v13 = vld [vmem:[#allocation2 + $0x8a0] ss:$24 sps:$4 sm:$0xff]   ;;  %p12388_p1 = scmp.ne.s32.totalorder %s12755_s7, %s12387_s15  ;;  %p12393_p3 = scmp.lt.s32.totalorder %s12737_s30, %s12387_s15 }
 0xc6e   :  { %10607 = vmatpush3.bf16.msra.mxu1 %v5072_v8  ;;  %v11395_v16 = vld [vmem:[#allocation2 + $0x870] ss:$24 sps:$4 sm:$0xff]  }
 0xc6f   :  { %10608 = vmatprep.subr.bf16.mxu1 %v12599_v42  ;;  %p12394_p4 = por %p12393_p3, %p12765_p2 }
 0xc71   :  { %p12395_p5 = pnand %p12394_p4, %p12388_p1 }
 0xc73   :  { %12398 = shalt.err (!%p12395_p5)  }
 0xc74   :  { %5119 = dma.hbm_to_vmem [thread:$0]  %s13456_s16, 2560, %s12755_s7, [#allocation3 + $0x1], %s13492_s3, %s12587_s5, %s12596_s2  ;;  %10609 = vmatpush3.bf16.msra.mxu1 %v11393_v12  ;;  %v5037_v17 = vpack.c.bf16 %v5021_v58, %v5021_v58  ;;  %v9920_v4 = vld [vmem:[#allocation7 + $0x16] ss:$0 sm:$0xff] }
 0xc75   :  { %10610 = vmatprep.subr.bf16.mxu1 %v12599_v42 }
 0xc78   :  { %10611 = vmatpush3.bf16.msra.mxu1 %v11394_v13 }
 0xc79   :  { %10612 = vmatprep.subr.bf16.mxu1 %v12599_v42 }
 0xc7c   :  { %10613 = vmatpush3.bf16.msra.mxu1 %v11395_v16 }
 0xc7f   :  { %10615 = vmatmul.mubr.msk.bf16.vlgmr.msra.gmra.mxu1 %vm4652_vm12, %v5037_v17 }
 0xd3f   :  { %v5108_v56 = vpop.f32.mrf.mxu1 }
 0xd40   :  { %v5109_v14 = vadd.f32 %v9920_v4, %v5108_v56 }
 0xd41   :  { %v10616_v21 = vpop.f32.mrf.mxu1 }
 0xd42   :  { %v5114_v22 = vmax.f32 %v5109_v14, 0.0 }
 0xd43   :  { %v5111_v5 = vpop.f32.mrf.mxu1 }
 0xd45   :  { %v10617_v2 = vpop.f32.mrf.mxu1 }
 0xd46   :  { %12567 = dma.done.wait [#allocation3], 1792 }
 0xd47   :  { %12568 = vsyncadd [#allocation3], 4294965504  ;;  %5255 = vmatprep.mubr.bf16.mxu0 %v12592_v45  ;;  %v5135_v23 = vld [vmem:[#allocation2 + $0x120] sm:$0x33]  ;;  %v11398_v25 = vld [vmem:[#allocation2 + $0xf4] ss:$24 sps:$4 sm:$0xff]  }
 0xd48   :  { %v9939_v24 = vcombine.high %v5135_v23, %v5135_v23  ;;  %v9938_v42 = vcombine.low %v5135_v23, %v5135_v23  ;;  %v11400_v27 = vld [vmem:[#allocation2 + $0xf0] ss:$24 sps:$4 sm:$0xff]   ;;  %v11401_v30 = vld [vmem:[#allocation2 + $0xc4] ss:$24 sps:$4 sm:$0xff]   ;;  %v11404_v32 = vld [vmem:[#allocation2 + $0x94] ss:$24 sps:$4 sm:$0xff]  }
 0xd49   :  { %v11407_v6 = vld [vmem:[#allocation2 + $0x64] ss:$24 sps:$4 sm:$0xff]   ;;  %v11410_v33 = vld [vmem:[#allocation2 + $0x34] ss:$24 sps:$4 sm:$0xff]   ;;  %v11403_v0 = vld [vmem:[#allocation2 + $0xc0] ss:$24 sps:$4 sm:$0xff]  }
 0xd4a   :  { %9940 = vmatprep.subr.msk.bf16.mxu0 %vm4559_vm10, %v9939_v24  ;;  %v5218_v26 = vsel %vm4559_vm10, %v9938_v42, 0  ;;  %v11413_v20 = vld [vmem:[#allocation2 + $0x4] ss:$24 sps:$4 sm:$0xff]   ;;  %s12407_s16 = scalar_lea.vmem %s12732_s0, 5760 }
 0xd4b   :  { %5226 = vmatpush1.bf16.msra.mxu0 %v5218_v26  ;;  %p12408_p6 = scmp.ne.s32.totalorder %s12732_s0, %s12407_s16  ;;  %p12413_p7 = scmp.lt.s32.totalorder %s12737_s30, %s12407_s16 }
 0xd4c   :  { %5227 = vmatprep.subr.bf16.mxu0 %v11398_v25 }
 0xd4d   :  { %p12414_p8 = por %p12413_p7, %p12741_p11 }
 0xd4f   :  { %5228 = vmatpush1.bf16.msra.mxu0 %v11400_v27  ;;  %p12415_p9 = pnand %p12414_p8, %p12408_p6 }
 0xd51   :  { %12418 = shalt.err (!%p12415_p9)  }
 0xd52   :  { %s13493_s2 = smov 12   ;;  %s13494_s8 = smov 192   ;;  %5229 = vmatprep.subr.bf16.mxu0 %v11401_v30  ;;  %v5136_v41 = vpack.c.bf16 %v5114_v22, %v5114_v22  ;;  %v5137_v34 = vld [vmem:[#allocation7 + $0x17] sm:$0x3] }
 0xd53   :  { %5270 = dma.hbm_to_vmem [thread:$0]  %s13457_s17, 5760, %s12732_s0, [#allocation3], %s13494_s8, %s12587_s5, %s13493_s2  ;;  %5230 = vmatpush1.bf16.msra.mxu0 %v11403_v0  ;;  %v5142_v11 = vrot.slane %v5137_v34, %v12836_v55  ;;  %v5146_v62 = vrot.slane %v5137_v34, %v12842_v57 }
 0xd54   :  { %v11406_v35 = vld [vmem:[#allocation2 + $0x90] ss:$24 sps:$4 sm:$0xff]   ;;  %5231 = vmatprep.subr.bf16.mxu0 %v11404_v32  ;;  %v11409_v37 = vld [vmem:[#allocation2 + $0x60] ss:$24 sps:$4 sm:$0xff]  }
 0xd55   :  { %v11412_v38 = vld [vmem:[#allocation2 + $0x30] ss:$24 sps:$4 sm:$0xff]   ;;  %v11415_v40 = vld [vmem:[#allocation2] ss:$24 sps:$4 sm:$0xff]  }
 0xd57   :  { %5232 = vmatpush1.bf16.msra.mxu0 %v11406_v35 }
 0xd58   :  { %5233 = vmatprep.subr.bf16.mxu0 %v11407_v6 }
 0xd5b   :  { %5234 = vmatpush1.bf16.msra.mxu0 %v11409_v37 }
 0xd5c   :  { %5235 = vmatprep.subr.bf16.mxu0 %v11410_v33 }
 0xd5f   :  { %5236 = vmatpush1.bf16.msra.mxu0 %v11412_v38 }
 0xd60   :  { %5237 = vmatprep.subr.bf16.mxu0 %v11413_v20 }
 0xd63   :  { %5238 = vmatpush1.bf16.msra.mxu0 %v11415_v40 }
 0xd66   :  { %9941 = vmatmul.mubr.msk.bf16.vlgmr.msra.gmra.mxu0 %vm4555_vm11, %v5136_v41 }
 0xe26   :  { %v5257_v1 = vpop.f32.mrf.mxu0 }
 0xe27   :  { %v5258_v43 = vadd.f32 %v5257_v1, %v5142_v11 }
 0xe28   :  { %v5259_v29 = vpop.f32.mrf.mxu0 }
 0xe29   :  { %v5264_v31 = vmax.f32 %v5258_v43, 0.0  ;;  %v5260_v39 = vadd.f32 %v5259_v29, %v5146_v62 }
 0xe2a   :  { %v5261_v44 = vpop.f32.mrf.mxu0 }
 0xe2b   :  { %v5265_v46 = vmax.f32 %v5260_v39, 0.0 }
 0xe2c   :  { %v5262_v47 = vpop.f32.mrf.mxu0 }
 0xe2d   :  { %12569 = dma.done.wait [#allocation3 + $0x1], 2560 }
 0xe2e   :  { %12570 = vsyncadd [#allocation3 + $0x1], 4294964736  ;;  %v5294_v48 = vpack.c.bf16 %v5265_v46, %v5265_v46  ;;  %v11416_v49 = vld [vmem:[#allocation2 + $0x9c4] ss:$24 sps:$4 sm:$0xff]   ;;  %v11418_v10 = vld [vmem:[#allocation2 + $0x9c0] ss:$24 sps:$4 sm:$0xff]  }
 0xe2f   :  { %5411 = vmatprep.subr.bf16.mxu1 %v11416_v49  ;;  %v11419_v15 = vld [vmem:[#allocation2 + $0x994] ss:$24 sps:$4 sm:$0xff]   ;;  %v11421_v18 = vld [vmem:[#allocation2 + $0x990] ss:$24 sps:$4 sm:$0xff]   ;;  %v11422_v19 = vld [vmem:[#allocation2 + $0x964] ss:$24 sps:$4 sm:$0xff]  }
 0xe30   :  { %9963 = vmatprep.mubr.msk.bf16.mxu1 %vm4437_vm7, %v5294_v48  ;;  %5412 = vmatpush1.bf16.msra.mxu1 %v11418_v10  ;;  %v11424_v59 = vld [vmem:[#allocation2 + $0x960] ss:$24 sps:$4 sm:$0xff]   ;;  %v11425_v61 = vld [vmem:[#allocation2 + $0x934] ss:$24 sps:$4 sm:$0xff]   ;;  %v11427_v36 = vld [vmem:[#allocation2 + $0x930] ss:$24 sps:$4 sm:$0xff]  }
 0xe31   :  { %5413 = vmatprep.subr.bf16.mxu1 %v11419_v15  ;;  %v11428_v52 = vld [vmem:[#allocation2 + $0x904] ss:$24 sps:$4 sm:$0xff]   ;;  %v11431_v54 = vld [vmem:[#allocation2 + $0x8d4] ss:$24 sps:$4 sm:$0xff]   ;;  %s12427_s17 = scalar_lea.vmem %s12755_s7, 9728 }
 0xe32   :  { %v11434_v58 = vld [vmem:[#allocation2 + $0x8a4] ss:$24 sps:$4 sm:$0xff]   ;;  %v11437_v60 = vld [vmem:[#allocation2 + $0x874] ss:$24 sps:$4 sm:$0xff]   ;;  %p12428_p10 = scmp.ne.s32.totalorder %s12755_s7, %s12427_s17  ;;  %p12433_p12 = scmp.lt.s32.totalorder %s12737_s30, %s12427_s17 }
 0xe33   :  { %v5292_v63 = vld [vmem:[#allocation2 + $0xa20] sm:$0x77]  ;;  %v11442_v3 = vld [vmem:[#allocation2 + $0x9f4] ss:$24 sps:$4 sm:$0xff]  }
 0xe34   :  { %5414 = vmatpush1.bf16.msra.mxu1 %v11421_v18  ;;  %p12434_p13 = por %p12433_p12, %p12765_p2 }
 0xe35   :  { %5415 = vmatprep.subr.bf16.mxu1 %v11422_v19 }
 0xe36   :  { %p12435_p0 = pnand %p12434_p13, %p12428_p10 }
 0xe38   :  { %5416 = vmatpush1.bf16.msra.mxu1 %v11424_v59 }
 0xe39   :  { %5417 = vmatprep.subr.bf16.mxu1 %v11425_v61 }
 0xe3a   :  { %12438 = shalt.err (!%p12435_p0)  }
 0xe3b   :  { %s13495_s26 = smov 16   ;;  %s13496_s27 = smov 256   ;;  %v9961_v17 = vcombine.high %v5292_v63, %v5292_v63  ;;  %v9960_v4 = vcombine.low %v5292_v63, %v5292_v63  ;;  %v5293_v21 = vpack.c.bf16 %v5264_v31, %v5264_v31  ;;  %v5295_v22 = vld [vmem:[#allocation7 + $0x19] sm:$0x3] }
 0xe3c   :  { %5458 = dma.hbm_to_vmem [thread:$0]  %s13458_s18, 9728, %s12755_s7, [#allocation3 + $0x1], %s13496_s27, %s12587_s5, %s13495_s26  ;;  %5418 = vmatpush1.bf16.msra.mxu1 %v11427_v36  ;;  %v5300_v5 = vrot.slane %v5295_v22, %v12836_v55  ;;  %v5304_v2 = vrot.slane %v5295_v22, %v12842_v57 }
 0xe3d   :  { %v11430_v8 = vld [vmem:[#allocation2 + $0x900] ss:$24 sps:$4 sm:$0xff]   ;;  %5419 = vmatprep.subr.bf16.mxu1 %v11428_v52  ;;  %v11433_v12 = vld [vmem:[#allocation2 + $0x8d0] ss:$24 sps:$4 sm:$0xff]   ;;  %v5406_v56 = vsel %vm4441_vm8, %v9960_v4, 0 }
 0xe3e   :  { %v11436_v13 = vld [vmem:[#allocation2 + $0x8a0] ss:$24 sps:$4 sm:$0xff]   ;;  %v11439_v16 = vld [vmem:[#allocation2 + $0x870] ss:$24 sps:$4 sm:$0xff]  }
 0xe3f   :  { %v11444_v14 = vld [vmem:[#allocation2 + $0x9f0] ss:$24 sps:$4 sm:$0xff]  }
 0xe40   :  { %5420 = vmatpush1.bf16.msra.mxu1 %v11430_v8 }
 0xe41   :  { %5421 = vmatprep.subr.bf16.mxu1 %v11431_v54 }
 0xe44   :  { %5422 = vmatpush1.bf16.msra.mxu1 %v11433_v12 }
 0xe45   :  { %5423 = vmatprep.subr.bf16.mxu1 %v11434_v58 }
 0xe48   :  { %5424 = vmatpush1.bf16.msra.mxu1 %v11436_v13 }
 0xe49   :  { %5425 = vmatprep.subr.bf16.mxu1 %v11437_v60 }
 0xe4c   :  { %5426 = vmatpush1.bf16.msra.mxu1 %v11439_v16 }
 0xe4d   :  { %9962 = vmatprep.subr.msk.bf16.mxu1 %vm4441_vm8, %v9961_v17 }
 0xe50   :  { %5440 = vmatpush2.bf16.msra.mxu1 %v5406_v56 }
 0xe51   :  { %5441 = vmatprep.subr.bf16.mxu1 %v11442_v3 }
 0xe54   :  { %5442 = vmatpush2.bf16.msra.mxu1 %v11444_v14 }
 0xe57   :  { %5444 = vmatmul.mubr.bf16.vlgmr.msra.gmra.mxu1 %v5293_v21 }
 0xf17   :  { %v5445_v23 = vpop.f32.mrf.mxu1 }
 0xf18   :  { %v13235_v24 = vadd.f32 %v5445_v23, %v5300_v5 }
 0xf19   :  { %v5447_v42 = vpop.f32.mrf.mxu1 }
 0xf1a   :  { %v5452_v25 = vmax.f32 %v13235_v24, 0.0  ;;  %v5448_v26 = vadd.f32 %v5447_v42, %v5304_v2 }
 0xf1b   :  { %v5449_v27 = vpop.f32.mrf.mxu1 }
 0xf1c   :  { %v5453_v30 = vmax.f32 %v5448_v26, 0.0 }
 0xf1d   :  { %v5450_v32 = vpop.f32.mrf.mxu1 }
 0xf1e   :  { %12571 = dma.done.wait [#allocation3], 5760 }
 0xf1f   :  { %12572 = vsyncadd [#allocation3], 4294961536  ;;  %5824 = vmatprep.subr.bf16.mxu1 %v12592_v45  ;;  %v5521_v6 = vpack.c.bf16 %v5453_v30, %v5453_v30  ;;  %v11445_v33 = vld [vmem:[#allocation2 + $0x154] ss:$24 sps:$4 sm:$0xff]   ;;  %v11447_v20 = vld [vmem:[#allocation2 + $0x158] ss:$24 sps:$4 sm:$0xff]  }
 0xf20   :  { %5783 = vmatprep.subr.bf16.mxu0 %v11445_v33  ;;  %v11448_v0 = vld [vmem:[#allocation2 + $0x150] ss:$24 sps:$4 sm:$0xff]   ;;  %5825 = vmatpush1.bf16.msra.mxu1 %v11447_v20  ;;  %v11449_v35 = vld [vmem:[#allocation2 + $0x124] ss:$24 sps:$4 sm:$0xff]   ;;  %v11452_v38 = vld [vmem:[#allocation2 + $0x120] ss:$24 sps:$4 sm:$0xff]  }
 0xf21   :  { %10010 = vmatprep.mubr.msk.bf16.mxu1 %vm4287_vm5, %v5521_v6  ;;  %10009 = vmatprep.mubr.msk.bf16.mxu0 %vm4287_vm5, %v5521_v6  ;;  %v11451_v37 = vld [vmem:[#allocation2 + $0x128] ss:$24 sps:$4 sm:$0xff]   ;;  %v11453_v40 = vld [vmem:[#allocation2 + $0xf4] ss:$24 sps:$4 sm:$0xff]   ;;  %v11455_v41 = vld [vmem:[#allocation2 + $0xf8] ss:$24 sps:$4 sm:$0xff]  }
 0xf22   :  { %5784 = vmatpush1.bf16.msra.mxu0 %v11448_v0  ;;  %5826 = vmatprep.subr.bf16.mxu1 %v12592_v45  ;;  %v11456_v34 = vld [vmem:[#allocation2 + $0xf0] ss:$24 sps:$4 sm:$0xff]   ;;  %v11457_v11 = vld [vmem:[#allocation2 + $0xc4] ss:$24 sps:$4 sm:$0xff]   ;;  %v11460_v1 = vld [vmem:[#allocation2 + $0xc0] ss:$24 sps:$4 sm:$0xff]  }
 0xf23   :  { %5785 = vmatprep.subr.bf16.mxu0 %v11449_v35  ;;  %v11459_v62 = vld [vmem:[#allocation2 + $0xc8] ss:$24 sps:$4 sm:$0xff]   ;;  %v11461_v43 = vld [vmem:[#allocation2 + $0x94] ss:$24 sps:$4 sm:$0xff]   ;;  %v11463_v29 = vld [vmem:[#allocation2 + $0x98] ss:$24 sps:$4 sm:$0xff]  }
 0xf24   :  { %5827 = vmatpush1.bf16.msra.mxu1 %v11451_v37  ;;  %v11464_v31 = vld [vmem:[#allocation2 + $0x90] ss:$24 sps:$4 sm:$0xff]   ;;  %v11465_v39 = vld [vmem:[#allocation2 + $0x64] ss:$24 sps:$4 sm:$0xff]   ;;  %v11468_v46 = vld [vmem:[#allocation2 + $0x60] ss:$24 sps:$4 sm:$0xff]  }
 0xf25   :  { %5828 = vmatprep.subr.bf16.mxu1 %v12592_v45  ;;  %v11467_v44 = vld [vmem:[#allocation2 + $0x68] ss:$24 sps:$4 sm:$0xff]   ;;  %v11469_v47 = vld [vmem:[#allocation2 + $0x34] ss:$24 sps:$4 sm:$0xff]   ;;  %v11471_v49 = vld [vmem:[#allocation2 + $0x38] ss:$24 sps:$4 sm:$0xff]  }
 0xf26   :  { %5786 = vmatpush1.bf16.msra.mxu0 %v11452_v38  ;;  %v5518_v48 = vld [vmem:[#allocation2 + $0x2a0] sm:$0x11]  ;;  %v11472_v10 = vld [vmem:[#allocation2 + $0x30] ss:$24 sps:$4 sm:$0xff]   ;;  %v11480_v58 = vld [vmem:[#allocation2 + $0x274] ss:$24 sps:$4 sm:$0xff]  }
 0xf27   :  { %5787 = vmatprep.subr.bf16.mxu0 %v11453_v40  ;;  %v11473_v15 = vld [vmem:[#allocation2 + $0x4] ss:$24 sps:$4 sm:$0xff]   ;;  %v10007_v18 = vcombine.high %v5518_v48, %v5518_v48  ;;  %v11475_v19 = vld [vmem:[#allocation2 + $0x8] ss:$24 sps:$4 sm:$0xff]   ;;  %v10006_v36 = vcombine.low %v5518_v48, %v5518_v48  ;;  %v11482_v60 = vld [vmem:[#allocation2 + $0x278] ss:$24 sps:$4 sm:$0xff]  }
 0xf28   :  { %5829 = vmatpush1.bf16.msra.mxu1 %v11455_v41  ;;  %v11478_v59 = vld [vmem:[#allocation2 + $0x2a8] ss:$0 sps:$4 sm:$0x11]   ;;  %v11476_v61 = vld [vmem:[#allocation2] ss:$24 sps:$4 sm:$0xff]   ;;  %s12447_s18 = scalar_lea.vmem %s12732_s0, 16000 }
 0xf29   :  { %5830 = vmatprep.subr.bf16.mxu1 %v12592_v45  ;;  %v5778_v52 = vand.u32 %v10007_v18, %v13031_v50  ;;  %v5781_v54 = vand.u32 %v11478_v59, %v13031_v50  ;;  %v11484_v63 = vld [vmem:[#allocation2 + $0x244] ss:$24 sps:$4 sm:$0xff]   ;;  %v11486_v3 = vld [vmem:[#allocation2 + $0x248] ss:$24 sps:$4 sm:$0xff]   ;;  %v11488_v8 = vld [vmem:[#allocation2 + $0x214] ss:$24 sps:$4 sm:$0xff]   ;;  %v5775_v17 = vand.u32 %v10006_v36, %v13031_v50  ;;  %p12448_p1 = scmp.ne.s32.totalorder %s12732_s0, %s12447_s18  ;;  %p12453_p3 = scmp.lt.s32.totalorder %s12737_s30, %s12447_s18 }
 0xf2a   :  { %5788 = vmatpush1.bf16.msra.mxu0 %v11456_v34  ;;  %v11490_v12 = vld [vmem:[#allocation2 + $0x218] ss:$24 sps:$4 sm:$0xff]   ;;  %v11492_v13 = vld [vmem:[#allocation2 + $0x1e4] ss:$24 sps:$4 sm:$0xff]   ;;  %v11494_v16 = vld [vmem:[#allocation2 + $0x1e8] ss:$24 sps:$4 sm:$0xff]  }
 0xf2b   :  { %5789 = vmatprep.subr.bf16.mxu0 %v11457_v11  ;;  %v11496_v4 = vld [vmem:[#allocation2 + $0x1b4] ss:$24 sps:$4 sm:$0xff]   ;;  %v11498_v56 = vld [vmem:[#allocation2 + $0x1b8] ss:$24 sps:$4 sm:$0xff]   ;;  %v11500_v14 = vld [vmem:[#allocation2 + $0x184] ss:$24 sps:$4 sm:$0xff]   ;;  %p12454_p4 = por %p12453_p3, %p12741_p11 }
 0xf2c   :  { %5831 = vmatpush1.bf16.msra.mxu1 %v11459_v62  ;;  %v11502_v21 = vld [vmem:[#allocation2 + $0x188] ss:$24 sps:$4 sm:$0xff]  }
 0xf2d   :  { %5832 = vmatprep.subr.bf16.mxu1 %v12592_v45  ;;  %p12455_p5 = pnand %p12454_p4, %p12448_p1 }
 0xf2e   :  { %5790 = vmatpush1.bf16.msra.mxu0 %v11460_v1 }
 0xf2f   :  { %5791 = vmatprep.subr.bf16.mxu0 %v11461_v43 }
 0xf30   :  { %5833 = vmatpush1.bf16.msra.mxu1 %v11463_v29 }
 0xf31   :  { %5834 = vmatprep.subr.bf16.mxu1 %v12592_v45 }
 0xf32   :  { %5792 = vmatpush1.bf16.msra.mxu0 %v11464_v31 }
 0xf33   :  { %5793 = vmatprep.subr.bf16.mxu0 %v11465_v39 }
 0xf34   :  { %5835 = vmatpush1.bf16.msra.mxu1 %v11467_v44 }
 0xf35   :  { %5836 = vmatprep.subr.bf16.mxu1 %v12592_v45 }
 0xf36   :  { %5794 = vmatpush1.bf16.msra.mxu0 %v11468_v46 }
 0xf37   :  { %5795 = vmatprep.subr.bf16.mxu0 %v11469_v47 }
 0xf38   :  { %5837 = vmatpush1.bf16.msra.mxu1 %v11471_v49 }
 0xf39   :  { %5838 = vmatprep.subr.bf16.mxu1 %v12592_v45 }
 0xf3a   :  { %5796 = vmatpush1.bf16.msra.mxu0 %v11472_v10 }
 0xf3b   :  { %5797 = vmatprep.subr.bf16.mxu0 %v11473_v15 }
 0xf3c   :  { %5839 = vmatpush1.bf16.msra.mxu1 %v11475_v19 }
 0xf3d   :  { %5842 = vmatprep.subr.bf16.mxu1 %v12592_v45 }
 0xf3e   :  { %5798 = vmatpush1.bf16.msra.mxu0 %v11476_v61 }
 0xf3f   :  { %5801 = vmatprep.subr.bf16.mxu0 %v5778_v52 }
 0xf40   :  { %12458 = shalt.err (!%p12455_p5)  }
 0xf41   :  { %s13497_s4 = smov 20   ;;  %s13498_s14 = smov 320   ;;  %5843 = vmatpush2.bf16.msra.mxu1 %v5781_v54  ;;  %v5520_v26 = vpack.c.bf16 %v5452_v25, %v5452_v25  ;;  %v5522_v27 = vld [vmem:[#allocation7 + $0x1b] sm:$0x7] }
 0xf42   :  { %5871 = dma.hbm_to_vmem [thread:$0]  %s13459_s19, 16000, %s12732_s0, [#allocation3], %s13498_s14, %s12587_s5, %s13497_s4  ;;  %5802 = vmatpush2.bf16.msra.mxu0 %v5775_v17  ;;  %5844 = vmatprep.subr.bf16.mxu1 %v12592_v45  ;;  %v5535_v30 = vrot.slane %v5522_v27, %v12867_v9  ;;  %v5527_v32 = vrot.slane %v5522_v27, %v12836_v55  ;;  %v5531_v33 = vrot.slane %v5522_v27, %v12842_v57 }
 0xf43   :  { %v11483_v50 = vld [vmem:[#allocation2 + $0x270] ss:$24 sps:$4 sm:$0xff]   ;;  %5803 = vmatprep.subr.bf16.mxu0 %v11480_v58  ;;  %v11487_v22 = vld [vmem:[#allocation2 + $0x240] ss:$24 sps:$4 sm:$0xff]  }
 0xf44   :  { %v11491_v5 = vld [vmem:[#allocation2 + $0x210] ss:$24 sps:$4 sm:$0xff]   ;;  %v11495_v2 = vld [vmem:[#allocation2 + $0x1e0] ss:$24 sps:$4 sm:$0xff]  }
 0xf45   :  { %5845 = vmatpush2.bf16.msra.mxu1 %v11482_v60  ;;  %v11499_v23 = vld [vmem:[#allocation2 + $0x1b0] ss:$24 sps:$4 sm:$0xff]   ;;  %v11503_v42 = vld [vmem:[#allocation2 + $0x180] ss:$24 sps:$4 sm:$0xff]  }
 0xf46   :  { %5804 = vmatpush2.bf16.msra.mxu0 %v11483_v50  ;;  %5846 = vmatprep.subr.bf16.mxu1 %v12592_v45 }
 0xf47   :  { %5805 = vmatprep.subr.bf16.mxu0 %v11484_v63 }
 0xf49   :  { %5847 = vmatpush2.bf16.msra.mxu1 %v11486_v3 }
 0xf4a   :  { %5806 = vmatpush2.bf16.msra.mxu0 %v11487_v22  ;;  %5848 = vmatprep.subr.bf16.mxu1 %v12592_v45 }
 0xf4b   :  { %5807 = vmatprep.subr.bf16.mxu0 %v11488_v8 }
 0xf4d   :  { %5849 = vmatpush2.bf16.msra.mxu1 %v11490_v12 }
 0xf4e   :  { %5808 = vmatpush2.bf16.msra.mxu0 %v11491_v5  ;;  %5850 = vmatprep.subr.bf16.mxu1 %v12592_v45 }
 0xf4f   :  { %5809 = vmatprep.subr.bf16.mxu0 %v11492_v13 }
 0xf51   :  { %5851 = vmatpush2.bf16.msra.mxu1 %v11494_v16 }
 0xf52   :  { %5810 = vmatpush2.bf16.msra.mxu0 %v11495_v2  ;;  %5852 = vmatprep.subr.bf16.mxu1 %v12592_v45 }
 0xf53   :  { %5811 = vmatprep.subr.bf16.mxu0 %v11496_v4 }
 0xf55   :  { %5853 = vmatpush2.bf16.msra.mxu1 %v11498_v56 }
 0xf56   :  { %5812 = vmatpush2.bf16.msra.mxu0 %v11499_v23  ;;  %5854 = vmatprep.subr.bf16.mxu1 %v12592_v45 }
 0xf57   :  { %5813 = vmatprep.subr.bf16.mxu0 %v11500_v14 }
 0xf59   :  { %5855 = vmatpush2.bf16.msra.mxu1 %v11502_v21 }
 0xf5a   :  { %5814 = vmatpush2.bf16.msra.mxu0 %v11503_v42 }
 0xf5c   :  { %5857 = vmatmul.mubr.bf16.vlgmr.msra.gmra.mxu1 %v5520_v26 }
 0xf5d   :  { %5816 = vmatmul.mubr.bf16.vlgmr.msra.gmra.mxu0 %v5520_v26 }
0x101c   :  { %v5858_v6 = vpop.f32.mrf.mxu1 }
0x101d   :  { %v5859_v20 = vadd.f32 %v5858_v6, %v5535_v30  ;;  %v5817_v0 = vpop.f32.mrf.mxu0 }
0x101e   :  { %v13276_v35 = vadd.f32 %v5817_v0, %v5527_v32  ;;  %v5860_v37 = vpop.f32.mrf.mxu1 }
0x101f   :  { %v5866_v24 = vmax.f32 %v5859_v20, 0.0  ;;  %v5819_v38 = vpop.f32.mrf.mxu0 }
0x1020   :  { %v5864_v25 = vmax.f32 %v13276_v35, 0.0  ;;  %v5820_v40 = vadd.f32 %v5819_v38, %v5531_v33  ;;  %v5861_v41 = vpop.f32.mrf.mxu1 }
0x1021   :  { %v5821_v34 = vpop.f32.mrf.mxu0 }
0x1022   :  { %v5865_v11 = vmax.f32 %v5820_v40, 0.0  ;;  %v5862_v62 = vpop.f32.mrf.mxu1 }
0x1023   :  { %v5822_v1 = vpop.f32.mrf.mxu0 }
0x1024   :  { %12573 = dma.done.wait [#allocation3 + $0x1], 9728 }
0x1025   :  { %12574 = vsyncadd [#allocation3 + $0x1], 4294957568  ;;  %6440 = vmatprep.mubr.bf16.mxu1 %v12592_v45  ;;  %v5952_v43 = vpack.c.bf16 %v5865_v11, %v5865_v11  ;;  %v11504_v29 = vld [vmem:[#allocation2 + $0x9c4] ss:$24 sps:$4 sm:$0xff]   ;;  %v11508_v39 = vld [vmem:[#allocation2 + $0x9c0] ss:$24 sps:$4 sm:$0xff]   ;;  %v13282_v52 = vpack.c.bf16 %v5866_v24, %v5866_v24 }
0x1026   :  { %v11506_v31 = vld [vmem:[#allocation2 + $0xbd4] ss:$24 sps:$4 sm:$0x3f]   ;;  %6367 = vmatprep.subr.bf16.mxu0 %v11504_v29  ;;  %v11509_v44 = vld [vmem:[#allocation2 + $0xbd0] ss:$24 sps:$4 sm:$0x3f]  }
0x1027   :  { %6399 = vmatprep.mubr.bf16.mxu0 %v5952_v43  ;;  %10087 = vmatprep.subr.msk.bf16.mxu1 %vm2784_vm1, %v11506_v31  ;;  %v11510_v46 = vld [vmem:[#allocation2 + $0x994] ss:$24 sps:$4 sm:$0xff]   ;;  %v6356_v47 = vsel %vm2784_vm1, %v11509_v44, 0  ;;  %v11512_v48 = vld [vmem:[#allocation2 + $0xba4] ss:$24 sps:$4 sm:$0xff]   ;;  %s12467_s19 = scalar_lea.vmem %s12755_s7, 26112 }
0x1028   :  { %6368 = vmatpush1.bf16.msra.mxu0 %v11508_v39  ;;  %v11514_v49 = vld [vmem:[#allocation2 + $0x990] ss:$24 sps:$4 sm:$0xff]   ;;  %6419 = vmatpush1.bf16.msra.mxu1 %v6356_v47  ;;  %v11515_v10 = vld [vmem:[#allocation2 + $0xba0] ss:$24 sps:$4 sm:$0xff]   ;;  %v11516_v15 = vld [vmem:[#allocation2 + $0x964] ss:$24 sps:$4 sm:$0xff]   ;;  %p12468_p11 = scmp.ne.s32.totalorder %s12755_s7, %s12467_s19  ;;  %p12473_p6 = scmp.lt.s32.totalorder %s12737_s30, %s12467_s19 }
0x1029   :  { %6369 = vmatprep.subr.bf16.mxu0 %v11510_v46  ;;  %6420 = vmatprep.subr.bf16.mxu1 %v11512_v48  ;;  %v11518_v18 = vld [vmem:[#allocation2 + $0xb74] ss:$24 sps:$4 sm:$0xff]   ;;  %v11520_v19 = vld [vmem:[#allocation2 + $0x960] ss:$24 sps:$4 sm:$0xff]   ;;  %v11521_v59 = vld [vmem:[#allocation2 + $0xb70] ss:$24 sps:$4 sm:$0xff]  }
0x102a   :  { %v11522_v61 = vld [vmem:[#allocation2 + $0x934] ss:$24 sps:$4 sm:$0xff]   ;;  %v11526_v54 = vld [vmem:[#allocation2 + $0x930] ss:$24 sps:$4 sm:$0xff]   ;;  %v11528_v60 = vld [vmem:[#allocation2 + $0x904] ss:$24 sps:$4 sm:$0xff]   ;;  %p12474_p7 = por %p12473_p6, %p12765_p2 }
0x102b   :  { %v11524_v36 = vld [vmem:[#allocation2 + $0x9cc] ss:$24 sps:$4 sm:$0xff]   ;;  %v11527_v58 = vld [vmem:[#allocation2 + $0x9c8] ss:$24 sps:$4 sm:$0xff]   ;;  %v11530_v63 = vld [vmem:[#allocation2 + $0x99c] ss:$24 sps:$4 sm:$0xff]  }
0x102c   :  { %6370 = vmatpush1.bf16.msra.mxu0 %v11514_v49  ;;  %6421 = vmatpush1.bf16.msra.mxu1 %v11515_v10  ;;  %v11532_v3 = vld [vmem:[#allocation2 + $0x900] ss:$24 sps:$4 sm:$0xff]   ;;  %v11534_v12 = vld [vmem:[#allocation2 + $0x8d4] ss:$24 sps:$4 sm:$0xff]   ;;  %v11538_v16 = vld [vmem:[#allocation2 + $0x8d0] ss:$24 sps:$4 sm:$0xff]   ;;  %p12475_p8 = pnand %p12474_p7, %p12468_p11 }
0x102d   :  { %6371 = vmatprep.subr.bf16.mxu0 %v11516_v15  ;;  %6422 = vmatprep.subr.bf16.mxu1 %v11518_v18  ;;  %v11533_v8 = vld [vmem:[#allocation2 + $0x998] ss:$24 sps:$4 sm:$0xff]   ;;  %v11536_v13 = vld [vmem:[#allocation2 + $0x96c] ss:$24 sps:$4 sm:$0xff]   ;;  %v11539_v17 = vld [vmem:[#allocation2 + $0x968] ss:$24 sps:$4 sm:$0xff]  }
0x102e   :  { %v11540_v4 = vld [vmem:[#allocation2 + $0x8a4] ss:$24 sps:$4 sm:$0xff]   ;;  %v11544_v14 = vld [vmem:[#allocation2 + $0x8a0] ss:$24 sps:$4 sm:$0xff]   ;;  %v11546_v50 = vld [vmem:[#allocation2 + $0x874] ss:$24 sps:$4 sm:$0xff]  }
0x102f   :  { %v11542_v56 = vld [vmem:[#allocation2 + $0x93c] ss:$24 sps:$4 sm:$0xff]   ;;  %v11545_v21 = vld [vmem:[#allocation2 + $0x938] ss:$24 sps:$4 sm:$0xff]   ;;  %v11548_v22 = vld [vmem:[#allocation2 + $0x90c] ss:$24 sps:$4 sm:$0xff]  }
0x1030   :  { %6372 = vmatpush1.bf16.msra.mxu0 %v11520_v19  ;;  %6423 = vmatpush1.bf16.msra.mxu1 %v11521_v59  ;;  %v11550_v5 = vld [vmem:[#allocation2 + $0x870] ss:$24 sps:$4 sm:$0xff]   ;;  %v11552_v23 = vld [vmem:[#allocation2 + $0xb44] ss:$24 sps:$4 sm:$0xff]   ;;  %v11556_v26 = vld [vmem:[#allocation2 + $0xb40] ss:$24 sps:$4 sm:$0xff]  }
0x1031   :  { %6373 = vmatprep.subr.bf16.mxu0 %v11522_v61  ;;  %6449 = vmatprep.subr.bf16.mxu1 %v11524_v36  ;;  %v11551_v2 = vld [vmem:[#allocation2 + $0x908] ss:$24 sps:$4 sm:$0xff]   ;;  %v11554_v42 = vld [vmem:[#allocation2 + $0x8dc] ss:$24 sps:$4 sm:$0xff]   ;;  %v11557_v27 = vld [vmem:[#allocation2 + $0x8d8] ss:$24 sps:$4 sm:$0xff]  }
0x1032   :  { %v11558_v30 = vld [vmem:[#allocation2 + $0xb14] ss:$24 sps:$4 sm:$0xff]   ;;  %v11562_v6 = vld [vmem:[#allocation2 + $0xb10] ss:$24 sps:$4 sm:$0xff]   ;;  %v11564_v20 = vld [vmem:[#allocation2 + $0xae4] ss:$24 sps:$4 sm:$0xff]  }
0x1033   :  { %10088 = vmatmul.mubr.msk.bf16.vlgmr.msra.gmra.mxu1 %vm3996_vm4, %v13282_v52  ;;  %v11560_v32 = vld [vmem:[#allocation2 + $0x8ac] ss:$24 sps:$4 sm:$0xff]   ;;  %v11563_v33 = vld [vmem:[#allocation2 + $0x8a8] ss:$24 sps:$4 sm:$0xff]   ;;  %v11566_v0 = vld [vmem:[#allocation2 + $0x87c] ss:$24 sps:$4 sm:$0xff]  }
0x1034   :  { %6374 = vmatpush1.bf16.msra.mxu0 %v11526_v54  ;;  %6450 = vmatpush1.bf16.msra.mxu1 %v11527_v58  ;;  %v11568_v37 = vld [vmem:[#allocation2 + $0xae0] ss:$24 sps:$4 sm:$0xff]   ;;  %v11570_v38 = vld [vmem:[#allocation2 + $0xab4] ss:$24 sps:$4 sm:$0xff]   ;;  %v11574_v41 = vld [vmem:[#allocation2 + $0xab0] ss:$24 sps:$4 sm:$0xff]  }
0x1035   :  { %6375 = vmatprep.subr.bf16.mxu0 %v11528_v60  ;;  %6451 = vmatprep.subr.bf16.mxu1 %v11530_v63  ;;  %v11569_v24 = vld [vmem:[#allocation2 + $0x878] ss:$24 sps:$4 sm:$0xff]   ;;  %v11572_v40 = vld [vmem:[#allocation2 + $0xb4c] ss:$24 sps:$4 sm:$0xff]   ;;  %v11575_v34 = vld [vmem:[#allocation2 + $0xb48] ss:$24 sps:$4 sm:$0xff]  }
0x1036   :  { %6481 = vmatprep.mubr.bf16.mxu1 %v5952_v43  ;;  %v11576_v11 = vld [vmem:[#allocation2 + $0xa84] ss:$24 sps:$4 sm:$0xff]   ;;  %v11580_v1 = vld [vmem:[#allocation2 + $0xa80] ss:$24 sps:$4 sm:$0xff]   ;;  %v11582_v29 = vld [vmem:[#allocation2 + $0xa54] ss:$24 sps:$4 sm:$0xff]  }
0x1037   :  { %v11578_v62 = vld [vmem:[#allocation2 + $0xb1c] ss:$24 sps:$4 sm:$0xff]   ;;  %v11581_v43 = vld [vmem:[#allocation2 + $0xb18] ss:$24 sps:$4 sm:$0xff]   ;;  %v11584_v31 = vld [vmem:[#allocation2 + $0xaec] ss:$24 sps:$4 sm:$0xff]  }
0x1038   :  { %6376 = vmatpush1.bf16.msra.mxu0 %v11532_v3  ;;  %6452 = vmatpush1.bf16.msra.mxu1 %v11533_v8  ;;  %v11588_v39 = vld [vmem:[#allocation2 + $0xa24] ss:$24 sps:$4 sm:$0xff]   ;;  %v11594_v46 = vld [vmem:[#allocation2 + $0x9f4] ss:$24 sps:$4 sm:$0xff]  }
0x1039   :  { %6377 = vmatprep.subr.bf16.mxu0 %v11534_v12  ;;  %6453 = vmatprep.subr.bf16.mxu1 %v11536_v13  ;;  %v11590_v44 = vld [vmem:[#allocation2 + $0xabc] ss:$24 sps:$4 sm:$0xff]   ;;  %v11596_v47 = vld [vmem:[#allocation2 + $0xa8c] ss:$24 sps:$4 sm:$0xff]  }
0x103a   :  { %v11600_v48 = vld [vmem:[#allocation2 + $0xa5c] ss:$24 sps:$4 sm:$0xff]   ;;  %v11606_v10 = vld [vmem:[#allocation2 + $0xa2c] ss:$24 sps:$4 sm:$0xff]  }
0x103b   :  { %v11602_v49 = vld [vmem:[#allocation2 + $0xbdc] ss:$24 sps:$4 sm:$0x3f]   ;;  %v11608_v15 = vld [vmem:[#allocation2 + $0xbac] ss:$24 sps:$4 sm:$0xff]  }
0x103c   :  { %6378 = vmatpush1.bf16.msra.mxu0 %v11538_v16  ;;  %6454 = vmatpush1.bf16.msra.mxu1 %v11539_v17  ;;  %v11612_v18 = vld [vmem:[#allocation2 + $0x9fc] ss:$24 sps:$4 sm:$0xff]  }
0x103d   :  { %6379 = vmatprep.subr.bf16.mxu0 %v11540_v4  ;;  %6455 = vmatprep.subr.bf16.mxu1 %v11542_v56  ;;  %v11614_v19 = vld [vmem:[#allocation2 + $0xb7c] ss:$24 sps:$4 sm:$0xff]  }
0x1040   :  { %6380 = vmatpush1.bf16.msra.mxu0 %v11544_v14  ;;  %6456 = vmatpush1.bf16.msra.mxu1 %v11545_v21 }
0x1041   :  { %6381 = vmatprep.subr.bf16.mxu0 %v11546_v50  ;;  %6457 = vmatprep.subr.bf16.mxu1 %v11548_v22 }
0x1044   :  { %6382 = vmatpush1.bf16.msra.mxu0 %v11550_v5  ;;  %6458 = vmatpush1.bf16.msra.mxu1 %v11551_v2 }
0x1045   :  { %6383 = vmatprep.subr.bf16.mxu0 %v11552_v23  ;;  %6459 = vmatprep.subr.bf16.mxu1 %v11554_v42 }
0x1048   :  { %6384 = vmatpush2.bf16.msra.mxu0 %v11556_v26  ;;  %6460 = vmatpush1.bf16.msra.mxu1 %v11557_v27 }
0x1049   :  { %6385 = vmatprep.subr.bf16.mxu0 %v11558_v30  ;;  %6461 = vmatprep.subr.bf16.mxu1 %v11560_v32 }
0x104c   :  { %6386 = vmatpush2.bf16.msra.mxu0 %v11562_v6  ;;  %6462 = vmatpush1.bf16.msra.mxu1 %v11563_v33 }
0x104d   :  { %6387 = vmatprep.subr.bf16.mxu0 %v11564_v20  ;;  %6463 = vmatprep.subr.bf16.mxu1 %v11566_v0 }
0x1050   :  { %6388 = vmatpush2.bf16.msra.mxu0 %v11568_v37  ;;  %6464 = vmatpush1.bf16.msra.mxu1 %v11569_v24 }
0x1051   :  { %6389 = vmatprep.subr.bf16.mxu0 %v11570_v38  ;;  %6465 = vmatprep.subr.bf16.mxu1 %v11572_v40 }
0x1054   :  { %6390 = vmatpush2.bf16.msra.mxu0 %v11574_v41  ;;  %6466 = vmatpush2.bf16.msra.mxu1 %v11575_v34 }
0x1055   :  { %6391 = vmatprep.subr.bf16.mxu0 %v11576_v11  ;;  %6467 = vmatprep.subr.bf16.mxu1 %v11578_v62 }
0x1056   :  { %12478 = shalt.err (!%p12475_p8)  }
0x1057   :  { %6545 = dma.hbm_to_vmem [thread:$0]  %s13460_s20, 26112, %s12755_s7, [#allocation3 + $0x1]  ;;  %v5951_v3 = vpack.c.bf16 %v5864_v25, %v5864_v25  ;;  %v5954_v21 = vld [vmem:[#allocation7 + $0x1e] sm:$0xf] }
0x1058   :  { %6392 = vmatpush2.bf16.msra.mxu0 %v11580_v1  ;;  %v11586_v59 = vld [vmem:[#allocation2 + $0xa50] ss:$24 sps:$4 sm:$0xff]   ;;  %6468 = vmatpush2.bf16.msra.mxu1 %v11581_v43  ;;  %v11592_v36 = vld [vmem:[#allocation2 + $0xa20] ss:$24 sps:$4 sm:$0xff]   ;;  %v5959_v50 = vrot.slane %v5954_v21, %v12836_v55  ;;  %v5963_v22 = vrot.slane %v5954_v21, %v12842_v57  ;;  %v5967_v33 = vrot.slane %v5954_v21, %v12867_v9 }
0x1059   :  { %6393 = vmatprep.subr.bf16.mxu0 %v11582_v29  ;;  %v11587_v61 = vld [vmem:[#allocation2 + $0xae8] ss:$24 sps:$4 sm:$0xff]   ;;  %6469 = vmatprep.subr.bf16.mxu1 %v11584_v31  ;;  %v11593_v54 = vld [vmem:[#allocation2 + $0xab8] ss:$24 sps:$4 sm:$0xff]   ;;  %v5971_v0 = vrot.slane %v5954_v21, %v12872_v28 }
0x105a   :  { %v11598_v58 = vld [vmem:[#allocation2 + $0x9f0] ss:$24 sps:$4 sm:$0xff]  }
0x105b   :  { %v11599_v60 = vld [vmem:[#allocation2 + $0xa88] ss:$24 sps:$4 sm:$0xff]   ;;  %v11605_v63 = vld [vmem:[#allocation2 + $0xbd8] ss:$24 sps:$4 sm:$0x3f]  }
0x105c   :  { %6394 = vmatpush2.bf16.msra.mxu0 %v11586_v59  ;;  %6470 = vmatpush2.bf16.msra.mxu1 %v11587_v61  ;;  %v11604_v8 = vld [vmem:[#allocation2 + $0xa58] ss:$24 sps:$4 sm:$0xff]   ;;  %v6362_v12 = vsel %vm2784_vm1, %v11605_v63, 0  ;;  %v11611_v13 = vld [vmem:[#allocation2 + $0xba8] ss:$24 sps:$4 sm:$0xff]  }
0x105d   :  { %6395 = vmatprep.subr.bf16.mxu0 %v11588_v39  ;;  %6471 = vmatprep.subr.bf16.mxu1 %v11590_v44  ;;  %v11610_v16 = vld [vmem:[#allocation2 + $0xa28] ss:$24 sps:$4 sm:$0xff]   ;;  %v11617_v35 = vld [vmem:[#allocation2 + $0xb78] ss:$24 sps:$4 sm:$0xff]  }
0x105e   :  { %v11616_v25 = vld [vmem:[#allocation2 + $0x9f8] ss:$24 sps:$4 sm:$0xff]  }
0x1060   :  { %6396 = vmatpush2.bf16.msra.mxu0 %v11592_v36  ;;  %6472 = vmatpush2.bf16.msra.mxu1 %v11593_v54 }
0x1061   :  { %6397 = vmatprep.subr.bf16.mxu0 %v11594_v46  ;;  %6473 = vmatprep.subr.bf16.mxu1 %v11596_v47 }
0x1064   :  { %6398 = vmatpush2.bf16.msra.mxu0 %v11598_v58  ;;  %6474 = vmatpush2.bf16.msra.mxu1 %v11599_v60 }
0x1065   :  { %10089 = vmatprep.subr.msk.bf16.mxu0 %vm2784_vm1, %v11602_v49  ;;  %6475 = vmatprep.subr.bf16.mxu1 %v11600_v48 }
0x1067   :  { %6400 = vmatmul.mubr.bf16.vlgmr.msra.gmra.mxu0 %v5951_v3 }
0x1068   :  { %6501 = vmatpush1.bf16.msra.mxu0 %v6362_v12  ;;  %6522 = vmatprep.mubr.bf16.mxu0 %v12592_v45 }
0x1069   :  { %6476 = vmatpush2.bf16.msra.mxu1 %v11604_v8  ;;  %6502 = vmatprep.subr.bf16.mxu0 %v11608_v15 }
0x106a   :  { %6477 = vmatprep.subr.bf16.mxu1 %v11606_v10 }
0x106c   :  { %6503 = vmatpush1.bf16.msra.mxu0 %v11611_v13 }
0x106d   :  { %6478 = vmatpush2.bf16.msra.mxu1 %v11610_v16  ;;  %6504 = vmatprep.subr.bf16.mxu0 %v11614_v19 }
0x106e   :  { %6479 = vmatprep.subr.bf16.mxu1 %v11612_v18 }
0x1070   :  { %6505 = vmatpush1.bf16.msra.mxu0 %v11617_v35 }
0x1071   :  { %6480 = vmatpush2.bf16.msra.mxu1 %v11616_v25 }
0x1073   :  { %10090 = vmatmul.mubr.msk.bf16.vlgmr.msra.gmra.mxu0 %vm3996_vm4, %v13282_v52 }
0x1074   :  { %6482 = vmatmul.mubr.bf16.vlgmr.msra.gmra.mxu1 %v5951_v3 }
0x10f3   :  { %v6442_v17 = vpop.f32.mrf.mxu1 }
0x10f5   :  { %v6444_v4 = vpop.f32.mrf.mxu1 }
0x10f7   :  { %v6446_v56 = vpop.f32.mrf.mxu1 }
0x10f9   :  { %v6447_v14 = vpop.f32.mrf.mxu1 }
0x1127   :  { %v6401_v5 = vpop.f32.mrf.mxu0 }
0x1128   :  { %v6402_v2 = vadd.f32 %v6401_v5, %v5959_v50 }
0x1129   :  { %v6403_v23 = vpop.f32.mrf.mxu0 }
0x112a   :  { %v13305_v42 = vadd.f32 %v6442_v17, %v6402_v2  ;;  %v6404_v26 = vadd.f32 %v6403_v23, %v5963_v22 }
0x112b   :  { %v6405_v27 = vpop.f32.mrf.mxu0 }
0x112c   :  { %v6531_v30 = vmax.f32 %v13305_v42, 0.0  ;;  %v6445_v52 = vadd.f32 %v6444_v4, %v6404_v26 }
0x112d   :  { %v6406_v32 = vpop.f32.mrf.mxu0 }
0x112e   :  { %v6532_v6 = vmax.f32 %v6445_v52, 0.0 }
0x1133   :  { %v6524_v20 = vpop.f32.mrf.mxu0 }
0x1134   :  { %v6483_v37 = vpop.f32.mrf.mxu1 }
0x1135   :  { %v6484_v24 = vadd.f32 %v6483_v37, %v5967_v33  ;;  %v6526_v38 = vpop.f32.mrf.mxu0 }
0x1136   :  { %v6485_v40 = vpop.f32.mrf.mxu1 }
0x1137   :  { %v13310_v41 = vadd.f32 %v6524_v20, %v6484_v24  ;;  %v6486_v34 = vadd.f32 %v6485_v40, %v5971_v0  ;;  %v6528_v11 = vpop.f32.mrf.mxu0 }
0x1138   :  { %v6487_v62 = vpop.f32.mrf.mxu1 }
0x1139   :  { %v6533_v1 = vmax.f32 %v13310_v41, 0.0  ;;  %v6527_v43 = vadd.f32 %v6526_v38, %v6486_v34  ;;  %v6529_v29 = vpop.f32.mrf.mxu0 }
0x113a   :  { %v6488_v31 = vpop.f32.mrf.mxu1 }
0x113b   :  { %v6534_v39 = vmax.f32 %v6527_v43, 0.0 }
0x113c   :  { %12575 = dma.done.wait [#allocation3], 16000 }
0x113d   :  { %12576 = vsyncadd [#allocation3], 4294951296  ;;  %v13313_v44 = vpack.c.bf16 %v6534_v39, %v6534_v39  ;;  %v13315_v46 = vpack.c.bf16 %v6532_v6, %v6532_v6  ;;  %v11618_v47 = vld [vmem:[#allocation2 + $0x154] ss:$24 sps:$4 sm:$0xff]   ;;  %v11622_v49 = vld [vmem:[#allocation2 + $0x150] ss:$24 sps:$4 sm:$0xff]   ;;  %v13323_v0 = vpack.c.bf16 %v6533_v1, %v6533_v1 }
0x113e   :  { %v11620_v48 = vld [vmem:[#allocation2 + $0x454] ss:$24 sps:$4 sm:$0xff]   ;;  %7383 = vmatprep.subr.bf16.mxu0 %v11618_v47  ;;  %v11623_v10 = vld [vmem:[#allocation2 + $0x450] ss:$24 sps:$4 sm:$0xff]   ;;  %v11624_v15 = vld [vmem:[#allocation2 + $0x124] ss:$24 sps:$4 sm:$0xff]  }
0x113f   :  { %10216 = vmatprep.mubr.msk.bf16.mxu1 %vm3577_vm3, %v13313_v44  ;;  %7415 = vmatprep.mubr.bf16.mxu0 %v13315_v46  ;;  %v11626_v18 = vld [vmem:[#allocation2 + $0x424] ss:$24 sps:$4 sm:$0xff]   ;;  %v11628_v19 = vld [vmem:[#allocation2 + $0x120] ss:$24 sps:$4 sm:$0xff]   ;;  %v11630_v61 = vld [vmem:[#allocation2 + $0xf4] ss:$24 sps:$4 sm:$0xff]  }
0x1140   :  { %7424 = vmatprep.subr.bf16.mxu1 %v11620_v48  ;;  %7384 = vmatpush1.bf16.msra.mxu0 %v11622_v49  ;;  %v11629_v59 = vld [vmem:[#allocation2 + $0x420] ss:$24 sps:$4 sm:$0xff]   ;;  %v11632_v36 = vld [vmem:[#allocation2 + $0x3f4] ss:$24 sps:$4 sm:$0xff]   ;;  %v11634_v54 = vld [vmem:[#allocation2 + $0xf0] ss:$24 sps:$4 sm:$0xff]  }
0x1141   :  { %7425 = vmatpush1.bf16.msra.mxu1 %v11623_v10  ;;  %7385 = vmatprep.subr.bf16.mxu0 %v11624_v15  ;;  %v11635_v58 = vld [vmem:[#allocation2 + $0x3f0] ss:$24 sps:$4 sm:$0xff]   ;;  %v11636_v60 = vld [vmem:[#allocation2 + $0xc4] ss:$24 sps:$4 sm:$0xff]   ;;  %v11640_v3 = vld [vmem:[#allocation2 + $0xc0] ss:$24 sps:$4 sm:$0xff]  }
0x1142   :  { %7426 = vmatprep.subr.bf16.mxu1 %v11626_v18  ;;  %v11638_v63 = vld [vmem:[#allocation2 + $0x3c4] ss:$24 sps:$4 sm:$0xff]   ;;  %v11641_v8 = vld [vmem:[#allocation2 + $0x3c0] ss:$24 sps:$4 sm:$0xff]   ;;  %v11642_v12 = vld [vmem:[#allocation2 + $0x94] ss:$24 sps:$4 sm:$0xff]  }
0x1143   :  { %v11644_v13 = vld [vmem:[#allocation2 + $0x394] ss:$24 sps:$4 sm:$0xff]   ;;  %v11646_v16 = vld [vmem:[#allocation2 + $0x90] ss:$24 sps:$4 sm:$0xff]   ;;  %v11648_v25 = vld [vmem:[#allocation2 + $0x64] ss:$24 sps:$4 sm:$0xff]  }
0x1144   :  { %7386 = vmatpush1.bf16.msra.mxu0 %v11628_v19  ;;  %v11647_v35 = vld [vmem:[#allocation2 + $0x390] ss:$24 sps:$4 sm:$0xff]   ;;  %v11650_v17 = vld [vmem:[#allocation2 + $0x364] ss:$24 sps:$4 sm:$0xff]   ;;  %v11652_v4 = vld [vmem:[#allocation2 + $0x60] ss:$24 sps:$4 sm:$0xff]  }
0x1145   :  { %7427 = vmatpush1.bf16.msra.mxu1 %v11629_v59  ;;  %7387 = vmatprep.subr.bf16.mxu0 %v11630_v61  ;;  %v11653_v56 = vld [vmem:[#allocation2 + $0x360] ss:$24 sps:$4 sm:$0xff]   ;;  %v11654_v14 = vld [vmem:[#allocation2 + $0x34] ss:$24 sps:$4 sm:$0xff]   ;;  %v11658_v50 = vld [vmem:[#allocation2 + $0x30] ss:$24 sps:$4 sm:$0xff]  }
0x1146   :  { %7428 = vmatprep.subr.bf16.mxu1 %v11632_v36  ;;  %v11656_v21 = vld [vmem:[#allocation2 + $0x334] ss:$24 sps:$4 sm:$0xff]   ;;  %v11659_v22 = vld [vmem:[#allocation2 + $0x330] ss:$24 sps:$4 sm:$0xff]   ;;  %v11660_v5 = vld [vmem:[#allocation2 + $0x4] ss:$24 sps:$4 sm:$0xff]  }
0x1147   :  { %v11662_v2 = vld [vmem:[#allocation2 + $0x304] ss:$24 sps:$4 sm:$0xff]   ;;  %v11664_v23 = vld [vmem:[#allocation2] ss:$24 sps:$4 sm:$0xff]   ;;  %v11666_v27 = vld [vmem:[#allocation2 + $0x2d4] ss:$24 sps:$4 sm:$0xff]  }
0x1148   :  { %7388 = vmatpush1.bf16.msra.mxu0 %v11634_v54  ;;  %v11665_v26 = vld [vmem:[#allocation2 + $0x300] ss:$24 sps:$4 sm:$0xff]   ;;  %v11668_v52 = vld [vmem:[#allocation2 + $0x484] ss:$24 sps:$4 sm:$0xff]   ;;  %v11670_v32 = vld [vmem:[#allocation2 + $0x2d0] ss:$24 sps:$4 sm:$0xff]  }
0x1149   :  { %7429 = vmatpush1.bf16.msra.mxu1 %v11635_v58  ;;  %7389 = vmatprep.subr.bf16.mxu0 %v11636_v60  ;;  %v11671_v6 = vld [vmem:[#allocation2 + $0x480] ss:$24 sps:$4 sm:$0xff]   ;;  %v11672_v33 = vld [vmem:[#allocation2 + $0x2a4] ss:$24 sps:$4 sm:$0xff]   ;;  %v11678_v38 = vld [vmem:[#allocation2 + $0x274] ss:$24 sps:$4 sm:$0xff]  }
0x114a   :  { %7430 = vmatprep.subr.bf16.mxu1 %v11638_v63  ;;  %v11676_v20 = vld [vmem:[#allocation2 + $0x15c] ss:$24 sps:$4 sm:$0xff]   ;;  %v11674_v37 = vld [vmem:[#allocation2 + $0x158] ss:$24 sps:$4 sm:$0xff]   ;;  %v11682_v40 = vld [vmem:[#allocation2 + $0x12c] ss:$24 sps:$4 sm:$0xff]  }
0x114b   :  { %v11677_v24 = vld [vmem:[#allocation2 + $0x2a0] ss:$24 sps:$4 sm:$0xff]   ;;  %v11683_v11 = vld [vmem:[#allocation2 + $0x270] ss:$24 sps:$4 sm:$0xff]   ;;  %v11684_v62 = vld [vmem:[#allocation2 + $0x244] ss:$24 sps:$4 sm:$0xff]  }
0x114c   :  { %7390 = vmatpush1.bf16.msra.mxu0 %v11640_v3  ;;  %v11680_v34 = vld [vmem:[#allocation2 + $0x128] ss:$24 sps:$4 sm:$0xff]   ;;  %v11688_v41 = vld [vmem:[#allocation2 + $0xfc] ss:$24 sps:$4 sm:$0xff]   ;;  %v11686_v1 = vld [vmem:[#allocation2 + $0xf8] ss:$24 sps:$4 sm:$0xff]  }
0x114d   :  { %7431 = vmatpush1.bf16.msra.mxu1 %v11641_v8  ;;  %7391 = vmatprep.subr.bf16.mxu0 %v11642_v12  ;;  %v11689_v43 = vld [vmem:[#allocation2 + $0x240] ss:$24 sps:$4 sm:$0xff]   ;;  %v11690_v29 = vld [vmem:[#allocation2 + $0x214] ss:$24 sps:$4 sm:$0xff]   ;;  %v11695_v47 = vld [vmem:[#allocation2 + $0x210] ss:$24 sps:$4 sm:$0xff]   ;;  %v13330_v8 = vpack.c.bf16 %v6531_v30, %v6531_v30 }
0x114e   :  { %7432 = vmatprep.subr.bf16.mxu1 %v11644_v13  ;;  %v11694_v31 = vld [vmem:[#allocation2 + $0xcc] ss:$24 sps:$4 sm:$0xff]   ;;  %v11692_v39 = vld [vmem:[#allocation2 + $0xc8] ss:$24 sps:$4 sm:$0xff]   ;;  %v11700_v49 = vld [vmem:[#allocation2 + $0x9c] ss:$24 sps:$4 sm:$0xff]  }
0x114f   :  { %v11696_v48 = vld [vmem:[#allocation2 + $0x1e4] ss:$24 sps:$4 sm:$0xff]   ;;  %v11698_v10 = vld [vmem:[#allocation2 + $0x98] ss:$24 sps:$4 sm:$0xff]   ;;  %v11702_v18 = vld [vmem:[#allocation2 + $0x1b4] ss:$24 sps:$4 sm:$0xff]  }
0x1150   :  { %7392 = vmatpush1.bf16.msra.mxu0 %v11646_v16  ;;  %v11701_v15 = vld [vmem:[#allocation2 + $0x1e0] ss:$24 sps:$4 sm:$0xff]   ;;  %v11706_v19 = vld [vmem:[#allocation2 + $0x6c] ss:$24 sps:$4 sm:$0xff]   ;;  %v11707_v61 = vld [vmem:[#allocation2 + $0x1b0] ss:$24 sps:$4 sm:$0xff]  }
0x1151   :  { %7433 = vmatpush1.bf16.msra.mxu1 %v11647_v35  ;;  %7393 = vmatprep.subr.bf16.mxu0 %v11648_v25  ;;  %v11704_v59 = vld [vmem:[#allocation2 + $0x68] ss:$24 sps:$4 sm:$0xff]   ;;  %v11708_v36 = vld [vmem:[#allocation2 + $0x184] ss:$24 sps:$4 sm:$0xff]   ;;  %v11710_v58 = vld [vmem:[#allocation2 + $0x38] ss:$24 sps:$4 sm:$0xff]  }
0x1152   :  { %7434 = vmatprep.subr.bf16.mxu1 %v11650_v17  ;;  %v11712_v54 = vld [vmem:[#allocation2 + $0x3c] ss:$24 sps:$4 sm:$0xff]   ;;  %v11713_v60 = vld [vmem:[#allocation2 + $0x180] ss:$24 sps:$4 sm:$0xff]   ;;  %v11716_v63 = vld [vmem:[#allocation2 + $0xc] ss:$24 sps:$4 sm:$0xff]  }
0x1153   :  { %v11719_v3 = vld [vmem:[#allocation2 + $0x45c] ss:$24 sps:$4 sm:$0xff]   ;;  %v11714_v12 = vld [vmem:[#allocation2 + $0x8] ss:$24 sps:$4 sm:$0xff]   ;;  %v11717_v13 = vld [vmem:[#allocation2 + $0x458] ss:$24 sps:$4 sm:$0xff]  }
0x1154   :  { %7394 = vmatpush1.bf16.msra.mxu0 %v11652_v4  ;;  %v11722_v16 = vld [vmem:[#allocation2 + $0x2dc] ss:$24 sps:$4 sm:$0xff]   ;;  %v11725_v35 = vld [vmem:[#allocation2 + $0x42c] ss:$24 sps:$4 sm:$0xff]   ;;  %v11720_v25 = vld [vmem:[#allocation2 + $0x2d8] ss:$24 sps:$4 sm:$0xff]  }
0x1155   :  { %7435 = vmatpush1.bf16.msra.mxu1 %v11653_v56  ;;  %7395 = vmatprep.subr.bf16.mxu0 %v11654_v14  ;;  %v11723_v17 = vld [vmem:[#allocation2 + $0x428] ss:$24 sps:$4 sm:$0xff]   ;;  %v11728_v4 = vld [vmem:[#allocation2 + $0x2ac] ss:$24 sps:$4 sm:$0xff]   ;;  %v11731_v42 = vld [vmem:[#allocation2 + $0x3fc] ss:$24 sps:$4 sm:$0xff]  }
0x1156   :  { %7436 = vmatprep.subr.bf16.mxu1 %v11656_v21  ;;  %v11726_v30 = vld [vmem:[#allocation2 + $0x2a8] ss:$24 sps:$4 sm:$0xff]   ;;  %v11729_v56 = vld [vmem:[#allocation2 + $0x3f8] ss:$24 sps:$4 sm:$0xff]   ;;  %v11734_v14 = vld [vmem:[#allocation2 + $0x27c] ss:$24 sps:$4 sm:$0xff]  }
0x1157   :  { %v11737_v21 = vld [vmem:[#allocation2 + $0x3cc] ss:$24 sps:$4 sm:$0xff]  }
0x1158   :  { %7396 = vmatpush1.bf16.msra.mxu0 %v11658_v50  ;;  %v11732_v50 = vld [vmem:[#allocation2 + $0x278] ss:$24 sps:$4 sm:$0xff]  }
0x1159   :  { %7437 = vmatpush1.bf16.msra.mxu1 %v11659_v22  ;;  %7397 = vmatprep.subr.bf16.mxu0 %v11660_v5  ;;  %v11735_v22 = vld [vmem:[#allocation2 + $0x3c8] ss:$24 sps:$4 sm:$0xff]   ;;  %v11740_v5 = vld [vmem:[#allocation2 + $0x24c] ss:$24 sps:$4 sm:$0xff]  }
0x115a   :  { %7438 = vmatprep.subr.bf16.mxu1 %v11662_v2  ;;  %v11743_v2 = vld [vmem:[#allocation2 + $0x39c] ss:$24 sps:$4 sm:$0xff]  }
0x115c   :  { %7398 = vmatpush1.bf16.msra.mxu0 %v11664_v23  ;;  %v11738_v23 = vld [vmem:[#allocation2 + $0x248] ss:$24 sps:$4 sm:$0xff]  }
0x115d   :  { %7439 = vmatpush1.bf16.msra.mxu1 %v11665_v26  ;;  %7399 = vmatprep.subr.bf16.mxu0 %v11666_v27  ;;  %v11741_v26 = vld [vmem:[#allocation2 + $0x398] ss:$24 sps:$4 sm:$0xff]   ;;  %v11746_v27 = vld [vmem:[#allocation2 + $0x21c] ss:$24 sps:$4 sm:$0xff]  }
0x115e   :  { %7454 = vmatprep.subr.bf16.mxu1 %v11668_v52  ;;  %v11749_v52 = vld [vmem:[#allocation2 + $0x36c] ss:$24 sps:$4 sm:$0xff]  }
0x1160   :  { %7400 = vmatpush2.bf16.msra.mxu0 %v11670_v32  ;;  %v11744_v32 = vld [vmem:[#allocation2 + $0x218] ss:$24 sps:$4 sm:$0xff]  }
0x1161   :  { %7455 = vmatpush2.bf16.msra.mxu1 %v11671_v6  ;;  %7401 = vmatprep.subr.bf16.mxu0 %v11672_v33  ;;  %v11747_v6 = vld [vmem:[#allocation2 + $0x368] ss:$24 sps:$4 sm:$0xff]   ;;  %v11752_v33 = vld [vmem:[#allocation2 + $0x1ec] ss:$24 sps:$4 sm:$0xff]  }
0x1162   :  { %7465 = vmatprep.subr.bf16.mxu1 %v11676_v20  ;;  %v11755_v20 = vld [vmem:[#allocation2 + $0x33c] ss:$24 sps:$4 sm:$0xff]  }
0x1164   :  { %7457 = vmatmul.mubr.bf16.vlgmr.msra.gmra.mxu1 %v13323_v0  ;;  %7402 = vmatpush2.bf16.msra.mxu0 %v11677_v24  ;;  %v11753_v24 = vld [vmem:[#allocation2 + $0x338] ss:$24 sps:$4 sm:$0xff]  }
0x1165   :  { %7466 = vmatpush1.bf16.msra.mxu1 %v11674_v37  ;;  %7403 = vmatprep.subr.bf16.mxu0 %v11678_v38  ;;  %v11750_v37 = vld [vmem:[#allocation2 + $0x1e8] ss:$24 sps:$4 sm:$0xff]   ;;  %v11758_v38 = vld [vmem:[#allocation2 + $0x1bc] ss:$24 sps:$4 sm:$0xff]  }
0x1166   :  { %7467 = vmatprep.subr.bf16.mxu1 %v11682_v40  ;;  %7497 = vmatprep.mubr.bf16.mxu1 %v13315_v46  ;;  %v11761_v40 = vld [vmem:[#allocation2 + $0x30c] ss:$24 sps:$4 sm:$0xff]  }
0x1168   :  { %7404 = vmatpush2.bf16.msra.mxu0 %v11683_v11  ;;  %v11759_v11 = vld [vmem:[#allocation2 + $0x308] ss:$24 sps:$4 sm:$0xff]  }
0x1169   :  { %7468 = vmatpush1.bf16.msra.mxu1 %v11680_v34  ;;  %7405 = vmatprep.subr.bf16.mxu0 %v11684_v62  ;;  %v11756_v34 = vld [vmem:[#allocation2 + $0x1b8] ss:$24 sps:$4 sm:$0xff]   ;;  %v11764_v62 = vld [vmem:[#allocation2 + $0x18c] ss:$24 sps:$4 sm:$0xff]  }
0x116a   :  { %7469 = vmatprep.subr.bf16.mxu1 %v11688_v41  ;;  %v11767_v41 = vld [vmem:[#allocation2 + $0x48c] ss:$24 sps:$4 sm:$0xff]  }
0x116c   :  { %7406 = vmatpush2.bf16.msra.mxu0 %v11689_v43  ;;  %v11765_v43 = vld [vmem:[#allocation2 + $0x488] ss:$24 sps:$4 sm:$0xff]  }
0x116d   :  { %7470 = vmatpush1.bf16.msra.mxu1 %v11686_v1  ;;  %7407 = vmatprep.subr.bf16.mxu0 %v11690_v29  ;;  %v11762_v1 = vld [vmem:[#allocation2 + $0x188] ss:$24 sps:$4 sm:$0xff]  }
0x116e   :  { %7471 = vmatprep.subr.bf16.mxu1 %v11694_v31  ;;  %v11768_v29 = vld [vmem:[#allocation2 + $0x2e0] ss:$24 sps:$4 sm:$0xff]  }
0x116f   :  { %v11769_v31 = vld [vmem:[#allocation2 + $0x160] ss:$24 sps:$4 sm:$0xff]  }
0x1170   :  { %7408 = vmatpush2.bf16.msra.mxu0 %v11695_v47  ;;  %v11771_v47 = vld [vmem:[#allocation2 + $0x2b0] ss:$24 sps:$4 sm:$0xff]  }
0x1171   :  { %7472 = vmatpush1.bf16.msra.mxu1 %v11692_v39  ;;  %7409 = vmatprep.subr.bf16.mxu0 %v11696_v48  ;;  %v11770_v39 = vld [vmem:[#allocation2 + $0x460] ss:$24 sps:$4 sm:$0xff]   ;;  %v11772_v48 = vld [vmem:[#allocation2 + $0x130] ss:$24 sps:$4 sm:$0xff]  }
0x1172   :  { %7473 = vmatprep.subr.bf16.mxu1 %v11700_v49  ;;  %v11773_v49 = vld [vmem:[#allocation2 + $0x430] ss:$24 sps:$4 sm:$0xff]  }
0x1174   :  { %7410 = vmatpush2.bf16.msra.mxu0 %v11701_v15  ;;  %v11775_v15 = vld [vmem:[#allocation2 + $0x100] ss:$24 sps:$4 sm:$0xff]  }
0x1175   :  { %7474 = vmatpush1.bf16.msra.mxu1 %v11698_v10  ;;  %7411 = vmatprep.subr.bf16.mxu0 %v11702_v18  ;;  %v11774_v10 = vld [vmem:[#allocation2 + $0x280] ss:$24 sps:$4 sm:$0xff]  }
0x1176   :  { %7475 = vmatprep.subr.bf16.mxu1 %v11706_v19  ;;  %v11776_v18 = vld [vmem:[#allocation2 + $0x400] ss:$24 sps:$4 sm:$0xff]   ;;  %v11777_v19 = vld [vmem:[#allocation2 + $0x250] ss:$24 sps:$4 sm:$0xff]  }
0x1178   :  { %7412 = vmatpush2.bf16.msra.mxu0 %v11707_v61  ;;  %v11779_v61 = vld [vmem:[#allocation2 + $0x3d0] ss:$24 sps:$4 sm:$0xff]  }
0x1179   :  { %7476 = vmatpush1.bf16.msra.mxu1 %v11704_v59  ;;  %7413 = vmatprep.subr.bf16.mxu0 %v11708_v36  ;;  %v11778_v59 = vld [vmem:[#allocation2 + $0xd0] ss:$24 sps:$4 sm:$0xff]   ;;  %v11780_v36 = vld [vmem:[#allocation2 + $0x220] ss:$24 sps:$4 sm:$0xff]  }
0x117a   :  { %7477 = vmatprep.subr.bf16.mxu1 %v11712_v54  ;;  %v11783_v54 = vld [vmem:[#allocation2 + $0x1f0] ss:$24 sps:$4 sm:$0xff]  }
0x117c   :  { %7414 = vmatpush2.bf16.msra.mxu0 %v11713_v60  ;;  %v11785_v60 = vld [vmem:[#allocation2 + $0x370] ss:$24 sps:$4 sm:$0xff]  }
0x117d   :  { %7478 = vmatpush1.bf16.msra.mxu1 %v11710_v58  ;;  %7506 = vmatprep.subr.bf16.mxu0 %v11719_v3  ;;  %v11784_v58 = vld [vmem:[#allocation2 + $0x70] ss:$24 sps:$4 sm:$0xff]   ;;  %v11787_v3 = vld [vmem:[#allocation2 + $0x40] ss:$24 sps:$4 sm:$0xff]  }
0x117e   :  { %7479 = vmatprep.subr.bf16.mxu1 %v11716_v63  ;;  %v11786_v63 = vld [vmem:[#allocation2 + $0x1c0] ss:$24 sps:$4 sm:$0xff]  }
0x117f   :  { %7416 = vmatmul.mubr.bf16.vlgmr.msra.gmra.mxu0 %v13330_v8 }
0x1180   :  { %7507 = vmatpush1.bf16.msra.mxu0 %v11717_v13  ;;  %10217 = vmatprep.mubr.msk.bf16.mxu0 %vm3577_vm3, %v13313_v44  ;;  %v11789_v13 = vld [vmem:[#allocation2 + $0x190] ss:$24 sps:$4 sm:$0xff]  }
0x1181   :  { %7480 = vmatpush1.bf16.msra.mxu1 %v11714_v12  ;;  %7508 = vmatprep.subr.bf16.mxu0 %v11725_v35  ;;  %v11788_v12 = vld [vmem:[#allocation2 + $0x340] ss:$24 sps:$4 sm:$0xff]   ;;  %v11791_v35 = vld [vmem:[#allocation2 + $0x310] ss:$24 sps:$4 sm:$0xff]  }
0x1182   :  { %7481 = vmatprep.subr.bf16.mxu1 %v11722_v16  ;;  %v11790_v16 = vld [vmem:[#allocation2 + $0x10] ss:$24 sps:$4 sm:$0xff]  }
0x1184   :  { %7509 = vmatpush1.bf16.msra.mxu0 %v11723_v17 }
0x1185   :  { %7482 = vmatpush2.bf16.msra.mxu1 %v11720_v25  ;;  %7510 = vmatprep.subr.bf16.mxu0 %v11731_v42  ;;  %v11792_v25 = vld [vmem:[#allocation2 + $0x490] ss:$24 sps:$4 sm:$0xff]  }
0x1186   :  { %7483 = vmatprep.subr.bf16.mxu1 %v11728_v4 }
0x1188   :  { %7511 = vmatpush1.bf16.msra.mxu0 %v11729_v56  ;;  %v6703_v56 = vld [vmem:[#allocation7 + $0x22] sm:$0x1f] }
0x1189   :  { %7484 = vmatpush2.bf16.msra.mxu1 %v11726_v30  ;;  %7512 = vmatprep.subr.bf16.mxu0 %v11737_v21  ;;  %v6712_v21 = vrot.slane %v6703_v56, %v12842_v57 }
0x118a   :  { %7485 = vmatprep.subr.bf16.mxu1 %v11734_v14  ;;  %v6708_v14 = vrot.slane %v6703_v56, %v12836_v55 }
0x118c   :  { %7513 = vmatpush1.bf16.msra.mxu0 %v11735_v22 }
0x118d   :  { %7486 = vmatpush2.bf16.msra.mxu1 %v11732_v50  ;;  %7514 = vmatprep.subr.bf16.mxu0 %v11743_v2 }
0x118e   :  { %7487 = vmatprep.subr.bf16.mxu1 %v11740_v5 }
0x1190   :  { %7515 = vmatpush1.bf16.msra.mxu0 %v11741_v26 }
0x1191   :  { %7488 = vmatpush2.bf16.msra.mxu1 %v11738_v23  ;;  %7516 = vmatprep.subr.bf16.mxu0 %v11749_v52 }
0x1192   :  { %7489 = vmatprep.subr.bf16.mxu1 %v11746_v27 }
0x1194   :  { %7517 = vmatpush1.bf16.msra.mxu0 %v11747_v6  ;;  %v6720_v6 = vrot.slane %v6703_v56, %v12872_v28 }
0x1195   :  { %7490 = vmatpush2.bf16.msra.mxu1 %v11744_v32  ;;  %7518 = vmatprep.subr.bf16.mxu0 %v11755_v20  ;;  %v6716_v32 = vrot.slane %v6703_v56, %v12867_v9 }
0x1196   :  { %7491 = vmatprep.subr.bf16.mxu1 %v11752_v33 }
0x1198   :  { %7519 = vmatpush1.bf16.msra.mxu0 %v11753_v24 }
0x1199   :  { %7492 = vmatpush2.bf16.msra.mxu1 %v11750_v37  ;;  %7520 = vmatprep.subr.bf16.mxu0 %v11761_v40 }
0x119a   :  { %7493 = vmatprep.subr.bf16.mxu1 %v11758_v38 }
0x119c   :  { %7521 = vmatpush1.bf16.msra.mxu0 %v11759_v11 }
0x119d   :  { %7494 = vmatpush2.bf16.msra.mxu1 %v11756_v34  ;;  %7536 = vmatprep.subr.bf16.mxu0 %v11767_v41 }
0x119e   :  { %7495 = vmatprep.subr.bf16.mxu1 %v11764_v62 }
0x11a0   :  { %7537 = vmatpush2.bf16.msra.mxu0 %v11765_v43 }
0x11a1   :  { %7496 = vmatpush2.bf16.msra.mxu1 %v11762_v1  ;;  %10526 = vmatprep.subr.bf16.mxu0 %v11768_v29 }
0x11a2   :  { %7587 = vmatprep.subr.bf16.mxu1 %v12592_v45 }
0x11a3   :  { %7539 = vmatmul.mubr.bf16.vlgmr.msra.gmra.mxu0 %v13323_v0 }
0x11a4   :  { %7498 = vmatmul.mubr.bf16.vlgmr.msra.gmra.mxu1 %v13330_v8  ;;  %10527 = vmatpush3.bf16.msra.mxu0 %v11769_v31 }
0x11a5   :  { %7588 = vmatpush1.bf16.msra.mxu1 %v11770_v39  ;;  %10528 = vmatprep.subr.bf16.mxu0 %v11771_v47  ;;  %v6724_v47 = vrot.slane %v6703_v56, %v12880_v51 }
0x11a6   :  { %7589 = vmatprep.subr.bf16.mxu1 %v12592_v45  ;;  %7579 = vmatprep.mubr.bf16.mxu0 %v13315_v46  ;;  %v11781_v46 = vld [vmem:[#allocation2 + $0xa0] ss:$24 sps:$4 sm:$0xff]  }
0x11a7   :  { %10218 = vmatprep.mubr.msk.bf16.mxu1 %vm3577_vm3, %v13313_v44  ;;  %v11782_v44 = vld [vmem:[#allocation2 + $0x3a0] ss:$24 sps:$4 sm:$0xff]  }
0x11a8   :  { %10529 = vmatpush3.bf16.msra.mxu0 %v11772_v48 }
0x11a9   :  { %7590 = vmatpush1.bf16.msra.mxu1 %v11773_v49  ;;  %10530 = vmatprep.subr.bf16.mxu0 %v11774_v10 }
0x11aa   :  { %7591 = vmatprep.subr.bf16.mxu1 %v12592_v45 }
0x11ac   :  { %10531 = vmatpush3.bf16.msra.mxu0 %v11775_v15 }
0x11ad   :  { %7592 = vmatpush1.bf16.msra.mxu1 %v11776_v18  ;;  %10532 = vmatprep.subr.bf16.mxu0 %v11777_v19 }
0x11ae   :  { %7593 = vmatprep.subr.bf16.mxu1 %v12592_v45 }
0x11b0   :  { %10533 = vmatpush3.bf16.msra.mxu0 %v11778_v59 }
0x11b1   :  { %7594 = vmatpush1.bf16.msra.mxu1 %v11779_v61  ;;  %10534 = vmatprep.subr.bf16.mxu0 %v11780_v36 }
0x11b2   :  { %7595 = vmatprep.subr.bf16.mxu1 %v12592_v45 }
0x11b4   :  { %10535 = vmatpush3.bf16.msra.mxu0 %v11781_v46 }
0x11b5   :  { %7596 = vmatpush1.bf16.msra.mxu1 %v11782_v44  ;;  %10536 = vmatprep.subr.bf16.mxu0 %v11783_v54 }
0x11b6   :  { %7597 = vmatprep.subr.bf16.mxu1 %v12592_v45 }
0x11b8   :  { %10537 = vmatpush3.bf16.msra.mxu0 %v11784_v58 }
0x11b9   :  { %7598 = vmatpush1.bf16.msra.mxu1 %v11785_v60  ;;  %10538 = vmatprep.subr.bf16.mxu0 %v11786_v63 }
0x11ba   :  { %7599 = vmatprep.subr.bf16.mxu1 %v12592_v45 }
0x11bc   :  { %10539 = vmatpush3.bf16.msra.mxu0 %v11787_v3 }
0x11bd   :  { %7600 = vmatpush1.bf16.msra.mxu1 %v11788_v12  ;;  %10540 = vmatprep.subr.bf16.mxu0 %v11789_v13 }
0x11be   :  { %7601 = vmatprep.subr.bf16.mxu1 %v12592_v45 }
0x11c0   :  { %10541 = vmatpush3.bf16.msra.mxu0 %v11790_v16 }
0x11c1   :  { %7602 = vmatpush1.bf16.msra.mxu1 %v11791_v35 }
0x11c2   :  { %7617 = vmatprep.subr.bf16.mxu1 %v12592_v45 }
0x11c3   :  { %7580 = vmatmul.mubr.bf16.vlgmr.msra.gmra.mxu0 %v13330_v8 }
0x11c5   :  { %7618 = vmatpush2.bf16.msra.mxu1 %v11792_v25 }
0x11c8   :  { %7620 = vmatmul.mubr.bf16.vlgmr.msra.gmra.mxu1 %v13323_v0 }
0x1224   :  { %v7458_v17 = vpop.f32.mrf.mxu1 }
0x1226   :  { %v7460_v4 = vpop.f32.mrf.mxu1 }
0x1228   :  { %v7462_v42 = vpop.f32.mrf.mxu1 }
0x122a   :  { %v7463_v30 = vpop.f32.mrf.mxu1 }
0x123f   :  { %v7417_v50 = vpop.f32.mrf.mxu0 }
0x1240   :  { %v7418_v22 = vadd.f32 %v7417_v50, %v6708_v14 }
0x1241   :  { %v7419_v5 = vpop.f32.mrf.mxu0 }
0x1242   :  { %v13353_v2 = vadd.f32 %v7458_v17, %v7418_v22  ;;  %v7420_v23 = vadd.f32 %v7419_v5, %v6712_v21 }
0x1243   :  { %v7421_v26 = vpop.f32.mrf.mxu0 }
0x1244   :  { %v7627_v8 = vmax.f32 %v13353_v2, 0.0  ;;  %v7461_v27 = vadd.f32 %v7460_v4, %v7420_v23 }
0x1245   :  { %v7422_v0 = vpop.f32.mrf.mxu0 }
0x1246   :  { %v7628_v52 = vmax.f32 %v7461_v27, 0.0 }
0x1263   :  { %v7540_v20 = vpop.f32.mrf.mxu0 }
0x1264   :  { %v7499_v33 = vpop.f32.mrf.mxu1 }
0x1265   :  { %v7500_v37 = vadd.f32 %v7499_v33, %v6716_v32  ;;  %v7542_v38 = vpop.f32.mrf.mxu0 }
0x1266   :  { %v7501_v24 = vpop.f32.mrf.mxu1 }
0x1267   :  { %v13358_v40 = vadd.f32 %v7540_v20, %v7500_v37  ;;  %v7502_v34 = vadd.f32 %v7501_v24, %v6720_v6  ;;  %v7544_v62 = vpop.f32.mrf.mxu0 }
0x1268   :  { %v7503_v11 = vpop.f32.mrf.mxu1 }
0x1269   :  { %v7629_v41 = vmax.f32 %v13358_v40, 0.0  ;;  %v7543_v1 = vadd.f32 %v7542_v38, %v7502_v34  ;;  %v7545_v29 = vpop.f32.mrf.mxu0 }
0x126a   :  { %v7504_v43 = vpop.f32.mrf.mxu1 }
0x126b   :  { %v7630_v31 = vmax.f32 %v7543_v1, 0.0 }
0x1283   :  { %v10542_v39 = vpop.f32.mrf.mxu0 }
0x1285   :  { %v10543_v48 = vpop.f32.mrf.mxu0 }
0x1286   :  { %v10544_v49 = vadd.f32 %v10543_v48, %v10542_v39 }
0x1287   :  { %v10545_v10 = vpop.f32.mrf.mxu0 }
0x1288   :  { %v7621_v15 = vpop.f32.mrf.mxu1  ;;  %v7582_v18 = vadd.f32 %v10544_v49, %v6724_v47 }
0x1289   :  { %v10546_v19 = vpop.f32.mrf.mxu0 }
0x128a   :  { %v7623_v59 = vpop.f32.mrf.mxu1  ;;  %v13362_v61 = vadd.f32 %v7621_v15, %v7582_v18 }
0x128c   :  { %v7624_v36 = vpop.f32.mrf.mxu1  ;;  %v7631_v46 = vmax.f32 %v13362_v61, 0.0 }
0x128e   :  { %v7625_v44 = vpop.f32.mrf.mxu1 }
0x128f   :  { %12577 = dma.done.wait [#allocation3 + $0x1], 26112 }
0x1290   :  { %12578 = vsyncadd [#allocation3 + $0x1], 4294941184  ;;  %v13365_v54 = vpack.c.bf16 %v7628_v52, %v7628_v52  ;;  %v13367_v58 = vpack.c.bf16 %v7630_v31, %v7630_v31  ;;  %9288 = vrot.lane.b32.xlu0 %v13138_v7, %s12602_s13  ;;  %9286 = vst.msk [vmem:[#allocation10] sm:$0xff] %vm4889_vm15, %v13138_v7  ;;  %v11793_v60 = vld [vmem:[#allocation2 + $0x9c4] ss:$24 sps:$4 sm:$0xff]   ;;  %s12603_s20 = smov [#allocation10]  }
0x1291   :  { %v11795_v63 = vld [vmem:[#allocation2 + $0x9c0] ss:$24 sps:$4 sm:$0xff]   ;;  %8911 = vmatprep.subr.bf16.mxu0 %v11793_v60  ;;  %v11796_v3 = vld [vmem:[#allocation2 + $0xcc4] ss:$24 sps:$4 sm:$0xff]   ;;  %v11799_v13 = vld [vmem:[#allocation2 + $0x994] ss:$24 sps:$4 sm:$0xff]  }
0x1292   :  { %8943 = vmatprep.mubr.bf16.mxu0 %v13365_v54  ;;  %8984 = vmatprep.mubr.bf16.mxu1 %v13367_v58  ;;  %v11798_v12 = vld [vmem:[#allocation2 + $0xcc0] ss:$24 sps:$4 sm:$0xff]   ;;  %v11801_v16 = vld [vmem:[#allocation2 + $0x990] ss:$24 sps:$4 sm:$0xff]   ;;  %v11802_v35 = vld [vmem:[#allocation2 + $0xc94] ss:$24 sps:$4 sm:$0xff]  }
0x1293   :  { %8912 = vmatpush1.bf16.msra.mxu0 %v11795_v63  ;;  %8952 = vmatprep.subr.bf16.mxu1 %v11796_v3  ;;  %v11804_v25 = vld [vmem:[#allocation2 + $0xc90] ss:$24 sps:$4 sm:$0xff]   ;;  %v11805_v17 = vld [vmem:[#allocation2 + $0x964] ss:$24 sps:$4 sm:$0xff]   ;;  %v11807_v7 = vld [vmem:[#allocation2 + $0x960] ss:$24 sps:$4 sm:$0xff]  }
0x1294   :  { %8953 = vmatpush1.bf16.msra.mxu1 %v11798_v12  ;;  %8913 = vmatprep.subr.bf16.mxu0 %v11799_v13  ;;  %v11808_v4 = vld [vmem:[#allocation2 + $0xc64] ss:$24 sps:$4 sm:$0xff]   ;;  %v11811_v42 = vld [vmem:[#allocation2 + $0x934] ss:$24 sps:$4 sm:$0xff]   ;;  %v11810_v30 = vld [vmem:[#allocation2 + $0xc60] ss:$24 sps:$4 sm:$0xff]  }
0x1295   :  { %8954 = vmatprep.subr.bf16.mxu1 %v11802_v35  ;;  %v11814_v56 = vld [vmem:[#allocation2 + $0xc34] ss:$24 sps:$4 sm:$0xff]   ;;  %v11813_v14 = vld [vmem:[#allocation2 + $0x930] ss:$24 sps:$4 sm:$0xff]   ;;  %v11817_v21 = vld [vmem:[#allocation2 + $0x904] ss:$24 sps:$4 sm:$0xff]  }
0x1296   :  { %v11816_v50 = vld [vmem:[#allocation2 + $0xc30] ss:$24 sps:$4 sm:$0xff]   ;;  %v11820_v22 = vld [vmem:[#allocation2 + $0xc04] ss:$24 sps:$4 sm:$0xff]   ;;  %v11819_v5 = vld [vmem:[#allocation2 + $0x900] ss:$24 sps:$4 sm:$0xff]  }
0x1297   :  { %8914 = vmatpush1.bf16.msra.mxu0 %v11801_v16  ;;  %v11823_v23 = vld [vmem:[#allocation2 + $0x8d4] ss:$24 sps:$4 sm:$0xff]   ;;  %v11822_v26 = vld [vmem:[#allocation2 + $0xc00] ss:$24 sps:$4 sm:$0xff]   ;;  %v11825_v0 = vld [vmem:[#allocation2 + $0x8d0] ss:$24 sps:$4 sm:$0xff]  }
0x1298   :  { %8915 = vmatprep.subr.bf16.mxu0 %v11805_v17  ;;  %8955 = vmatpush1.bf16.msra.mxu1 %v11804_v25  ;;  %v11826_v27 = vld [vmem:[#allocation2 + $0xbd4] ss:$24 sps:$4 sm:$0xff]   ;;  %v11829_v52 = vld [vmem:[#allocation2 + $0x8a4] ss:$24 sps:$4 sm:$0xff]   ;;  %v11828_v32 = vld [vmem:[#allocation2 + $0xbd0] ss:$24 sps:$4 sm:$0xff]  }
0x1299   :  { %8956 = vmatprep.subr.bf16.mxu1 %v11808_v4  ;;  %v11832_v6 = vld [vmem:[#allocation2 + $0xba4] ss:$24 sps:$4 sm:$0xff]   ;;  %v11831_v33 = vld [vmem:[#allocation2 + $0x8a0] ss:$24 sps:$4 sm:$0xff]   ;;  %v11835_v20 = vld [vmem:[#allocation2 + $0x874] ss:$24 sps:$4 sm:$0xff]  }
0x129a   :  { %v11834_v37 = vld [vmem:[#allocation2 + $0xba0] ss:$24 sps:$4 sm:$0xff]   ;;  %v11838_v24 = vld [vmem:[#allocation2 + $0xb74] ss:$24 sps:$4 sm:$0xff]   ;;  %v11837_v38 = vld [vmem:[#allocation2 + $0x870] ss:$24 sps:$4 sm:$0xff]  }
0x129b   :  { %8916 = vmatpush1.bf16.msra.mxu0 %v11807_v7  ;;  %v11841_v34 = vld [vmem:[#allocation2 + $0xb44] ss:$24 sps:$4 sm:$0xff]   ;;  %v11840_v11 = vld [vmem:[#allocation2 + $0xb70] ss:$24 sps:$4 sm:$0xff]   ;;  %v11843_v1 = vld [vmem:[#allocation2 + $0xb40] ss:$24 sps:$4 sm:$0xff]  }
0x129c   :  { %8917 = vmatprep.subr.bf16.mxu0 %v11811_v42  ;;  %8957 = vmatpush1.bf16.msra.mxu1 %v11810_v30  ;;  %v11844_v62 = vld [vmem:[#allocation2 + $0xe44] ss:$24 sps:$4 sm:$0xff]   ;;  %v11847_v43 = vld [vmem:[#allocation2 + $0xb14] ss:$24 sps:$4 sm:$0xff]   ;;  %v11846_v29 = vld [vmem:[#allocation2 + $0xe40] ss:$24 sps:$4 sm:$0xff]  }
0x129d   :  { %8958 = vmatprep.subr.bf16.mxu1 %v11814_v56  ;;  %v11850_v31 = vld [vmem:[#allocation2 + $0xe14] ss:$24 sps:$4 sm:$0xff]   ;;  %v11849_v39 = vld [vmem:[#allocation2 + $0xb10] ss:$24 sps:$4 sm:$0xff]   ;;  %v11853_v47 = vld [vmem:[#allocation2 + $0xae4] ss:$24 sps:$4 sm:$0xff]  }
0x129e   :  { %v11852_v48 = vld [vmem:[#allocation2 + $0xe10] ss:$24 sps:$4 sm:$0xff]   ;;  %v11856_v49 = vld [vmem:[#allocation2 + $0xde4] ss:$24 sps:$4 sm:$0xff]   ;;  %v11855_v10 = vld [vmem:[#allocation2 + $0xae0] ss:$24 sps:$4 sm:$0xff]  }
0x129f   :  { %8918 = vmatpush1.bf16.msra.mxu0 %v11813_v14  ;;  %v11859_v15 = vld [vmem:[#allocation2 + $0xab4] ss:$24 sps:$4 sm:$0xff]   ;;  %v11858_v18 = vld [vmem:[#allocation2 + $0xde0] ss:$24 sps:$4 sm:$0xff]   ;;  %v11861_v59 = vld [vmem:[#allocation2 + $0xab0] ss:$24 sps:$4 sm:$0xff]  }
0x12a0   :  { %8919 = vmatprep.subr.bf16.mxu0 %v11817_v21  ;;  %8959 = vmatpush1.bf16.msra.mxu1 %v11816_v50  ;;  %v11862_v19 = vld [vmem:[#allocation2 + $0xdb4] ss:$24 sps:$4 sm:$0xff]   ;;  %v11865_v36 = vld [vmem:[#allocation2 + $0xa84] ss:$24 sps:$4 sm:$0xff]   ;;  %v11864_v44 = vld [vmem:[#allocation2 + $0xdb0] ss:$24 sps:$4 sm:$0xff]  }
0x12a1   :  { %8960 = vmatprep.subr.bf16.mxu1 %v11820_v22  ;;  %v11868_v60 = vld [vmem:[#allocation2 + $0xd84] ss:$24 sps:$4 sm:$0xff]   ;;  %v11867_v63 = vld [vmem:[#allocation2 + $0xa80] ss:$24 sps:$4 sm:$0xff]   ;;  %v11871_v3 = vld [vmem:[#allocation2 + $0xa54] ss:$24 sps:$4 sm:$0xff]   ;;  %v13378_v22 = vpack.c.bf16 %v7627_v8, %v7627_v8 }
0x12a2   :  { %v11870_v12 = vld [vmem:[#allocation2 + $0xd80] ss:$24 sps:$4 sm:$0xff]   ;;  %v11874_v13 = vld [vmem:[#allocation2 + $0xd54] ss:$24 sps:$4 sm:$0xff]   ;;  %v11873_v16 = vld [vmem:[#allocation2 + $0xa50] ss:$24 sps:$4 sm:$0xff]  }
0x12a3   :  { %8920 = vmatpush1.bf16.msra.mxu0 %v11819_v5  ;;  %v11877_v35 = vld [vmem:[#allocation2 + $0xa24] ss:$24 sps:$4 sm:$0xff]   ;;  %v11876_v25 = vld [vmem:[#allocation2 + $0xd50] ss:$24 sps:$4 sm:$0xff]   ;;  %v11879_v7 = vld [vmem:[#allocation2 + $0xa20] ss:$24 sps:$4 sm:$0xff]  }
0x12a4   :  { %8921 = vmatprep.subr.bf16.mxu0 %v11823_v23  ;;  %8961 = vmatpush1.bf16.msra.mxu1 %v11822_v26  ;;  %v11880_v17 = vld [vmem:[#allocation2 + $0xd24] ss:$24 sps:$4 sm:$0xff]   ;;  %v11883_v4 = vld [vmem:[#allocation2 + $0x9f4] ss:$24 sps:$4 sm:$0xff]   ;;  %v11882_v42 = vld [vmem:[#allocation2 + $0xd20] ss:$24 sps:$4 sm:$0xff]   ;;  %v13385_v26 = vpack.c.bf16 %v7629_v41, %v7629_v41  ;;  %v13394_v41 = vpack.c.bf16 %v7631_v46, %v7631_v46 }
0x12a5   :  { %8962 = vmatprep.subr.bf16.mxu1 %v11826_v27  ;;  %v11886_v30 = vld [vmem:[#allocation2 + $0xcf4] ss:$24 sps:$4 sm:$0xff]   ;;  %v11885_v56 = vld [vmem:[#allocation2 + $0x9f0] ss:$24 sps:$4 sm:$0xff]   ;;  %s9308_s30 = sshll.u32 %s12603_s20, 4  ;;  %s9309_s30 = int_to_ptr.vmem [resolvable:$true] %s9308_s30 }
0x12a6   :  { %v11889_v14 = vld [vmem:[#allocation2 + $0xea4] ss:$24 sps:$4 sm:$0x3f]   ;;  %v11891_v21 = vld [vmem:[#allocation2 + $0xea0] ss:$24 sps:$4 sm:$0x3f]   ;;  %p12484_p9 = scmp.lt.s32.totalorder %s9309_s30, %s9309_s30 }
0x12a7   :  { %8922 = vmatpush1.bf16.msra.mxu0 %v11825_v0  ;;  %v11888_v50 = vld [vmem:[#allocation2 + $0xcf0] ss:$24 sps:$4 sm:$0xff]   ;;  %v11900_v5 = vld [vmem:[#allocation2 + $0xccc] ss:$24 sps:$4 sm:$0xff]   ;;  %v8894_v23 = vsel %vm2784_vm1, %v11891_v21, 0  ;;  %s12479_s5 = scalar_lea.vmem %s9309_s30, 128 }
0x12a8   :  { %8923 = vmatprep.subr.bf16.mxu0 %v11829_v52  ;;  %8963 = vmatpush1.bf16.msra.mxu1 %v11828_v32  ;;  %v11894_v27 = vld [vmem:[#allocation2 + $0xe74] ss:$24 sps:$4 sm:$0xff]   ;;  %v11898_v0 = vld [vmem:[#allocation2 + $0xcc8] ss:$24 sps:$4 sm:$0xff]   ;;  %v11904_v40 = vld [vmem:[#allocation2 + $0xc98] ss:$24 sps:$4 sm:$0xff]   ;;  %p12480_p2 = scmp.ne.s32.totalorder %s9309_s30, %s12479_s5  ;;  %p12485_p10 = scmp.lt.s32.totalorder %s12479_s5, %s12479_s5 }
0x12a9   :  { %8964 = vmatprep.subr.bf16.mxu1 %v11832_v6  ;;  %v11906_v2 = vld [vmem:[#allocation2 + $0xc9c] ss:$24 sps:$4 sm:$0xff]   ;;  %v11892_v8 = vld [vmem:[#allocation2 + $0xe70] ss:$24 sps:$4 sm:$0xff]   ;;  %v11897_v52 = vld [vmem:[#allocation2 + $0x9cc] ss:$24 sps:$4 sm:$0xff]  }
0x12aa   :  { %v11912_v32 = vld [vmem:[#allocation2 + $0xc6c] ss:$24 sps:$4 sm:$0xff]   ;;  %v11895_v6 = vld [vmem:[#allocation2 + $0x9c8] ss:$24 sps:$4 sm:$0xff]   ;;  %v11916_v46 = vld [vmem:[#allocation2 + $0xc38] ss:$24 sps:$4 sm:$0xff]   ;;  %p12486_p12 = por %p12485_p10, %p12484_p9 }
0x12ab   :  { %8924 = vmatpush1.bf16.msra.mxu0 %v11831_v33  ;;  %v11903_v33 = vld [vmem:[#allocation2 + $0x99c] ss:$24 sps:$4 sm:$0xff]   ;;  %v11909_v61 = vld [vmem:[#allocation2 + $0x96c] ss:$24 sps:$4 sm:$0xff]  }
0x12ac   :  { %8925 = vmatprep.subr.bf16.mxu0 %v11835_v20  ;;  %8965 = vmatpush1.bf16.msra.mxu1 %v11834_v37  ;;  %v11910_v20 = vld [vmem:[#allocation2 + $0xc68] ss:$24 sps:$4 sm:$0xff]   ;;  %v11918_v37 = vld [vmem:[#allocation2 + $0xc3c] ss:$24 sps:$4 sm:$0xff]   ;;  %p12487_p13 = pnand %p12486_p12, %p12480_p2 }
0x12ad   :  { %8966 = vmatprep.subr.bf16.mxu1 %v11838_v24  ;;  %v11901_v24 = vld [vmem:[#allocation2 + $0x998] ss:$24 sps:$4 sm:$0xff]   ;;  %v11963_v21 = vld [vmem:[#allocation2 + $0xabc] ss:$24 sps:$4 sm:$0xff]  }
0x12af   :  { %8926 = vmatpush1.bf16.msra.mxu0 %v11837_v38  ;;  %v11924_v38 = vld [vmem:[#allocation2 + $0xc0c] ss:$24 sps:$4 sm:$0xff]  }
0x12b0   :  { %8927 = vmatprep.subr.bf16.mxu0 %v11841_v34  ;;  %8967 = vmatpush1.bf16.msra.mxu1 %v11840_v11  ;;  %v11907_v34 = vld [vmem:[#allocation2 + $0x968] ss:$24 sps:$4 sm:$0xff]   ;;  %v11915_v11 = vld [vmem:[#allocation2 + $0x93c] ss:$24 sps:$4 sm:$0xff]  }
0x12b1   :  { %8968 = vmatprep.subr.bf16.mxu1 %v11844_v62  ;;  %v11922_v62 = vld [vmem:[#allocation2 + $0xc08] ss:$24 sps:$4 sm:$0xff]  }
0x12b3   :  { %8928 = vmatpush2.bf16.msra.mxu0 %v11843_v1  ;;  %v11930_v1 = vld [vmem:[#allocation2 + $0xbdc] ss:$24 sps:$4 sm:$0xff]  }
0x12b4   :  { %8929 = vmatprep.subr.bf16.mxu0 %v11847_v43  ;;  %8969 = vmatpush2.bf16.msra.mxu1 %v11846_v29  ;;  %v11913_v43 = vld [vmem:[#allocation2 + $0x938] ss:$24 sps:$4 sm:$0xff]   ;;  %v11921_v29 = vld [vmem:[#allocation2 + $0x90c] ss:$24 sps:$4 sm:$0xff]  }
0x12b5   :  { %8970 = vmatprep.subr.bf16.mxu1 %v11850_v31  ;;  %v11928_v31 = vld [vmem:[#allocation2 + $0xbd8] ss:$24 sps:$4 sm:$0xff]  }
0x12b7   :  { %8930 = vmatpush2.bf16.msra.mxu0 %v11849_v39  ;;  %v11936_v39 = vld [vmem:[#allocation2 + $0xbac] ss:$24 sps:$4 sm:$0xff]  }
0x12b8   :  { %8931 = vmatprep.subr.bf16.mxu0 %v11853_v47  ;;  %8971 = vmatpush2.bf16.msra.mxu1 %v11852_v48  ;;  %v11919_v47 = vld [vmem:[#allocation2 + $0x908] ss:$24 sps:$4 sm:$0xff]   ;;  %v11927_v48 = vld [vmem:[#allocation2 + $0x8dc] ss:$24 sps:$4 sm:$0xff]  }
0x12b9   :  { %8972 = vmatprep.subr.bf16.mxu1 %v11856_v49  ;;  %v11934_v49 = vld [vmem:[#allocation2 + $0xba8] ss:$24 sps:$4 sm:$0xff]  }
0x12bb   :  { %8932 = vmatpush2.bf16.msra.mxu0 %v11855_v10  ;;  %v11942_v10 = vld [vmem:[#allocation2 + $0xb7c] ss:$24 sps:$4 sm:$0xff]  }
0x12bc   :  { %8933 = vmatprep.subr.bf16.mxu0 %v11859_v15  ;;  %8973 = vmatpush2.bf16.msra.mxu1 %v11858_v18  ;;  %v11925_v15 = vld [vmem:[#allocation2 + $0x8d8] ss:$24 sps:$4 sm:$0xff]   ;;  %v11933_v18 = vld [vmem:[#allocation2 + $0x8ac] ss:$24 sps:$4 sm:$0xff]  }
0x12bd   :  { %8974 = vmatprep.subr.bf16.mxu1 %v11862_v19  ;;  %v11940_v19 = vld [vmem:[#allocation2 + $0xb78] ss:$24 sps:$4 sm:$0xff]  }
0x12bf   :  { %8934 = vmatpush2.bf16.msra.mxu0 %v11861_v59  ;;  %v11948_v59 = vld [vmem:[#allocation2 + $0xe4c] ss:$24 sps:$4 sm:$0xff]  }
0x12c0   :  { %8935 = vmatprep.subr.bf16.mxu0 %v11865_v36  ;;  %8975 = vmatpush2.bf16.msra.mxu1 %v11864_v44  ;;  %v11931_v36 = vld [vmem:[#allocation2 + $0x8a8] ss:$24 sps:$4 sm:$0xff]   ;;  %v11939_v44 = vld [vmem:[#allocation2 + $0x87c] ss:$24 sps:$4 sm:$0xff]  }
0x12c1   :  { %8976 = vmatprep.subr.bf16.mxu1 %v11868_v60  ;;  %v11946_v60 = vld [vmem:[#allocation2 + $0xe48] ss:$24 sps:$4 sm:$0xff]  }
0x12c3   :  { %8936 = vmatpush2.bf16.msra.mxu0 %v11867_v63  ;;  %v11954_v63 = vld [vmem:[#allocation2 + $0xe1c] ss:$24 sps:$4 sm:$0xff]  }
0x12c4   :  { %8937 = vmatprep.subr.bf16.mxu0 %v11871_v3  ;;  %8977 = vmatpush2.bf16.msra.mxu1 %v11870_v12  ;;  %v11937_v3 = vld [vmem:[#allocation2 + $0x878] ss:$24 sps:$4 sm:$0xff]   ;;  %v11945_v12 = vld [vmem:[#allocation2 + $0xb4c] ss:$24 sps:$4 sm:$0xff]  }
0x12c5   :  { %8978 = vmatprep.subr.bf16.mxu1 %v11874_v13  ;;  %v11952_v13 = vld [vmem:[#allocation2 + $0xe18] ss:$24 sps:$4 sm:$0xff]  }
0x12c7   :  { %8938 = vmatpush2.bf16.msra.mxu0 %v11873_v16  ;;  %v11960_v16 = vld [vmem:[#allocation2 + $0xdec] ss:$24 sps:$4 sm:$0xff]  }
0x12c8   :  { %8939 = vmatprep.subr.bf16.mxu0 %v11877_v35  ;;  %8979 = vmatpush2.bf16.msra.mxu1 %v11876_v25  ;;  %v11943_v35 = vld [vmem:[#allocation2 + $0xb48] ss:$24 sps:$4 sm:$0xff]   ;;  %v11951_v25 = vld [vmem:[#allocation2 + $0xb1c] ss:$24 sps:$4 sm:$0xff]  }
0x12c9   :  { %8980 = vmatprep.subr.bf16.mxu1 %v11880_v17  ;;  %v11958_v17 = vld [vmem:[#allocation2 + $0xde8] ss:$24 sps:$4 sm:$0xff]  }
0x12cb   :  { %8940 = vmatpush2.bf16.msra.mxu0 %v11879_v7  ;;  %v11966_v7 = vld [vmem:[#allocation2 + $0xdbc] ss:$24 sps:$4 sm:$0xff]  }
0x12cc   :  { %8941 = vmatprep.subr.bf16.mxu0 %v11883_v4  ;;  %8981 = vmatpush2.bf16.msra.mxu1 %v11882_v42  ;;  %v11949_v4 = vld [vmem:[#allocation2 + $0xb18] ss:$24 sps:$4 sm:$0xff]   ;;  %v11957_v42 = vld [vmem:[#allocation2 + $0xaec] ss:$24 sps:$4 sm:$0xff]  }
0x12cd   :  { %8982 = vmatprep.subr.bf16.mxu1 %v11886_v30  ;;  %v11964_v30 = vld [vmem:[#allocation2 + $0xdb8] ss:$24 sps:$4 sm:$0xff]  }
0x12cf   :  { %8942 = vmatpush2.bf16.msra.mxu0 %v11885_v56  ;;  %v11972_v56 = vld [vmem:[#allocation2 + $0xd8c] ss:$24 sps:$4 sm:$0xff]  }
0x12d0   :  { %10423 = vmatprep.subr.msk.bf16.mxu0 %vm2784_vm1, %v11889_v14  ;;  %8983 = vmatpush2.bf16.msra.mxu1 %v11888_v50  ;;  %v11955_v14 = vld [vmem:[#allocation2 + $0xae8] ss:$24 sps:$4 sm:$0xff]  }
0x12d1   :  { %9075 = vmatprep.subr.bf16.mxu1 %v11900_v5  ;;  %v11970_v50 = vld [vmem:[#allocation2 + $0xd88] ss:$24 sps:$4 sm:$0xff]   ;;  %v11978_v5 = vld [vmem:[#allocation2 + $0xd5c] ss:$24 sps:$4 sm:$0xff]  }
0x12d2   :  { %8944 = vmatmul.mubr.bf16.vlgmr.msra.gmra.mxu0 %v13378_v22 }
0x12d3   :  { %9006 = vmatpush1.bf16.msra.mxu0 %v8894_v23  ;;  %9025 = vmatprep.mubr.bf16.mxu0 %v12592_v45  ;;  %v11961_v23 = vld [vmem:[#allocation2 + $0xab8] ss:$24 sps:$4 sm:$0xff]  }
0x12d4   :  { %8985 = vmatmul.mubr.bf16.vlgmr.msra.gmra.mxu1 %v13385_v26  ;;  %9007 = vmatprep.subr.bf16.mxu0 %v11894_v27  ;;  %v11969_v27 = vld [vmem:[#allocation2 + $0xa8c] ss:$24 sps:$4 sm:$0xff]  }
0x12d5   :  { %9076 = vmatpush1.bf16.msra.mxu1 %v11898_v0  ;;  %9107 = vmatprep.mubr.bf16.mxu1 %v13367_v58  ;;  %v11976_v0 = vld [vmem:[#allocation2 + $0xd58] ss:$24 sps:$4 sm:$0xff]  }
0x12d6   :  { %9077 = vmatprep.subr.bf16.mxu1 %v11906_v2  ;;  %v11984_v2 = vld [vmem:[#allocation2 + $0xd2c] ss:$24 sps:$4 sm:$0xff]  }
0x12d7   :  { %9008 = vmatpush1.bf16.msra.mxu0 %v11892_v8  ;;  %v11967_v8 = vld [vmem:[#allocation2 + $0xa88] ss:$24 sps:$4 sm:$0xff]  }
0x12d8   :  { %9034 = vmatprep.subr.bf16.mxu0 %v11897_v52  ;;  %v11975_v52 = vld [vmem:[#allocation2 + $0xa5c] ss:$24 sps:$4 sm:$0xff]  }
0x12d9   :  { %9078 = vmatpush1.bf16.msra.mxu1 %v11904_v40  ;;  %v11982_v40 = vld [vmem:[#allocation2 + $0xd28] ss:$24 sps:$4 sm:$0xff]  }
0x12da   :  { %10424 = vmatmul.mubr.msk.bf16.vlgmr.msra.gmra.mxu0 %vm2780_vm2, %v13394_v41  ;;  %9079 = vmatprep.subr.bf16.mxu1 %v11912_v32  ;;  %v11990_v32 = vld [vmem:[#allocation2 + $0xcfc] ss:$24 sps:$4 sm:$0xff]  }
0x12db   :  { %9035 = vmatpush1.bf16.msra.mxu0 %v11895_v6  ;;  %9066 = vmatprep.mubr.bf16.mxu0 %v13365_v54  ;;  %v11973_v6 = vld [vmem:[#allocation2 + $0xa58] ss:$24 sps:$4 sm:$0xff]  }
0x12dc   :  { %9036 = vmatprep.subr.bf16.mxu0 %v11903_v33  ;;  %v11981_v33 = vld [vmem:[#allocation2 + $0xa2c] ss:$24 sps:$4 sm:$0xff]  }
0x12dd   :  { %9080 = vmatpush1.bf16.msra.mxu1 %v11910_v20  ;;  %v11988_v20 = vld [vmem:[#allocation2 + $0xcf8] ss:$24 sps:$4 sm:$0xff]  }
0x12de   :  { %9081 = vmatprep.subr.bf16.mxu1 %v11918_v37  ;;  %v12002_v37 = vld [vmem:[#allocation2 + $0xcd4] ss:$24 sps:$4 sm:$0xff]  }
0x12df   :  { %9037 = vmatpush1.bf16.msra.mxu0 %v11901_v24  ;;  %v11979_v24 = vld [vmem:[#allocation2 + $0xa28] ss:$24 sps:$4 sm:$0xff]  }
0x12e0   :  { %9038 = vmatprep.subr.bf16.mxu0 %v11909_v61  ;;  %v11987_v61 = vld [vmem:[#allocation2 + $0x9fc] ss:$24 sps:$4 sm:$0xff]  }
0x12e1   :  { %9082 = vmatpush1.bf16.msra.mxu1 %v11916_v46  ;;  %v12000_v46 = vld [vmem:[#allocation2 + $0xcd0] ss:$24 sps:$4 sm:$0xff]  }
0x12e2   :  { %9083 = vmatprep.subr.bf16.mxu1 %v11924_v38  ;;  %v12008_v38 = vld [vmem:[#allocation2 + $0xca4] ss:$24 sps:$4 sm:$0xff]  }
0x12e3   :  { %9039 = vmatpush1.bf16.msra.mxu0 %v11907_v34  ;;  %v11985_v34 = vld [vmem:[#allocation2 + $0x9f8] ss:$24 sps:$4 sm:$0xff]  }
0x12e4   :  { %9040 = vmatprep.subr.bf16.mxu0 %v11915_v11  ;;  %v11991_v11 = vld [vmem:[#allocation2 + $0xeac] ss:$24 sps:$4 sm:$0x3f]  }
0x12e5   :  { %9084 = vmatpush1.bf16.msra.mxu1 %v11922_v62  ;;  %v11993_v62 = vld [vmem:[#allocation2 + $0xea8] ss:$24 sps:$4 sm:$0x3f]  }
0x12e6   :  { %9085 = vmatprep.subr.bf16.mxu1 %v11930_v1  ;;  %v12006_v1 = vld [vmem:[#allocation2 + $0xca0] ss:$24 sps:$4 sm:$0xff]  }
0x12e7   :  { %9041 = vmatpush1.bf16.msra.mxu0 %v11913_v43  ;;  %v12014_v43 = vld [vmem:[#allocation2 + $0xc74] ss:$24 sps:$4 sm:$0xff]  }
0x12e8   :  { %9042 = vmatprep.subr.bf16.mxu0 %v11921_v29  ;;  %v8900_v29 = vsel %vm2784_vm1, %v11993_v62, 0  ;;  %v12092_v62 = vld [vmem:[#allocation2 + $0xd04] ss:$24 sps:$4 sm:$0xff]  }
0x12e9   :  { %9086 = vmatpush1.bf16.msra.mxu1 %v11928_v31  ;;  %v11996_v31 = vld [vmem:[#allocation2 + $0xe7c] ss:$24 sps:$4 sm:$0xff]  }
0x12ea   :  { %9087 = vmatprep.subr.bf16.mxu1 %v11936_v39  ;;  %v12012_v39 = vld [vmem:[#allocation2 + $0xc70] ss:$24 sps:$4 sm:$0xff]  }
0x12eb   :  { %9043 = vmatpush1.bf16.msra.mxu0 %v11919_v47  ;;  %v12020_v47 = vld [vmem:[#allocation2 + $0xc44] ss:$24 sps:$4 sm:$0xff]  }
0x12ec   :  { %9044 = vmatprep.subr.bf16.mxu0 %v11927_v48  ;;  %v11994_v48 = vld [vmem:[#allocation2 + $0xe78] ss:$24 sps:$4 sm:$0xff]  }
0x12ed   :  { %9088 = vmatpush1.bf16.msra.mxu1 %v11934_v49  ;;  %v12018_v49 = vld [vmem:[#allocation2 + $0xc40] ss:$24 sps:$4 sm:$0xff]  }
0x12ee   :  { %9089 = vmatprep.subr.bf16.mxu1 %v11942_v10  ;;  %v12026_v10 = vld [vmem:[#allocation2 + $0xc14] ss:$24 sps:$4 sm:$0xff]  }
0x12ef   :  { %9045 = vmatpush1.bf16.msra.mxu0 %v11925_v15  ;;  %v11997_v15 = vld [vmem:[#allocation2 + $0x9d0] ss:$24 sps:$4 sm:$0xff]  }
0x12f0   :  { %9046 = vmatprep.subr.bf16.mxu0 %v11933_v18  ;;  %v12005_v18 = vld [vmem:[#allocation2 + $0x9a4] ss:$24 sps:$4 sm:$0xff]  }
0x12f1   :  { %9090 = vmatpush1.bf16.msra.mxu1 %v11940_v19  ;;  %v12024_v19 = vld [vmem:[#allocation2 + $0xc10] ss:$24 sps:$4 sm:$0xff]  }
0x12f2   :  { %9091 = vmatprep.subr.bf16.mxu1 %v11948_v59  ;;  %v12032_v59 = vld [vmem:[#allocation2 + $0xbe4] ss:$24 sps:$4 sm:$0xff]  }
0x12f3   :  { %9047 = vmatpush1.bf16.msra.mxu0 %v11931_v36  ;;  %v12003_v36 = vld [vmem:[#allocation2 + $0x9a0] ss:$24 sps:$4 sm:$0xff]  }
0x12f4   :  { %9048 = vmatprep.subr.bf16.mxu0 %v11939_v44  ;;  %v12011_v44 = vld [vmem:[#allocation2 + $0x974] ss:$24 sps:$4 sm:$0xff]  }
0x12f5   :  { %9092 = vmatpush2.bf16.msra.mxu1 %v11946_v60  ;;  %v12030_v60 = vld [vmem:[#allocation2 + $0xbe0] ss:$24 sps:$4 sm:$0xff]  }
0x12f6   :  { %9093 = vmatprep.subr.bf16.mxu1 %v11954_v63  ;;  %v12038_v63 = vld [vmem:[#allocation2 + $0xbb4] ss:$24 sps:$4 sm:$0xff]  }
0x12f7   :  { %9049 = vmatpush1.bf16.msra.mxu0 %v11937_v3  ;;  %v12009_v3 = vld [vmem:[#allocation2 + $0x970] ss:$24 sps:$4 sm:$0xff]  }
0x12f8   :  { %9050 = vmatprep.subr.bf16.mxu0 %v11945_v12  ;;  %v12017_v12 = vld [vmem:[#allocation2 + $0x944] ss:$24 sps:$4 sm:$0xff]  }
0x12f9   :  { %9094 = vmatpush2.bf16.msra.mxu1 %v11952_v13  ;;  %v12036_v13 = vld [vmem:[#allocation2 + $0xbb0] ss:$24 sps:$4 sm:$0xff]  }
0x12fa   :  { %9095 = vmatprep.subr.bf16.mxu1 %v11960_v16  ;;  %v12044_v16 = vld [vmem:[#allocation2 + $0xb84] ss:$24 sps:$4 sm:$0xff]  }
0x12fb   :  { %9051 = vmatpush2.bf16.msra.mxu0 %v11943_v35  ;;  %v12015_v35 = vld [vmem:[#allocation2 + $0x940] ss:$24 sps:$4 sm:$0xff]  }
0x12fc   :  { %9052 = vmatprep.subr.bf16.mxu0 %v11951_v25  ;;  %v12023_v25 = vld [vmem:[#allocation2 + $0x914] ss:$24 sps:$4 sm:$0xff]  }
0x12fd   :  { %9096 = vmatpush2.bf16.msra.mxu1 %v11958_v17  ;;  %v12050_v17 = vld [vmem:[#allocation2 + $0xe54] ss:$24 sps:$4 sm:$0xff]  }
0x12fe   :  { %9097 = vmatprep.subr.bf16.mxu1 %v11966_v7  ;;  %v12021_v7 = vld [vmem:[#allocation2 + $0x910] ss:$24 sps:$4 sm:$0xff]  }
0x12ff   :  { %9053 = vmatpush2.bf16.msra.mxu0 %v11949_v4  ;;  %v12029_v4 = vld [vmem:[#allocation2 + $0x8e4] ss:$24 sps:$4 sm:$0xff]  }
0x1300   :  { %9054 = vmatprep.subr.bf16.mxu0 %v11957_v42  ;;  %v12048_v42 = vld [vmem:[#allocation2 + $0xe50] ss:$24 sps:$4 sm:$0xff]  }
0x1301   :  { %9098 = vmatpush2.bf16.msra.mxu1 %v11964_v30  ;;  %v12056_v30 = vld [vmem:[#allocation2 + $0xe24] ss:$24 sps:$4 sm:$0xff]  }
0x1302   :  { %9099 = vmatprep.subr.bf16.mxu1 %v11972_v56  ;;  %v12027_v56 = vld [vmem:[#allocation2 + $0x8e0] ss:$24 sps:$4 sm:$0xff]  }
0x1303   :  { %9055 = vmatpush2.bf16.msra.mxu0 %v11955_v14  ;;  %v12035_v14 = vld [vmem:[#allocation2 + $0x8b4] ss:$24 sps:$4 sm:$0xff]  }
0x1304   :  { %9056 = vmatprep.subr.bf16.mxu0 %v11963_v21  ;;  %v12054_v21 = vld [vmem:[#allocation2 + $0xe20] ss:$24 sps:$4 sm:$0xff]  }
0x1305   :  { %9100 = vmatpush2.bf16.msra.mxu1 %v11970_v50  ;;  %v12062_v50 = vld [vmem:[#allocation2 + $0xdf4] ss:$24 sps:$4 sm:$0xff]  }
0x1306   :  { %9101 = vmatprep.subr.bf16.mxu1 %v11978_v5  ;;  %v12033_v5 = vld [vmem:[#allocation2 + $0x8b0] ss:$24 sps:$4 sm:$0xff]  }
0x1307   :  { %9057 = vmatpush2.bf16.msra.mxu0 %v11961_v23  ;;  %v12041_v23 = vld [vmem:[#allocation2 + $0x884] ss:$24 sps:$4 sm:$0xff]  }
0x1308   :  { %9058 = vmatprep.subr.bf16.mxu0 %v11969_v27  ;;  %v12060_v27 = vld [vmem:[#allocation2 + $0xdf0] ss:$24 sps:$4 sm:$0xff]  }
0x1309   :  { %9102 = vmatpush2.bf16.msra.mxu1 %v11976_v0  ;;  %v12068_v0 = vld [vmem:[#allocation2 + $0xdc4] ss:$24 sps:$4 sm:$0xff]  }
0x130a   :  { %9103 = vmatprep.subr.bf16.mxu1 %v11984_v2  ;;  %v12039_v2 = vld [vmem:[#allocation2 + $0x880] ss:$24 sps:$4 sm:$0xff]  }
0x130b   :  { %9059 = vmatpush2.bf16.msra.mxu0 %v11967_v8  ;;  %v12047_v8 = vld [vmem:[#allocation2 + $0xb54] ss:$24 sps:$4 sm:$0xff]  }
0x130c   :  { %9060 = vmatprep.subr.bf16.mxu0 %v11975_v52  ;;  %v12066_v52 = vld [vmem:[#allocation2 + $0xdc0] ss:$24 sps:$4 sm:$0xff]  }
0x130d   :  { %9104 = vmatpush2.bf16.msra.mxu1 %v11982_v40  ;;  %v12074_v40 = vld [vmem:[#allocation2 + $0xd94] ss:$24 sps:$4 sm:$0xff]  }
0x130e   :  { %9105 = vmatprep.subr.bf16.mxu1 %v11990_v32  ;;  %v12045_v32 = vld [vmem:[#allocation2 + $0xb50] ss:$24 sps:$4 sm:$0xff]  }
0x130f   :  { %9061 = vmatpush2.bf16.msra.mxu0 %v11973_v6  ;;  %v12053_v6 = vld [vmem:[#allocation2 + $0xb24] ss:$24 sps:$4 sm:$0xff]  }
0x1310   :  { %9062 = vmatprep.subr.bf16.mxu0 %v11981_v33  ;;  %v12072_v33 = vld [vmem:[#allocation2 + $0xd90] ss:$24 sps:$4 sm:$0xff]  }
0x1311   :  { %9106 = vmatpush2.bf16.msra.mxu1 %v11988_v20  ;;  %v12080_v20 = vld [vmem:[#allocation2 + $0xd64] ss:$24 sps:$4 sm:$0xff]  }
0x1312   :  { %9198 = vmatprep.subr.bf16.mxu1 %v12002_v37  ;;  %v12051_v37 = vld [vmem:[#allocation2 + $0xb20] ss:$24 sps:$4 sm:$0xff]  }
0x1313   :  { %9063 = vmatpush2.bf16.msra.mxu0 %v11979_v24  ;;  %v12059_v24 = vld [vmem:[#allocation2 + $0xaf4] ss:$24 sps:$4 sm:$0xff]  }
0x1314   :  { %9064 = vmatprep.subr.bf16.mxu0 %v11987_v61  ;;  %9108 = vmatmul.mubr.bf16.vlgmr.msra.gmra.mxu1 %v13385_v26  ;;  %v12078_v61 = vld [vmem:[#allocation2 + $0xd60] ss:$24 sps:$4 sm:$0xff]  }
0x1315   :  { %9199 = vmatpush1.bf16.msra.mxu1 %v12000_v46  ;;  %9230 = vmatprep.mubr.bf16.mxu1 %v13367_v58  ;;  %v11999_v58 = vld [vmem:[#allocation2 + $0x9d4] ss:$24 sps:$4 sm:$0xff]  }
0x1316   :  { %9200 = vmatprep.subr.bf16.mxu1 %v12008_v38  ;;  %v12086_v46 = vld [vmem:[#allocation2 + $0xd34] ss:$24 sps:$4 sm:$0xff]   ;;  %v12057_v38 = vld [vmem:[#allocation2 + $0xaf0] ss:$24 sps:$4 sm:$0xff]  }
0x1317   :  { %9065 = vmatpush2.bf16.msra.mxu0 %v11985_v34  ;;  %v12065_v34 = vld [vmem:[#allocation2 + $0xac4] ss:$24 sps:$4 sm:$0xff]  }
0x1318   :  { %10425 = vmatprep.subr.msk.bf16.mxu0 %vm2784_vm1, %v11991_v11  ;;  %v12084_v11 = vld [vmem:[#allocation2 + $0xd30] ss:$24 sps:$4 sm:$0xff]  }
0x1319   :  { %9201 = vmatpush1.bf16.msra.mxu1 %v12006_v1  ;;  %v12063_v1 = vld [vmem:[#allocation2 + $0xac0] ss:$24 sps:$4 sm:$0xff]  }
0x131a   :  { %9067 = vmatmul.mubr.bf16.vlgmr.msra.gmra.mxu0 %v13378_v22  ;;  %9202 = vmatprep.subr.bf16.mxu1 %v12014_v43  ;;  %v12071_v43 = vld [vmem:[#allocation2 + $0xa94] ss:$24 sps:$4 sm:$0xff]  }
0x131b   :  { %9129 = vmatpush1.bf16.msra.mxu0 %v8900_v29  ;;  %9148 = vmatprep.mubr.bf16.mxu0 %v12592_v45  ;;  %v12090_v29 = vld [vmem:[#allocation2 + $0xd00] ss:$24 sps:$4 sm:$0xff]  }
0x131c   :  { %9130 = vmatprep.subr.bf16.mxu0 %v11996_v31  ;;  %v12069_v31 = vld [vmem:[#allocation2 + $0xa90] ss:$24 sps:$4 sm:$0xff]  }
0x131d   :  { %9203 = vmatpush1.bf16.msra.mxu1 %v12012_v39  ;;  %v12077_v39 = vld [vmem:[#allocation2 + $0xa64] ss:$24 sps:$4 sm:$0xff]  }
0x131e   :  { %9204 = vmatprep.subr.bf16.mxu1 %v12020_v47  ;;  %v12075_v47 = vld [vmem:[#allocation2 + $0xa60] ss:$24 sps:$4 sm:$0xff]  }
0x131f   :  { %9131 = vmatpush1.bf16.msra.mxu0 %v11994_v48  ;;  %v12083_v48 = vld [vmem:[#allocation2 + $0xa34] ss:$24 sps:$4 sm:$0xff]  }
0x1320   :  { %9157 = vmatprep.subr.bf16.mxu0 %v11999_v58  ;;  %v12081_v58 = vld [vmem:[#allocation2 + $0xa30] ss:$24 sps:$4 sm:$0xff]  }
0x1321   :  { %9205 = vmatpush1.bf16.msra.mxu1 %v12018_v49  ;;  %v12089_v49 = vld [vmem:[#allocation2 + $0xa04] ss:$24 sps:$4 sm:$0xff]  }
0x1322   :  { %10426 = vmatmul.mubr.msk.bf16.vlgmr.msra.gmra.mxu0 %vm2780_vm2, %v13394_v41  ;;  %9206 = vmatprep.subr.bf16.mxu1 %v12026_v10  ;;  %v12087_v10 = vld [vmem:[#allocation2 + $0xa00] ss:$24 sps:$4 sm:$0xff]  }
0x1323   :  { %9158 = vmatpush1.bf16.msra.mxu0 %v11997_v15  ;;  %9189 = vmatprep.mubr.bf16.mxu0 %v13365_v54  ;;  %v12042_v54 = vld [vmem:[#allocation2 + $0xb80] ss:$24 sps:$4 sm:$0xff]   ;;  %v12093_v15 = vld [vmem:[#allocation2 + $0xeb4] ss:$24 sps:$4 sm:$0x3f]  }
0x1324   :  { %9159 = vmatprep.subr.bf16.mxu0 %v12005_v18  ;;  %v12095_v18 = vld [vmem:[#allocation2 + $0xeb0] ss:$24 sps:$4 sm:$0x3f]  }
0x1325   :  { %9207 = vmatpush1.bf16.msra.mxu1 %v12024_v19  ;;  %v8906_v19 = vsel %vm2784_vm1, %v12095_v18, 0 }
0x1326   :  { %9208 = vmatprep.subr.bf16.mxu1 %v12032_v59  ;;  %v12098_v59 = vld [vmem:[#allocation2 + $0xe84] ss:$24 sps:$4 sm:$0xff]  }
0x1327   :  { %9160 = vmatpush1.bf16.msra.mxu0 %v12003_v36  ;;  %v12096_v36 = vld [vmem:[#allocation2 + $0xe80] ss:$24 sps:$4 sm:$0xff]  }
0x1328   :  { %9161 = vmatprep.subr.bf16.mxu0 %v12011_v44 }
0x1329   :  { %9209 = vmatpush1.bf16.msra.mxu1 %v12030_v60 }
0x132a   :  { %9210 = vmatprep.subr.bf16.mxu1 %v12038_v63 }
0x132b   :  { %9162 = vmatpush1.bf16.msra.mxu0 %v12009_v3 }
0x132c   :  { %9163 = vmatprep.subr.bf16.mxu0 %v12017_v12 }
0x132d   :  { %9211 = vmatpush1.bf16.msra.mxu1 %v12036_v13 }
0x132e   :  { %9212 = vmatprep.subr.bf16.mxu1 %v12044_v16 }
0x132f   :  { %9164 = vmatpush1.bf16.msra.mxu0 %v12015_v35 }
0x1330   :  { %9165 = vmatprep.subr.bf16.mxu0 %v12023_v25 }
0x1331   :  { %9213 = vmatpush1.bf16.msra.mxu1 %v12042_v54 }
0x1332   :  { %9214 = vmatprep.subr.bf16.mxu1 %v12050_v17 }
0x1333   :  { %9166 = vmatpush1.bf16.msra.mxu0 %v12021_v7 }
0x1334   :  { %9167 = vmatprep.subr.bf16.mxu0 %v12029_v4 }
0x1335   :  { %9215 = vmatpush2.bf16.msra.mxu1 %v12048_v42 }
0x1336   :  { %9216 = vmatprep.subr.bf16.mxu1 %v12056_v30 }
0x1337   :  { %9168 = vmatpush1.bf16.msra.mxu0 %v12027_v56 }
0x1338   :  { %9169 = vmatprep.subr.bf16.mxu0 %v12035_v14 }
0x1339   :  { %9217 = vmatpush2.bf16.msra.mxu1 %v12054_v21 }
0x133a   :  { %9218 = vmatprep.subr.bf16.mxu1 %v12062_v50 }
0x133b   :  { %9170 = vmatpush1.bf16.msra.mxu0 %v12033_v5 }
0x133c   :  { %9171 = vmatprep.subr.bf16.mxu0 %v12041_v23 }
0x133d   :  { %9219 = vmatpush2.bf16.msra.mxu1 %v12060_v27 }
0x133e   :  { %9220 = vmatprep.subr.bf16.mxu1 %v12068_v0 }
0x133f   :  { %9172 = vmatpush1.bf16.msra.mxu0 %v12039_v2 }
0x1340   :  { %9173 = vmatprep.subr.bf16.mxu0 %v12047_v8 }
0x1341   :  { %9221 = vmatpush2.bf16.msra.mxu1 %v12066_v52 }
0x1342   :  { %9222 = vmatprep.subr.bf16.mxu1 %v12074_v40 }
0x1343   :  { %9174 = vmatpush2.bf16.msra.mxu0 %v12045_v32 }
0x1344   :  { %9175 = vmatprep.subr.bf16.mxu0 %v12053_v6 }
0x1345   :  { %9223 = vmatpush2.bf16.msra.mxu1 %v12072_v33 }
0x1346   :  { %9224 = vmatprep.subr.bf16.mxu1 %v12080_v20 }
0x1347   :  { %9176 = vmatpush2.bf16.msra.mxu0 %v12051_v37 }
0x1348   :  { %9177 = vmatprep.subr.bf16.mxu0 %v12059_v24 }
0x1349   :  { %9225 = vmatpush2.bf16.msra.mxu1 %v12078_v61 }
0x134a   :  { %9226 = vmatprep.subr.bf16.mxu1 %v12086_v46 }
0x134b   :  { %9178 = vmatpush2.bf16.msra.mxu0 %v12057_v38 }
0x134c   :  { %9179 = vmatprep.subr.bf16.mxu0 %v12065_v34 }
0x134d   :  { %9227 = vmatpush2.bf16.msra.mxu1 %v12084_v11 }
0x134e   :  { %9228 = vmatprep.subr.bf16.mxu1 %v12092_v62 }
0x134f   :  { %9180 = vmatpush2.bf16.msra.mxu0 %v12063_v1 }
0x1350   :  { %9181 = vmatprep.subr.bf16.mxu0 %v12071_v43 }
0x1351   :  { %9229 = vmatpush2.bf16.msra.mxu1 %v12090_v29 }
0x1353   :  { %9182 = vmatpush2.bf16.msra.mxu0 %v12069_v31 }
0x1354   :  { %9183 = vmatprep.subr.bf16.mxu0 %v12077_v39  ;;  %9231 = vmatmul.mubr.bf16.vlgmr.msra.gmra.mxu1 %v13385_v26  ;;  %v13415_v26 = vld [vmem:[#allocation7 + $0x27] sm:$0x3f] }
0x1355   :  { %v7849_v44 = vrot.slane %v13415_v26, %v12836_v55  ;;  %v7853_v63 = vrot.slane %v13415_v26, %v12842_v57  ;;  %v9289_v57 = vpop.permute.xlu0 %9288 }
0x1356   :  { %9291 = vst.msk [vmem:[#allocation12] sm:$0xff] %vm4889_vm15, %v9289_v57 }
0x1357   :  { %9184 = vmatpush2.bf16.msra.mxu0 %v12075_v47 }
0x1358   :  { %9185 = vmatprep.subr.bf16.mxu0 %v12083_v48 }
0x135b   :  { %9186 = vmatpush2.bf16.msra.mxu0 %v12081_v58 }
0x135c   :  { %9187 = vmatprep.subr.bf16.mxu0 %v12089_v49 }
0x135f   :  { %9188 = vmatpush2.bf16.msra.mxu0 %v12087_v10 }
0x1360   :  { %10427 = vmatprep.subr.msk.bf16.mxu0 %vm2784_vm1, %v12093_v15 }
0x1362   :  { %9190 = vmatmul.mubr.bf16.vlgmr.msra.gmra.mxu0 %v13378_v22 }
0x1363   :  { %9252 = vmatpush1.bf16.msra.mxu0 %v8906_v19  ;;  %9271 = vmatprep.mubr.bf16.mxu0 %v12592_v45 }
0x1364   :  { %9253 = vmatprep.subr.bf16.mxu0 %v12098_v59 }
0x1367   :  { %9254 = vmatpush1.bf16.msra.mxu0 %v12096_v36 }
0x136a   :  { %10428 = vmatmul.mubr.msk.bf16.vlgmr.msra.gmra.mxu0 %vm2780_vm2, %v13394_v41 }
0x1392   :  { %v8945_v60 = vpop.f32.mrf.mxu0 }
0x1393   :  { %v8946_v12 = vadd.f32 %v8945_v60, %v7849_v44 }
0x1394   :  { %v8947_v3 = vpop.f32.mrf.mxu0  ;;  %v8986_v22 = vpop.f32.mrf.mxu1 }
0x1395   :  { %v8948_v45 = vadd.f32 %v8947_v3, %v7853_v63  ;;  %v8987_v54 = vadd.f32 %v8986_v22, %v8946_v12 }
0x1396   :  { %v8949_v13 = vpop.f32.mrf.mxu0  ;;  %v8988_v16 = vpop.f32.mrf.mxu1 }
0x1397   :  { %v8989_v7 = vadd.f32 %v8988_v16, %v8948_v45 }
0x1398   :  { %v8950_v35 = vpop.f32.mrf.mxu0  ;;  %v8990_v25 = vpop.f32.mrf.mxu1 }
0x139a   :  { %v9027_v17 = vpop.f32.mrf.mxu0  ;;  %v8991_v41 = vpop.f32.mrf.mxu1 }
0x139b   :  { %v9028_v4 = vadd.f32 %v9027_v17, %v8987_v54 }
0x139c   :  { %v9029_v42 = vpop.f32.mrf.mxu0 }
0x139d   :  { %9280 = vst [vmem:[#allocation9] sm:$0xff] %v9028_v4  ;;  %v9030_v55 = vadd.f32 %v9029_v42, %v8989_v7 }
0x139e   :  { %v9031_v30 = vpop.f32.mrf.mxu0 }
0x139f   :  { %9281 = vst [vmem:[#allocation9 + $0x8] sm:$0xff] %v9030_v55 }
0x13a0   :  { %v9032_v56 = vpop.f32.mrf.mxu0 }
0x13a1   :  { %12490 = shalt.err (!%p12487_p13)
}
0x13a2   :  { %9311 = dma.vmem_to_hbm [thread:$0]  %s9309_s30, 128, %s13462_s22, [#allocation11]  }
0x13a3   :  { %s12604_s13 = smov [#allocation12]  }
0x13a4   :  { %s9318_s6 = sshll.u32 %s12604_s13, 4  ;;  %s9319_s6 = int_to_ptr.vmem [resolvable:$true] %s9318_s6 }
0x13a5   :  { %s12499_s15 = scalar_lea.vmem %s9319_s6, 128  ;;  %p12504_p1 = scmp.lt.s32.totalorder %s9319_s6, %s9319_s6 }
0x13a6   :  { %p12500_p0 = scmp.ne.s32.totalorder %s9319_s6, %s12499_s15  ;;  %p12505_p3 = scmp.lt.s32.totalorder %s12499_s15, %s12499_s15 }
0x13a8   :  { %p12506_p4 = por %p12505_p3, %p12504_p1 }
0x13aa   :  { %p12507_p5 = pnand %p12506_p4, %p12500_p0 }
0x13ac   :  { %12510 = shalt.err (!%p12507_p5)
}
0x13ad   :  { %9321 = dma.vmem_to_hbm [thread:$0]  %s9319_s6, 128, %s13463_s23, [#allocation11]   ;;  %v7857_v5 = vrot.slane %v13415_v26, %v12867_v9  ;;  %v7861_v0 = vrot.slane %v13415_v26, %v12872_v28  ;;  %v7868_v28 = vsub.s32 5, %v12832_v53  ;;  %v7865_v1 = vrot.slane %v13415_v26, %v12880_v51 }
0x13ae   :  { %s12605_s22 = smov [#allocation9]  }
0x13af   :  { %v7869_v29 = vrot.slane %v13415_v26, %v7868_v28  ;;  %s9298_s23 = sshll.u32 %s12605_s22, 4  ;;  %s9299_s23 = int_to_ptr.vmem [resolvable:$true] %s9298_s23 }
0x13b0   :  { %s12519_s16 = scalar_lea.vmem %s9299_s23, 768  ;;  %p12524_p6 = scmp.lt.s32.totalorder %s9299_s23, %s9299_s23 }
0x13b1   :  { %p12520_p11 = scmp.ne.s32.totalorder %s9299_s23, %s12519_s16  ;;  %p12525_p7 = scmp.lt.s32.totalorder %s12519_s16, %s12519_s16 }
0x13b3   :  { %p12526_p8 = por %p12525_p7, %p12524_p6 }
0x13b5   :  { %p12527_p2 = pnand %p12526_p8, %p12520_p11 }
0x13d4   :  { %v9109_v14 = vpop.f32.mrf.mxu1 }
0x13d6   :  { %v9111_v21 = vpop.f32.mrf.mxu1 }
0x13d8   :  { %v9113_v50 = vpop.f32.mrf.mxu1 }
0x13da   :  { %v9068_v23 = vpop.f32.mrf.mxu0  ;;  %v9114_v27 = vpop.f32.mrf.mxu1 }
0x13db   :  { %v9069_v8 = vadd.f32 %v9068_v23, %v7857_v5 }
0x13dc   :  { %v9070_v2 = vpop.f32.mrf.mxu0 }
0x13dd   :  { %v9071_v40 = vadd.f32 %v9070_v2, %v7861_v0  ;;  %v9110_v6 = vadd.f32 %v9109_v14, %v9069_v8 }
0x13de   :  { %v9072_v52 = vpop.f32.mrf.mxu0 }
0x13df   :  { %v9112_v20 = vadd.f32 %v9111_v21, %v9071_v40 }
0x13e0   :  { %v9073_v32 = vpop.f32.mrf.mxu0 }
0x13e2   :  { %v9150_v33 = vpop.f32.mrf.mxu0 }
0x13e3   :  { %v9151_v37 = vadd.f32 %v9150_v33, %v9110_v6 }
0x13e4   :  { %v9152_v24 = vpop.f32.mrf.mxu0 }
0x13e5   :  { %9282 = vst [vmem:[#allocation9 + $0x10] sm:$0xff] %v9151_v37  ;;  %v9153_v61 = vadd.f32 %v9152_v24, %v9112_v20 }
0x13e6   :  { %v9154_v46 = vpop.f32.mrf.mxu0 }
0x13e7   :  { %9283 = vst [vmem:[#allocation9 + $0x18] sm:$0xff] %v9153_v61 }
0x13e8   :  { %v9155_v9 = vpop.f32.mrf.mxu0 }
0x1414   :  { %v9232_v38 = vpop.f32.mrf.mxu1 }
0x1416   :  { %v9234_v34 = vpop.f32.mrf.mxu1 }
0x1418   :  { %v9236_v11 = vpop.f32.mrf.mxu1 }
0x141a   :  { %v9237_v62 = vpop.f32.mrf.mxu1 }
0x1422   :  { %v9191_v43 = vpop.f32.mrf.mxu0 }
0x1423   :  { %v9192_v39 = vadd.f32 %v9191_v43, %v7865_v1 }
0x1424   :  { %v9193_v31 = vpop.f32.mrf.mxu0 }
0x1425   :  { %v9194_v48 = vadd.f32 %v9193_v31, %v7869_v29  ;;  %v9233_v49 = vadd.f32 %v9232_v38, %v9192_v39 }
0x1426   :  { %v9195_v47 = vpop.f32.mrf.mxu0 }
0x1427   :  { %v9235_v15 = vadd.f32 %v9234_v34, %v9194_v48 }
0x1428   :  { %v9196_v58 = vpop.f32.mrf.mxu0 }
0x142a   :  { %v9273_v10 = vpop.f32.mrf.mxu0 }
0x142b   :  { %v9274_v18 = vadd.f32 %v9273_v10, %v9233_v49 }
0x142c   :  { %v9275_v19 = vpop.f32.mrf.mxu0 }
0x142d   :  { %9284 = vst [vmem:[#allocation9 + $0x20] sm:$0xff] %v9274_v18  ;;  %v9276_v53 = vadd.f32 %v9275_v19, %v9235_v15 }
0x142e   :  { %v9277_v59 = vpop.f32.mrf.mxu0 }
0x142f   :  { %9285 = vst.msk [vmem:[#allocation9 + $0x28] sm:$0xff] %vm1557_vm0, %v9276_v53 }
0x1430   :  { %v9278_v51 = vpop.f32.mrf.mxu0 }
0x1431   :  { %12530 = shalt.err (!%p12527_p2)
}
0x1432   :  { %9301 = dma.vmem_to_hbm [thread:$0]  %s9299_s23, 768, %s13461_s21, [#allocation6]  }
0x1433   :  { %12579 = dma.done.wait [#allocation6], 768  }
0x1434   :  { %12580 = vsyncadd [#allocation6], 4294966528 }
0x1435   :  { %12581 = dma.done.wait [#allocation11], 256  }
0x1436   :  { %12582 = vsyncadd [#allocation11], 4294967040 }
0x1437   :  { %9331 = vsyncpa [#allocation5], 1 }
0x1438   :  { %9332 = vsyncpa [#allocation8], 1 }
0x1439   :  { %9333 = vsyncpa [#allocation6], 1 }
0x143a   :  { %9334 = vsyncpa [#allocation11], 1 }
0x143b   :  { %9335 = vsyncmov [#allocation3] }
0x143e   :  { %s9336_s12 = vpop.sfrf %9335 }
0x143f   :  { %p10429_p9 = scmp.ne.s32.totalorder %s9336_s12, 0 }
0x1441   :  { %9340 = shalt.err (%p10429_p9)  }
0x1442   :  { %9342 = vsyncmov [#allocation3 + $0x1] }
0x1445   :  { %s9343_s28 = vpop.sfrf %9342 }
0x1446   :  { %p10430_p10 = scmp.ne.s32.totalorder %s9343_s28, 0 }
0x1448   :  { %9347 = shalt.err (%p10430_p10)  }

</bundles_post_ra>
